<compile_context>
chip_gen: v5e
topology: v5e:2x2
jax: 0.10.0
libtpu: 0.0.40
codegen_flags: <defaults>
</compile_context>

<pallas_src>
from functools import partial

import numpy as np
import jax
import jax.numpy as jnp
from jax.experimental import pallas as pl
from jax.experimental.pallas import tpu as pltpu

EPS = 1e-5  # nn.BatchNorm2d default eps


def _round_up(a, b):
    return -(-a // b) * b


@partial(jax.jit, static_argnames=("rows_target",))
def double_conv_pallas(x_nchw, w1, g1, b1, w2, g2, b2, *, rows_target=1024):
    N, Cin, H, W = x_nchw.shape
    Cmid = w1.shape[0]
    Cout = w2.shape[0]

    # ---------------- static geometry ----------------
    Wp = _round_up(W + 2, 8)                       # padded width (sublane aligned)
    # image rows per tile: even (so the 2*Wp halo tiles the flat rows evenly),
    # targeting ~rows_target flat rows per grid step.
    TH = 2 * max(1, min(_round_up(H + 2, 2) // 2, -(-rows_target // (2 * Wp))))
    Hpp = _round_up(H + 2, TH)                     # padded height (multiple of TH, even)
    P = Hpp * Wp                                   # flat rows per image
    T = TH * Wp                                    # flat rows per tile (mult of 16)
    HALO = 2 * Wp                                  # halo rows: >= Wp+1, divides T, mult of 16
    hpb = TH // 2                                  # halo-blocks per tile
    n_tiles = Hpp // TH
    n_hblk = P // HALO
    Cmid_p = _round_up(Cmid, 128)
    Cout_p = _round_up(Cout, 128)
    count = float(N * H * W)
    # ext-buffer row offset of tap (ky, kx) for output row j (ext index = j + offs[k])
    offs = [HALO + (ky - 1) * Wp + (kx - 1) for ky in range(3) for kx in range(3)]

    # ---------------- layout / parameter prep (plain JAX glue) ----------------
    xp = jnp.transpose(x_nchw, (0, 2, 3, 1)).astype(jnp.float32)            # NHWC
    xp = jnp.pad(xp, ((0, 0), (1, Hpp - H - 1), (1, Wp - W - 1), (0, 0)))   # one merged pad
    x_flat = xp.reshape(N, P, Cin)

    # OIHW -> (9*Ci, Co) im2col weights, channel-padded for lane-dense outputs
    w1m = jnp.transpose(w1.astype(jnp.float32), (2, 3, 1, 0)).reshape(9 * Cin, Cmid)
    w1m = jnp.pad(w1m, ((0, 0), (0, Cmid_p - Cmid)))
    w2m = jnp.transpose(w2.astype(jnp.float32), (2, 3, 1, 0))               # (3,3,Cmid,Cout)
    w2m = jnp.pad(w2m, ((0, 0), (0, 0), (0, Cmid_p - Cmid), (0, Cout_p - Cout)))
    w2m = w2m.reshape(9 * Cmid_p, Cout_p)

    g1p = jnp.pad(g1.astype(jnp.float32), (0, Cmid_p - Cmid))
    b1p = jnp.pad(b1.astype(jnp.float32), (0, Cmid_p - Cmid))
    g2p = jnp.pad(g2.astype(jnp.float32), (0, Cout_p - Cout))
    b2p = jnp.pad(b2.astype(jnp.float32), (0, Cout_p - Cout))

    # valid-pixel mask in the padded-flat layout (static, shape (P, 1))
    m_np = np.zeros((Hpp, Wp), np.float32)
    m_np[1:H + 1, 1:W + 1] = 1.0
    mask = jnp.asarray(m_np.reshape(P, 1))

    cparams = pltpu.CompilerParams(
        dimension_semantics=("parallel", "parallel"),
        vmem_limit_bytes=32 * 1024 * 1024)

    # ---------------- index maps ----------------
    def cur_map(n, t):
        return (n, t, 0)

    def lo_map(n, t):                  # HALO rows just below the tile (clamped at 0)
        return (n, jnp.maximum(t * hpb - 1, 0), 0)

    def hi_map(n, t):                  # HALO rows just above the tile (clamped at top)
        return (n, jnp.minimum((t + 1) * hpb, n_hblk - 1), 0)

    def m_cur_map(n, t):
        return (t, 0)

    def m_lo_map(n, t):
        return (jnp.maximum(t * hpb - 1, 0), 0)

    def m_hi_map(n, t):
        return (jnp.minimum((t + 1) * hpb, n_hblk - 1), 0)

    def im2col_matmul(ext, col, w_ref, cwidth):
        # gather the 9 shifted views into one (T, 9*C) buffer, then one MXU matmul
        for k in range(9):
            col[:, k * cwidth:(k + 1) * cwidth] = ext[pl.ds(offs[k], T), :]
        return jnp.dot(col[...], w_ref[...], preferred_element_type=jnp.float32)

    # ---------------- pass 1: conv1 + per-tile channel sum / sumsq ----------------
    def conv1_kernel(xlo_ref, xcur_ref, xhi_ref, m_ref, w_ref,
                     h1_ref, ps_ref, pq_ref, ext, col):
        ext[pl.ds(0, HALO), :] = xlo_ref[...]
        ext[pl.ds(HALO, T), :] = xcur_ref[...]
        ext[pl.ds(HALO + T, HALO), :] = xhi_ref[...]
        h = im2col_matmul(ext, col, w_ref, Cin)
        hm = h * m_ref[...]                      # zero padding-row/col outputs
        h1_ref[...] = hm.astype(h1_ref.dtype)    # bf16 store, lane dense (Cmid_p)
        ps_ref[...] = jnp.sum(hm, axis=0, keepdims=True)        # f32, pre-cast
        pq_ref[...] = jnp.sum(hm * hm, axis=0, keepdims=True)

    h1, ps1, pq1 = pl.pallas_call(
        conv1_kernel,
        out_shape=(jax.ShapeDtypeStruct((N, P, Cmid_p), jnp.bfloat16),
                   jax.ShapeDtypeStruct((N, n_tiles, 1, Cmid_p), jnp.float32),
                   jax.ShapeDtypeStruct((N, n_tiles, 1, Cmid_p), jnp.float32)),
        grid_spec=pltpu.PrefetchScalarGridSpec(
            num_scalar_prefetch=0, grid=(N, n_tiles),
            in_specs=[pl.BlockSpec((None, HALO, Cin), lo_map),
                      pl.BlockSpec((None, T, Cin), cur_map),
                      pl.BlockSpec((None, HALO, Cin), hi_map),
                      pl.BlockSpec((T, 1), m_cur_map),
                      pl.BlockSpec((9 * Cin, Cmid_p), lambda n, t: (0, 0))],
            out_specs=[pl.BlockSpec((None, T, Cmid_p), cur_map),
                       pl.BlockSpec((None, None, 1, Cmid_p), lambda n, t: (n, t, 0, 0)),
                       pl.BlockSpec((None, None, 1, Cmid_p), lambda n, t: (n, t, 0, 0))],
            scratch_shapes=[pltpu.VMEM((T + 2 * HALO, Cin), jnp.float32),
                            pltpu.VMEM((T, 9 * Cin), jnp.float32)]),
        compiler_params=cparams,
    )(x_flat, x_flat, x_flat, mask, w1m)

    def bn_affine(ps, pq, gamma_p, beta_p):
        s = jnp.sum(ps, axis=(0, 1))                 # (1, Cp) total over batch & tiles
        q = jnp.sum(pq, axis=(0, 1))
        mean = s / count
        var = jnp.maximum(q / count - mean * mean, 0.0)   # biased batch var (training)
        inv = jax.lax.rsqrt(var + EPS)
        scale = gamma_p[None, :] * inv
        shift = beta_p[None, :] - mean * scale
        return scale, shift

    sc1, sh1 = bn_affine(ps1, pq1, g1p, b1p)

    # ---------------- pass 2: BN1+ReLU -> conv2 + per-tile sum / sumsq ----------------
    def conv2_kernel(hlo_ref, hcur_ref, hhi_ref, mlo_ref, mcur_ref, mhi_ref,
                     sc_ref, sh_ref, w_ref, h2_ref, ps_ref, pq_ref, ext, col):
        def act(v_ref, m_ref):
            v = v_ref[...].astype(jnp.float32)
            return jnp.maximum(v * sc_ref[...] + sh_ref[...], 0.0) * m_ref[...]

        ext[pl.ds(0, HALO), :] = act(hlo_ref, mlo_ref)
        ext[pl.ds(HALO, T), :] = act(hcur_ref, mcur_ref)
        ext[pl.ds(HALO + T, HALO), :] = act(hhi_ref, mhi_ref)
        h = im2col_matmul(ext, col, w_ref, Cmid_p)
        hm = h * mcur_ref[...]
        h2_ref[...] = hm.astype(h2_ref.dtype)
        ps_ref[...] = jnp.sum(hm, axis=0, keepdims=True)
        pq_ref[...] = jnp.sum(hm * hm, axis=0, keepdims=True)

    h2, ps2, pq2 = pl.pallas_call(
        conv2_kernel,
        out_shape=(jax.ShapeDtypeStruct((N, P, Cout_p), jnp.bfloat16),
                   jax.ShapeDtypeStruct((N, n_tiles, 1, Cout_p), jnp.float32),
                   jax.ShapeDtypeStruct((N, n_tiles, 1, Cout_p), jnp.float32)),
        grid_spec=pltpu.PrefetchScalarGridSpec(
            num_scalar_prefetch=0, grid=(N, n_tiles),
            in_specs=[pl.BlockSpec((None, HALO, Cmid_p), lo_map),
                      pl.BlockSpec((None, T, Cmid_p), cur_map),
                      pl.BlockSpec((None, HALO, Cmid_p), hi_map),
                      pl.BlockSpec((HALO, 1), m_lo_map),
                      pl.BlockSpec((T, 1), m_cur_map),
                      pl.BlockSpec((HALO, 1), m_hi_map),
                      pl.BlockSpec((1, Cmid_p), lambda n, t: (0, 0)),
                      pl.BlockSpec((1, Cmid_p), lambda n, t: (0, 0)),
                      pl.BlockSpec((9 * Cmid_p, Cout_p), lambda n, t: (0, 0))],
            out_specs=[pl.BlockSpec((None, T, Cout_p), cur_map),
                       pl.BlockSpec((None, None, 1, Cout_p), lambda n, t: (n, t, 0, 0)),
                       pl.BlockSpec((None, None, 1, Cout_p), lambda n, t: (n, t, 0, 0))],
            scratch_shapes=[pltpu.VMEM((T + 2 * HALO, Cmid_p), jnp.float32),
                            pltpu.VMEM((T, 9 * Cmid_p), jnp.float32)]),
        compiler_params=cparams,
    )(h1, h1, h1, mask, mask, mask, sc1, sh1, w2m)

    sc2, sh2 = bn_affine(ps2, pq2, g2p, b2p)

    # ---------------- BN2 + ReLU fused by XLA with crop + transpose ----------------
    h2v = h2.reshape(N, Hpp, Wp, Cout_p)[:, 1:H + 1, 1:W + 1, :Cout].astype(jnp.float32)
    y = jnp.maximum(h2v * sc2[0, :Cout] + sh2[0, :Cout], 0.0)
    return jnp.transpose(y, (0, 3, 1, 2))


def double_conv_ref(x, w1, g1, b1, w2, g2, b2):
    """Pure-JAX reference matching PyTorch training-mode forward (full f32)."""
    hp = jax.lax.Precision.HIGHEST

    def conv(x, w):
        return jax.lax.conv_general_dilated(
            x, w, window_strides=(1, 1), padding="SAME",
            dimension_numbers=("NCHW", "OIHW", "NCHW"), precision=hp)

    def bn_relu(y, g, b):
        mean = jnp.mean(y, axis=(0, 2, 3), keepdims=True)
        var = jnp.mean((y - mean) ** 2, axis=(0, 2, 3), keepdims=True)
        yn = (y - mean) * jax.lax.rsqrt(var + EPS)
        yn = yn * g.reshape(1, -1, 1, 1) + b.reshape(1, -1, 1, 1)
        return jnp.maximum(yn, 0.0)

    return bn_relu(conv(bn_relu(conv(x, w1), g1, b1), w2), g2, b2)


if __name__ == "__main__":
    key = jax.random.PRNGKey(0)
    ks = jax.random.split(key, 7)
    N, Cin, H, W = 2, 4, 16, 16
    Cmid = Cout = 8  # mid_channels defaults to out_channels

    x = jax.random.normal(ks[0], (N, Cin, H, W), jnp.float32)
    w1 = 0.3 * jax.random.normal(ks[1], (Cmid, Cin, 3, 3), jnp.float32)
    g1 = 1.0 + 0.1 * jax.random.normal(ks[2], (Cmid,), jnp.float32)
    b1 = 0.1 * jax.random.normal(ks[3], (Cmid,), jnp.float32)
    w2 = 0.3 * jax.random.normal(ks[4], (Cout, Cmid, 3, 3), jnp.float32)
    g2 = 1.0 + 0.1 * jax.random.normal(ks[5], (Cout,), jnp.float32)
    b2 = 0.1 * jax.random.normal(ks[6], (Cout,), jnp.float32)

    ref = double_conv_ref(x, w1, g1, b1, w2, g2, b2)

    # default path: whole image in one tile per grid step
    out = jax.block_until_ready(double_conv_pallas(x, w1, g1, b1, w2, g2, b2))
    assert out.shape == ref.shape == (N, Cout, H, W)
    # tolerance reflects default MXU matmul precision + bf16 inter-pass intermediates
    # (both intentional, per perf review); accumulation and BN stats stay f32.
    np.testing.assert_allclose(np.asarray(out), np.asarray(ref), rtol=2e-2, atol=2e-2)

    # row-tiled path: force 5 tiles of 4 image rows to exercise the halo logic
    out_t = jax.block_until_ready(
        double_conv_pallas(x, w1, g1, b1, w2, g2, b2, rows_target=64))
    np.testing.assert_allclose(np.asarray(out_t), np.asarray(ref), rtol=2e-2, atol=2e-2)

    print("KERNEL_OK")
</pallas_src>

<mosaic_0001>
module attributes {stable_mosaic.version = 11 : i64} {
  func.func @conv1_kernel(%arg0: i32, %arg1: i32, %arg2: memref<1x48x4xf32, #tpu.memory_space<vmem>>, %arg3: memref<1x432x4xf32, #tpu.memory_space<vmem>>, %arg4: memref<1x48x4xf32, #tpu.memory_space<vmem>>, %arg5: memref<432x1xf32, #tpu.memory_space<vmem>>, %arg6: memref<36x128xf32, #tpu.memory_space<vmem>>, %arg7: memref<1x432x128xbf16, #tpu.memory_space<vmem>>, %arg8: memref<1x1x1x128xf32, #tpu.memory_space<vmem>>, %arg9: memref<1x1x1x128xf32, #tpu.memory_space<vmem>>, %arg10: memref<528x4xf32, #tpu.memory_space<vmem>>, %arg11: memref<432x36xf32, #tpu.memory_space<vmem>>) attributes {dimension_semantics = [#tpu.dimension_semantics<parallel>, #tpu.dimension_semantics<parallel>], iteration_bounds = array<i64: 2, 1>, scalar_prefetch = 0 : i64, scratch_operands = 2 : i64, tpu.core_type = #tpu.core_type<tc>, window_params = [{transform_indices = @transform_0, window_bounds = array<i64: 1, 48, 4>}, {transform_indices = @transform_1, window_bounds = array<i64: 1, 432, 4>}, {transform_indices = @transform_2, window_bounds = array<i64: 1, 48, 4>}, {transform_indices = @transform_3, window_bounds = array<i64: 432, 1>}, {pipeline_mode = #tpu.pipeline_mode<synchronous>, transform_indices = @transform_4, window_bounds = array<i64: 36, 128>}, {transform_indices = @transform_5, window_bounds = array<i64: 1, 432, 128>}, {transform_indices = @transform_6, window_bounds = array<i64: 1, 1, 1, 128>}, {transform_indices = @transform_7, window_bounds = array<i64: 1, 1, 1, 128>}]} {
    %c0 = arith.constant 0 : index
    %c0_0 = arith.constant 0 : index
    %c0_1 = arith.constant 0 : index
    %0 = vector.load %arg2[%c0, %c0_0, %c0_1] : memref<1x48x4xf32, #tpu.memory_space<vmem>>, vector<1x48x4xf32>
    %1 = vector.shape_cast %0 : vector<1x48x4xf32> to vector<48x4xf32>
    %c0_2 = arith.constant 0 : index
    %c0_3 = arith.constant 0 : index
    %2 = vector.load %arg10[%c0_2, %c0_3] : memref<528x4xf32, #tpu.memory_space<vmem>>, vector<48x4xf32>
    tpu.vector_store %arg10[%c0_2, %c0_3], %1 {strides = array<i32>} : memref<528x4xf32, #tpu.memory_space<vmem>>, vector<48x4xf32>,
    %c0_4 = arith.constant 0 : index
    %c0_5 = arith.constant 0 : index
    %c0_6 = arith.constant 0 : index
    %3 = vector.load %arg3[%c0_4, %c0_5, %c0_6] : memref<1x432x4xf32, #tpu.memory_space<vmem>>, vector<1x432x4xf32>
    %4 = vector.shape_cast %3 : vector<1x432x4xf32> to vector<432x4xf32>
    %c48 = arith.constant 48 : index
    %c0_7 = arith.constant 0 : index
    %5 = vector.load %arg10[%c48, %c0_7] : memref<528x4xf32, #tpu.memory_space<vmem>>, vector<432x4xf32>
    tpu.vector_store %arg10[%c48, %c0_7], %4 {strides = array<i32>} : memref<528x4xf32, #tpu.memory_space<vmem>>, vector<432x4xf32>,
    %c0_8 = arith.constant 0 : index
    %c0_9 = arith.constant 0 : index
    %c0_10 = arith.constant 0 : index
    %6 = vector.load %arg4[%c0_8, %c0_9, %c0_10] : memref<1x48x4xf32, #tpu.memory_space<vmem>>, vector<1x48x4xf32>
    %7 = vector.shape_cast %6 : vector<1x48x4xf32> to vector<48x4xf32>
    %c480 = arith.constant 480 : index
    %c0_11 = arith.constant 0 : index
    %8 = vector.load %arg10[%c480, %c0_11] : memref<528x4xf32, #tpu.memory_space<vmem>>, vector<48x4xf32>
    tpu.vector_store %arg10[%c480, %c0_11], %7 {strides = array<i32>} : memref<528x4xf32, #tpu.memory_space<vmem>>, vector<48x4xf32>,
    %c23 = arith.constant 23 : index
    %c0_12 = arith.constant 0 : index
    %9 = vector.load %arg10[%c23, %c0_12] : memref<528x4xf32, #tpu.memory_space<vmem>>, vector<432x4xf32>
    %c0_13 = arith.constant 0 : index
    %c0_14 = arith.constant 0 : index
    %10 = vector.load %arg11[%c0_13, %c0_14] : memref<432x36xf32, #tpu.memory_space<vmem>>, vector<432x4xf32>
    tpu.vector_store %arg11[%c0_13, %c0_14], %9 {strides = array<i32>} : memref<432x36xf32, #tpu.memory_space<vmem>>, vector<432x4xf32>,
    %c24 = arith.constant 24 : index
    %c0_15 = arith.constant 0 : index
    %11 = vector.load %arg10[%c24, %c0_15] : memref<528x4xf32, #tpu.memory_space<vmem>>, vector<432x4xf32>
    %c0_16 = arith.constant 0 : index
    %c4 = arith.constant 4 : index
    %12 = vector.load %arg11[%c0_16, %c4] : memref<432x36xf32, #tpu.memory_space<vmem>>, vector<432x4xf32>
    tpu.vector_store %arg11[%c0_16, %c4], %11 {strides = array<i32>} : memref<432x36xf32, #tpu.memory_space<vmem>>, vector<432x4xf32>,
    %c25 = arith.constant 25 : index
    %c0_17 = arith.constant 0 : index
    %13 = vector.load %arg10[%c25, %c0_17] : memref<528x4xf32, #tpu.memory_space<vmem>>, vector<432x4xf32>
    %c0_18 = arith.constant 0 : index
    %c8 = arith.constant 8 : index
    %14 = vector.load %arg11[%c0_18, %c8] : memref<432x36xf32, #tpu.memory_space<vmem>>, vector<432x4xf32>
    tpu.vector_store %arg11[%c0_18, %c8], %13 {strides = array<i32>} : memref<432x36xf32, #tpu.memory_space<vmem>>, vector<432x4xf32>,
    %c47 = arith.constant 47 : index
    %c0_19 = arith.constant 0 : index
    %15 = vector.load %arg10[%c47, %c0_19] : memref<528x4xf32, #tpu.memory_space<vmem>>, vector<432x4xf32>
    %c0_20 = arith.constant 0 : index
    %c12 = arith.constant 12 : index
    %16 = vector.load %arg11[%c0_20, %c12] : memref<432x36xf32, #tpu.memory_space<vmem>>, vector<432x4xf32>
    tpu.vector_store %arg11[%c0_20, %c12], %15 {strides = array<i32>} : memref<432x36xf32, #tpu.memory_space<vmem>>, vector<432x4xf32>,
    %c48_21 = arith.constant 48 : index
    %c0_22 = arith.constant 0 : index
    %17 = vector.load %arg10[%c48_21, %c0_22] : memref<528x4xf32, #tpu.memory_space<vmem>>, vector<432x4xf32>
    %c0_23 = arith.constant 0 : index
    %c16 = arith.constant 16 : index
    %18 = vector.load %arg11[%c0_23, %c16] : memref<432x36xf32, #tpu.memory_space<vmem>>, vector<432x4xf32>
    tpu.vector_store %arg11[%c0_23, %c16], %17 {strides = array<i32>} : memref<432x36xf32, #tpu.memory_space<vmem>>, vector<432x4xf32>,
    %c49 = arith.constant 49 : index
    %c0_24 = arith.constant 0 : index
    %19 = vector.load %arg10[%c49, %c0_24] : memref<528x4xf32, #tpu.memory_space<vmem>>, vector<432x4xf32>
    %c0_25 = arith.constant 0 : index
    %c20 = arith.constant 20 : index
    %20 = vector.load %arg11[%c0_25, %c20] : memref<432x36xf32, #tpu.memory_space<vmem>>, vector<432x4xf32>
    tpu.vector_store %arg11[%c0_25, %c20], %19 {strides = array<i32>} : memref<432x36xf32, #tpu.memory_space<vmem>>, vector<432x4xf32>,
    %c71 = arith.constant 71 : index
    %c0_26 = arith.constant 0 : index
    %21 = vector.load %arg10[%c71, %c0_26] : memref<528x4xf32, #tpu.memory_space<vmem>>, vector<432x4xf32>
    %c0_27 = arith.constant 0 : index
    %c24_28 = arith.constant 24 : index
    %22 = vector.load %arg11[%c0_27, %c24_28] : memref<432x36xf32, #tpu.memory_space<vmem>>, vector<432x4xf32>
    tpu.vector_store %arg11[%c0_27, %c24_28], %21 {strides = array<i32>} : memref<432x36xf32, #tpu.memory_space<vmem>>, vector<432x4xf32>,
    %c72 = arith.constant 72 : index
    %c0_29 = arith.constant 0 : index
    %23 = vector.load %arg10[%c72, %c0_29] : memref<528x4xf32, #tpu.memory_space<vmem>>, vector<432x4xf32>
    %c0_30 = arith.constant 0 : index
    %c28 = arith.constant 28 : index
    %24 = vector.load %arg11[%c0_30, %c28] : memref<432x36xf32, #tpu.memory_space<vmem>>, vector<432x4xf32>
    tpu.vector_store %arg11[%c0_30, %c28], %23 {strides = array<i32>} : memref<432x36xf32, #tpu.memory_space<vmem>>, vector<432x4xf32>,
    %c73 = arith.constant 73 : index
    %c0_31 = arith.constant 0 : index
    %25 = vector.load %arg10[%c73, %c0_31] : memref<528x4xf32, #tpu.memory_space<vmem>>, vector<432x4xf32>
    %c0_32 = arith.constant 0 : index
    %c32 = arith.constant 32 : index
    %26 = vector.load %arg11[%c0_32, %c32] : memref<432x36xf32, #tpu.memory_space<vmem>>, vector<432x4xf32>
    tpu.vector_store %arg11[%c0_32, %c32], %25 {strides = array<i32>} : memref<432x36xf32, #tpu.memory_space<vmem>>, vector<432x4xf32>,
    %c0_33 = arith.constant 0 : index
    %c0_34 = arith.constant 0 : index
    %27 = vector.load %arg11[%c0_33, %c0_34] : memref<432x36xf32, #tpu.memory_space<vmem>>, vector<432x36xf32>
    %c0_35 = arith.constant 0 : index
    %c0_36 = arith.constant 0 : index
    %28 = vector.load %arg6[%c0_35, %c0_36] : memref<36x128xf32, #tpu.memory_space<vmem>>, vector<36x128xf32>
    %cst = arith.constant dense<0.000000e+00> : vector<432x128xf32>
    %29 = tpu.matmul %27, %28, %cst {dimension_numbers = #tpu.dot_dimension_numbers<[1], [0], [0], [1], [0, 0, 1, 1], [], []>} : vector<432x36xf32>, vector<36x128xf32>, vector<432x128xf32> -> vector<432x128xf32>
    %c0_37 = arith.constant 0 : index
    %c0_38 = arith.constant 0 : index
    %30 = vector.load %arg5[%c0_37, %c0_38] : memref<432x1xf32, #tpu.memory_space<vmem>>, vector<432x1xf32>
    %31 = vector.broadcast %30 : vector<432x1xf32> to vector<432x128xf32>
    %32 = arith.mulf %29, %31 : vector<432x128xf32>
    %33 = arith.truncf %32 : vector<432x128xf32> to vector<432x128xbf16>
    %c0_39 = arith.constant 0 : index
    %c0_40 = arith.constant 0 : index
    %c0_41 = arith.constant 0 : index
    %34 = vector.load %arg7[%c0_39, %c0_40, %c0_41] : memref<1x432x128xbf16, #tpu.memory_space<vmem>>, vector<1x432x128xbf16>
    %35 = vector.shape_cast %34 : vector<1x432x128xbf16> to vector<432x128xbf16>
    %36 = vector.shape_cast %33 : vector<432x128xbf16> to vector<1x432x128xbf16>
    tpu.vector_store %arg7[%c0_39, %c0_40, %c0_41], %36 {strides = array<i32>} : memref<1x432x128xbf16, #tpu.memory_space<vmem>>, vector<1x432x128xbf16>,
    %cst_42 = arith.constant dense<0.000000e+00> : vector<128xf32>
    %37 = vector.multi_reduction <add>, %32, %cst_42 [0] : vector<432x128xf32> to vector<128xf32>
    %38 = vector.shape_cast %37 : vector<128xf32> to vector<1x128xf32>
    %c0_43 = arith.constant 0 : index
    %c0_44 = arith.constant 0 : index
    %c0_45 = arith.constant 0 : index
    %c0_46 = arith.constant 0 : index
    %39 = vector.load %arg8[%c0_43, %c0_44, %c0_45, %c0_46] : memref<1x1x1x128xf32, #tpu.memory_space<vmem>>, vector<1x1x1x128xf32>
    %40 = vector.shape_cast %39 : vector<1x1x1x128xf32> to vector<1x128xf32>
    %41 = vector.shape_cast %38 : vector<1x128xf32> to vector<1x1x1x128xf32>
    tpu.vector_store %arg8[%c0_43, %c0_44, %c0_45, %c0_46], %41 {strides = array<i32>} : memref<1x1x1x128xf32, #tpu.memory_space<vmem>>, vector<1x1x1x128xf32>,
    %42 = arith.mulf %32, %32 : vector<432x128xf32>
    %cst_47 = arith.constant dense<0.000000e+00> : vector<128xf32>
    %43 = vector.multi_reduction <add>, %42, %cst_47 [0] : vector<432x128xf32> to vector<128xf32>
    %44 = vector.shape_cast %43 : vector<128xf32> to vector<1x128xf32>
    %c0_48 = arith.constant 0 : index
    %c0_49 = arith.constant 0 : index
    %c0_50 = arith.constant 0 : index
    %c0_51 = arith.constant 0 : index
    %45 = vector.load %arg9[%c0_48, %c0_49, %c0_50, %c0_51] : memref<1x1x1x128xf32, #tpu.memory_space<vmem>>, vector<1x1x1x128xf32>
    %46 = vector.shape_cast %45 : vector<1x1x1x128xf32> to vector<1x128xf32>
    %47 = vector.shape_cast %44 : vector<1x128xf32> to vector<1x1x1x128xf32>
    tpu.vector_store %arg9[%c0_48, %c0_49, %c0_50, %c0_51], %47 {strides = array<i32>} : memref<1x1x1x128xf32, #tpu.memory_space<vmem>>, vector<1x1x1x128xf32>,
    return
  }
  func.func @transform_0(%arg0: i32, %arg1: i32) -> (i32, i32, i32) {
    %c9_i32 = arith.constant 9 : i32
    %0 = arith.muli %arg1, %c9_i32 : i32
    %c1_i32 = arith.constant 1 : i32
    %1 = arith.subi %0, %c1_i32 : i32
    %c0_i32 = arith.constant 0 : i32
    %2 = arith.maxsi %1, %c0_i32 : i32
    %c0_i32_0 = arith.constant 0 : i32
    %c0_i32_1 = arith.constant 0 : i32
    return %arg0, %2, %c0_i32_0 : i32, i32, i32
  }
  func.func @transform_1(%arg0: i32, %arg1: i32) -> (i32, i32, i32) {
    %c0_i32 = arith.constant 0 : i32
    %c0_i32_0 = arith.constant 0 : i32
    return %arg0, %arg1, %c0_i32 : i32, i32, i32
  }
  func.func @transform_2(%arg0: i32, %arg1: i32) -> (i32, i32, i32) {
    %c1_i32 = arith.constant 1 : i32
    %0 = arith.addi %arg1, %c1_i32 : i32
    %c9_i32 = arith.constant 9 : i32
    %1 = arith.muli %0, %c9_i32 : i32
    %c8_i32 = arith.constant 8 : i32
    %2 = arith.minsi %1, %c8_i32 : i32
    %c0_i32 = arith.constant 0 : i32
    %c0_i32_0 = arith.constant 0 : i32
    return %arg0, %2, %c0_i32 : i32, i32, i32
  }
  func.func @transform_3(%arg0: i32, %arg1: i32) -> (i32, i32) {
    %c0_i32 = arith.constant 0 : i32
    %c0_i32_0 = arith.constant 0 : i32
    return %arg1, %c0_i32 : i32, i32
  }
  func.func @transform_4(%arg0: i32, %arg1: i32) -> (i32, i32) {
    %c0_i32 = arith.constant 0 : i32
    %c0_i32_0 = arith.constant 0 : i32
    %c0_i32_1 = arith.constant 0 : i32
    return %c0_i32, %c0_i32_0 : i32, i32
  }
  func.func @transform_5(%arg0: i32, %arg1: i32) -> (i32, i32, i32) {
    %c0_i32 = arith.constant 0 : i32
    %c0_i32_0 = arith.constant 0 : i32
    return %arg0, %arg1, %c0_i32 : i32, i32, i32
  }
  func.func @transform_6(%arg0: i32, %arg1: i32) -> (i32, i32, i32, i32) {
    %c0_i32 = arith.constant 0 : i32
    %c0_i32_0 = arith.constant 0 : i32
    %c0_i32_1 = arith.constant 0 : i32
    return %arg0, %arg1, %c0_i32, %c0_i32_0 : i32, i32, i32, i32
  }
  func.func @transform_7(%arg0: i32, %arg1: i32) -> (i32, i32, i32, i32) {
    %c0_i32 = arith.constant 0 : i32
    %c0_i32_0 = arith.constant 0 : i32
    %c0_i32_1 = arith.constant 0 : i32
    return %arg0, %arg1, %c0_i32, %c0_i32_0 : i32, i32, i32, i32
  }
}

module attributes {stable_mosaic.version = 11 : i64} {
  func.func @conv2_kernel(%arg0: i32, %arg1: i32, %arg2: memref<1x48x128xbf16, #tpu.memory_space<vmem>>, %arg3: memref<1x432x128xbf16, #tpu.memory_space<vmem>>, %arg4: memref<1x48x128xbf16, #tpu.memory_space<vmem>>, %arg5: memref<48x1xf32, #tpu.memory_space<vmem>>, %arg6: memref<432x1xf32, #tpu.memory_space<vmem>>, %arg7: memref<48x1xf32, #tpu.memory_space<vmem>>, %arg8: memref<1x128xf32, #tpu.memory_space<vmem>>, %arg9: memref<1x128xf32, #tpu.memory_space<vmem>>, %arg10: memref<1152x128xf32, #tpu.memory_space<vmem>>, %arg11: memref<1x432x128xbf16, #tpu.memory_space<vmem>>, %arg12: memref<1x1x1x128xf32, #tpu.memory_space<vmem>>, %arg13: memref<1x1x1x128xf32, #tpu.memory_space<vmem>>, %arg14: memref<528x128xf32, #tpu.memory_space<vmem>>, %arg15: memref<432x1152xf32, #tpu.memory_space<vmem>>) attributes {dimension_semantics = [#tpu.dimension_semantics<parallel>, #tpu.dimension_semantics<parallel>], iteration_bounds = array<i64: 2, 1>, scalar_prefetch = 0 : i64, scratch_operands = 2 : i64, tpu.core_type = #tpu.core_type<tc>, window_params = [{transform_indices = @transform_0, window_bounds = array<i64: 1, 48, 128>}, {transform_indices = @transform_1, window_bounds = array<i64: 1, 432, 128>}, {transform_indices = @transform_2, window_bounds = array<i64: 1, 48, 128>}, {transform_indices = @transform_3, window_bounds = array<i64: 48, 1>}, {transform_indices = @transform_4, window_bounds = array<i64: 432, 1>}, {transform_indices = @transform_5, window_bounds = array<i64: 48, 1>}, {pipeline_mode = #tpu.pipeline_mode<synchronous>, transform_indices = @transform_6, window_bounds = array<i64: 1, 128>}, {pipeline_mode = #tpu.pipeline_mode<synchronous>, transform_indices = @transform_7, window_bounds = array<i64: 1, 128>}, {pipeline_mode = #tpu.pipeline_mode<synchronous>, transform_indices = @transform_8, window_bounds = array<i64: 1152, 128>}, {transform_indices = @transform_9, window_bounds = array<i64: 1, 432, 128>}, {transform_indices = @transform_10, window_bounds = array<i64: 1, 1, 1, 128>}, {transform_indices = @transform_11, window_bounds = array<i64: 1, 1, 1, 128>}]} {
    %c0 = arith.constant 0 : index
    %c0_0 = arith.constant 0 : index
    %c0_1 = arith.constant 0 : index
    %0 = vector.load %arg2[%c0, %c0_0, %c0_1] : memref<1x48x128xbf16, #tpu.memory_space<vmem>>, vector<1x48x128xbf16>
    %1 = vector.shape_cast %0 : vector<1x48x128xbf16> to vector<48x128xbf16>
    %2 = arith.extf %1 : vector<48x128xbf16> to vector<48x128xf32>
    %c0_2 = arith.constant 0 : index
    %c0_3 = arith.constant 0 : index
    %3 = vector.load %arg8[%c0_2, %c0_3] : memref<1x128xf32, #tpu.memory_space<vmem>>, vector<1x128xf32>
    %4 = vector.broadcast %3 : vector<1x128xf32> to vector<48x128xf32>
    %5 = arith.mulf %2, %4 : vector<48x128xf32>
    %c0_4 = arith.constant 0 : index
    %c0_5 = arith.constant 0 : index
    %6 = vector.load %arg9[%c0_4, %c0_5] : memref<1x128xf32, #tpu.memory_space<vmem>>, vector<1x128xf32>
    %7 = vector.broadcast %6 : vector<1x128xf32> to vector<48x128xf32>
    %8 = arith.addf %5, %7 : vector<48x128xf32>
    %cst = arith.constant 0.000000e+00 : f32
    %9 = vector.broadcast %cst : f32 to vector<48x128xf32>
    %10 = arith.maximumf %8, %9 : vector<48x128xf32>
    %c0_6 = arith.constant 0 : index
    %c0_7 = arith.constant 0 : index
    %11 = vector.load %arg5[%c0_6, %c0_7] : memref<48x1xf32, #tpu.memory_space<vmem>>, vector<48x1xf32>
    %12 = vector.broadcast %11 : vector<48x1xf32> to vector<48x128xf32>
    %13 = arith.mulf %10, %12 : vector<48x128xf32>
    %c0_8 = arith.constant 0 : index
    %c0_9 = arith.constant 0 : index
    %14 = vector.load %arg14[%c0_8, %c0_9] : memref<528x128xf32, #tpu.memory_space<vmem>>, vector<48x128xf32>
    tpu.vector_store %arg14[%c0_8, %c0_9], %13 {strides = array<i32>} : memref<528x128xf32, #tpu.memory_space<vmem>>, vector<48x128xf32>,
    %c0_10 = arith.constant 0 : index
    %c0_11 = arith.constant 0 : index
    %c0_12 = arith.constant 0 : index
    %15 = vector.load %arg3[%c0_10, %c0_11, %c0_12] : memref<1x432x128xbf16, #tpu.memory_space<vmem>>, vector<1x432x128xbf16>
    %16 = vector.shape_cast %15 : vector<1x432x128xbf16> to vector<432x128xbf16>
    %17 = arith.extf %16 : vector<432x128xbf16> to vector<432x128xf32>
    %c0_13 = arith.constant 0 : index
    %c0_14 = arith.constant 0 : index
    %18 = vector.load %arg8[%c0_13, %c0_14] : memref<1x128xf32, #tpu.memory_space<vmem>>, vector<1x128xf32>
    %19 = vector.broadcast %18 : vector<1x128xf32> to vector<432x128xf32>
    %20 = arith.mulf %17, %19 : vector<432x128xf32>
    %c0_15 = arith.constant 0 : index
    %c0_16 = arith.constant 0 : index
    %21 = vector.load %arg9[%c0_15, %c0_16] : memref<1x128xf32, #tpu.memory_space<vmem>>, vector<1x128xf32>
    %22 = vector.broadcast %21 : vector<1x128xf32> to vector<432x128xf32>
    %23 = arith.addf %20, %22 : vector<432x128xf32>
    %cst_17 = arith.constant 0.000000e+00 : f32
    %24 = vector.broadcast %cst_17 : f32 to vector<432x128xf32>
    %25 = arith.maximumf %23, %24 : vector<432x128xf32>
    %c0_18 = arith.constant 0 : index
    %c0_19 = arith.constant 0 : index
    %26 = vector.load %arg6[%c0_18, %c0_19] : memref<432x1xf32, #tpu.memory_space<vmem>>, vector<432x1xf32>
    %27 = vector.broadcast %26 : vector<432x1xf32> to vector<432x128xf32>
    %28 = arith.mulf %25, %27 : vector<432x128xf32>
    %c48 = arith.constant 48 : index
    %c0_20 = arith.constant 0 : index
    %29 = vector.load %arg14[%c48, %c0_20] : memref<528x128xf32, #tpu.memory_space<vmem>>, vector<432x128xf32>
    tpu.vector_store %arg14[%c48, %c0_20], %28 {strides = array<i32>} : memref<528x128xf32, #tpu.memory_space<vmem>>, vector<432x128xf32>,
    %c0_21 = arith.constant 0 : index
    %c0_22 = arith.constant 0 : index
    %c0_23 = arith.constant 0 : index
    %30 = vector.load %arg4[%c0_21, %c0_22, %c0_23] : memref<1x48x128xbf16, #tpu.memory_space<vmem>>, vector<1x48x128xbf16>
    %31 = vector.shape_cast %30 : vector<1x48x128xbf16> to vector<48x128xbf16>
    %32 = arith.extf %31 : vector<48x128xbf16> to vector<48x128xf32>
    %c0_24 = arith.constant 0 : index
    %c0_25 = arith.constant 0 : index
    %33 = vector.load %arg8[%c0_24, %c0_25] : memref<1x128xf32, #tpu.memory_space<vmem>>, vector<1x128xf32>
    %34 = vector.broadcast %33 : vector<1x128xf32> to vector<48x128xf32>
    %35 = arith.mulf %32, %34 : vector<48x128xf32>
    %c0_26 = arith.constant 0 : index
    %c0_27 = arith.constant 0 : index
    %36 = vector.load %arg9[%c0_26, %c0_27] : memref<1x128xf32, #tpu.memory_space<vmem>>, vector<1x128xf32>
    %37 = vector.broadcast %36 : vector<1x128xf32> to vector<48x128xf32>
    %38 = arith.addf %35, %37 : vector<48x128xf32>
    %cst_28 = arith.constant 0.000000e+00 : f32
    %39 = vector.broadcast %cst_28 : f32 to vector<48x128xf32>
    %40 = arith.maximumf %38, %39 : vector<48x128xf32>
    %c0_29 = arith.constant 0 : index
    %c0_30 = arith.constant 0 : index
    %41 = vector.load %arg7[%c0_29, %c0_30] : memref<48x1xf32, #tpu.memory_space<vmem>>, vector<48x1xf32>
    %42 = vector.broadcast %41 : vector<48x1xf32> to vector<48x128xf32>
    %43 = arith.mulf %40, %42 : vector<48x128xf32>
    %c480 = arith.constant 480 : index
    %c0_31 = arith.constant 0 : index
    %44 = vector.load %arg14[%c480, %c0_31] : memref<528x128xf32, #tpu.memory_space<vmem>>, vector<48x128xf32>
    tpu.vector_store %arg14[%c480, %c0_31], %43 {strides = array<i32>} : memref<528x128xf32, #tpu.memory_space<vmem>>, vector<48x128xf32>,
    %c23 = arith.constant 23 : index
    %c0_32 = arith.constant 0 : index
    %45 = vector.load %arg14[%c23, %c0_32] : memref<528x128xf32, #tpu.memory_space<vmem>>, vector<432x128xf32>
    %c0_33 = arith.constant 0 : index
    %c0_34 = arith.constant 0 : index
    %46 = vector.load %arg15[%c0_33, %c0_34] : memref<432x1152xf32, #tpu.memory_space<vmem>>, vector<432x128xf32>
    tpu.vector_store %arg15[%c0_33, %c0_34], %45 {strides = array<i32>} : memref<432x1152xf32, #tpu.memory_space<vmem>>, vector<432x128xf32>,
    %c24 = arith.constant 24 : index
    %c0_35 = arith.constant 0 : index
    %47 = vector.load %arg14[%c24, %c0_35] : memref<528x128xf32, #tpu.memory_space<vmem>>, vector<432x128xf32>
    %c0_36 = arith.constant 0 : index
    %c128 = arith.constant 128 : index
    %48 = vector.load %arg15[%c0_36, %c128] : memref<432x1152xf32, #tpu.memory_space<vmem>>, vector<432x128xf32>
    tpu.vector_store %arg15[%c0_36, %c128], %47 {strides = array<i32>} : memref<432x1152xf32, #tpu.memory_space<vmem>>, vector<432x128xf32>,
    %c25 = arith.constant 25 : index
    %c0_37 = arith.constant 0 : index
    %49 = vector.load %arg14[%c25, %c0_37] : memref<528x128xf32, #tpu.memory_space<vmem>>, vector<432x128xf32>
    %c0_38 = arith.constant 0 : index
    %c256 = arith.constant 256 : index
    %50 = vector.load %arg15[%c0_38, %c256] : memref<432x1152xf32, #tpu.memory_space<vmem>>, vector<432x128xf32>
    tpu.vector_store %arg15[%c0_38, %c256], %49 {strides = array<i32>} : memref<432x1152xf32, #tpu.memory_space<vmem>>, vector<432x128xf32>,
    %c47 = arith.constant 47 : index
    %c0_39 = arith.constant 0 : index
    %51 = vector.load %arg14[%c47, %c0_39] : memref<528x128xf32, #tpu.memory_space<vmem>>, vector<432x128xf32>
    %c0_40 = arith.constant 0 : index
    %c384 = arith.constant 384 : index
    %52 = vector.load %arg15[%c0_40, %c384] : memref<432x1152xf32, #tpu.memory_space<vmem>>, vector<432x128xf32>
    tpu.vector_store %arg15[%c0_40, %c384], %51 {strides = array<i32>} : memref<432x1152xf32, #tpu.memory_space<vmem>>, vector<432x128xf32>,
    %c48_41 = arith.constant 48 : index
    %c0_42 = arith.constant 0 : index
    %53 = vector.load %arg14[%c48_41, %c0_42] : memref<528x128xf32, #tpu.memory_space<vmem>>, vector<432x128xf32>
    %c0_43 = arith.constant 0 : index
    %c512 = arith.constant 512 : index
    %54 = vector.load %arg15[%c0_43, %c512] : memref<432x1152xf32, #tpu.memory_space<vmem>>, vector<432x128xf32>
    tpu.vector_store %arg15[%c0_43, %c512], %53 {strides = array<i32>} : memref<432x1152xf32, #tpu.memory_space<vmem>>, vector<432x128xf32>,
    %c49 = arith.constant 49 : index
    %c0_44 = arith.constant 0 : index
    %55 = vector.load %arg14[%c49, %c0_44] : memref<528x128xf32, #tpu.memory_space<vmem>>, vector<432x128xf32>
    %c0_45 = arith.constant 0 : index
    %c640 = arith.constant 640 : index
    %56 = vector.load %arg15[%c0_45, %c640] : memref<432x1152xf32, #tpu.memory_space<vmem>>, vector<432x128xf32>
    tpu.vector_store %arg15[%c0_45, %c640], %55 {strides = array<i32>} : memref<432x1152xf32, #tpu.memory_space<vmem>>, vector<432x128xf32>,
    %c71 = arith.constant 71 : index
    %c0_46 = arith.constant 0 : index
    %57 = vector.load %arg14[%c71, %c0_46] : memref<528x128xf32, #tpu.memory_space<vmem>>, vector<432x128xf32>
    %c0_47 = arith.constant 0 : index
    %c768 = arith.constant 768 : index
    %58 = vector.load %arg15[%c0_47, %c768] : memref<432x1152xf32, #tpu.memory_space<vmem>>, vector<432x128xf32>
    tpu.vector_store %arg15[%c0_47, %c768], %57 {strides = array<i32>} : memref<432x1152xf32, #tpu.memory_space<vmem>>, vector<432x128xf32>,
    %c72 = arith.constant 72 : index
    %c0_48 = arith.constant 0 : index
    %59 = vector.load %arg14[%c72, %c0_48] : memref<528x128xf32, #tpu.memory_space<vmem>>, vector<432x128xf32>
    %c0_49 = arith.constant 0 : index
    %c896 = arith.constant 896 : index
    %60 = vector.load %arg15[%c0_49, %c896] : memref<432x1152xf32, #tpu.memory_space<vmem>>, vector<432x128xf32>
    tpu.vector_store %arg15[%c0_49, %c896], %59 {strides = array<i32>} : memref<432x1152xf32, #tpu.memory_space<vmem>>, vector<432x128xf32>,
    %c73 = arith.constant 73 : index
    %c0_50 = arith.constant 0 : index
    %61 = vector.load %arg14[%c73, %c0_50] : memref<528x128xf32, #tpu.memory_space<vmem>>, vector<432x128xf32>
    %c0_51 = arith.constant 0 : index
    %c1024 = arith.constant 1024 : index
    %62 = vector.load %arg15[%c0_51, %c1024] : memref<432x1152xf32, #tpu.memory_space<vmem>>, vector<432x128xf32>
    tpu.vector_store %arg15[%c0_51, %c1024], %61 {strides = array<i32>} : memref<432x1152xf32, #tpu.memory_space<vmem>>, vector<432x128xf32>,
    %c0_52 = arith.constant 0 : index
    %c0_53 = arith.constant 0 : index
    %63 = vector.load %arg15[%c0_52, %c0_53] : memref<432x1152xf32, #tpu.memory_space<vmem>>, vector<432x1152xf32>
    %c0_54 = arith.constant 0 : index
    %c0_55 = arith.constant 0 : index
    %64 = vector.load %arg10[%c0_54, %c0_55] : memref<1152x128xf32, #tpu.memory_space<vmem>>, vector<1152x128xf32>
    %cst_56 = arith.constant dense<0.000000e+00> : vector<432x128xf32>
    %65 = tpu.matmul %63, %64, %cst_56 {dimension_numbers = #tpu.dot_dimension_numbers<[1], [0], [0], [1], [0, 0, 1, 1], [], []>} : vector<432x1152xf32>, vector<1152x128xf32>, vector<432x128xf32> -> vector<432x128xf32>
    %c0_57 = arith.constant 0 : index
    %c0_58 = arith.constant 0 : index
    %66 = vector.load %arg6[%c0_57, %c0_58] : memref<432x1xf32, #tpu.memory_space<vmem>>, vector<432x1xf32>
    %67 = vector.broadcast %66 : vector<432x1xf32> to vector<432x128xf32>
    %68 = arith.mulf %65, %67 : vector<432x128xf32>
    %69 = arith.truncf %68 : vector<432x128xf32> to vector<432x128xbf16>
    %c0_59 = arith.constant 0 : index
    %c0_60 = arith.constant 0 : index
    %c0_61 = arith.constant 0 : index
    %70 = vector.load %arg11[%c0_59, %c0_60, %c0_61] : memref<1x432x128xbf16, #tpu.memory_space<vmem>>, vector<1x432x128xbf16>
    %71 = vector.shape_cast %70 : vector<1x432x128xbf16> to vector<432x128xbf16>
    %72 = vector.shape_cast %69 : vector<432x128xbf16> to vector<1x432x128xbf16>
    tpu.vector_store %arg11[%c0_59, %c0_60, %c0_61], %72 {strides = array<i32>} : memref<1x432x128xbf16, #tpu.memory_space<vmem>>, vector<1x432x128xbf16>,
    %cst_62 = arith.constant dense<0.000000e+00> : vector<128xf32>
    %73 = vector.multi_reduction <add>, %68, %cst_62 [0] : vector<432x128xf32> to vector<128xf32>
    %74 = vector.shape_cast %73 : vector<128xf32> to vector<1x128xf32>
    %c0_63 = arith.constant 0 : index
    %c0_64 = arith.constant 0 : index
    %c0_65 = arith.constant 0 : index
    %c0_66 = arith.constant 0 : index
    %75 = vector.load %arg12[%c0_63, %c0_64, %c0_65, %c0_66] : memref<1x1x1x128xf32, #tpu.memory_space<vmem>>, vector<1x1x1x128xf32>
    %76 = vector.shape_cast %75 : vector<1x1x1x128xf32> to vector<1x128xf32>
    %77 = vector.shape_cast %74 : vector<1x128xf32> to vector<1x1x1x128xf32>
    tpu.vector_store %arg12[%c0_63, %c0_64, %c0_65, %c0_66], %77 {strides = array<i32>} : memref<1x1x1x128xf32, #tpu.memory_space<vmem>>, vector<1x1x1x128xf32>,
    %78 = arith.mulf %68, %68 : vector<432x128xf32>
    %cst_67 = arith.constant dense<0.000000e+00> : vector<128xf32>
    %79 = vector.multi_reduction <add>, %78, %cst_67 [0] : vector<432x128xf32> to vector<128xf32>
    %80 = vector.shape_cast %79 : vector<128xf32> to vector<1x128xf32>
    %c0_68 = arith.constant 0 : index
    %c0_69 = arith.constant 0 : index
    %c0_70 = arith.constant 0 : index
    %c0_71 = arith.constant 0 : index
    %81 = vector.load %arg13[%c0_68, %c0_69, %c0_70, %c0_71] : memref<1x1x1x128xf32, #tpu.memory_space<vmem>>, vector<1x1x1x128xf32>
    %82 = vector.shape_cast %81 : vector<1x1x1x128xf32> to vector<1x128xf32>
    %83 = vector.shape_cast %80 : vector<1x128xf32> to vector<1x1x1x128xf32>
    tpu.vector_store %arg13[%c0_68, %c0_69, %c0_70, %c0_71], %83 {strides = array<i32>} : memref<1x1x1x128xf32, #tpu.memory_space<vmem>>, vector<1x1x1x128xf32>,
    return
  }
  func.func @transform_0(%arg0: i32, %arg1: i32) -> (i32, i32, i32) {
    %c9_i32 = arith.constant 9 : i32
    %0 = arith.muli %arg1, %c9_i32 : i32
    %c1_i32 = arith.constant 1 : i32
    %1 = arith.subi %0, %c1_i32 : i32
    %c0_i32 = arith.constant 0 : i32
    %2 = arith.maxsi %1, %c0_i32 : i32
    %c0_i32_0 = arith.constant 0 : i32
    %c0_i32_1 = arith.constant 0 : i32
    return %arg0, %2, %c0_i32_0 : i32, i32, i32
  }
  func.func @transform_1(%arg0: i32, %arg1: i32) -> (i32, i32, i32) {
    %c0_i32 = arith.constant 0 : i32
    %c0_i32_0 = arith.constant 0 : i32
    return %arg0, %arg1, %c0_i32 : i32, i32, i32
  }
  func.func @transform_2(%arg0: i32, %arg1: i32) -> (i32, i32, i32) {
    %c1_i32 = arith.constant 1 : i32
    %0 = arith.addi %arg1, %c1_i32 : i32
    %c9_i32 = arith.constant 9 : i32
    %1 = arith.muli %0, %c9_i32 : i32
    %c8_i32 = arith.constant 8 : i32
    %2 = arith.minsi %1, %c8_i32 : i32
    %c0_i32 = arith.constant 0 : i32
    %c0_i32_0 = arith.constant 0 : i32
    return %arg0, %2, %c0_i32 : i32, i32, i32
  }
  func.func @transform_3(%arg0: i32, %arg1: i32) -> (i32, i32) {
    %c9_i32 = arith.constant 9 : i32
    %0 = arith.muli %arg1, %c9_i32 : i32
    %c1_i32 = arith.constant 1 : i32
    %1 = arith.subi %0, %c1_i32 : i32
    %c0_i32 = arith.constant 0 : i32
    %2 = arith.maxsi %1, %c0_i32 : i32
    %c0_i32_0 = arith.constant 0 : i32
    %c0_i32_1 = arith.constant 0 : i32
    return %2, %c0_i32_0 : i32, i32
  }
  func.func @transform_4(%arg0: i32, %arg1: i32) -> (i32, i32) {
    %c0_i32 = arith.constant 0 : i32
    %c0_i32_0 = arith.constant 0 : i32
    return %arg1, %c0_i32 : i32, i32
  }
  func.func @transform_5(%arg0: i32, %arg1: i32) -> (i32, i32) {
    %c1_i32 = arith.constant 1 : i32
    %0 = arith.addi %arg1, %c1_i32 : i32
    %c9_i32 = arith.constant 9 : i32
    %1 = arith.muli %0, %c9_i32 : i32
    %c8_i32 = arith.constant 8 : i32
    %2 = arith.minsi %1, %c8_i32 : i32
    %c0_i32 = arith.constant 0 : i32
    %c0_i32_0 = arith.constant 0 : i32
    return %2, %c0_i32 : i32, i32
  }
  func.func @transform_6(%arg0: i32, %arg1: i32) -> (i32, i32) {
    %c0_i32 = arith.constant 0 : i32
    %c0_i32_0 = arith.constant 0 : i32
    %c0_i32_1 = arith.constant 0 : i32
    return %c0_i32, %c0_i32_0 : i32, i32
  }
  func.func @transform_7(%arg0: i32, %arg1: i32) -> (i32, i32) {
    %c0_i32 = arith.constant 0 : i32
    %c0_i32_0 = arith.constant 0 : i32
    %c0_i32_1 = arith.constant 0 : i32
    return %c0_i32, %c0_i32_0 : i32, i32
  }
  func.func @transform_8(%arg0: i32, %arg1: i32) -> (i32, i32) {
    %c0_i32 = arith.constant 0 : i32
    %c0_i32_0 = arith.constant 0 : i32
    %c0_i32_1 = arith.constant 0 : i32
    return %c0_i32, %c0_i32_0 : i32, i32
  }
  func.func @transform_9(%arg0: i32, %arg1: i32) -> (i32, i32, i32) {
    %c0_i32 = arith.constant 0 : i32
    %c0_i32_0 = arith.constant 0 : i32
    return %arg0, %arg1, %c0_i32 : i32, i32, i32
  }
  func.func @transform_10(%arg0: i32, %arg1: i32) -> (i32, i32, i32, i32) {
    %c0_i32 = arith.constant 0 : i32
    %c0_i32_0 = arith.constant 0 : i32
    %c0_i32_1 = arith.constant 0 : i32
    return %arg0, %arg1, %c0_i32, %c0_i32_0 : i32, i32, i32, i32
  }
  func.func @transform_11(%arg0: i32, %arg1: i32) -> (i32, i32, i32, i32) {
    %c0_i32 = arith.constant 0 : i32
    %c0_i32_0 = arith.constant 0 : i32
    %c0_i32_1 = arith.constant 0 : i32
    return %arg0, %arg1, %c0_i32, %c0_i32_0 : i32, i32, i32, i32
  }
}

</mosaic_0001>

<bundles_post_ra>
// kernel: double_conv_pallas.2
= control target key start
LH: loop header
LB: loop body
LE: loop exit
PB: predicated region body
PF: predicated region fallthrough
CT: control target
= control target key end

     0   :  { %s4973_s24 = smov 0   ;;  %s4975_s25 = smov 0   ;;  %s6748_s0 = inlined_call_operand.vmem [shape: f32[2,432,4], index: 0, kind: input, shape index: {}, may-alias: {0,1,2}]   ;;  %s6749_s1 = inlined_call_operand.vmem [shape: f32[2,432,4], index: 1, kind: input, shape index: {}, may-alias: {0,1,2}]   ;;  %s6750_s2 = inlined_call_operand.vmem [shape: f32[2,432,4], index: 2, kind: input, shape index: {}, may-alias: {0,1,2}]   ;;  %s6751_s3 = inlined_call_operand.vmem [shape: f32[432,1], index: 3, kind: input, shape index: {}]   ;;  %s6752_s4 = inlined_call_operand.vmem [shape: f32[36,128], index: 4, kind: input, shape index: {}]   ;;  %s6753_s5 = inlined_call_operand.vmem [shape: bf16[2,432,128], index: 5, kind: output, shape index: {0}]   ;;  %s6754_s6 = inlined_call_operand.vmem [shape: f32[2,1,1,128], index: 6, kind: output, shape index: {1}]   ;;  %s6755_s7 = inlined_call_operand.vmem [shape: f32[2,1,1,128], index: 7, kind: output, shape index: {2}]  }
   0x1   :  { %s4977_s26 = smov 0  }
   0x2 LB: > { %s30_s27 = sadd.s32 1, %s4918_s25  ;;  %p4620_p0 = scmp.ge.s32.totalorder %s4922_s26, 1  ;;  %s4922_s26 = sphi %s4977_s26, %s18_s26   ;;  %s4918_s25 = sphi %s4975_s25, %s6757_s25   ;;  %s4914_s24 = sphi %s4973_s24, %s6756_s24  }
   0x3   : > { %p32_p1 = scmp.ge.s32.totalorder %s30_s27, 2  ;;  %p344_p2 = scmp.lt.s32.totalorder %s4922_s26, 3 }
   0x5   : > { %s6759_s27 = smov (%p32_p1, %s30_s27), 0  ;;  %p345_p3 = pnand %p4620_p0, %p344_p2 }
   0x6   : > { %p432_p4 = scmp.lt.s32.totalorder (!%p345_p3), %s4914_s24, 1  ;;  %s4924_s12 = smov (!%p345_p3), 4  }
   0x7   : > { %348 = sbr.rel (%p345_p3) target bundleno = 1511 (0x5e7), region = 40  ;;  %s4925_s13 = smov (!%p345_p3), 8  }
   0x8   : > { %s4926_s14 = smov (!%p345_p3), 12   ;;  %s4927_s15 = smov (!%p345_p3), 16  }
   0x9   : > { %s4928_s16 = smov (!%p345_p3), 20   ;;  %s4929_s21 = smov (!%p345_p3), 24  }
   0xa   : > { %s4930_s22 = smov (!%p345_p3), 28   ;;  %s4931_s23 = smov (!%p345_p3), 32  }
   0xc   : > { %s6761_s24 = smov (!%p432_p4, %s4914_s24), 1  ;;  %vm507_vm0 = vcmask 31744   ;;  %vm1012_vm1 = vcmask 64544   ;;  %vm1337_vm2 = vcmask 97344   ;;  %vm1662_vm3 = vcmask 130144  }
   0xd   : > { %s4994_s28 = smul.u32 432, %s6761_s24  ;;  %vm1987_vm4 = vcmask 162944   ;;  %vm2312_vm5 = vcmask 195744   ;;  %vm2637_vm6 = vcmask 228544   ;;  %vm2962_vm7 = vcmask 261344  }
   0xe   : > { %vm3564_vm8 = vcmask 1043456   ;;  %vm3287_vm9 = vcmask 294144   ;;  %vm3401_vm10 = vcmask 293888   ;;  %s4862_s10 = smul.u32 216, %s6761_s24 }
   0xf   : > { %s5000_s8 = scalar_lea.vmem %s6749_s1, %s4994_s28  ;;  %s5006_s11 = scalar_lea.vmem %s6748_s0, %s4994_s28 }
  0x10   : > { %v515_v0 = vld [vmem:[%s5000_s8 + $0x8] sm:$0xff]  ;;  %v504_v2 = vld [vmem:[%s5006_s11 + $0x18] sm:$0xff]  ;;  %v516_v3 = vld [vmem:[%s5000_s8 + $0x10] sm:$0xff]  ;;  %s4683_s17 = sadd.s32 384, %s4994_s28 }
  0x11   : > { %v506_v1 = vld [vmem:[%s5006_s11 + $0x28] sm:$0xff]  ;;  %569 = vst.msk [vmem:[#allocation2 + $0x38] sm:$0xff] %vm507_vm0, %v515_v0  ;;  %v514_v4 = vld [vmem:[%s5000_s8] sm:$0xff]  ;;  %v517_v9 = vld [vmem:[%s5000_s8 + $0x18] sm:$0xff]  ;;  %s5852_s20 = scalar_lea.vmem %s6750_s2, %s4683_s17  ;;  %s6467_s17 = scalar_lea.vmem %s6753_s5, %s4862_s10 }
  0x12   : > { %513 = vst.msk [vmem:[#allocation2 + $0x28] sm:$0xff] %vm507_vm0, %v506_v1  ;;  %v505_v5 = vld [vmem:[%s5006_s11 + $0x20] sm:$0xff]  ;;  %v519_v6 = vld [vmem:[%s5000_s8 + $0x28] sm:$0xff]  ;;  %v521_v12 = vld [vmem:[%s5000_s8 + $0x38] sm:$0xff] }
  0x13   : > { %511 = vst.msk [vmem:[#allocation2 + $0x18] sm:$0xff] %vm507_vm0, %v504_v2  ;;  %v518_v7 = vld [vmem:[%s5000_s8 + $0x20] sm:$0xff]  ;;  %v520_v13 = vld [vmem:[%s5000_s8 + $0x30] sm:$0xff]  ;;  %v525_v15 = vld [vmem:[%s5000_s8 + $0x58] sm:$0xff] }
  0x14   : > { %570 = vst.msk [vmem:[#allocation2 + $0x40] sm:$0xff] %vm507_vm0, %v516_v3  ;;  %v522_v11 = vld [vmem:[%s5000_s8 + $0x40] sm:$0xff]  ;;  %v524_v16 = vld [vmem:[%s5000_s8 + $0x50] sm:$0xff]  ;;  %v523_v18 = vld [vmem:[%s5000_s8 + $0x48] sm:$0xff] }
  0x15   : > { %568 = vst.msk [vmem:[#allocation2 + $0x30] sm:$0xff] %vm507_vm0, %v514_v4  ;;  %v528_v20 = vld [vmem:[%s5000_s8 + $0x70] sm:$0xff]  ;;  %v527_v21 = vld [vmem:[%s5000_s8 + $0x68] sm:$0xff]  ;;  %v526_v22 = vld [vmem:[%s5000_s8 + $0x60] sm:$0xff] }
  0x16   : > { %512 = vst.msk [vmem:[#allocation2 + $0x20] sm:$0xff] %vm507_vm0, %v505_v5  ;;  %v531_v24 = vld [vmem:[%s5000_s8 + $0x88] sm:$0xff]  ;;  %v530_v25 = vld [vmem:[%s5000_s8 + $0x80] sm:$0xff]  ;;  %v529_v26 = vld [vmem:[%s5000_s8 + $0x78] sm:$0xff] }
  0x17   : > { %573 = vst.msk [vmem:[#allocation2 + $0x58] sm:$0xff] %vm507_vm0, %v519_v6  ;;  %v534_v30 = vld [vmem:[%s5000_s8 + $0xa0] sm:$0xff]  ;;  %v533_v31 = vld [vmem:[%s5000_s8 + $0x98] sm:$0xff]  ;;  %v532_v32 = vld [vmem:[%s5000_s8 + $0x90] sm:$0xff] }
  0x18   : > { %v746_v8 = vld [vmem:[#allocation2 + $0x38] sm:$0xff]  ;;  %572 = vst.msk [vmem:[#allocation2 + $0x50] sm:$0xff] %vm507_vm0, %v518_v7  ;;  %v536_v37 = vld [vmem:[%s5000_s8 + $0xb0] sm:$0xff]  ;;  %v535_v38 = vld [vmem:[%s5000_s8 + $0xa8] sm:$0xff] }
  0x19   : > { %858 = vrot.lane.b32.xlu2 %v746_v8, %s4924_s12  ;;  %v744_v10 = vld [vmem:[#allocation2 + $0x28] sm:$0xff]  ;;  %571 = vst.msk [vmem:[#allocation2 + $0x48] sm:$0xff] %vm507_vm0, %v517_v9  ;;  %v537_v36 = vld [vmem:[%s5000_s8 + $0xb8] sm:$0xff]  ;;  %v540_v42 = vld [vmem:[%s5000_s8 + $0xd0] sm:$0xff] }
  0x1a   : > { %854 = vrot.lane.b32.xlu1 %v744_v10, %s4924_s12  ;;  %v742_v14 = vld [vmem:[#allocation2 + $0x18] sm:$0xff]  ;;  %576 = vst.msk [vmem:[#allocation2 + $0x70] sm:$0xff] %vm507_vm0, %v522_v11  ;;  %v539_v43 = vld [vmem:[%s5000_s8 + $0xc8] sm:$0xff]  ;;  %v538_v44 = vld [vmem:[%s5000_s8 + $0xc0] sm:$0xff] }
  0x1b   : > { %850 = vrot.lane.b32.xlu0 %v742_v14, %s4924_s12  ;;  %575 = vst.msk [vmem:[#allocation2 + $0x68] sm:$0xff] %vm507_vm0, %v521_v12  ;;  %v747_v17 = vld [vmem:[#allocation2 + $0x40] sm:$0xff]  ;;  %v543_v48 = vld [vmem:[%s5000_s8 + $0xe8] sm:$0xff]  ;;  %v541_v50 = vld [vmem:[%s5000_s8 + $0xd8] sm:$0xff] }
  0x1c   : > { %574 = vst.msk [vmem:[#allocation2 + $0x60] sm:$0xff] %vm507_vm0, %v520_v13  ;;  %v745_v19 = vld [vmem:[#allocation2 + $0x30] sm:$0xff]  ;;  %v542_v49 = vld [vmem:[%s5000_s8 + $0xe0] sm:$0xff]  ;;  %v545_v55 = vld [vmem:[%s5000_s8 + $0xf8] sm:$0xff] }
  0x1d   : > { %579 = vst.msk [vmem:[#allocation2 + $0x88] sm:$0xff] %vm507_vm0, %v525_v15  ;;  %v743_v23 = vld [vmem:[#allocation2 + $0x20] sm:$0xff]  ;;  %v544_v56 = vld [vmem:[%s5000_s8 + $0xf0] sm:$0xff]  ;;  %v549_v60 = vld [vmem:[%s5000_s8 + $0x118] sm:$0xff] }
  0x1e   : > { %578 = vst.msk [vmem:[#allocation2 + $0x80] sm:$0xff] %vm507_vm0, %v524_v16  ;;  %v750_v27 = vld [vmem:[#allocation2 + $0x58] sm:$0xff]  ;;  %v546_v54 = vld [vmem:[%s5000_s8 + $0x100] sm:$0xff]  ;;  %v548_v61 = vld [vmem:[%s5000_s8 + $0x110] sm:$0xff] }
  0x1f   : > { %577 = vst.msk [vmem:[#allocation2 + $0x78] sm:$0xff] %vm507_vm0, %v523_v18  ;;  %v749_v28 = vld [vmem:[#allocation2 + $0x50] sm:$0xff]  ;;  %v547_v63 = vld [vmem:[%s5000_s8 + $0x108] sm:$0xff]  ;;  %v5119_v5 = vld [vmem:[#allocation2 + $0x3f] sm:$0xff] }
  0x20   : > { %582 = vst.msk [vmem:[#allocation2 + $0xa0] sm:$0xff] %vm507_vm0, %v528_v20  ;;  %v748_v29 = vld [vmem:[#allocation2 + $0x48] sm:$0xff]  ;;  %v5106_v62 = vld [vmem:[#allocation2 + $0x37] sm:$0xff]  ;;  %v550_v6 = vld [vmem:[%s5000_s8 + $0x120] sm:$0xff] }
  0x21   : > { %860 = vrot.lane.b32.xlu2 %v747_v17, %s4924_s12  ;;  %581 = vst.msk [vmem:[#allocation2 + $0x98] sm:$0xff] %vm507_vm0, %v527_v21  ;;  %v753_v33 = vld [vmem:[#allocation2 + $0x70] sm:$0xff]  ;;  %v551_v4 = vld [vmem:[%s5000_s8 + $0x128] sm:$0xff]  ;;  %v554_v11 = vld [vmem:[%s5000_s8 + $0x140] sm:$0xff] }
  0x22   : > { %856 = vrot.lane.b32.xlu1 %v745_v19, %s4924_s12  ;;  %580 = vst.msk [vmem:[#allocation2 + $0x90] sm:$0xff] %vm507_vm0, %v526_v22  ;;  %v752_v34 = vld [vmem:[#allocation2 + $0x68] sm:$0xff]  ;;  %v552_v3 = vld [vmem:[%s5000_s8 + $0x130] sm:$0xff]  ;;  %v553_v13 = vld [vmem:[%s5000_s8 + $0x138] sm:$0xff] }
  0x23   : > { %852 = vrot.lane.b32.xlu0 %v743_v23, %s4924_s12  ;;  %585 = vst.msk [vmem:[#allocation2 + $0xb8] sm:$0xff] %vm507_vm0, %v531_v24  ;;  %v751_v35 = vld [vmem:[#allocation2 + $0x60] sm:$0xff]  ;;  %v555_v10 = vld [vmem:[%s5000_s8 + $0x148] sm:$0xff]  ;;  %v5132_v12 = vld [vmem:[#allocation2 + $0x57] sm:$0xff] }
  0x24   : > { %584 = vst.msk [vmem:[#allocation2 + $0xb0] sm:$0xff] %vm507_vm0, %v530_v25  ;;  %v756_v39 = vld [vmem:[#allocation2 + $0x88] sm:$0xff]  ;;  %v503_v15 = vld [vmem:[%s5006_s11 + $0x10] sm:$0xff]  ;;  %v558_v18 = vld [vmem:[%s5000_s8 + $0x160] sm:$0xff] }
  0x25   : > { %583 = vst.msk [vmem:[#allocation2 + $0xa8] sm:$0xff] %vm507_vm0, %v529_v26  ;;  %v755_v40 = vld [vmem:[#allocation2 + $0x80] sm:$0xff]  ;;  %v5146_v19 = vld [vmem:[#allocation2 + $0x6f] sm:$0xff]  ;;  %v557_v21 = vld [vmem:[%s5000_s8 + $0x158] sm:$0xff] }
  0x26   : > { %588 = vst.msk [vmem:[#allocation2 + $0xd0] sm:$0xff] %vm507_vm0, %v534_v30  ;;  %v754_v41 = vld [vmem:[#allocation2 + $0x78] sm:$0xff]  ;;  %v636_v20 = vld [vmem:[#allocation2 + $0x27] sm:$0xff]  ;;  %v556_v24 = vld [vmem:[%s5000_s8 + $0x150] sm:$0xff] }
  0x27   : > { %587 = vst.msk [vmem:[#allocation2 + $0xc8] sm:$0xff] %vm507_vm0, %v533_v31  ;;  %v759_v45 = vld [vmem:[#allocation2 + $0xa0] sm:$0xff]  ;;  %v5164_v30 = vld [vmem:[#allocation2 + $0x2f] sm:$0xff] }
  0x28   : > { %586 = vst.msk [vmem:[#allocation2 + $0xc0] sm:$0xff] %vm507_vm0, %v532_v32  ;;  %v758_v46 = vld [vmem:[#allocation2 + $0x98] sm:$0xff] }
  0x29   : > { %866 = vrot.lane.b32.xlu2 %v750_v27, %s4924_s12  ;;  %591 = vst.msk [vmem:[#allocation2 + $0xe8] sm:$0xff] %vm507_vm0, %v537_v36  ;;  %v757_v47 = vld [vmem:[#allocation2 + $0x90] sm:$0xff]  ;;  %v635_v32 = vld [vmem:[#allocation2 + $0x1f] sm:$0xff] }
  0x2a   : > { %864 = vrot.lane.b32.xlu1 %v749_v28, %s4924_s12  ;;  %590 = vst.msk [vmem:[#allocation2 + $0xe0] sm:$0xff] %vm507_vm0, %v536_v37  ;;  %v762_v51 = vld [vmem:[#allocation2 + $0xb8] sm:$0xff] }
  0x2b   : > { %862 = vrot.lane.b32.xlu0 %v748_v29, %s4924_s12  ;;  %589 = vst.msk [vmem:[#allocation2 + $0xd8] sm:$0xff] %vm507_vm0, %v535_v38  ;;  %v761_v52 = vld [vmem:[#allocation2 + $0xb0] sm:$0xff]  ;;  %v561_v28 = vld [vmem:[%s5000_s8 + $0x178] sm:$0xff]  ;;  %v5162_v29 = vld [vmem:[#allocation2 + $0x87] sm:$0xff] }
  0x2c   : > { %594 = vst.msk [vmem:[#allocation2 + $0x100] sm:$0xff] %vm507_vm0, %v540_v42  ;;  %v760_v53 = vld [vmem:[#allocation2 + $0xa8] sm:$0xff]  ;;  %v564_v38 = vld [vmem:[%s5000_s8 + $0x190] sm:$0xff] }
  0x2d   : > { %593 = vst.msk [vmem:[#allocation2 + $0xf8] sm:$0xff] %vm507_vm0, %v539_v43  ;;  %v765_v57 = vld [vmem:[#allocation2 + $0xd0] sm:$0xff]  ;;  %v563_v43 = vld [vmem:[%s5000_s8 + $0x188] sm:$0xff] }
  0x2e   : > { %592 = vst.msk [vmem:[#allocation2 + $0xf0] sm:$0xff] %vm507_vm0, %v538_v44  ;;  %v764_v58 = vld [vmem:[#allocation2 + $0xc8] sm:$0xff] }
  0x2f   : > { %597 = vst.msk [vmem:[#allocation2 + $0x118] sm:$0xff] %vm507_vm0, %v543_v48  ;;  %v763_v59 = vld [vmem:[#allocation2 + $0xc0] sm:$0xff]  ;;  %v5202_v48 = vld [vmem:[#allocation2 + $0xb7] sm:$0xff] }
  0x30   : > { %596 = vst.msk [vmem:[#allocation2 + $0x110] sm:$0xff] %vm507_vm0, %v542_v49  ;;  %v768_v0 = vld [vmem:[#allocation2 + $0xe8] sm:$0xff] }
  0x31   : > { %872 = vrot.lane.b32.xlu2 %v753_v33, %s4924_s12  ;;  %595 = vst.msk [vmem:[#allocation2 + $0x108] sm:$0xff] %vm507_vm0, %v541_v50  ;;  %v767_v1 = vld [vmem:[#allocation2 + $0xe0] sm:$0xff]  ;;  %v560_v33 = vld [vmem:[%s5000_s8 + $0x170] sm:$0xff] }
  0x32   : > { %870 = vrot.lane.b32.xlu1 %v752_v34, %s4924_s12  ;;  %600 = vst.msk [vmem:[#allocation2 + $0x130] sm:$0xff] %vm507_vm0, %v546_v54  ;;  %v766_v2 = vld [vmem:[#allocation2 + $0xd8] sm:$0xff]  ;;  %v5204_v49 = vld [vmem:[#allocation2 + $0x67] sm:$0xff] }
  0x33   : > { %868 = vrot.lane.b32.xlu0 %v751_v35, %s4924_s12  ;;  %599 = vst.msk [vmem:[#allocation2 + $0x128] sm:$0xff] %vm507_vm0, %v545_v55  ;;  %v771_v7 = vld [vmem:[#allocation2 + $0x100] sm:$0xff]  ;;  %v559_v35 = vld [vmem:[%s5000_s8 + $0x168] sm:$0xff] }
  0x34   : > { %598 = vst.msk [vmem:[#allocation2 + $0x120] sm:$0xff] %vm507_vm0, %v544_v56  ;;  %v770_v8 = vld [vmem:[#allocation2 + $0xf8] sm:$0xff]  ;;  %v5219_v56 = vld [vmem:[#allocation2 + $0xcf] sm:$0xff] }
  0x35   : > { %603 = vst.msk [vmem:[#allocation2 + $0x148] sm:$0xff] %vm507_vm0, %v549_v60  ;;  %v769_v9 = vld [vmem:[#allocation2 + $0xf0] sm:$0xff]  ;;  %v5206_v50 = vld [vmem:[#allocation2 + $0x5f] sm:$0xff] }
  0x36   : > { %692 = vst.msk [vmem:[#allocation3 + $0x20] sm:$0xff] %vm507_vm0, %v5106_v62  ;;  %v774_v14 = vld [vmem:[#allocation2 + $0x118] sm:$0xff] }
  0x37   : > { %602 = vst.msk [vmem:[#allocation2 + $0x140] sm:$0xff] %vm507_vm0, %v548_v61  ;;  %v773_v16 = vld [vmem:[#allocation2 + $0x110] sm:$0xff] }
  0x38   : > { %601 = vst.msk [vmem:[#allocation2 + $0x138] sm:$0xff] %vm507_vm0, %v547_v63  ;;  %v772_v17 = vld [vmem:[#allocation2 + $0x108] sm:$0xff] }
  0x39   : > { %878 = vrot.lane.b32.xlu2 %v756_v39, %s4924_s12  ;;  %606 = vst.msk [vmem:[#allocation2 + $0x160] sm:$0xff] %vm507_vm0, %v552_v3  ;;  %v777_v22 = vld [vmem:[#allocation2 + $0x130] sm:$0xff]  ;;  %v5181_v39 = vld [vmem:[#allocation2 + $0x9f] sm:$0xff] }
  0x3a   : > { %876 = vrot.lane.b32.xlu1 %v755_v40, %s4924_s12  ;;  %693 = vst.msk [vmem:[#allocation3 + $0x28] sm:$0xff] %vm507_vm0, %v5119_v5  ;;  %v776_v23 = vld [vmem:[#allocation2 + $0x128] sm:$0xff]  ;;  %v5239_v3 = vld [vmem:[#allocation2 + $0x97] sm:$0xff] }
  0x3b   : > { %874 = vrot.lane.b32.xlu0 %v754_v41, %s4924_s12  ;;  %605 = vst.msk [vmem:[#allocation2 + $0x158] sm:$0xff] %vm507_vm0, %v551_v4  ;;  %v775_v26 = vld [vmem:[#allocation2 + $0x120] sm:$0xff]  ;;  %v5183_v40 = vld [vmem:[#allocation2 + $0x4f] sm:$0xff] }
  0x3c   : > { %604 = vst.msk [vmem:[#allocation2 + $0x150] sm:$0xff] %vm507_vm0, %v550_v6  ;;  %v780_v31 = vld [vmem:[#allocation2 + $0x148] sm:$0xff] }
  0x3d   : > { %609 = vst.msk [vmem:[#allocation2 + $0x178] sm:$0xff] %vm507_vm0, %v555_v10  ;;  %v5185_v41 = vld [vmem:[#allocation2 + $0x47] sm:$0xff]  ;;  %v5243_v6 = vld [vmem:[#allocation2 + $0x8f] sm:$0xff] }
  0x3e   : > { %696 = vst.msk [vmem:[#allocation3 + $0x40] sm:$0xff] %vm507_vm0, %v5132_v12  ;;  %v779_v34 = vld [vmem:[#allocation2 + $0x140] sm:$0xff] }
  0x3f   : > { %608 = vst.msk [vmem:[#allocation2 + $0x170] sm:$0xff] %vm507_vm0, %v554_v11  ;;  %v778_v36 = vld [vmem:[#allocation2 + $0x138] sm:$0xff] }
  0x40   : > { %607 = vst.msk [vmem:[#allocation2 + $0x168] sm:$0xff] %vm507_vm0, %v553_v13  ;;  %v783_v42 = vld [vmem:[#allocation2 + $0x160] sm:$0xff] }
  0x41   : > { %884 = vrot.lane.b32.xlu2 %v759_v45, %s4924_s12  ;;  %510 = vst.msk [vmem:[#allocation2 + $0x10] sm:$0xff] %vm507_vm0, %v503_v15  ;;  %v562_v45 = vld [vmem:[%s5000_s8 + $0x180] sm:$0xff] }
  0x42   : > { %882 = vrot.lane.b32.xlu1 %v758_v46, %s4924_s12  ;;  %612 = vst.msk [vmem:[#allocation2 + $0x190] sm:$0xff] %vm507_vm0, %v558_v18  ;;  %v782_v44 = vld [vmem:[#allocation2 + $0x158] sm:$0xff] }
  0x43   : > { %880 = vrot.lane.b32.xlu0 %v757_v47, %s4924_s12  ;;  %699 = vst.msk [vmem:[#allocation3 + $0x58] sm:$0xff] %vm507_vm0, %v5146_v19  ;;  %v781_v46 = vld [vmem:[#allocation2 + $0x150] sm:$0xff]  ;;  %v5255_v13 = vld [vmem:[#allocation2 + $0xff] sm:$0xff] }
  0x44   : > { %690 = vst.msk [vmem:[#allocation3 + $0x10] sm:$0xff] %vm507_vm0, %v636_v20 }
  0x45   : > { %611 = vst.msk [vmem:[#allocation2 + $0x188] sm:$0xff] %vm507_vm0, %v557_v21 }
  0x46   : > { %610 = vst.msk [vmem:[#allocation2 + $0x180] sm:$0xff] %vm507_vm0, %v556_v24  ;;  %v5275_v24 = vld [vmem:[#allocation2 + $0xc7] sm:$0xff] }
  0x47   : > { %615 = vst.msk [vmem:[#allocation2 + $0x1a8] sm:$0xff] %vm507_vm0, %v561_v28  ;;  %v1068_v28 = vld [vmem:[#allocation2 + $0x21] sm:$0xff] }
  0x48   : > { %v634_v25 = vld [vmem:[#allocation2 + $0x17] sm:$0xff]  ;;  %702 = vst.msk [vmem:[#allocation3 + $0x70] sm:$0xff] %vm507_vm0, %v5162_v29 }
  0x49   : > { %890 = vrot.lane.b32.xlu2 %v762_v51, %s4924_s12  ;;  %688 = vst.msk [vmem:[#allocation3] sm:$0xff] %vm507_vm0, %v634_v25  ;;  %v786_v51 = vld [vmem:[#allocation2 + $0x178] sm:$0xff]  ;;  %v1069_v25 = vld [vmem:[#allocation2 + $0x29] sm:$0xff] }
  0x4a   : > { %888 = vrot.lane.b32.xlu1 %v761_v52, %s4924_s12  ;;  %691 = vst.msk [vmem:[#allocation3 + $0x18] sm:$0xff] %vm507_vm0, %v5164_v30  ;;  %v785_v52 = vld [vmem:[#allocation2 + $0x170] sm:$0xff] }
  0x4b   : > { %886 = vrot.lane.b32.xlu0 %v760_v53, %s4924_s12  ;;  %689 = vst.msk [vmem:[#allocation3 + $0x8] sm:$0xff] %vm507_vm0, %v635_v32  ;;  %v784_v53 = vld [vmem:[#allocation2 + $0x168] sm:$0xff] }
  0x4c   : > { %614 = vst.msk [vmem:[#allocation2 + $0x1a0] sm:$0xff] %vm507_vm0, %v560_v33  ;;  %v788_v61 = vld [vmem:[#allocation2 + $0x188] sm:$0xff] }
  0x4d   : > { %613 = vst.msk [vmem:[#allocation2 + $0x198] sm:$0xff] %vm507_vm0, %v559_v35  ;;  %v787_v63 = vld [vmem:[#allocation2 + $0x180] sm:$0xff] }
  0x4e   : > { %618 = vst.msk [vmem:[#allocation2 + $0x1c0] sm:$0xff] %vm507_vm0, %v564_v38  ;;  %v792_v4 = vld [vmem:[#allocation2 + $0x1a8] sm:$0xff]  ;;  %v5293_v35 = vld [vmem:[#allocation2 + $0xdf] sm:$0xff] }
  0x4f   : > { %705 = vst.msk [vmem:[#allocation3 + $0x88] sm:$0xff] %vm507_vm0, %v5181_v39 }
  0x50   : > { %695 = vst.msk [vmem:[#allocation3 + $0x38] sm:$0xff] %vm507_vm0, %v5183_v40 }
  0x51   : > { %896 = vrot.lane.b32.xlu2 %v765_v57, %s4924_s12  ;;  %694 = vst.msk [vmem:[#allocation3 + $0x30] sm:$0xff] %vm507_vm0, %v5185_v41  ;;  %v5221_v57 = vld [vmem:[#allocation2 + $0x7f] sm:$0xff] }
  0x52   : > { %894 = vrot.lane.b32.xlu1 %v764_v58, %s4924_s12  ;;  %617 = vst.msk [vmem:[#allocation2 + $0x1b8] sm:$0xff] %vm507_vm0, %v563_v43  ;;  %v789_v58 = vld [vmem:[#allocation2 + $0x190] sm:$0xff] }
  0x53   : > { %892 = vrot.lane.b32.xlu0 %v763_v59, %s4924_s12  ;;  %616 = vst.msk [vmem:[#allocation2 + $0x1b0] sm:$0xff] %vm507_vm0, %v562_v45  ;;  %v5225_v59 = vld [vmem:[#allocation2 + $0x77] sm:$0xff] }
  0x54   : > { %708 = vst.msk [vmem:[#allocation3 + $0xa0] sm:$0xff] %vm507_vm0, %v5202_v48  ;;  %v1070_v43 = vld [vmem:[#allocation2 + $0x31] sm:$0xff] }
  0x55   : > { %698 = vst.msk [vmem:[#allocation3 + $0x50] sm:$0xff] %vm507_vm0, %v5204_v49  ;;  %v795_v15 = vld [vmem:[#allocation2 + $0x1c0] sm:$0xff] }
  0x56   : > { %697 = vst.msk [vmem:[#allocation3 + $0x48] sm:$0xff] %vm507_vm0, %v5206_v50 }
  0x57   : > { %711 = vst.msk [vmem:[#allocation3 + $0xb8] sm:$0xff] %vm507_vm0, %v5219_v56 }
  0x58   : > { %701 = vst.msk [vmem:[#allocation3 + $0x68] sm:$0xff] %vm507_vm0, %v5221_v57 }
  0x59   : > { %902 = vrot.lane.b32.xlu2 %v768_v0, %s4924_s12  ;;  %700 = vst.msk [vmem:[#allocation3 + $0x60] sm:$0xff] %vm507_vm0, %v5225_v59  ;;  %v794_v18 = vld [vmem:[#allocation2 + $0x1b8] sm:$0xff] }
  0x5a   : > { %900 = vrot.lane.b32.xlu1 %v767_v1, %s4924_s12  ;;  %704 = vst.msk [vmem:[#allocation3 + $0x80] sm:$0xff] %vm507_vm0, %v5239_v3  ;;  %v793_v20 = vld [vmem:[#allocation2 + $0x1b0] sm:$0xff] }
  0x5b   : > { %898 = vrot.lane.b32.xlu0 %v766_v2, %s4924_s12  ;;  %v5237_v2 = vld [vmem:[#allocation2 + $0xe7] sm:$0xff]  ;;  %703 = vst.msk [vmem:[#allocation3 + $0x78] sm:$0xff] %vm507_vm0, %v5243_v6 }
  0x5c   : > { %714 = vst.msk [vmem:[#allocation3 + $0xd0] sm:$0xff] %vm507_vm0, %v5237_v2 }
  0x5d   : > { %717 = vst.msk [vmem:[#allocation3 + $0xe8] sm:$0xff] %vm507_vm0, %v5255_v13 }
  0x5e   : > { %710 = vst.msk [vmem:[#allocation3 + $0xb0] sm:$0xff] %vm507_vm0, %v5275_v24 }
  0x5f   : > { %713 = vst.msk [vmem:[#allocation3 + $0xc8] sm:$0xff] %vm507_vm0, %v5293_v35 }
  0x61   : > { %908 = vrot.lane.b32.xlu2 %v771_v7, %s4924_s12 }
  0x62   : > { %906 = vrot.lane.b32.xlu1 %v770_v8, %s4924_s12  ;;  %v791_v8 = vld [vmem:[#allocation2 + $0x1a0] sm:$0xff] }
  0x63   : > { %904 = vrot.lane.b32.xlu0 %v769_v9, %s4924_s12  ;;  %v790_v9 = vld [vmem:[#allocation2 + $0x198] sm:$0xff] }
  0x69   : > { %914 = vrot.lane.b32.xlu2 %v774_v14, %s4924_s12  ;;  %v5257_v14 = vld [vmem:[#allocation2 + $0xaf] sm:$0xff] }
  0x6a   : > { %912 = vrot.lane.b32.xlu1 %v773_v16, %s4924_s12  ;;  %v5261_v16 = vld [vmem:[#allocation2 + $0xa7] sm:$0xff]  ;;  %707 = vst.msk [vmem:[#allocation3 + $0x98] sm:$0xff] %vm507_vm0, %v5257_v14 }
  0x6b   : > { %910 = vrot.lane.b32.xlu0 %v772_v17, %s4924_s12  ;;  %706 = vst.msk [vmem:[#allocation3 + $0x90] sm:$0xff] %vm507_vm0, %v5261_v16 }
  0x71   : > { %920 = vrot.lane.b32.xlu2 %v777_v22, %s4924_s12 }
  0x72   : > { %918 = vrot.lane.b32.xlu1 %v776_v23, %s4924_s12  ;;  %v5273_v23 = vld [vmem:[#allocation2 + $0x117] sm:$0xff] }
  0x73   : > { %v859_v27 = vpop.permute.xlu2 %858  ;;  %916 = vrot.lane.b32.xlu0 %v775_v26, %s4924_s12  ;;  %720 = vst.msk [vmem:[#allocation3 + $0x100] sm:$0xff] %vm507_vm0, %v5273_v23  ;;  %v5279_v26 = vld [vmem:[#allocation2 + $0xbf] sm:$0xff] }
  0x74   : > { %1017 = vst.msk [vmem:[#allocation3 + $0x20] sm:$0xff] %vm1012_vm1, %v859_v27 }
  0x75   : > { %709 = vst.msk [vmem:[#allocation3 + $0xa8] sm:$0xff] %vm507_vm0, %v5279_v26 }
  0x79   : > { %926 = vrot.lane.b32.xlu2 %v780_v31, %s4924_s12  ;;  %v1067_v31 = vld [vmem:[#allocation2 + $0x19] sm:$0xff] }
  0x7a   : > { %924 = vrot.lane.b32.xlu1 %v779_v34, %s4924_s12  ;;  %v5291_v34 = vld [vmem:[#allocation2 + $0x12f] sm:$0xff] }
  0x7b   : > { %v861_v37 = vpop.permute.xlu2 %860  ;;  %922 = vrot.lane.b32.xlu0 %v778_v36, %s4924_s12  ;;  %v1072_v36 = vld [vmem:[#allocation2 + $0x41] sm:$0xff]  ;;  %723 = vst.msk [vmem:[#allocation3 + $0x118] sm:$0xff] %vm507_vm0, %v5291_v34 }
  0x7c   : > { %1018 = vst.msk [vmem:[#allocation3 + $0x28] sm:$0xff] %vm1012_vm1, %v861_v37  ;;  %v5297_v37 = vld [vmem:[#allocation2 + $0xd7] sm:$0xff] }
  0x7d   : > { %712 = vst.msk [vmem:[#allocation3 + $0xc0] sm:$0xff] %vm507_vm0, %v5297_v37 }
  0x81   : > { %932 = vrot.lane.b32.xlu2 %v783_v42, %s4924_s12  ;;  %v1071_v42 = vld [vmem:[#allocation2 + $0x39] sm:$0xff] }
  0x82   : > { %930 = vrot.lane.b32.xlu1 %v782_v44, %s4924_s12 }
  0x83   : > { %v867_v47 = vpop.permute.xlu2 %866  ;;  %928 = vrot.lane.b32.xlu0 %v781_v46, %s4924_s12  ;;  %v5309_v46 = vld [vmem:[#allocation2 + $0x147] sm:$0xff] }
  0x84   : > { %1021 = vst.msk [vmem:[#allocation3 + $0x40] sm:$0xff] %vm1012_vm1, %v867_v47  ;;  %v5311_v47 = vld [vmem:[#allocation2 + $0xf7] sm:$0xff] }
  0x85   : > { %726 = vst.msk [vmem:[#allocation3 + $0x130] sm:$0xff] %vm507_vm0, %v5309_v46 }
  0x86   : > { %716 = vst.msk [vmem:[#allocation3 + $0xe0] sm:$0xff] %vm507_vm0, %v5311_v47 }
  0x89   : > { %938 = vrot.lane.b32.xlu2 %v786_v51, %s4924_s12  ;;  %v1075_v51 = vld [vmem:[#allocation2 + $0x59] sm:$0xff] }
  0x8a   : > { %936 = vrot.lane.b32.xlu1 %v785_v52, %s4924_s12  ;;  %v5315_v52 = vld [vmem:[#allocation2 + $0xef] sm:$0xff] }
  0x8b   : > { %v873_v54 = vpop.permute.xlu2 %872  ;;  %934 = vrot.lane.b32.xlu0 %v784_v53, %s4924_s12  ;;  %715 = vst.msk [vmem:[#allocation3 + $0xd8] sm:$0xff] %vm507_vm0, %v5315_v52 }
  0x8c   : > { %1024 = vst.msk [vmem:[#allocation3 + $0x58] sm:$0xff] %vm1012_vm1, %v873_v54  ;;  %v855_v55 = vpop.permute.xlu1 %854  ;;  %v1074_v54 = vld [vmem:[#allocation2 + $0x51] sm:$0xff] }
  0x8d   : > { %1015 = vst.msk [vmem:[#allocation3 + $0x10] sm:$0xff] %vm1012_vm1, %v855_v55  ;;  %v851_v60 = vpop.permute.xlu0 %850  ;;  %v1073_v55 = vld [vmem:[#allocation2 + $0x49] sm:$0xff] }
  0x8e   : > { %1013 = vst.msk [vmem:[#allocation3] sm:$0xff] %vm1012_vm1, %v851_v60 }
  0x91   : > { %944 = vrot.lane.b32.xlu2 %v789_v58, %s4924_s12 }
  0x92   : > { %942 = vrot.lane.b32.xlu1 %v788_v61, %s4924_s12  ;;  %v5327_v61 = vld [vmem:[#allocation2 + $0x15f] sm:$0xff] }
  0x93   : > { %v879_v0 = vpop.permute.xlu2 %878  ;;  %940 = vrot.lane.b32.xlu0 %v787_v63, %s4924_s12  ;;  %v5329_v63 = vld [vmem:[#allocation2 + $0x10f] sm:$0xff]  ;;  %729 = vst.msk [vmem:[#allocation3 + $0x148] sm:$0xff] %vm507_vm0, %v5327_v61 }
  0x94   : > { %1027 = vst.msk [vmem:[#allocation3 + $0x70] sm:$0xff] %vm1012_vm1, %v879_v0  ;;  %v857_v1 = vpop.permute.xlu1 %856  ;;  %v1078_v0 = vld [vmem:[#allocation2 + $0x71] sm:$0xff] }
  0x95   : > { %1016 = vst.msk [vmem:[#allocation3 + $0x18] sm:$0xff] %vm1012_vm1, %v857_v1  ;;  %v853_v7 = vpop.permute.xlu0 %852  ;;  %v5333_v1 = vld [vmem:[#allocation2 + $0x107] sm:$0xff] }
  0x96   : > { %1014 = vst.msk [vmem:[#allocation3 + $0x8] sm:$0xff] %vm1012_vm1, %v853_v7  ;;  %v1077_v7 = vld [vmem:[#allocation2 + $0x69] sm:$0xff] }
  0x97   : > { %719 = vst.msk [vmem:[#allocation3 + $0xf8] sm:$0xff] %vm507_vm0, %v5329_v63 }
  0x98   : > { %718 = vst.msk [vmem:[#allocation3 + $0xf0] sm:$0xff] %vm507_vm0, %v5333_v1 }
  0x99   : > { %950 = vrot.lane.b32.xlu2 %v792_v4, %s4924_s12 }
  0x9a   : > { %948 = vrot.lane.b32.xlu1 %v791_v8, %s4924_s12  ;;  %v1076_v8 = vld [vmem:[#allocation2 + $0x61] sm:$0xff] }
  0x9b   : > { %v885_v10 = vpop.permute.xlu2 %884  ;;  %946 = vrot.lane.b32.xlu0 %v790_v9, %s4924_s12 }
  0x9c   : > { %1030 = vst.msk [vmem:[#allocation3 + $0x88] sm:$0xff] %vm1012_vm1, %v885_v10  ;;  %v865_v11 = vpop.permute.xlu1 %864 }
  0x9d   : > { %1020 = vst.msk [vmem:[#allocation3 + $0x38] sm:$0xff] %vm1012_vm1, %v865_v11  ;;  %v863_v17 = vpop.permute.xlu0 %862  ;;  %v5345_v11 = vld [vmem:[#allocation2 + $0x177] sm:$0xff] }
  0x9e   : > { %1019 = vst.msk [vmem:[#allocation3 + $0x30] sm:$0xff] %vm1012_vm1, %v863_v17  ;;  %v1081_v17 = vld [vmem:[#allocation2 + $0x89] sm:$0xff] }
  0x9f   : > { %732 = vst.msk [vmem:[#allocation3 + $0x160] sm:$0xff] %vm507_vm0, %v5345_v11 }
  0xa1   : > { %956 = vrot.lane.b32.xlu2 %v795_v15, %s4924_s12  ;;  %v5347_v15 = vld [vmem:[#allocation2 + $0x127] sm:$0xff] }
  0xa2   : > { %954 = vrot.lane.b32.xlu1 %v794_v18, %s4924_s12  ;;  %v5351_v18 = vld [vmem:[#allocation2 + $0x11f] sm:$0xff]  ;;  %722 = vst.msk [vmem:[#allocation3 + $0x110] sm:$0xff] %vm507_vm0, %v5347_v15 }
  0xa3   : > { %v891_v21 = vpop.permute.xlu2 %890  ;;  %952 = vrot.lane.b32.xlu0 %v793_v20, %s4924_s12  ;;  %721 = vst.msk [vmem:[#allocation3 + $0x108] sm:$0xff] %vm507_vm0, %v5351_v18 }
  0xa4   : > { %1033 = vst.msk [vmem:[#allocation3 + $0xa0] sm:$0xff] %vm1012_vm1, %v891_v21  ;;  %v871_v22 = vpop.permute.xlu1 %870  ;;  %v1080_v21 = vld [vmem:[#allocation2 + $0x81] sm:$0xff] }
  0xa5   : > { %1023 = vst.msk [vmem:[#allocation3 + $0x50] sm:$0xff] %vm1012_vm1, %v871_v22  ;;  %v869_v27 = vpop.permute.xlu0 %868  ;;  %v1079_v22 = vld [vmem:[#allocation2 + $0x79] sm:$0xff] }
  0xa6   : > { %1022 = vst.msk [vmem:[#allocation3 + $0x48] sm:$0xff] %vm1012_vm1, %v869_v27 }
  0xa9   : > { %1179 = vrot.lane.b32.xlu2 %v1069_v25, %s4925_s13 }
  0xaa   : > { %1177 = vrot.lane.b32.xlu1 %v1068_v28, %s4925_s13  ;;  %v5363_v28 = vld [vmem:[#allocation2 + $0x18f] sm:$0xff] }
  0xab   : > { %v897_v32 = vpop.permute.xlu2 %896  ;;  %1175 = vrot.lane.b32.xlu0 %v1067_v31, %s4925_s13  ;;  %v5365_v31 = vld [vmem:[#allocation2 + $0x13f] sm:$0xff]  ;;  %735 = vst.msk [vmem:[#allocation3 + $0x178] sm:$0xff] %vm507_vm0, %v5363_v28 }
  0xac   : > { %1036 = vst.msk [vmem:[#allocation3 + $0xb8] sm:$0xff] %vm1012_vm1, %v897_v32  ;;  %v877_v33 = vpop.permute.xlu1 %876  ;;  %v1084_v32 = vld [vmem:[#allocation2 + $0xa1] sm:$0xff] }
  0xad   : > { %1026 = vst.msk [vmem:[#allocation3 + $0x68] sm:$0xff] %vm1012_vm1, %v877_v33  ;;  %v875_v38 = vpop.permute.xlu0 %874  ;;  %v5369_v33 = vld [vmem:[#allocation2 + $0x137] sm:$0xff] }
  0xae   : > { %1025 = vst.msk [vmem:[#allocation3 + $0x60] sm:$0xff] %vm1012_vm1, %v875_v38  ;;  %v1083_v38 = vld [vmem:[#allocation2 + $0x99] sm:$0xff] }
  0xaf   : > { %725 = vst.msk [vmem:[#allocation3 + $0x128] sm:$0xff] %vm507_vm0, %v5365_v31 }
  0xb0   : > { %724 = vst.msk [vmem:[#allocation3 + $0x120] sm:$0xff] %vm507_vm0, %v5369_v33 }
  0xb1   : > { %1185 = vrot.lane.b32.xlu2 %v1072_v36, %s4925_s13 }
  0xb2   : > { %1183 = vrot.lane.b32.xlu1 %v1071_v42, %s4925_s13  ;;  %v1082_v42 = vld [vmem:[#allocation2 + $0x91] sm:$0xff] }
  0xb3   : > { %v903_v44 = vpop.permute.xlu2 %902  ;;  %1181 = vrot.lane.b32.xlu0 %v1070_v43, %s4925_s13 }
  0xb4   : > { %1039 = vst.msk [vmem:[#allocation3 + $0xd0] sm:$0xff] %vm1012_vm1, %v903_v44  ;;  %v883_v45 = vpop.permute.xlu1 %882 }
  0xb5   : > { %1029 = vst.msk [vmem:[#allocation3 + $0x80] sm:$0xff] %vm1012_vm1, %v883_v45  ;;  %v881_v53 = vpop.permute.xlu0 %880  ;;  %v5381_v45 = vld [vmem:[#allocation2 + $0x1a7] sm:$0xff] }
  0xb6   : > { %1028 = vst.msk [vmem:[#allocation3 + $0x78] sm:$0xff] %vm1012_vm1, %v881_v53  ;;  %v1087_v53 = vld [vmem:[#allocation2 + $0xb9] sm:$0xff] }
  0xb7   : > { %738 = vst.msk [vmem:[#allocation3 + $0x190] sm:$0xff] %vm507_vm0, %v5381_v45 }
  0xb9   : > { %1191 = vrot.lane.b32.xlu2 %v1075_v51, %s4925_s13  ;;  %v5383_v51 = vld [vmem:[#allocation2 + $0x157] sm:$0xff] }
  0xba   : > { %1189 = vrot.lane.b32.xlu1 %v1074_v54, %s4925_s13  ;;  %v5387_v54 = vld [vmem:[#allocation2 + $0x14f] sm:$0xff]  ;;  %728 = vst.msk [vmem:[#allocation3 + $0x140] sm:$0xff] %vm507_vm0, %v5383_v51 }
  0xbb   : > { %v909_v58 = vpop.permute.xlu2 %908  ;;  %1187 = vrot.lane.b32.xlu0 %v1073_v55, %s4925_s13  ;;  %727 = vst.msk [vmem:[#allocation3 + $0x138] sm:$0xff] %vm507_vm0, %v5387_v54 }
  0xbc   : > { %1042 = vst.msk [vmem:[#allocation3 + $0xe8] sm:$0xff] %vm1012_vm1, %v909_v58  ;;  %v889_v60 = vpop.permute.xlu1 %888  ;;  %v1086_v58 = vld [vmem:[#allocation2 + $0xb1] sm:$0xff] }
  0xbd   : > { %1032 = vst.msk [vmem:[#allocation3 + $0x98] sm:$0xff] %vm1012_vm1, %v889_v60  ;;  %v887_v4 = vpop.permute.xlu0 %886  ;;  %v1085_v60 = vld [vmem:[#allocation2 + $0xa9] sm:$0xff] }
  0xbe   : > { %1031 = vst.msk [vmem:[#allocation3 + $0x90] sm:$0xff] %vm1012_vm1, %v887_v4 }
  0xc1   : > { %1197 = vrot.lane.b32.xlu2 %v1078_v0, %s4925_s13 }
  0xc2   : > { %1195 = vrot.lane.b32.xlu1 %v1077_v7, %s4925_s13  ;;  %v5399_v7 = vld [vmem:[#allocation2 + $0x1bf] sm:$0xff] }
  0xc3   : > { %v915_v9 = vpop.permute.xlu2 %914  ;;  %1193 = vrot.lane.b32.xlu0 %v1076_v8, %s4925_s13  ;;  %v5401_v8 = vld [vmem:[#allocation2 + $0x16f] sm:$0xff]  ;;  %741 = vst.msk [vmem:[#allocation3 + $0x1a8] sm:$0xff] %vm507_vm0, %v5399_v7 }
  0xc4   : > { %1045 = vst.msk [vmem:[#allocation3 + $0x100] sm:$0xff] %vm1012_vm1, %v915_v9  ;;  %v895_v10 = vpop.permute.xlu1 %894  ;;  %v1090_v9 = vld [vmem:[#allocation2 + $0xd1] sm:$0xff] }
  0xc5   : > { %1035 = vst.msk [vmem:[#allocation3 + $0xb0] sm:$0xff] %vm1012_vm1, %v895_v10  ;;  %v893_v20 = vpop.permute.xlu0 %892  ;;  %v5405_v10 = vld [vmem:[#allocation2 + $0x167] sm:$0xff] }
  0xc6   : > { %1034 = vst.msk [vmem:[#allocation3 + $0xa8] sm:$0xff] %vm1012_vm1, %v893_v20  ;;  %v1089_v20 = vld [vmem:[#allocation2 + $0xc9] sm:$0xff] }
  0xc7   : > { %731 = vst.msk [vmem:[#allocation3 + $0x158] sm:$0xff] %vm507_vm0, %v5401_v8 }
  0xc8   : > { %730 = vst.msk [vmem:[#allocation3 + $0x150] sm:$0xff] %vm507_vm0, %v5405_v10 }
  0xc9   : > { %1203 = vrot.lane.b32.xlu2 %v1081_v17, %s4925_s13 }
  0xca   : > { %1201 = vrot.lane.b32.xlu1 %v1080_v21, %s4925_s13  ;;  %v1088_v21 = vld [vmem:[#allocation2 + $0xc1] sm:$0xff] }
  0xcb   : > { %v921_v25 = vpop.permute.xlu2 %920  ;;  %1199 = vrot.lane.b32.xlu0 %v1079_v22, %s4925_s13 }
  0xcc   : > { %1048 = vst.msk [vmem:[#allocation3 + $0x118] sm:$0xff] %vm1012_vm1, %v921_v25  ;;  %v901_v27 = vpop.permute.xlu1 %900 }
  0xcd   : > { %1038 = vst.msk [vmem:[#allocation3 + $0xc8] sm:$0xff] %vm1012_vm1, %v901_v27  ;;  %v899_v36 = vpop.permute.xlu0 %898  ;;  %v5417_v27 = vld [vmem:[#allocation2 + $0x187] sm:$0xff] }
  0xce   : > { %1037 = vst.msk [vmem:[#allocation3 + $0xc0] sm:$0xff] %vm1012_vm1, %v899_v36  ;;  %v1093_v36 = vld [vmem:[#allocation2 + $0xe9] sm:$0xff] }
  0xcf   : > { %734 = vst.msk [vmem:[#allocation3 + $0x170] sm:$0xff] %vm507_vm0, %v5417_v27 }
  0xd1   : > { %1209 = vrot.lane.b32.xlu2 %v1084_v32, %s4925_s13  ;;  %v5419_v32 = vld [vmem:[#allocation2 + $0x17f] sm:$0xff] }
  0xd2   : > { %1207 = vrot.lane.b32.xlu1 %v1083_v38, %s4925_s13  ;;  %733 = vst.msk [vmem:[#allocation3 + $0x168] sm:$0xff] %vm507_vm0, %v5419_v32 }
  0xd3   : > { %v927_v43 = vpop.permute.xlu2 %926  ;;  %1205 = vrot.lane.b32.xlu0 %v1082_v42, %s4925_s13  ;;  %v1092_v42 = vld [vmem:[#allocation2 + $0xe1] sm:$0xff] }
  0xd4   : > { %1051 = vst.msk [vmem:[#allocation3 + $0x130] sm:$0xff] %vm1012_vm1, %v927_v43  ;;  %v907_v44 = vpop.permute.xlu1 %906  ;;  %v1091_v43 = vld [vmem:[#allocation2 + $0xd9] sm:$0xff] }
  0xd5   : > { %1041 = vst.msk [vmem:[#allocation3 + $0xe0] sm:$0xff] %vm1012_vm1, %v907_v44  ;;  %v905_v55 = vpop.permute.xlu0 %904 }
  0xd6   : > { %1040 = vst.msk [vmem:[#allocation3 + $0xd8] sm:$0xff] %vm1012_vm1, %v905_v55  ;;  %v5431_v55 = vld [vmem:[#allocation2 + $0x19f] sm:$0xff] }
  0xd7   : > { %737 = vst.msk [vmem:[#allocation3 + $0x188] sm:$0xff] %vm507_vm0, %v5431_v55 }
  0xd9   : > { %1215 = vrot.lane.b32.xlu2 %v1087_v53, %s4925_s13 }
  0xda   : > { %1213 = vrot.lane.b32.xlu1 %v1086_v58, %s4925_s13  ;;  %v5433_v58 = vld [vmem:[#allocation2 + $0x197] sm:$0xff] }
  0xdb   : > { %v933_v0 = vpop.permute.xlu2 %932  ;;  %1211 = vrot.lane.b32.xlu0 %v1085_v60, %s4925_s13  ;;  %v1096_v60 = vld [vmem:[#allocation2 + $0x101] sm:$0xff]  ;;  %736 = vst.msk [vmem:[#allocation3 + $0x180] sm:$0xff] %vm507_vm0, %v5433_v58 }
  0xdc   : > { %1054 = vst.msk [vmem:[#allocation3 + $0x148] sm:$0xff] %vm1012_vm1, %v933_v0  ;;  %v913_v4 = vpop.permute.xlu1 %912 }
  0xdd   : > { %1044 = vst.msk [vmem:[#allocation3 + $0xf8] sm:$0xff] %vm1012_vm1, %v913_v4  ;;  %v911_v17 = vpop.permute.xlu0 %910  ;;  %v1095_v4 = vld [vmem:[#allocation2 + $0xf9] sm:$0xff] }
  0xde   : > { %1043 = vst.msk [vmem:[#allocation3 + $0xf0] sm:$0xff] %vm1012_vm1, %v911_v17 }
  0xe1   : > { %1221 = vrot.lane.b32.xlu2 %v1090_v9, %s4925_s13  ;;  %v1094_v9 = vld [vmem:[#allocation2 + $0xf1] sm:$0xff] }
  0xe2   : > { %1219 = vrot.lane.b32.xlu1 %v1089_v20, %s4925_s13 }
  0xe3   : > { %v939_v22 = vpop.permute.xlu2 %938  ;;  %1217 = vrot.lane.b32.xlu0 %v1088_v21, %s4925_s13  ;;  %v5445_v21 = vld [vmem:[#allocation2 + $0x1b7] sm:$0xff] }
  0xe4   : > { %1057 = vst.msk [vmem:[#allocation3 + $0x160] sm:$0xff] %vm1012_vm1, %v939_v22  ;;  %v919_v25 = vpop.permute.xlu1 %918  ;;  %v5447_v22 = vld [vmem:[#allocation2 + $0x1af] sm:$0xff] }
  0xe5   : > { %1047 = vst.msk [vmem:[#allocation3 + $0x110] sm:$0xff] %vm1012_vm1, %v919_v25  ;;  %v917_v38 = vpop.permute.xlu0 %916  ;;  %v1099_v25 = vld [vmem:[#allocation2 + $0x119] sm:$0xff] }
  0xe6   : > { %1046 = vst.msk [vmem:[#allocation3 + $0x108] sm:$0xff] %vm1012_vm1, %v917_v38  ;;  %v1098_v38 = vld [vmem:[#allocation2 + $0x111] sm:$0xff] }
  0xe7   : > { %740 = vst.msk [vmem:[#allocation3 + $0x1a0] sm:$0xff] %vm507_vm0, %v5445_v21 }
  0xe8   : > { %739 = vst.msk [vmem:[#allocation3 + $0x198] sm:$0xff] %vm507_vm0, %v5447_v22 }
  0xe9   : > { %1227 = vrot.lane.b32.xlu2 %v1093_v36, %s4925_s13 }
  0xea   : > { %1225 = vrot.lane.b32.xlu1 %v1092_v42, %s4925_s13  ;;  %v1097_v42 = vld [vmem:[#allocation2 + $0x109] sm:$0xff] }
  0xeb   : > { %v945_v44 = vpop.permute.xlu2 %944  ;;  %1223 = vrot.lane.b32.xlu0 %v1091_v43, %s4925_s13 }
  0xec   : > { %1060 = vst.msk [vmem:[#allocation3 + $0x178] sm:$0xff] %vm1012_vm1, %v945_v44  ;;  %v925_v53 = vpop.permute.xlu1 %924 }
  0xed   : > { %1050 = vst.msk [vmem:[#allocation3 + $0x128] sm:$0xff] %vm1012_vm1, %v925_v53  ;;  %v923_v0 = vpop.permute.xlu0 %922  ;;  %v1102_v53 = vld [vmem:[#allocation2 + $0x131] sm:$0xff] }
  0xee   : > { %1049 = vst.msk [vmem:[#allocation3 + $0x120] sm:$0xff] %vm1012_vm1, %v923_v0  ;;  %v1101_v0 = vld [vmem:[#allocation2 + $0x129] sm:$0xff] }
  0xf1   : > { %1233 = vrot.lane.b32.xlu2 %v1096_v60, %s4925_s13 }
  0xf2   : > { %1231 = vrot.lane.b32.xlu1 %v1095_v4, %s4925_s13  ;;  %v1100_v4 = vld [vmem:[#allocation2 + $0x121] sm:$0xff] }
  0xf3   : > { %v951_v17 = vpop.permute.xlu2 %950  ;;  %1229 = vrot.lane.b32.xlu0 %v1094_v9, %s4925_s13 }
  0xf4   : > { %1063 = vst.msk [vmem:[#allocation3 + $0x190] sm:$0xff] %vm1012_vm1, %v951_v17  ;;  %v931_v20 = vpop.permute.xlu1 %930 }
  0xf5   : > { %1053 = vst.msk [vmem:[#allocation3 + $0x140] sm:$0xff] %vm1012_vm1, %v931_v20  ;;  %v929_v36 = vpop.permute.xlu0 %928  ;;  %v1105_v20 = vld [vmem:[#allocation2 + $0x149] sm:$0xff] }
  0xf6   : > { %1052 = vst.msk [vmem:[#allocation3 + $0x138] sm:$0xff] %vm1012_vm1, %v929_v36  ;;  %v1104_v36 = vld [vmem:[#allocation2 + $0x141] sm:$0xff] }
  0xf9   : > { %1239 = vrot.lane.b32.xlu2 %v1099_v25, %s4925_s13 }
  0xfa   : > { %1237 = vrot.lane.b32.xlu1 %v1098_v38, %s4925_s13  ;;  %v1103_v38 = vld [vmem:[#allocation2 + $0x139] sm:$0xff] }
  0xfb   : > { %v957_v43 = vpop.permute.xlu2 %956  ;;  %1235 = vrot.lane.b32.xlu0 %v1097_v42, %s4925_s13 }
  0xfc   : > { %1066 = vst.msk [vmem:[#allocation3 + $0x1a8] sm:$0xff] %vm1012_vm1, %v957_v43  ;;  %v937_v44 = vpop.permute.xlu1 %936 }
  0xfd   : > { %1056 = vst.msk [vmem:[#allocation3 + $0x158] sm:$0xff] %vm1012_vm1, %v937_v44  ;;  %v935_v60 = vpop.permute.xlu0 %934  ;;  %v565_v44 = vld [vmem:[%s5000_s8 + $0x198] sm:$0xff] }
  0xfe   : > { %1055 = vst.msk [vmem:[#allocation3 + $0x150] sm:$0xff] %vm1012_vm1, %v935_v60 }
  0xff   : > { %619 = vst.msk [vmem:[#allocation2 + $0x1c8] sm:$0xff] %vm507_vm0, %v565_v44  ;;  %v1114_v44 = vld [vmem:[#allocation2 + $0x191] sm:$0xff] }
 0x101   : > { %1245 = vrot.lane.b32.xlu2 %v1102_v53, %s4925_s13  ;;  %v1108_v53 = vld [vmem:[#allocation2 + $0x161] sm:$0xff] }
 0x102   : > { %1243 = vrot.lane.b32.xlu1 %v1101_v0, %s4925_s13  ;;  %v1107_v0 = vld [vmem:[#allocation2 + $0x159] sm:$0xff] }
 0x103   : > { %v1180_v9 = vpop.permute.xlu2 %1179  ;;  %1241 = vrot.lane.b32.xlu0 %v1100_v4, %s4925_s13  ;;  %v1106_v4 = vld [vmem:[#allocation2 + $0x151] sm:$0xff] }
 0x104   : > { %1340 = vst.msk [vmem:[#allocation3 + $0x10] sm:$0xff] %vm1337_vm2, %v1180_v9  ;;  %v943_v17 = vpop.permute.xlu1 %942 }
 0x105   : > { %1059 = vst.msk [vmem:[#allocation3 + $0x170] sm:$0xff] %vm1012_vm1, %v943_v17  ;;  %v941_v25 = vpop.permute.xlu0 %940 }
 0x106   : > { %1058 = vst.msk [vmem:[#allocation3 + $0x168] sm:$0xff] %vm1012_vm1, %v941_v25 }
 0x109   : > { %1251 = vrot.lane.b32.xlu2 %v1105_v20, %s4925_s13  ;;  %v1111_v20 = vld [vmem:[#allocation2 + $0x179] sm:$0xff] }
 0x10a   : > { %1249 = vrot.lane.b32.xlu1 %v1104_v36, %s4925_s13  ;;  %v1110_v36 = vld [vmem:[#allocation2 + $0x171] sm:$0xff] }
 0x10b   : > { %v1186_v42 = vpop.permute.xlu2 %1185  ;;  %1247 = vrot.lane.b32.xlu0 %v1103_v38, %s4925_s13  ;;  %v1109_v38 = vld [vmem:[#allocation2 + $0x169] sm:$0xff] }
 0x10c   : > { %1343 = vst.msk [vmem:[#allocation3 + $0x28] sm:$0xff] %vm1337_vm2, %v1186_v42  ;;  %v949_v43 = vpop.permute.xlu1 %948 }
 0x10d   : > { %1062 = vst.msk [vmem:[#allocation3 + $0x188] sm:$0xff] %vm1012_vm1, %v949_v43  ;;  %v947_v60 = vpop.permute.xlu0 %946 }
 0x10e   : > { %1061 = vst.msk [vmem:[#allocation3 + $0x180] sm:$0xff] %vm1012_vm1, %v947_v60  ;;  %v1113_v60 = vld [vmem:[#allocation2 + $0x189] sm:$0xff] }
 0x111   : > { %1257 = vrot.lane.b32.xlu2 %v1108_v53, %s4925_s13 }
 0x112   : > { %1255 = vrot.lane.b32.xlu1 %v1107_v0, %s4925_s13  ;;  %v1112_v0 = vld [vmem:[#allocation2 + $0x181] sm:$0xff] }
 0x113   : > { %v1192_v9 = vpop.permute.xlu2 %1191  ;;  %1253 = vrot.lane.b32.xlu0 %v1106_v4, %s4925_s13 }
 0x114   : > { %1346 = vst.msk [vmem:[#allocation3 + $0x40] sm:$0xff] %vm1337_vm2, %v1192_v9  ;;  %v955_v17 = vpop.permute.xlu1 %954 }
 0x115   : > { %1065 = vst.msk [vmem:[#allocation3 + $0x1a0] sm:$0xff] %vm1012_vm1, %v955_v17  ;;  %v953_v25 = vpop.permute.xlu0 %952  ;;  %v1117_v17 = vld [vmem:[#allocation2 + $0x1a9] sm:$0xff] }
 0x116   : > { %1064 = vst.msk [vmem:[#allocation3 + $0x198] sm:$0xff] %vm1012_vm1, %v953_v25  ;;  %v1116_v25 = vld [vmem:[#allocation2 + $0x1a1] sm:$0xff] }
 0x119   : > { %1263 = vrot.lane.b32.xlu2 %v1111_v20, %s4925_s13 }
 0x11a   : > { %1261 = vrot.lane.b32.xlu1 %v1110_v36, %s4925_s13  ;;  %v1115_v36 = vld [vmem:[#allocation2 + $0x199] sm:$0xff] }
 0x11b   : > { %v1198_v42 = vpop.permute.xlu2 %1197  ;;  %1259 = vrot.lane.b32.xlu0 %v1109_v38, %s4925_s13 }
 0x11c   : > { %1349 = vst.msk [vmem:[#allocation3 + $0x58] sm:$0xff] %vm1337_vm2, %v1198_v42  ;;  %v1178_v43 = vpop.permute.xlu1 %1177 }
 0x11d   : > { %1339 = vst.msk [vmem:[#allocation3 + $0x8] sm:$0xff] %vm1337_vm2, %v1178_v43  ;;  %v1176_v53 = vpop.permute.xlu0 %1175  ;;  %v1120_v43 = vld [vmem:[#allocation2 + $0x1c1] sm:$0xff] }
 0x11e   : > { %1338 = vst.msk [vmem:[#allocation3] sm:$0xff] %vm1337_vm2, %v1176_v53  ;;  %v1119_v53 = vld [vmem:[#allocation2 + $0x1b9] sm:$0xff] }
 0x121   : > { %1269 = vrot.lane.b32.xlu2 %v1114_v44, %s4925_s13 }
 0x122   : > { %1267 = vrot.lane.b32.xlu1 %v1113_v60, %s4925_s13  ;;  %v1118_v60 = vld [vmem:[#allocation2 + $0x1b1] sm:$0xff] }
 0x123   : > { %v1204_v4 = vpop.permute.xlu2 %1203  ;;  %1265 = vrot.lane.b32.xlu0 %v1112_v0, %s4925_s13 }
 0x124   : > { %1352 = vst.msk [vmem:[#allocation3 + $0x70] sm:$0xff] %vm1337_vm2, %v1204_v4  ;;  %v1184_v9 = vpop.permute.xlu1 %1183 }
 0x125   : > { %1342 = vst.msk [vmem:[#allocation3 + $0x20] sm:$0xff] %vm1337_vm2, %v1184_v9  ;;  %v1182_v20 = vpop.permute.xlu0 %1181 }
 0x126   : > { %1341 = vst.msk [vmem:[#allocation3 + $0x18] sm:$0xff] %vm1337_vm2, %v1182_v20 }
 0x129   : > { %1275 = vrot.lane.b32.xlu2 %v1117_v17, %s4925_s13 }
 0x12a   : > { %1273 = vrot.lane.b32.xlu1 %v1116_v25, %s4925_s13 }
 0x12b   : > { %v1210_v38 = vpop.permute.xlu2 %1209  ;;  %1271 = vrot.lane.b32.xlu0 %v1115_v36, %s4925_s13  ;;  %v566_v36 = vld [vmem:[%s5000_s8 + $0x1a0] sm:$0xff] }
 0x12c   : > { %1355 = vst.msk [vmem:[#allocation3 + $0x88] sm:$0xff] %vm1337_vm2, %v1210_v38  ;;  %v1190_v42 = vpop.permute.xlu1 %1189  ;;  %v567_v38 = vld [vmem:[%s5000_s8 + $0x1a8] sm:$0xff] }
 0x12d   : > { %1345 = vst.msk [vmem:[#allocation3 + $0x38] sm:$0xff] %vm1337_vm2, %v1190_v42  ;;  %v1188_v44 = vpop.permute.xlu0 %1187 }
 0x12e   : > { %1344 = vst.msk [vmem:[#allocation3 + $0x30] sm:$0xff] %vm1337_vm2, %v1188_v44 }
 0x12f   : > { %620 = vst.msk [vmem:[#allocation2 + $0x1d0] sm:$0xff] %vm507_vm0, %v566_v36  ;;  %v1739_v36 = vld [vmem:[#allocation2 + $0xe0] sm:$0xff] }
 0x130   : > { %621 = vst.msk [vmem:[#allocation2 + $0x1d8] sm:$0xff] %vm507_vm0, %v567_v38  ;;  %v1738_v38 = vld [vmem:[#allocation2 + $0xd8] sm:$0xff] }
 0x131   : > { %1281 = vrot.lane.b32.xlu2 %v1120_v43, %s4925_s13 }
 0x132   : > { %1279 = vrot.lane.b32.xlu1 %v1119_v53, %s4925_s13 }
 0x133   : > { %v1216_v0 = vpop.permute.xlu2 %1215  ;;  %1277 = vrot.lane.b32.xlu0 %v1118_v60, %s4925_s13  ;;  %v1718_v60 = vld [vmem:[#allocation2 + $0x38] sm:$0xff] }
 0x134   : > { %1358 = vst.msk [vmem:[#allocation3 + $0xa0] sm:$0xff] %vm1337_vm2, %v1216_v0  ;;  %v1196_v4 = vpop.permute.xlu1 %1195  ;;  %v1717_v0 = vld [vmem:[#allocation2 + $0x30] sm:$0xff] }
 0x135   : > { %1348 = vst.msk [vmem:[#allocation3 + $0x50] sm:$0xff] %vm1337_vm2, %v1196_v4  ;;  %v1194_v9 = vpop.permute.xlu0 %1193 }
 0x136   : > { %1347 = vst.msk [vmem:[#allocation3 + $0x48] sm:$0xff] %vm1337_vm2, %v1194_v9  ;;  %v1444_v43 = vld [vmem:[#allocation2 + $0x1cf] sm:$0xff] }
 0x139   : > { %1504 = vrot.lane.b32.xlu2 %v5119_v5, %s4926_s14 }
 0x13a   : > { %1502 = vrot.lane.b32.xlu1 %v5106_v62, %s4926_s14 }
 0x13b   : > { %v1222_v17 = vpop.permute.xlu2 %1221  ;;  %1500 = vrot.lane.b32.xlu0 %v5164_v30, %s4926_s14 }
 0x13c   : > { %1361 = vst.msk [vmem:[#allocation3 + $0xb8] sm:$0xff] %vm1337_vm2, %v1222_v17  ;;  %v1202_v20 = vpop.permute.xlu1 %1201  ;;  %v1722_v17 = vld [vmem:[#allocation2 + $0x58] sm:$0xff] }
 0x13d   : > { %1351 = vst.msk [vmem:[#allocation3 + $0x68] sm:$0xff] %vm1337_vm2, %v1202_v20  ;;  %v1200_v25 = vpop.permute.xlu0 %1199 }
 0x13e   : > { %1350 = vst.msk [vmem:[#allocation3 + $0x60] sm:$0xff] %vm1337_vm2, %v1200_v25  ;;  %v1721_v25 = vld [vmem:[#allocation2 + $0x50] sm:$0xff] }
 0x141   : > { %1510 = vrot.lane.b32.xlu2 %v5132_v12, %s4926_s14 }
 0x142   : > { %1508 = vrot.lane.b32.xlu1 %v5183_v40, %s4926_s14 }
 0x143   : > { %v1228_v5 = vpop.permute.xlu2 %1227  ;;  %1506 = vrot.lane.b32.xlu0 %v5185_v41, %s4926_s14 }
 0x144   : > { %1364 = vst.msk [vmem:[#allocation3 + $0xd0] sm:$0xff] %vm1337_vm2, %v1228_v5  ;;  %v1208_v62 = vpop.permute.xlu1 %1207  ;;  %v1720_v5 = vld [vmem:[#allocation2 + $0x48] sm:$0xff] }
 0x145   : > { %1354 = vst.msk [vmem:[#allocation3 + $0x80] sm:$0xff] %vm1337_vm2, %v1208_v62  ;;  %v1206_v30 = vpop.permute.xlu0 %1205 }
 0x146   : > { %1353 = vst.msk [vmem:[#allocation3 + $0x78] sm:$0xff] %vm1337_vm2, %v1206_v30 }
 0x149   : > { %1516 = vrot.lane.b32.xlu2 %v5146_v19, %s4926_s14 }
 0x14a   : > { %1514 = vrot.lane.b32.xlu1 %v5204_v49, %s4926_s14 }
 0x14b   : > { %v1234_v12 = vpop.permute.xlu2 %1233  ;;  %1512 = vrot.lane.b32.xlu0 %v5206_v50, %s4926_s14 }
 0x14c   : > { %1367 = vst.msk [vmem:[#allocation3 + $0xe8] sm:$0xff] %vm1337_vm2, %v1234_v12  ;;  %v1214_v40 = vpop.permute.xlu1 %1213  ;;  %v1725_v12 = vld [vmem:[#allocation2 + $0x70] sm:$0xff] }
 0x14d   : > { %1357 = vst.msk [vmem:[#allocation3 + $0x98] sm:$0xff] %vm1337_vm2, %v1214_v40  ;;  %v1212_v41 = vpop.permute.xlu0 %1211 }
 0x14e   : > { %1356 = vst.msk [vmem:[#allocation3 + $0x90] sm:$0xff] %vm1337_vm2, %v1212_v41  ;;  %v1724_v41 = vld [vmem:[#allocation2 + $0x68] sm:$0xff] }
 0x151   : > { %1522 = vrot.lane.b32.xlu2 %v5162_v29, %s4926_s14 }
 0x152   : > { %1520 = vrot.lane.b32.xlu1 %v5221_v57, %s4926_s14 }
 0x153   : > { %v1240_v19 = vpop.permute.xlu2 %1239  ;;  %1518 = vrot.lane.b32.xlu0 %v5225_v59, %s4926_s14 }
 0x154   : > { %1370 = vst.msk [vmem:[#allocation3 + $0x100] sm:$0xff] %vm1337_vm2, %v1240_v19  ;;  %v1220_v49 = vpop.permute.xlu1 %1219  ;;  %v1723_v19 = vld [vmem:[#allocation2 + $0x60] sm:$0xff] }
 0x155   : > { %1360 = vst.msk [vmem:[#allocation3 + $0xb0] sm:$0xff] %vm1337_vm2, %v1220_v49  ;;  %v1218_v50 = vpop.permute.xlu0 %1217 }
 0x156   : > { %1359 = vst.msk [vmem:[#allocation3 + $0xa8] sm:$0xff] %vm1337_vm2, %v1218_v50 }
 0x159   : > { %1528 = vrot.lane.b32.xlu2 %v5181_v39, %s4926_s14 }
 0x15a   : > { %1526 = vrot.lane.b32.xlu1 %v5239_v3, %s4926_s14 }
 0x15b   : > { %v1246_v29 = vpop.permute.xlu2 %1245  ;;  %1524 = vrot.lane.b32.xlu0 %v5243_v6, %s4926_s14 }
 0x15c   : > { %1373 = vst.msk [vmem:[#allocation3 + $0x118] sm:$0xff] %vm1337_vm2, %v1246_v29  ;;  %v1226_v57 = vpop.permute.xlu1 %1225  ;;  %v1728_v29 = vld [vmem:[#allocation2 + $0x88] sm:$0xff] }
 0x15d   : > { %1363 = vst.msk [vmem:[#allocation3 + $0xc8] sm:$0xff] %vm1337_vm2, %v1226_v57  ;;  %v1224_v59 = vpop.permute.xlu0 %1223 }
 0x15e   : > { %1362 = vst.msk [vmem:[#allocation3 + $0xc0] sm:$0xff] %vm1337_vm2, %v1224_v59  ;;  %v1727_v59 = vld [vmem:[#allocation2 + $0x80] sm:$0xff] }
 0x161   : > { %1534 = vrot.lane.b32.xlu2 %v5202_v48, %s4926_s14 }
 0x162   : > { %1532 = vrot.lane.b32.xlu1 %v5257_v14, %s4926_s14 }
 0x163   : > { %v1252_v39 = vpop.permute.xlu2 %1251  ;;  %1530 = vrot.lane.b32.xlu0 %v5261_v16, %s4926_s14 }
 0x164   : > { %1376 = vst.msk [vmem:[#allocation3 + $0x130] sm:$0xff] %vm1337_vm2, %v1252_v39  ;;  %v1232_v3 = vpop.permute.xlu1 %1231  ;;  %v1726_v39 = vld [vmem:[#allocation2 + $0x78] sm:$0xff] }
 0x165   : > { %1366 = vst.msk [vmem:[#allocation3 + $0xe0] sm:$0xff] %vm1337_vm2, %v1232_v3  ;;  %v1230_v6 = vpop.permute.xlu0 %1229 }
 0x166   : > { %1365 = vst.msk [vmem:[#allocation3 + $0xd8] sm:$0xff] %vm1337_vm2, %v1230_v6 }
 0x169   : > { %1540 = vrot.lane.b32.xlu2 %v5219_v56, %s4926_s14 }
 0x16a   : > { %1538 = vrot.lane.b32.xlu1 %v5275_v24, %s4926_s14 }
 0x16b   : > { %v1258_v48 = vpop.permute.xlu2 %1257  ;;  %1536 = vrot.lane.b32.xlu0 %v5279_v26, %s4926_s14 }
 0x16c   : > { %1379 = vst.msk [vmem:[#allocation3 + $0x148] sm:$0xff] %vm1337_vm2, %v1258_v48  ;;  %v1238_v14 = vpop.permute.xlu1 %1237  ;;  %v1731_v48 = vld [vmem:[#allocation2 + $0xa0] sm:$0xff] }
 0x16d   : > { %1369 = vst.msk [vmem:[#allocation3 + $0xf8] sm:$0xff] %vm1337_vm2, %v1238_v14  ;;  %v1236_v16 = vpop.permute.xlu0 %1235 }
 0x16e   : > { %1368 = vst.msk [vmem:[#allocation3 + $0xf0] sm:$0xff] %vm1337_vm2, %v1236_v16  ;;  %v1730_v16 = vld [vmem:[#allocation2 + $0x98] sm:$0xff] }
 0x171   : > { %1546 = vrot.lane.b32.xlu2 %v5237_v2, %s4926_s14 }
 0x172   : > { %1544 = vrot.lane.b32.xlu1 %v5293_v35, %s4926_s14 }
 0x173   : > { %v1264_v56 = vpop.permute.xlu2 %1263  ;;  %1542 = vrot.lane.b32.xlu0 %v5297_v37, %s4926_s14 }
 0x174   : > { %1382 = vst.msk [vmem:[#allocation3 + $0x160] sm:$0xff] %vm1337_vm2, %v1264_v56  ;;  %v1244_v24 = vpop.permute.xlu1 %1243  ;;  %v1729_v56 = vld [vmem:[#allocation2 + $0x90] sm:$0xff] }
 0x175   : > { %1372 = vst.msk [vmem:[#allocation3 + $0x110] sm:$0xff] %vm1337_vm2, %v1244_v24  ;;  %v1242_v26 = vpop.permute.xlu0 %1241 }
 0x176   : > { %1371 = vst.msk [vmem:[#allocation3 + $0x108] sm:$0xff] %vm1337_vm2, %v1242_v26 }
 0x179   : > { %1552 = vrot.lane.b32.xlu2 %v5255_v13, %s4926_s14 }
 0x17a   : > { %1550 = vrot.lane.b32.xlu1 %v5311_v47, %s4926_s14 }
 0x17b   : > { %v1270_v2 = vpop.permute.xlu2 %1269  ;;  %1548 = vrot.lane.b32.xlu0 %v5315_v52, %s4926_s14 }
 0x17c   : > { %1385 = vst.msk [vmem:[#allocation3 + $0x178] sm:$0xff] %vm1337_vm2, %v1270_v2  ;;  %v1250_v35 = vpop.permute.xlu1 %1249  ;;  %v1734_v2 = vld [vmem:[#allocation2 + $0xb8] sm:$0xff] }
 0x17d   : > { %1375 = vst.msk [vmem:[#allocation3 + $0x128] sm:$0xff] %vm1337_vm2, %v1250_v35  ;;  %v1248_v37 = vpop.permute.xlu0 %1247 }
 0x17e   : > { %1374 = vst.msk [vmem:[#allocation3 + $0x120] sm:$0xff] %vm1337_vm2, %v1248_v37  ;;  %v1733_v37 = vld [vmem:[#allocation2 + $0xb0] sm:$0xff] }
 0x181   : > { %1558 = vrot.lane.b32.xlu2 %v5273_v23, %s4926_s14 }
 0x182   : > { %1556 = vrot.lane.b32.xlu1 %v5329_v63, %s4926_s14 }
 0x183   : > { %v1276_v13 = vpop.permute.xlu2 %1275  ;;  %1554 = vrot.lane.b32.xlu0 %v5333_v1, %s4926_s14 }
 0x184   : > { %1388 = vst.msk [vmem:[#allocation3 + $0x190] sm:$0xff] %vm1337_vm2, %v1276_v13  ;;  %v1256_v47 = vpop.permute.xlu1 %1255  ;;  %v1732_v13 = vld [vmem:[#allocation2 + $0xa8] sm:$0xff] }
 0x185   : > { %1378 = vst.msk [vmem:[#allocation3 + $0x140] sm:$0xff] %vm1337_vm2, %v1256_v47  ;;  %v1254_v52 = vpop.permute.xlu0 %1253 }
 0x186   : > { %1377 = vst.msk [vmem:[#allocation3 + $0x138] sm:$0xff] %vm1337_vm2, %v1254_v52 }
 0x189   : > { %1564 = vrot.lane.b32.xlu2 %v5291_v34, %s4926_s14 }
 0x18a   : > { %1562 = vrot.lane.b32.xlu1 %v5347_v15, %s4926_s14 }
 0x18b   : > { %v1282_v23 = vpop.permute.xlu2 %1281  ;;  %1560 = vrot.lane.b32.xlu0 %v5351_v18, %s4926_s14 }
 0x18c   : > { %1391 = vst.msk [vmem:[#allocation3 + $0x1a8] sm:$0xff] %vm1337_vm2, %v1282_v23  ;;  %v1262_v63 = vpop.permute.xlu1 %1261  ;;  %v1737_v23 = vld [vmem:[#allocation2 + $0xd0] sm:$0xff] }
 0x18d   : > { %1381 = vst.msk [vmem:[#allocation3 + $0x158] sm:$0xff] %vm1337_vm2, %v1262_v63  ;;  %v1260_v1 = vpop.permute.xlu0 %1259 }
 0x18e   : > { %1380 = vst.msk [vmem:[#allocation3 + $0x150] sm:$0xff] %vm1337_vm2, %v1260_v1  ;;  %v1736_v1 = vld [vmem:[#allocation2 + $0xc8] sm:$0xff] }
 0x191   : > { %1570 = vrot.lane.b32.xlu2 %v5309_v46, %s4926_s14 }
 0x192   : > { %1568 = vrot.lane.b32.xlu1 %v5365_v31, %s4926_s14 }
 0x193   : > { %v1505_v34 = vpop.permute.xlu2 %1504  ;;  %1566 = vrot.lane.b32.xlu0 %v5369_v33, %s4926_s14 }
 0x194   : > { %1665 = vst.msk [vmem:[#allocation3 + $0x10] sm:$0xff] %vm1662_vm3, %v1505_v34  ;;  %v1268_v15 = vpop.permute.xlu1 %1267  ;;  %v1735_v34 = vld [vmem:[#allocation2 + $0xc0] sm:$0xff] }
 0x195   : > { %1384 = vst.msk [vmem:[#allocation3 + $0x170] sm:$0xff] %vm1337_vm2, %v1268_v15  ;;  %v1266_v18 = vpop.permute.xlu0 %1265 }
 0x196   : > { %1383 = vst.msk [vmem:[#allocation3 + $0x168] sm:$0xff] %vm1337_vm2, %v1266_v18 }
 0x199   : > { %1576 = vrot.lane.b32.xlu2 %v5327_v61, %s4926_s14 }
 0x19a   : > { %1574 = vrot.lane.b32.xlu1 %v5383_v51, %s4926_s14 }
 0x19b   : > { %v1511_v46 = vpop.permute.xlu2 %1510  ;;  %1572 = vrot.lane.b32.xlu0 %v5387_v54, %s4926_s14 }
 0x19c   : > { %1668 = vst.msk [vmem:[#allocation3 + $0x28] sm:$0xff] %vm1662_vm3, %v1511_v46  ;;  %v1274_v31 = vpop.permute.xlu1 %1273  ;;  %v1740_v46 = vld [vmem:[#allocation2 + $0xe8] sm:$0xff] }
 0x19d   : > { %1387 = vst.msk [vmem:[#allocation3 + $0x188] sm:$0xff] %vm1337_vm2, %v1274_v31  ;;  %v1272_v33 = vpop.permute.xlu0 %1271 }
 0x19e   : > { %1386 = vst.msk [vmem:[#allocation3 + $0x180] sm:$0xff] %vm1337_vm2, %v1272_v33 }
 0x1a1   : > { %1582 = vrot.lane.b32.xlu2 %v5345_v11, %s4926_s14 }
 0x1a2   : > { %1580 = vrot.lane.b32.xlu1 %v5401_v8, %s4926_s14 }
 0x1a3   : > { %v1517_v61 = vpop.permute.xlu2 %1516  ;;  %1578 = vrot.lane.b32.xlu0 %v5405_v10, %s4926_s14 }
 0x1a4   : > { %1671 = vst.msk [vmem:[#allocation3 + $0x40] sm:$0xff] %vm1662_vm3, %v1517_v61  ;;  %v1280_v51 = vpop.permute.xlu1 %1279 }
 0x1a5   : > { %1390 = vst.msk [vmem:[#allocation3 + $0x1a0] sm:$0xff] %vm1337_vm2, %v1280_v51  ;;  %v1278_v54 = vpop.permute.xlu0 %1277  ;;  %v1743_v51 = vld [vmem:[#allocation2 + $0x100] sm:$0xff] }
 0x1a6   : > { %1389 = vst.msk [vmem:[#allocation3 + $0x198] sm:$0xff] %vm1337_vm2, %v1278_v54 }
 0x1a9   : > { %1588 = vrot.lane.b32.xlu2 %v5363_v28, %s4926_s14 }
 0x1aa   : > { %1586 = vrot.lane.b32.xlu1 %v5417_v27, %s4926_s14 }
 0x1ab   : > { %v1523_v11 = vpop.permute.xlu2 %1522  ;;  %1584 = vrot.lane.b32.xlu0 %v5419_v32, %s4926_s14 }
 0x1ac   : > { %1674 = vst.msk [vmem:[#allocation3 + $0x58] sm:$0xff] %vm1662_vm3, %v1523_v11  ;;  %v1503_v8 = vpop.permute.xlu1 %1502  ;;  %v1742_v11 = vld [vmem:[#allocation2 + $0xf8] sm:$0xff] }
 0x1ad   : > { %1664 = vst.msk [vmem:[#allocation3 + $0x8] sm:$0xff] %vm1662_vm3, %v1503_v8  ;;  %v1501_v10 = vpop.permute.xlu0 %1500  ;;  %v1741_v8 = vld [vmem:[#allocation2 + $0xf0] sm:$0xff] }
 0x1ae   : > { %1663 = vst.msk [vmem:[#allocation3] sm:$0xff] %vm1662_vm3, %v1501_v10 }
 0x1b1   : > { %1594 = vrot.lane.b32.xlu2 %v5381_v45, %s4926_s14 }
 0x1b2   : > { %1592 = vrot.lane.b32.xlu1 %v5431_v55, %s4926_s14 }
 0x1b3   : > { %v1529_v28 = vpop.permute.xlu2 %1528  ;;  %1590 = vrot.lane.b32.xlu0 %v5433_v58, %s4926_s14  ;;  %v1445_v58 = vld [vmem:[#allocation2 + $0x1d7] sm:$0xff] }
 0x1b4   : > { %1677 = vst.msk [vmem:[#allocation3 + $0x70] sm:$0xff] %vm1662_vm3, %v1529_v28  ;;  %v1509_v27 = vpop.permute.xlu1 %1508 }
 0x1b5   : > { %1667 = vst.msk [vmem:[#allocation3 + $0x20] sm:$0xff] %vm1662_vm3, %v1509_v27  ;;  %v1507_v32 = vpop.permute.xlu0 %1506  ;;  %v1746_v27 = vld [vmem:[#allocation2 + $0x118] sm:$0xff] }
 0x1b6   : > { %1666 = vst.msk [vmem:[#allocation3 + $0x18] sm:$0xff] %vm1662_vm3, %v1507_v32 }
 0x1b9   : > { %1600 = vrot.lane.b32.xlu2 %v5399_v7, %s4926_s14  ;;  %v1443_v7 = vld [vmem:[#allocation2 + $0x1c7] sm:$0xff] }
 0x1ba   : > { %1598 = vrot.lane.b32.xlu1 %v5445_v21, %s4926_s14 }
 0x1bb   : > { %v1535_v45 = vpop.permute.xlu2 %1534  ;;  %1596 = vrot.lane.b32.xlu0 %v5447_v22, %s4926_s14  ;;  %v1719_v22 = vld [vmem:[#allocation2 + $0x40] sm:$0xff] }
 0x1bc   : > { %1680 = vst.msk [vmem:[#allocation3 + $0x88] sm:$0xff] %vm1662_vm3, %v1535_v45  ;;  %v1515_v55 = vpop.permute.xlu1 %1514  ;;  %v1745_v45 = vld [vmem:[#allocation2 + $0x110] sm:$0xff] }
 0x1bd   : > { %1670 = vst.msk [vmem:[#allocation3 + $0x38] sm:$0xff] %vm1662_vm3, %v1515_v55  ;;  %v1513_v42 = vpop.permute.xlu0 %1512  ;;  %v1744_v55 = vld [vmem:[#allocation2 + $0x108] sm:$0xff] }
 0x1be   : > { %1669 = vst.msk [vmem:[#allocation3 + $0x30] sm:$0xff] %vm1662_vm3, %v1513_v42 }
 0x1c1   : > { %1606 = vrot.lane.b32.xlu2 %v1445_v58, %s4926_s14 }
 0x1c2   : > { %1604 = vrot.lane.b32.xlu1 %v1444_v43, %s4926_s14  ;;  %v1749_v43 = vld [vmem:[#allocation2 + $0x130] sm:$0xff] }
 0x1c3   : > { %v1541_v21 = vpop.permute.xlu2 %1540  ;;  %1602 = vrot.lane.b32.xlu0 %v1443_v7, %s4926_s14 }
 0x1c4   : > { %1683 = vst.msk [vmem:[#allocation3 + $0xa0] sm:$0xff] %vm1662_vm3, %v1541_v21  ;;  %v1521_v44 = vpop.permute.xlu1 %1520  ;;  %v1748_v21 = vld [vmem:[#allocation2 + $0x128] sm:$0xff] }
 0x1c5   : > { %1673 = vst.msk [vmem:[#allocation3 + $0x50] sm:$0xff] %vm1662_vm3, %v1521_v44  ;;  %v1519_v53 = vpop.permute.xlu0 %1518  ;;  %v1747_v44 = vld [vmem:[#allocation2 + $0x120] sm:$0xff] }
 0x1c6   : > { %1672 = vst.msk [vmem:[#allocation3 + $0x48] sm:$0xff] %vm1662_vm3, %v1519_v53 }
 0x1c9   : > { %1829 = vrot.lane.b32.xlu2 %v1719_v22, %s4927_s15 }
 0x1ca   : > { %1827 = vrot.lane.b32.xlu1 %v1718_v60, %s4927_s15  ;;  %v1752_v60 = vld [vmem:[#allocation2 + $0x148] sm:$0xff] }
 0x1cb   : > { %v1547_v4 = vpop.permute.xlu2 %1546  ;;  %1825 = vrot.lane.b32.xlu0 %v1717_v0, %s4927_s15 }
 0x1cc   : > { %1686 = vst.msk [vmem:[#allocation3 + $0xb8] sm:$0xff] %vm1662_vm3, %v1547_v4  ;;  %v1527_v9 = vpop.permute.xlu1 %1526  ;;  %v1751_v4 = vld [vmem:[#allocation2 + $0x140] sm:$0xff] }
 0x1cd   : > { %1676 = vst.msk [vmem:[#allocation3 + $0x68] sm:$0xff] %vm1662_vm3, %v1527_v9  ;;  %v1525_v20 = vpop.permute.xlu0 %1524  ;;  %v1750_v9 = vld [vmem:[#allocation2 + $0x138] sm:$0xff] }
 0x1ce   : > { %1675 = vst.msk [vmem:[#allocation3 + $0x60] sm:$0xff] %vm1662_vm3, %v1525_v20 }
 0x1d1   : > { %1835 = vrot.lane.b32.xlu2 %v1722_v17, %s4927_s15 }
 0x1d2   : > { %1833 = vrot.lane.b32.xlu1 %v1721_v25, %s4927_s15  ;;  %v1755_v25 = vld [vmem:[#allocation2 + $0x160] sm:$0xff] }
 0x1d3   : > { %v1553_v62 = vpop.permute.xlu2 %1552  ;;  %1831 = vrot.lane.b32.xlu0 %v1720_v5, %s4927_s15 }
 0x1d4   : > { %1689 = vst.msk [vmem:[#allocation3 + $0xd0] sm:$0xff] %vm1662_vm3, %v1553_v62  ;;  %v1533_v30 = vpop.permute.xlu1 %1532  ;;  %v1754_v62 = vld [vmem:[#allocation2 + $0x158] sm:$0xff] }
 0x1d5   : > { %1679 = vst.msk [vmem:[#allocation3 + $0x80] sm:$0xff] %vm1662_vm3, %v1533_v30  ;;  %v1531_v40 = vpop.permute.xlu0 %1530  ;;  %v1753_v30 = vld [vmem:[#allocation2 + $0x150] sm:$0xff] }
 0x1d6   : > { %1678 = vst.msk [vmem:[#allocation3 + $0x78] sm:$0xff] %vm1662_vm3, %v1531_v40 }
 0x1d9   : > { %1841 = vrot.lane.b32.xlu2 %v1725_v12, %s4927_s15 }
 0x1da   : > { %1839 = vrot.lane.b32.xlu1 %v1724_v41, %s4927_s15  ;;  %v1758_v41 = vld [vmem:[#allocation2 + $0x178] sm:$0xff] }
 0x1db   : > { %v1559_v49 = vpop.permute.xlu2 %1558  ;;  %1837 = vrot.lane.b32.xlu0 %v1723_v19, %s4927_s15 }
 0x1dc   : > { %1692 = vst.msk [vmem:[#allocation3 + $0xe8] sm:$0xff] %vm1662_vm3, %v1559_v49  ;;  %v1539_v50 = vpop.permute.xlu1 %1538  ;;  %v1757_v49 = vld [vmem:[#allocation2 + $0x170] sm:$0xff] }
 0x1dd   : > { %1682 = vst.msk [vmem:[#allocation3 + $0x98] sm:$0xff] %vm1662_vm3, %v1539_v50  ;;  %v1537_v57 = vpop.permute.xlu0 %1536  ;;  %v1756_v50 = vld [vmem:[#allocation2 + $0x168] sm:$0xff] }
 0x1de   : > { %1681 = vst.msk [vmem:[#allocation3 + $0x90] sm:$0xff] %vm1662_vm3, %v1537_v57 }
 0x1e1   : > { %1847 = vrot.lane.b32.xlu2 %v1728_v29, %s4927_s15 }
 0x1e2   : > { %1845 = vrot.lane.b32.xlu1 %v1727_v59, %s4927_s15  ;;  %v1761_v59 = vld [vmem:[#allocation2 + $0x190] sm:$0xff] }
 0x1e3   : > { %v1565_v3 = vpop.permute.xlu2 %1564  ;;  %1843 = vrot.lane.b32.xlu0 %v1726_v39, %s4927_s15 }
 0x1e4   : > { %1695 = vst.msk [vmem:[#allocation3 + $0x100] sm:$0xff] %vm1662_vm3, %v1565_v3  ;;  %v1545_v6 = vpop.permute.xlu1 %1544  ;;  %v1760_v3 = vld [vmem:[#allocation2 + $0x188] sm:$0xff] }
 0x1e5   : > { %1685 = vst.msk [vmem:[#allocation3 + $0xb0] sm:$0xff] %vm1662_vm3, %v1545_v6  ;;  %v1543_v14 = vpop.permute.xlu0 %1542  ;;  %v1759_v6 = vld [vmem:[#allocation2 + $0x180] sm:$0xff] }
 0x1e6   : > { %1684 = vst.msk [vmem:[#allocation3 + $0xa8] sm:$0xff] %vm1662_vm3, %v1543_v14 }
 0x1e9   : > { %1853 = vrot.lane.b32.xlu2 %v1731_v48, %s4927_s15 }
 0x1ea   : > { %1851 = vrot.lane.b32.xlu1 %v1730_v16, %s4927_s15  ;;  %v1764_v16 = vld [vmem:[#allocation2 + $0x1a8] sm:$0xff] }
 0x1eb   : > { %v1571_v24 = vpop.permute.xlu2 %1570  ;;  %1849 = vrot.lane.b32.xlu0 %v1729_v56, %s4927_s15 }
 0x1ec   : > { %1698 = vst.msk [vmem:[#allocation3 + $0x118] sm:$0xff] %vm1662_vm3, %v1571_v24  ;;  %v1551_v26 = vpop.permute.xlu1 %1550  ;;  %v1763_v24 = vld [vmem:[#allocation2 + $0x1a0] sm:$0xff] }
 0x1ed   : > { %1688 = vst.msk [vmem:[#allocation3 + $0xc8] sm:$0xff] %vm1662_vm3, %v1551_v26  ;;  %v1549_v35 = vpop.permute.xlu0 %1548  ;;  %v1762_v26 = vld [vmem:[#allocation2 + $0x198] sm:$0xff] }
 0x1ee   : > { %1687 = vst.msk [vmem:[#allocation3 + $0xc0] sm:$0xff] %vm1662_vm3, %v1549_v35 }
 0x1f1   : > { %1859 = vrot.lane.b32.xlu2 %v1734_v2, %s4927_s15 }
 0x1f2   : > { %1857 = vrot.lane.b32.xlu1 %v1733_v37, %s4927_s15  ;;  %v1767_v37 = vld [vmem:[#allocation2 + $0x1c0] sm:$0xff] }
 0x1f3   : > { %v1577_v47 = vpop.permute.xlu2 %1576  ;;  %1855 = vrot.lane.b32.xlu0 %v1732_v13, %s4927_s15 }
 0x1f4   : > { %1701 = vst.msk [vmem:[#allocation3 + $0x130] sm:$0xff] %vm1662_vm3, %v1577_v47  ;;  %v1557_v52 = vpop.permute.xlu1 %1556  ;;  %v1766_v47 = vld [vmem:[#allocation2 + $0x1b8] sm:$0xff] }
 0x1f5   : > { %1691 = vst.msk [vmem:[#allocation3 + $0xe0] sm:$0xff] %vm1662_vm3, %v1557_v52  ;;  %v1555_v63 = vpop.permute.xlu0 %1554  ;;  %v1765_v52 = vld [vmem:[#allocation2 + $0x1b0] sm:$0xff] }
 0x1f6   : > { %1690 = vst.msk [vmem:[#allocation3 + $0xd8] sm:$0xff] %vm1662_vm3, %v1555_v63 }
 0x1f9   : > { %1865 = vrot.lane.b32.xlu2 %v1737_v23, %s4927_s15 }
 0x1fa   : > { %1863 = vrot.lane.b32.xlu1 %v1736_v1, %s4927_s15  ;;  %v1770_v1 = vld [vmem:[#allocation2 + $0x1d8] sm:$0xff] }
 0x1fb   : > { %v1583_v15 = vpop.permute.xlu2 %1582  ;;  %1861 = vrot.lane.b32.xlu0 %v1735_v34, %s4927_s15 }
 0x1fc   : > { %1704 = vst.msk [vmem:[#allocation3 + $0x148] sm:$0xff] %vm1662_vm3, %v1583_v15  ;;  %v1563_v18 = vpop.permute.xlu1 %1562  ;;  %v1769_v15 = vld [vmem:[#allocation2 + $0x1d0] sm:$0xff] }
 0x1fd   : > { %1694 = vst.msk [vmem:[#allocation3 + $0xf8] sm:$0xff] %vm1662_vm3, %v1563_v18  ;;  %v1561_v31 = vpop.permute.xlu0 %1560  ;;  %v1768_v18 = vld [vmem:[#allocation2 + $0x1c8] sm:$0xff] }
 0x1fe   : > { %1693 = vst.msk [vmem:[#allocation3 + $0xf0] sm:$0xff] %vm1662_vm3, %v1561_v31 }
 0x201   : > { %1871 = vrot.lane.b32.xlu2 %v1740_v46, %s4927_s15 }
 0x202   : > { %1869 = vrot.lane.b32.xlu1 %v1739_v36, %s4927_s15  ;;  %v2044_v36 = vld [vmem:[#allocation2 + $0x41] sm:$0xff] }
 0x203   : > { %v1589_v33 = vpop.permute.xlu2 %1588  ;;  %1867 = vrot.lane.b32.xlu0 %v1738_v38, %s4927_s15 }
 0x204   : > { %1707 = vst.msk [vmem:[#allocation3 + $0x160] sm:$0xff] %vm1662_vm3, %v1589_v33  ;;  %v1569_v61 = vpop.permute.xlu1 %1568  ;;  %v2043_v33 = vld [vmem:[#allocation2 + $0x39] sm:$0xff] }
 0x205   : > { %1697 = vst.msk [vmem:[#allocation3 + $0x110] sm:$0xff] %vm1662_vm3, %v1569_v61  ;;  %v1567_v54 = vpop.permute.xlu0 %1566  ;;  %v2042_v61 = vld [vmem:[#allocation2 + $0x31] sm:$0xff] }
 0x206   : > { %1696 = vst.msk [vmem:[#allocation3 + $0x108] sm:$0xff] %vm1662_vm3, %v1567_v54 }
 0x209   : > { %1877 = vrot.lane.b32.xlu2 %v1743_v51, %s4927_s15 }
 0x20a   : > { %1875 = vrot.lane.b32.xlu1 %v1742_v11, %s4927_s15  ;;  %v2047_v11 = vld [vmem:[#allocation2 + $0x59] sm:$0xff] }
 0x20b   : > { %v1595_v10 = vpop.permute.xlu2 %1594  ;;  %1873 = vrot.lane.b32.xlu0 %v1741_v8, %s4927_s15 }
 0x20c   : > { %1710 = vst.msk [vmem:[#allocation3 + $0x178] sm:$0xff] %vm1662_vm3, %v1595_v10  ;;  %v1575_v28 = vpop.permute.xlu1 %1574  ;;  %v2046_v10 = vld [vmem:[#allocation2 + $0x51] sm:$0xff] }
 0x20d   : > { %1700 = vst.msk [vmem:[#allocation3 + $0x128] sm:$0xff] %vm1662_vm3, %v1575_v28  ;;  %v1573_v32 = vpop.permute.xlu0 %1572  ;;  %v2045_v28 = vld [vmem:[#allocation2 + $0x49] sm:$0xff] }
 0x20e   : > { %1699 = vst.msk [vmem:[#allocation3 + $0x120] sm:$0xff] %vm1662_vm3, %v1573_v32 }
 0x211   : > { %1883 = vrot.lane.b32.xlu2 %v1746_v27, %s4927_s15 }
 0x212   : > { %1881 = vrot.lane.b32.xlu1 %v1745_v45, %s4927_s15  ;;  %v2050_v45 = vld [vmem:[#allocation2 + $0x71] sm:$0xff] }
 0x213   : > { %v1601_v58 = vpop.permute.xlu2 %1600  ;;  %1879 = vrot.lane.b32.xlu0 %v1744_v55, %s4927_s15 }
 0x214   : > { %1713 = vst.msk [vmem:[#allocation3 + $0x190] sm:$0xff] %vm1662_vm3, %v1601_v58  ;;  %v1581_v42 = vpop.permute.xlu1 %1580  ;;  %v2049_v58 = vld [vmem:[#allocation2 + $0x69] sm:$0xff] }
 0x215   : > { %1703 = vst.msk [vmem:[#allocation3 + $0x140] sm:$0xff] %vm1662_vm3, %v1581_v42  ;;  %v1579_v7 = vpop.permute.xlu0 %1578  ;;  %v2048_v42 = vld [vmem:[#allocation2 + $0x61] sm:$0xff] }
 0x216   : > { %1702 = vst.msk [vmem:[#allocation3 + $0x138] sm:$0xff] %vm1662_vm3, %v1579_v7 }
 0x219   : > { %1889 = vrot.lane.b32.xlu2 %v1749_v43, %s4927_s15 }
 0x21a   : > { %1887 = vrot.lane.b32.xlu1 %v1748_v21, %s4927_s15  ;;  %v2053_v21 = vld [vmem:[#allocation2 + $0x89] sm:$0xff] }
 0x21b   : > { %v1607_v22 = vpop.permute.xlu2 %1606  ;;  %1885 = vrot.lane.b32.xlu0 %v1747_v44, %s4927_s15 }
 0x21c   : > { %1716 = vst.msk [vmem:[#allocation3 + $0x1a8] sm:$0xff] %vm1662_vm3, %v1607_v22  ;;  %v1587_v53 = vpop.permute.xlu1 %1586  ;;  %v2052_v22 = vld [vmem:[#allocation2 + $0x81] sm:$0xff] }
 0x21d   : > { %1706 = vst.msk [vmem:[#allocation3 + $0x158] sm:$0xff] %vm1662_vm3, %v1587_v53  ;;  %v1585_v0 = vpop.permute.xlu0 %1584  ;;  %v2051_v53 = vld [vmem:[#allocation2 + $0x79] sm:$0xff] }
 0x21e   : > { %1705 = vst.msk [vmem:[#allocation3 + $0x150] sm:$0xff] %vm1662_vm3, %v1585_v0 }
 0x221   : > { %1895 = vrot.lane.b32.xlu2 %v1752_v60, %s4927_s15 }
 0x222   : > { %1893 = vrot.lane.b32.xlu1 %v1751_v4, %s4927_s15  ;;  %v2056_v4 = vld [vmem:[#allocation2 + $0xa1] sm:$0xff] }
 0x223   : > { %v1830_v17 = vpop.permute.xlu2 %1829  ;;  %1891 = vrot.lane.b32.xlu0 %v1750_v9, %s4927_s15 }
 0x224   : > { %1990 = vst.msk [vmem:[#allocation3 + $0x10] sm:$0xff] %vm1987_vm4, %v1830_v17  ;;  %v1593_v20 = vpop.permute.xlu1 %1592  ;;  %v2055_v17 = vld [vmem:[#allocation2 + $0x99] sm:$0xff] }
 0x225   : > { %1709 = vst.msk [vmem:[#allocation3 + $0x170] sm:$0xff] %vm1662_vm3, %v1593_v20  ;;  %v1591_v5 = vpop.permute.xlu0 %1590  ;;  %v2054_v20 = vld [vmem:[#allocation2 + $0x91] sm:$0xff] }
 0x226   : > { %1708 = vst.msk [vmem:[#allocation3 + $0x168] sm:$0xff] %vm1662_vm3, %v1591_v5 }
 0x229   : > { %1901 = vrot.lane.b32.xlu2 %v1755_v25, %s4927_s15 }
 0x22a   : > { %1899 = vrot.lane.b32.xlu1 %v1754_v62, %s4927_s15  ;;  %v2059_v62 = vld [vmem:[#allocation2 + $0xb9] sm:$0xff] }
 0x22b   : > { %v1836_v12 = vpop.permute.xlu2 %1835  ;;  %1897 = vrot.lane.b32.xlu0 %v1753_v30, %s4927_s15 }
 0x22c   : > { %1993 = vst.msk [vmem:[#allocation3 + $0x28] sm:$0xff] %vm1987_vm4, %v1836_v12  ;;  %v1599_v40 = vpop.permute.xlu1 %1598  ;;  %v2058_v12 = vld [vmem:[#allocation2 + $0xb1] sm:$0xff] }
 0x22d   : > { %1712 = vst.msk [vmem:[#allocation3 + $0x188] sm:$0xff] %vm1662_vm3, %v1599_v40  ;;  %v1597_v19 = vpop.permute.xlu0 %1596  ;;  %v2057_v40 = vld [vmem:[#allocation2 + $0xa9] sm:$0xff] }
 0x22e   : > { %1711 = vst.msk [vmem:[#allocation3 + $0x180] sm:$0xff] %vm1662_vm3, %v1597_v19 }
 0x231   : > { %1907 = vrot.lane.b32.xlu2 %v1758_v41, %s4927_s15 }
 0x232   : > { %1905 = vrot.lane.b32.xlu1 %v1757_v49, %s4927_s15  ;;  %v2062_v49 = vld [vmem:[#allocation2 + $0xd1] sm:$0xff] }
 0x233   : > { %v1842_v29 = vpop.permute.xlu2 %1841  ;;  %1903 = vrot.lane.b32.xlu0 %v1756_v50, %s4927_s15 }
 0x234   : > { %1996 = vst.msk [vmem:[#allocation3 + $0x40] sm:$0xff] %vm1987_vm4, %v1842_v29  ;;  %v1605_v57 = vpop.permute.xlu1 %1604  ;;  %v2061_v29 = vld [vmem:[#allocation2 + $0xc9] sm:$0xff] }
 0x235   : > { %1715 = vst.msk [vmem:[#allocation3 + $0x1a0] sm:$0xff] %vm1662_vm3, %v1605_v57  ;;  %v1603_v39 = vpop.permute.xlu0 %1602  ;;  %v2060_v57 = vld [vmem:[#allocation2 + $0xc1] sm:$0xff] }
 0x236   : > { %1714 = vst.msk [vmem:[#allocation3 + $0x198] sm:$0xff] %vm1662_vm3, %v1603_v39 }
 0x239   : > { %1913 = vrot.lane.b32.xlu2 %v1761_v59, %s4927_s15 }
 0x23a   : > { %1911 = vrot.lane.b32.xlu1 %v1760_v3, %s4927_s15  ;;  %v2065_v3 = vld [vmem:[#allocation2 + $0xe9] sm:$0xff] }
 0x23b   : > { %v1848_v48 = vpop.permute.xlu2 %1847  ;;  %1909 = vrot.lane.b32.xlu0 %v1759_v6, %s4927_s15 }
 0x23c   : > { %1999 = vst.msk [vmem:[#allocation3 + $0x58] sm:$0xff] %vm1987_vm4, %v1848_v48  ;;  %v1828_v14 = vpop.permute.xlu1 %1827  ;;  %v2064_v48 = vld [vmem:[#allocation2 + $0xe1] sm:$0xff] }
 0x23d   : > { %1989 = vst.msk [vmem:[#allocation3 + $0x8] sm:$0xff] %vm1987_vm4, %v1828_v14  ;;  %v1826_v56 = vpop.permute.xlu0 %1825  ;;  %v2063_v14 = vld [vmem:[#allocation2 + $0xd9] sm:$0xff] }
 0x23e   : > { %1988 = vst.msk [vmem:[#allocation3] sm:$0xff] %vm1987_vm4, %v1826_v56 }
 0x241   : > { %1919 = vrot.lane.b32.xlu2 %v1764_v16, %s4927_s15 }
 0x242   : > { %1917 = vrot.lane.b32.xlu1 %v1763_v24, %s4927_s15  ;;  %v2068_v24 = vld [vmem:[#allocation2 + $0x101] sm:$0xff] }
 0x243   : > { %v1854_v2 = vpop.permute.xlu2 %1853  ;;  %1915 = vrot.lane.b32.xlu0 %v1762_v26, %s4927_s15 }
 0x244   : > { %2002 = vst.msk [vmem:[#allocation3 + $0x70] sm:$0xff] %vm1987_vm4, %v1854_v2  ;;  %v1834_v35 = vpop.permute.xlu1 %1833  ;;  %v2067_v2 = vld [vmem:[#allocation2 + $0xf9] sm:$0xff] }
 0x245   : > { %1992 = vst.msk [vmem:[#allocation3 + $0x20] sm:$0xff] %vm1987_vm4, %v1834_v35  ;;  %v1832_v13 = vpop.permute.xlu0 %1831  ;;  %v2066_v35 = vld [vmem:[#allocation2 + $0xf1] sm:$0xff] }
 0x246   : > { %1991 = vst.msk [vmem:[#allocation3 + $0x18] sm:$0xff] %vm1987_vm4, %v1832_v13 }
 0x249   : > { %1925 = vrot.lane.b32.xlu2 %v1767_v37, %s4927_s15 }
 0x24a   : > { %1923 = vrot.lane.b32.xlu1 %v1766_v47, %s4927_s15  ;;  %v2071_v47 = vld [vmem:[#allocation2 + $0x119] sm:$0xff] }
 0x24b   : > { %v1860_v23 = vpop.permute.xlu2 %1859  ;;  %1921 = vrot.lane.b32.xlu0 %v1765_v52, %s4927_s15 }
 0x24c   : > { %2005 = vst.msk [vmem:[#allocation3 + $0x88] sm:$0xff] %vm1987_vm4, %v1860_v23  ;;  %v1840_v63 = vpop.permute.xlu1 %1839  ;;  %v2070_v23 = vld [vmem:[#allocation2 + $0x111] sm:$0xff] }
 0x24d   : > { %1995 = vst.msk [vmem:[#allocation3 + $0x38] sm:$0xff] %vm1987_vm4, %v1840_v63  ;;  %v1838_v34 = vpop.permute.xlu0 %1837  ;;  %v2069_v63 = vld [vmem:[#allocation2 + $0x109] sm:$0xff] }
 0x24e   : > { %1994 = vst.msk [vmem:[#allocation3 + $0x30] sm:$0xff] %vm1987_vm4, %v1838_v34 }
 0x251   : > { %1931 = vrot.lane.b32.xlu2 %v1770_v1, %s4927_s15 }
 0x252   : > { %1929 = vrot.lane.b32.xlu1 %v1769_v15, %s4927_s15  ;;  %v2074_v15 = vld [vmem:[#allocation2 + $0x131] sm:$0xff] }
 0x253   : > { %v1866_v46 = vpop.permute.xlu2 %1865  ;;  %1927 = vrot.lane.b32.xlu0 %v1768_v18, %s4927_s15  ;;  %s494_s15 = scalar_lea.vmem %s6754_s6, %s6761_s24 }
 0x254   : > { %2008 = vst.msk [vmem:[#allocation3 + $0xa0] sm:$0xff] %vm1987_vm4, %v1866_v46  ;;  %v1846_v31 = vpop.permute.xlu1 %1845  ;;  %v2073_v46 = vld [vmem:[#allocation2 + $0x129] sm:$0xff] }
 0x255   : > { %1998 = vst.msk [vmem:[#allocation3 + $0x50] sm:$0xff] %vm1987_vm4, %v1846_v31  ;;  %v1844_v38 = vpop.permute.xlu0 %1843  ;;  %v2072_v31 = vld [vmem:[#allocation2 + $0x121] sm:$0xff] }
 0x256   : > { %1997 = vst.msk [vmem:[#allocation3 + $0x48] sm:$0xff] %vm1987_vm4, %v1844_v38 }
 0x259   : > { %2154 = vrot.lane.b32.xlu2 %v2044_v36, %s4928_s16 }
 0x25a   : > { %2152 = vrot.lane.b32.xlu1 %v2043_v33, %s4928_s16  ;;  %v2077_v33 = vld [vmem:[#allocation2 + $0x149] sm:$0xff] }
 0x25b   : > { %v1872_v51 = vpop.permute.xlu2 %1871  ;;  %2150 = vrot.lane.b32.xlu0 %v2042_v61, %s4928_s16 }
 0x25c   : > { %2011 = vst.msk [vmem:[#allocation3 + $0xb8] sm:$0xff] %vm1987_vm4, %v1872_v51  ;;  %v1852_v54 = vpop.permute.xlu1 %1851  ;;  %v2076_v51 = vld [vmem:[#allocation2 + $0x141] sm:$0xff] }
 0x25d   : > { %2001 = vst.msk [vmem:[#allocation3 + $0x68] sm:$0xff] %vm1987_vm4, %v1852_v54  ;;  %v1850_v8 = vpop.permute.xlu0 %1849  ;;  %v2075_v54 = vld [vmem:[#allocation2 + $0x139] sm:$0xff] }
 0x25e   : > { %2000 = vst.msk [vmem:[#allocation3 + $0x60] sm:$0xff] %vm1987_vm4, %v1850_v8 }
 0x261   : > { %2160 = vrot.lane.b32.xlu2 %v2047_v11, %s4928_s16 }
 0x262   : > { %2158 = vrot.lane.b32.xlu1 %v2046_v10, %s4928_s16  ;;  %v2080_v10 = vld [vmem:[#allocation2 + $0x161] sm:$0xff] }
 0x263   : > { %v1878_v27 = vpop.permute.xlu2 %1877  ;;  %2156 = vrot.lane.b32.xlu0 %v2045_v28, %s4928_s16 }
 0x264   : > { %2014 = vst.msk [vmem:[#allocation3 + $0xd0] sm:$0xff] %vm1987_vm4, %v1878_v27  ;;  %v1858_v32 = vpop.permute.xlu1 %1857  ;;  %v2079_v27 = vld [vmem:[#allocation2 + $0x159] sm:$0xff] }
 0x265   : > { %2004 = vst.msk [vmem:[#allocation3 + $0x80] sm:$0xff] %vm1987_vm4, %v1858_v32  ;;  %v1856_v55 = vpop.permute.xlu0 %1855  ;;  %v2078_v32 = vld [vmem:[#allocation2 + $0x151] sm:$0xff] }
 0x266   : > { %2003 = vst.msk [vmem:[#allocation3 + $0x78] sm:$0xff] %vm1987_vm4, %v1856_v55 }
 0x269   : > { %2166 = vrot.lane.b32.xlu2 %v2050_v45, %s4928_s16 }
 0x26a   : > { %2164 = vrot.lane.b32.xlu1 %v2049_v58, %s4928_s16  ;;  %v622_v58 = vld [vmem:[%s5852_s20] sm:$0xff] }
 0x26b   : > { %v1884_v43 = vpop.permute.xlu2 %1883  ;;  %2162 = vrot.lane.b32.xlu0 %v2048_v42, %s4928_s16  ;;  %v2083_v42 = vld [vmem:[#allocation2 + $0x179] sm:$0xff]  ;;  %628 = vst.msk [vmem:[#allocation2 + $0x1e0] sm:$0xff] %vm507_vm0, %v622_v58 }
 0x26c   : > { %2017 = vst.msk [vmem:[#allocation3 + $0xe8] sm:$0xff] %vm1987_vm4, %v1884_v43  ;;  %v1864_v7 = vpop.permute.xlu1 %1863  ;;  %v2382_v58 = vld [vmem:[#allocation2 + $0xbf] sm:$0xff] }
 0x26d   : > { %2007 = vst.msk [vmem:[#allocation3 + $0x98] sm:$0xff] %vm1987_vm4, %v1864_v7  ;;  %v1862_v44 = vpop.permute.xlu0 %1861  ;;  %v2082_v7 = vld [vmem:[#allocation2 + $0x171] sm:$0xff] }
 0x26e   : > { %2006 = vst.msk [vmem:[#allocation3 + $0x90] sm:$0xff] %vm1987_vm4, %v1862_v44 }
 0x271   : > { %2172 = vrot.lane.b32.xlu2 %v2053_v21, %s4928_s16  ;;  %v2081_v21 = vld [vmem:[#allocation2 + $0x169] sm:$0xff] }
 0x272   : > { %2170 = vrot.lane.b32.xlu1 %v2052_v22, %s4928_s16 }
 0x273   : > { %v1890_v60 = vpop.permute.xlu2 %1889  ;;  %2168 = vrot.lane.b32.xlu0 %v2051_v53, %s4928_s16  ;;  %v2086_v53 = vld [vmem:[#allocation2 + $0x191] sm:$0xff] }
 0x274   : > { %2020 = vst.msk [vmem:[#allocation3 + $0x100] sm:$0xff] %vm1987_vm4, %v1890_v60  ;;  %v1870_v0 = vpop.permute.xlu1 %1869 }
 0x275   : > { %2010 = vst.msk [vmem:[#allocation3 + $0xb0] sm:$0xff] %vm1987_vm4, %v1870_v0  ;;  %v1868_v9 = vpop.permute.xlu0 %1867  ;;  %v2085_v0 = vld [vmem:[#allocation2 + $0x189] sm:$0xff] }
 0x276   : > { %2009 = vst.msk [vmem:[#allocation3 + $0xa8] sm:$0xff] %vm1987_vm4, %v1868_v9 }
 0x279   : > { %2178 = vrot.lane.b32.xlu2 %v2056_v4, %s4928_s16  ;;  %v2084_v4 = vld [vmem:[#allocation2 + $0x181] sm:$0xff] }
 0x27a   : > { %2176 = vrot.lane.b32.xlu1 %v2055_v17, %s4928_s16 }
 0x27b   : > { %v1896_v25 = vpop.permute.xlu2 %1895  ;;  %2174 = vrot.lane.b32.xlu0 %v2054_v20, %s4928_s16  ;;  %v2089_v20 = vld [vmem:[#allocation2 + $0x1a9] sm:$0xff] }
 0x27c   : > { %2023 = vst.msk [vmem:[#allocation3 + $0x118] sm:$0xff] %vm1987_vm4, %v1896_v25  ;;  %v1876_v5 = vpop.permute.xlu1 %1875 }
 0x27d   : > { %2013 = vst.msk [vmem:[#allocation3 + $0xc8] sm:$0xff] %vm1987_vm4, %v1876_v5  ;;  %v1874_v30 = vpop.permute.xlu0 %1873  ;;  %v2088_v5 = vld [vmem:[#allocation2 + $0x1a1] sm:$0xff] }
 0x27e   : > { %2012 = vst.msk [vmem:[#allocation3 + $0xc0] sm:$0xff] %vm1987_vm4, %v1874_v30 }
 0x281   : > { %2184 = vrot.lane.b32.xlu2 %v2059_v62, %s4928_s16  ;;  %v2087_v62 = vld [vmem:[#allocation2 + $0x199] sm:$0xff] }
 0x282   : > { %2182 = vrot.lane.b32.xlu1 %v2058_v12, %s4928_s16 }
 0x283   : > { %v1902_v41 = vpop.permute.xlu2 %1901  ;;  %2180 = vrot.lane.b32.xlu0 %v2057_v40, %s4928_s16  ;;  %v2092_v40 = vld [vmem:[#allocation2 + $0x1c1] sm:$0xff] }
 0x284   : > { %2026 = vst.msk [vmem:[#allocation3 + $0x130] sm:$0xff] %vm1987_vm4, %v1902_v41  ;;  %v1882_v19 = vpop.permute.xlu1 %1881 }
 0x285   : > { %2016 = vst.msk [vmem:[#allocation3 + $0xe0] sm:$0xff] %vm1987_vm4, %v1882_v19  ;;  %v1880_v50 = vpop.permute.xlu0 %1879  ;;  %v2091_v19 = vld [vmem:[#allocation2 + $0x1b9] sm:$0xff] }
 0x286   : > { %2015 = vst.msk [vmem:[#allocation3 + $0xd8] sm:$0xff] %vm1987_vm4, %v1880_v50 }
 0x289   : > { %2190 = vrot.lane.b32.xlu2 %v2062_v49, %s4928_s16  ;;  %v2090_v49 = vld [vmem:[#allocation2 + $0x1b1] sm:$0xff] }
 0x28a   : > { %2188 = vrot.lane.b32.xlu1 %v2061_v29, %s4928_s16 }
 0x28b   : > { %v1908_v59 = vpop.permute.xlu2 %1907  ;;  %2186 = vrot.lane.b32.xlu0 %v2060_v57, %s4928_s16  ;;  %v2095_v57 = vld [vmem:[#allocation2 + $0x1d9] sm:$0xff] }
 0x28c   : > { %2029 = vst.msk [vmem:[#allocation3 + $0x148] sm:$0xff] %vm1987_vm4, %v1908_v59  ;;  %v1888_v39 = vpop.permute.xlu1 %1887 }
 0x28d   : > { %2019 = vst.msk [vmem:[#allocation3 + $0xf8] sm:$0xff] %vm1987_vm4, %v1888_v39  ;;  %v1886_v6 = vpop.permute.xlu0 %1885  ;;  %v2094_v39 = vld [vmem:[#allocation2 + $0x1d1] sm:$0xff] }
 0x28e   : > { %2018 = vst.msk [vmem:[#allocation3 + $0xf0] sm:$0xff] %vm1987_vm4, %v1886_v6 }
 0x291   : > { %2196 = vrot.lane.b32.xlu2 %v2065_v3, %s4928_s16  ;;  %v2093_v3 = vld [vmem:[#allocation2 + $0x1c9] sm:$0xff] }
 0x292   : > { %2194 = vrot.lane.b32.xlu1 %v2064_v48, %s4928_s16 }
 0x293   : > { %v1914_v16 = vpop.permute.xlu2 %1913  ;;  %2192 = vrot.lane.b32.xlu0 %v2063_v14, %s4928_s16  ;;  %v2369_v14 = vld [vmem:[#allocation2 + $0x57] sm:$0xff] }
 0x294   : > { %2032 = vst.msk [vmem:[#allocation3 + $0x160] sm:$0xff] %vm1987_vm4, %v1914_v16  ;;  %v1894_v56 = vpop.permute.xlu1 %1893 }
 0x295   : > { %2022 = vst.msk [vmem:[#allocation3 + $0x110] sm:$0xff] %vm1987_vm4, %v1894_v56  ;;  %v1892_v26 = vpop.permute.xlu0 %1891  ;;  %v2368_v56 = vld [vmem:[#allocation2 + $0x4f] sm:$0xff] }
 0x296   : > { %2021 = vst.msk [vmem:[#allocation3 + $0x108] sm:$0xff] %vm1987_vm4, %v1892_v26 }
 0x299   : > { %2202 = vrot.lane.b32.xlu2 %v2068_v24, %s4928_s16  ;;  %v2367_v24 = vld [vmem:[#allocation2 + $0x47] sm:$0xff] }
 0x29a   : > { %2200 = vrot.lane.b32.xlu1 %v2067_v2, %s4928_s16 }
 0x29b   : > { %v1920_v37 = vpop.permute.xlu2 %1919  ;;  %2198 = vrot.lane.b32.xlu0 %v2066_v35, %s4928_s16  ;;  %v2372_v35 = vld [vmem:[#allocation2 + $0x6f] sm:$0xff] }
 0x29c   : > { %2035 = vst.msk [vmem:[#allocation3 + $0x178] sm:$0xff] %vm1987_vm4, %v1920_v37  ;;  %v1900_v13 = vpop.permute.xlu1 %1899 }
 0x29d   : > { %2025 = vst.msk [vmem:[#allocation3 + $0x128] sm:$0xff] %vm1987_vm4, %v1900_v13  ;;  %v1898_v52 = vpop.permute.xlu0 %1897  ;;  %v2371_v13 = vld [vmem:[#allocation2 + $0x67] sm:$0xff] }
 0x29e   : > { %2024 = vst.msk [vmem:[#allocation3 + $0x120] sm:$0xff] %vm1987_vm4, %v1898_v52 }
 0x2a1   : > { %2208 = vrot.lane.b32.xlu2 %v2071_v47, %s4928_s16  ;;  %v2370_v47 = vld [vmem:[#allocation2 + $0x5f] sm:$0xff] }
 0x2a2   : > { %2206 = vrot.lane.b32.xlu1 %v2070_v23, %s4928_s16 }
 0x2a3   : > { %v1926_v1 = vpop.permute.xlu2 %1925  ;;  %2204 = vrot.lane.b32.xlu0 %v2069_v63, %s4928_s16  ;;  %v2375_v63 = vld [vmem:[#allocation2 + $0x87] sm:$0xff] }
 0x2a4   : > { %2038 = vst.msk [vmem:[#allocation3 + $0x190] sm:$0xff] %vm1987_vm4, %v1926_v1  ;;  %v1906_v34 = vpop.permute.xlu1 %1905 }
 0x2a5   : > { %2028 = vst.msk [vmem:[#allocation3 + $0x140] sm:$0xff] %vm1987_vm4, %v1906_v34  ;;  %v1904_v18 = vpop.permute.xlu0 %1903  ;;  %v2374_v34 = vld [vmem:[#allocation2 + $0x7f] sm:$0xff] }
 0x2a6   : > { %2027 = vst.msk [vmem:[#allocation3 + $0x138] sm:$0xff] %vm1987_vm4, %v1904_v18 }
 0x2a9   : > { %2214 = vrot.lane.b32.xlu2 %v2074_v15, %s4928_s16  ;;  %v2373_v15 = vld [vmem:[#allocation2 + $0x77] sm:$0xff] }
 0x2aa   : > { %2212 = vrot.lane.b32.xlu1 %v2073_v46, %s4928_s16 }
 0x2ab   : > { %v1932_v36 = vpop.permute.xlu2 %1931  ;;  %2210 = vrot.lane.b32.xlu0 %v2072_v31, %s4928_s16  ;;  %v2378_v31 = vld [vmem:[#allocation2 + $0x9f] sm:$0xff] }
 0x2ac   : > { %2041 = vst.msk [vmem:[#allocation3 + $0x1a8] sm:$0xff] %vm1987_vm4, %v1932_v36  ;;  %v1912_v38 = vpop.permute.xlu1 %1911 }
 0x2ad   : > { %2031 = vst.msk [vmem:[#allocation3 + $0x158] sm:$0xff] %vm1987_vm4, %v1912_v38  ;;  %v1910_v61 = vpop.permute.xlu0 %1909  ;;  %v2377_v38 = vld [vmem:[#allocation2 + $0x97] sm:$0xff] }
 0x2ae   : > { %2030 = vst.msk [vmem:[#allocation3 + $0x150] sm:$0xff] %vm1987_vm4, %v1910_v61 }
 0x2b1   : > { %2220 = vrot.lane.b32.xlu2 %v2077_v33, %s4928_s16  ;;  %v2376_v33 = vld [vmem:[#allocation2 + $0x8f] sm:$0xff] }
 0x2b2   : > { %2218 = vrot.lane.b32.xlu1 %v2076_v51, %s4928_s16 }
 0x2b3   : > { %v2155_v11 = vpop.permute.xlu2 %2154  ;;  %2216 = vrot.lane.b32.xlu0 %v2075_v54, %s4928_s16  ;;  %v2381_v54 = vld [vmem:[#allocation2 + $0xb7] sm:$0xff] }
 0x2b4   : > { %2315 = vst.msk [vmem:[#allocation3 + $0x10] sm:$0xff] %vm2312_vm5, %v2155_v11  ;;  %v1918_v8 = vpop.permute.xlu1 %1917 }
 0x2b5   : > { %2034 = vst.msk [vmem:[#allocation3 + $0x170] sm:$0xff] %vm1987_vm4, %v1918_v8  ;;  %v1916_v28 = vpop.permute.xlu0 %1915  ;;  %v2380_v8 = vld [vmem:[#allocation2 + $0xaf] sm:$0xff] }
 0x2b6   : > { %2033 = vst.msk [vmem:[#allocation3 + $0x168] sm:$0xff] %vm1987_vm4, %v1916_v28 }
 0x2b9   : > { %2226 = vrot.lane.b32.xlu2 %v2080_v10, %s4928_s16  ;;  %v2379_v10 = vld [vmem:[#allocation2 + $0xa7] sm:$0xff] }
 0x2ba   : > { %2224 = vrot.lane.b32.xlu1 %v2079_v27, %s4928_s16 }
 0x2bb   : > { %v2161_v45 = vpop.permute.xlu2 %2160  ;;  %2222 = vrot.lane.b32.xlu0 %v2078_v32, %s4928_s16  ;;  %v2384_v32 = vld [vmem:[#allocation2 + $0xcf] sm:$0xff] }
 0x2bc   : > { %2318 = vst.msk [vmem:[#allocation3 + $0x28] sm:$0xff] %vm2312_vm5, %v2161_v45  ;;  %v1924_v55 = vpop.permute.xlu1 %1923 }
 0x2bd   : > { %2037 = vst.msk [vmem:[#allocation3 + $0x188] sm:$0xff] %vm1987_vm4, %v1924_v55  ;;  %v1922_v43 = vpop.permute.xlu0 %1921  ;;  %v2383_v55 = vld [vmem:[#allocation2 + $0xc7] sm:$0xff] }
 0x2be   : > { %2036 = vst.msk [vmem:[#allocation3 + $0x180] sm:$0xff] %vm1987_vm4, %v1922_v43 }
 0x2c1   : > { %2232 = vrot.lane.b32.xlu2 %v2083_v42, %s4928_s16 }
 0x2c2   : > { %2230 = vrot.lane.b32.xlu1 %v2082_v7, %s4928_s16  ;;  %v2387_v7 = vld [vmem:[#allocation2 + $0xe7] sm:$0xff] }
 0x2c3   : > { %v2167_v44 = vpop.permute.xlu2 %2166  ;;  %2228 = vrot.lane.b32.xlu0 %v2081_v21, %s4928_s16 }
 0x2c4   : > { %2321 = vst.msk [vmem:[#allocation3 + $0x40] sm:$0xff] %vm2312_vm5, %v2167_v44  ;;  %v1930_v22 = vpop.permute.xlu1 %1929  ;;  %v2386_v44 = vld [vmem:[#allocation2 + $0xdf] sm:$0xff] }
 0x2c5   : > { %2040 = vst.msk [vmem:[#allocation3 + $0x1a0] sm:$0xff] %vm1987_vm4, %v1930_v22  ;;  %v1928_v60 = vpop.permute.xlu0 %1927  ;;  %v2385_v22 = vld [vmem:[#allocation2 + $0xd7] sm:$0xff] }
 0x2c6   : > { %2039 = vst.msk [vmem:[#allocation3 + $0x198] sm:$0xff] %vm1987_vm4, %v1928_v60 }
 0x2c9   : > { %2238 = vrot.lane.b32.xlu2 %v2086_v53, %s4928_s16 }
 0x2ca   : > { %2236 = vrot.lane.b32.xlu1 %v2085_v0, %s4928_s16  ;;  %v2390_v0 = vld [vmem:[#allocation2 + $0xff] sm:$0xff] }
 0x2cb   : > { %v2173_v9 = vpop.permute.xlu2 %2172  ;;  %2234 = vrot.lane.b32.xlu0 %v2084_v4, %s4928_s16 }
 0x2cc   : > { %2324 = vst.msk [vmem:[#allocation3 + $0x58] sm:$0xff] %vm2312_vm5, %v2173_v9  ;;  %v2153_v17 = vpop.permute.xlu1 %2152  ;;  %v2389_v9 = vld [vmem:[#allocation2 + $0xf7] sm:$0xff] }
 0x2cd   : > { %2314 = vst.msk [vmem:[#allocation3 + $0x8] sm:$0xff] %vm2312_vm5, %v2153_v17  ;;  %v2151_v25 = vpop.permute.xlu0 %2150  ;;  %v2388_v17 = vld [vmem:[#allocation2 + $0xef] sm:$0xff] }
 0x2ce   : > { %2313 = vst.msk [vmem:[#allocation3] sm:$0xff] %vm2312_vm5, %v2151_v25 }
 0x2d1   : > { %2244 = vrot.lane.b32.xlu2 %v2089_v20, %s4928_s16 }
 0x2d2   : > { %2242 = vrot.lane.b32.xlu1 %v2088_v5, %s4928_s16  ;;  %v2393_v5 = vld [vmem:[#allocation2 + $0x117] sm:$0xff] }
 0x2d3   : > { %v2179_v30 = vpop.permute.xlu2 %2178  ;;  %2240 = vrot.lane.b32.xlu0 %v2087_v62, %s4928_s16 }
 0x2d4   : > { %2327 = vst.msk [vmem:[#allocation3 + $0x70] sm:$0xff] %vm2312_vm5, %v2179_v30  ;;  %v2159_v12 = vpop.permute.xlu1 %2158  ;;  %v2392_v30 = vld [vmem:[#allocation2 + $0x10f] sm:$0xff] }
 0x2d5   : > { %2317 = vst.msk [vmem:[#allocation3 + $0x20] sm:$0xff] %vm2312_vm5, %v2159_v12  ;;  %v2157_v41 = vpop.permute.xlu0 %2156  ;;  %v2391_v12 = vld [vmem:[#allocation2 + $0x107] sm:$0xff] }
 0x2d6   : > { %2316 = vst.msk [vmem:[#allocation3 + $0x18] sm:$0xff] %vm2312_vm5, %v2157_v41 }
 0x2d9   : > { %2250 = vrot.lane.b32.xlu2 %v2092_v40, %s4928_s16 }
 0x2da   : > { %2248 = vrot.lane.b32.xlu1 %v2091_v19, %s4928_s16  ;;  %v2396_v19 = vld [vmem:[#allocation2 + $0x12f] sm:$0xff] }
 0x2db   : > { %v2185_v50 = vpop.permute.xlu2 %2184  ;;  %2246 = vrot.lane.b32.xlu0 %v2090_v49, %s4928_s16 }
 0x2dc   : > { %2330 = vst.msk [vmem:[#allocation3 + $0x88] sm:$0xff] %vm2312_vm5, %v2185_v50  ;;  %v2165_v29 = vpop.permute.xlu1 %2164  ;;  %v2395_v50 = vld [vmem:[#allocation2 + $0x127] sm:$0xff] }
 0x2dd   : > { %2320 = vst.msk [vmem:[#allocation3 + $0x38] sm:$0xff] %vm2312_vm5, %v2165_v29  ;;  %v2163_v59 = vpop.permute.xlu0 %2162  ;;  %v2394_v29 = vld [vmem:[#allocation2 + $0x11f] sm:$0xff] }
 0x2de   : > { %2319 = vst.msk [vmem:[#allocation3 + $0x30] sm:$0xff] %vm2312_vm5, %v2163_v59 }
 0x2e1   : > { %2256 = vrot.lane.b32.xlu2 %v2095_v57, %s4928_s16 }
 0x2e2   : > { %2254 = vrot.lane.b32.xlu1 %v2094_v39, %s4928_s16  ;;  %v2399_v39 = vld [vmem:[#allocation2 + $0x147] sm:$0xff] }
 0x2e3   : > { %v2191_v6 = vpop.permute.xlu2 %2190  ;;  %2252 = vrot.lane.b32.xlu0 %v2093_v3, %s4928_s16 }
 0x2e4   : > { %2333 = vst.msk [vmem:[#allocation3 + $0xa0] sm:$0xff] %vm2312_vm5, %v2191_v6  ;;  %v2171_v48 = vpop.permute.xlu1 %2170  ;;  %v2398_v6 = vld [vmem:[#allocation2 + $0x13f] sm:$0xff] }
 0x2e5   : > { %2323 = vst.msk [vmem:[#allocation3 + $0x50] sm:$0xff] %vm2312_vm5, %v2171_v48  ;;  %v2169_v16 = vpop.permute.xlu0 %2168  ;;  %v2397_v48 = vld [vmem:[#allocation2 + $0x137] sm:$0xff] }
 0x2e6   : > { %2322 = vst.msk [vmem:[#allocation3 + $0x48] sm:$0xff] %vm2312_vm5, %v2169_v16 }
 0x2e9   : > { %2479 = vrot.lane.b32.xlu2 %v2369_v14, %s4929_s21 }
 0x2ea   : > { %2477 = vrot.lane.b32.xlu1 %v2368_v56, %s4929_s21  ;;  %v2402_v56 = vld [vmem:[#allocation2 + $0x15f] sm:$0xff] }
 0x2eb   : > { %v2197_v26 = vpop.permute.xlu2 %2196  ;;  %2475 = vrot.lane.b32.xlu0 %v2367_v24, %s4929_s21 }
 0x2ec   : > { %2336 = vst.msk [vmem:[#allocation3 + $0xb8] sm:$0xff] %vm2312_vm5, %v2197_v26  ;;  %v2177_v2 = vpop.permute.xlu1 %2176  ;;  %v2401_v26 = vld [vmem:[#allocation2 + $0x157] sm:$0xff] }
 0x2ed   : > { %2326 = vst.msk [vmem:[#allocation3 + $0x68] sm:$0xff] %vm2312_vm5, %v2177_v2  ;;  %v2175_v37 = vpop.permute.xlu0 %2174  ;;  %v2400_v2 = vld [vmem:[#allocation2 + $0x14f] sm:$0xff] }
 0x2ee   : > { %2325 = vst.msk [vmem:[#allocation3 + $0x60] sm:$0xff] %vm2312_vm5, %v2175_v37 }
 0x2f1   : > { %2485 = vrot.lane.b32.xlu2 %v2372_v35, %s4929_s21 }
 0x2f2   : > { %2483 = vrot.lane.b32.xlu1 %v2371_v13, %s4929_s21  ;;  %v2405_v13 = vld [vmem:[#allocation2 + $0x177] sm:$0xff] }
 0x2f3   : > { %v2203_v52 = vpop.permute.xlu2 %2202  ;;  %2481 = vrot.lane.b32.xlu0 %v2370_v47, %s4929_s21 }
 0x2f4   : > { %2339 = vst.msk [vmem:[#allocation3 + $0xd0] sm:$0xff] %vm2312_vm5, %v2203_v52  ;;  %v2183_v23 = vpop.permute.xlu1 %2182  ;;  %v2404_v52 = vld [vmem:[#allocation2 + $0x16f] sm:$0xff] }
 0x2f5   : > { %2329 = vst.msk [vmem:[#allocation3 + $0x80] sm:$0xff] %vm2312_vm5, %v2183_v23  ;;  %v2181_v1 = vpop.permute.xlu0 %2180  ;;  %v2403_v23 = vld [vmem:[#allocation2 + $0x167] sm:$0xff] }
 0x2f6   : > { %2328 = vst.msk [vmem:[#allocation3 + $0x78] sm:$0xff] %vm2312_vm5, %v2181_v1 }
 0x2f9   : > { %2491 = vrot.lane.b32.xlu2 %v2375_v63, %s4929_s21 }
 0x2fa   : > { %2489 = vrot.lane.b32.xlu1 %v2374_v34, %s4929_s21  ;;  %v623_v34 = vld [vmem:[%s5852_s20 + $0x8] sm:$0xff] }
 0x2fb   : > { %v2209_v18 = vpop.permute.xlu2 %2208  ;;  %2487 = vrot.lane.b32.xlu0 %v2373_v15, %s4929_s21  ;;  %v624_v15 = vld [vmem:[%s5852_s20 + $0x10] sm:$0xff]  ;;  %629 = vst.msk [vmem:[#allocation2 + $0x1e8] sm:$0xff] %vm507_vm0, %v623_v34  ;;  %v2708_v34 = vld [vmem:[#allocation2 + $0xc8] sm:$0xff] }
 0x2fc   : > { %2342 = vst.msk [vmem:[#allocation3 + $0xe8] sm:$0xff] %vm2312_vm5, %v2209_v18  ;;  %v2189_v46 = vpop.permute.xlu1 %2188  ;;  %v2408_v18 = vld [vmem:[#allocation2 + $0x18f] sm:$0xff] }
 0x2fd   : > { %2332 = vst.msk [vmem:[#allocation3 + $0x98] sm:$0xff] %vm2312_vm5, %v2189_v46  ;;  %v2187_v36 = vpop.permute.xlu0 %2186 }
 0x2fe   : > { %2331 = vst.msk [vmem:[#allocation3 + $0x90] sm:$0xff] %vm2312_vm5, %v2187_v36  ;;  %v2406_v36 = vld [vmem:[#allocation2 + $0x17f] sm:$0xff] }
 0x2ff   : > { %630 = vst.msk [vmem:[#allocation2 + $0x1f0] sm:$0xff] %vm507_vm0, %v624_v15  ;;  %v2707_v15 = vld [vmem:[#allocation2 + $0xc0] sm:$0xff] }
 0x301   : > { %2497 = vrot.lane.b32.xlu2 %v2378_v31, %s4929_s21  ;;  %v2407_v31 = vld [vmem:[#allocation2 + $0x187] sm:$0xff] }
 0x302   : > { %2495 = vrot.lane.b32.xlu1 %v2377_v38, %s4929_s21 }
 0x303   : > { %v2215_v61 = vpop.permute.xlu2 %2214  ;;  %2493 = vrot.lane.b32.xlu0 %v2376_v33, %s4929_s21 }
 0x304   : > { %2345 = vst.msk [vmem:[#allocation3 + $0x100] sm:$0xff] %vm2312_vm5, %v2215_v61  ;;  %v2195_v51 = vpop.permute.xlu1 %2194  ;;  %v2411_v61 = vld [vmem:[#allocation2 + $0x1a7] sm:$0xff] }
 0x305   : > { %2335 = vst.msk [vmem:[#allocation3 + $0xb0] sm:$0xff] %vm2312_vm5, %v2195_v51  ;;  %v2193_v11 = vpop.permute.xlu0 %2192 }
 0x306   : > { %2334 = vst.msk [vmem:[#allocation3 + $0xa8] sm:$0xff] %vm2312_vm5, %v2193_v11  ;;  %v2409_v11 = vld [vmem:[#allocation2 + $0x197] sm:$0xff] }
 0x309   : > { %2503 = vrot.lane.b32.xlu2 %v2381_v54, %s4929_s21  ;;  %v2410_v54 = vld [vmem:[#allocation2 + $0x19f] sm:$0xff] }
 0x30a   : > { %2501 = vrot.lane.b32.xlu1 %v2380_v8, %s4929_s21 }
 0x30b   : > { %v2221_v28 = vpop.permute.xlu2 %2220  ;;  %2499 = vrot.lane.b32.xlu0 %v2379_v10, %s4929_s21 }
 0x30c   : > { %2348 = vst.msk [vmem:[#allocation3 + $0x118] sm:$0xff] %vm2312_vm5, %v2221_v28  ;;  %v2201_v27 = vpop.permute.xlu1 %2200  ;;  %v2414_v28 = vld [vmem:[#allocation2 + $0x1bf] sm:$0xff] }
 0x30d   : > { %2338 = vst.msk [vmem:[#allocation3 + $0xc8] sm:$0xff] %vm2312_vm5, %v2201_v27  ;;  %v2199_v45 = vpop.permute.xlu0 %2198 }
 0x30e   : > { %2337 = vst.msk [vmem:[#allocation3 + $0xc0] sm:$0xff] %vm2312_vm5, %v2199_v45  ;;  %v2412_v45 = vld [vmem:[#allocation2 + $0x1af] sm:$0xff] }
 0x311   : > { %2509 = vrot.lane.b32.xlu2 %v2384_v32, %s4929_s21  ;;  %v2413_v32 = vld [vmem:[#allocation2 + $0x1b7] sm:$0xff] }
 0x312   : > { %2507 = vrot.lane.b32.xlu1 %v2383_v55, %s4929_s21 }
 0x313   : > { %v2227_v42 = vpop.permute.xlu2 %2226  ;;  %2505 = vrot.lane.b32.xlu0 %v2382_v58, %s4929_s21 }
 0x314   : > { %2351 = vst.msk [vmem:[#allocation3 + $0x130] sm:$0xff] %vm2312_vm5, %v2227_v42  ;;  %v2207_v43 = vpop.permute.xlu1 %2206  ;;  %v2417_v42 = vld [vmem:[#allocation2 + $0x1d7] sm:$0xff] }
 0x315   : > { %2341 = vst.msk [vmem:[#allocation3 + $0xe0] sm:$0xff] %vm2312_vm5, %v2207_v43  ;;  %v2205_v21 = vpop.permute.xlu0 %2204 }
 0x316   : > { %2340 = vst.msk [vmem:[#allocation3 + $0xd8] sm:$0xff] %vm2312_vm5, %v2205_v21  ;;  %v2415_v21 = vld [vmem:[#allocation2 + $0x1c7] sm:$0xff] }
 0x319   : > { %2515 = vrot.lane.b32.xlu2 %v2387_v7, %s4929_s21  ;;  %v2416_v7 = vld [vmem:[#allocation2 + $0x1cf] sm:$0xff] }
 0x31a   : > { %2513 = vrot.lane.b32.xlu1 %v2386_v44, %s4929_s21 }
 0x31b   : > { %v2233_v53 = vpop.permute.xlu2 %2232  ;;  %2511 = vrot.lane.b32.xlu0 %v2385_v22, %s4929_s21 }
 0x31c   : > { %2354 = vst.msk [vmem:[#allocation3 + $0x148] sm:$0xff] %vm2312_vm5, %v2233_v53  ;;  %v2213_v60 = vpop.permute.xlu1 %2212  ;;  %v2420_v53 = vld [vmem:[#allocation2 + $0x1ef] sm:$0xff] }
 0x31d   : > { %2344 = vst.msk [vmem:[#allocation3 + $0xf8] sm:$0xff] %vm2312_vm5, %v2213_v60  ;;  %v2211_v4 = vpop.permute.xlu0 %2210 }
 0x31e   : > { %2343 = vst.msk [vmem:[#allocation3 + $0xf0] sm:$0xff] %vm2312_vm5, %v2211_v4  ;;  %v2418_v4 = vld [vmem:[#allocation2 + $0x1df] sm:$0xff] }
 0x321   : > { %2521 = vrot.lane.b32.xlu2 %v2390_v0, %s4929_s21  ;;  %v2419_v0 = vld [vmem:[#allocation2 + $0x1e7] sm:$0xff] }
 0x322   : > { %2519 = vrot.lane.b32.xlu1 %v2389_v9, %s4929_s21 }
 0x323   : > { %v2239_v20 = vpop.permute.xlu2 %2238  ;;  %2517 = vrot.lane.b32.xlu0 %v2388_v17, %s4929_s21 }
 0x324   : > { %2357 = vst.msk [vmem:[#allocation3 + $0x160] sm:$0xff] %vm2312_vm5, %v2239_v20  ;;  %v2219_v25 = vpop.permute.xlu1 %2218  ;;  %v2694_v20 = vld [vmem:[#allocation2 + $0x58] sm:$0xff] }
 0x325   : > { %2347 = vst.msk [vmem:[#allocation3 + $0x110] sm:$0xff] %vm2312_vm5, %v2219_v25  ;;  %v2217_v62 = vpop.permute.xlu0 %2216 }
 0x326   : > { %2346 = vst.msk [vmem:[#allocation3 + $0x108] sm:$0xff] %vm2312_vm5, %v2217_v62  ;;  %v2692_v62 = vld [vmem:[#allocation2 + $0x48] sm:$0xff] }
 0x329   : > { %2527 = vrot.lane.b32.xlu2 %v2393_v5, %s4929_s21  ;;  %v2693_v5 = vld [vmem:[#allocation2 + $0x50] sm:$0xff] }
 0x32a   : > { %2525 = vrot.lane.b32.xlu1 %v2392_v30, %s4929_s21 }
 0x32b   : > { %v2245_v40 = vpop.permute.xlu2 %2244  ;;  %2523 = vrot.lane.b32.xlu0 %v2391_v12, %s4929_s21 }
 0x32c   : > { %2360 = vst.msk [vmem:[#allocation3 + $0x178] sm:$0xff] %vm2312_vm5, %v2245_v40  ;;  %v2225_v41 = vpop.permute.xlu1 %2224  ;;  %v2697_v40 = vld [vmem:[#allocation2 + $0x70] sm:$0xff] }
 0x32d   : > { %2350 = vst.msk [vmem:[#allocation3 + $0x128] sm:$0xff] %vm2312_vm5, %v2225_v41  ;;  %v2223_v49 = vpop.permute.xlu0 %2222 }
 0x32e   : > { %2349 = vst.msk [vmem:[#allocation3 + $0x120] sm:$0xff] %vm2312_vm5, %v2223_v49  ;;  %v2695_v49 = vld [vmem:[#allocation2 + $0x60] sm:$0xff] }
 0x331   : > { %2533 = vrot.lane.b32.xlu2 %v2396_v19, %s4929_s21  ;;  %v2696_v19 = vld [vmem:[#allocation2 + $0x68] sm:$0xff] }
 0x332   : > { %2531 = vrot.lane.b32.xlu1 %v2395_v50, %s4929_s21 }
 0x333   : > { %v2251_v57 = vpop.permute.xlu2 %2250  ;;  %2529 = vrot.lane.b32.xlu0 %v2394_v29, %s4929_s21 }
 0x334   : > { %2363 = vst.msk [vmem:[#allocation3 + $0x190] sm:$0xff] %vm2312_vm5, %v2251_v57  ;;  %v2231_v59 = vpop.permute.xlu1 %2230  ;;  %v2700_v57 = vld [vmem:[#allocation2 + $0x88] sm:$0xff] }
 0x335   : > { %2353 = vst.msk [vmem:[#allocation3 + $0x140] sm:$0xff] %vm2312_vm5, %v2231_v59  ;;  %v2229_v3 = vpop.permute.xlu0 %2228 }
 0x336   : > { %2352 = vst.msk [vmem:[#allocation3 + $0x138] sm:$0xff] %vm2312_vm5, %v2229_v3  ;;  %v2698_v3 = vld [vmem:[#allocation2 + $0x78] sm:$0xff] }
 0x339   : > { %2539 = vrot.lane.b32.xlu2 %v2399_v39, %s4929_s21  ;;  %v2699_v39 = vld [vmem:[#allocation2 + $0x80] sm:$0xff] }
 0x33a   : > { %2537 = vrot.lane.b32.xlu1 %v2398_v6, %s4929_s21 }
 0x33b   : > { %v2257_v14 = vpop.permute.xlu2 %2256  ;;  %2535 = vrot.lane.b32.xlu0 %v2397_v48, %s4929_s21 }
 0x33c   : > { %2366 = vst.msk [vmem:[#allocation3 + $0x1a8] sm:$0xff] %vm2312_vm5, %v2257_v14  ;;  %v2237_v16 = vpop.permute.xlu1 %2236  ;;  %v2703_v14 = vld [vmem:[#allocation2 + $0xa0] sm:$0xff] }
 0x33d   : > { %2356 = vst.msk [vmem:[#allocation3 + $0x158] sm:$0xff] %vm2312_vm5, %v2237_v16  ;;  %v2235_v24 = vpop.permute.xlu0 %2234 }
 0x33e   : > { %2355 = vst.msk [vmem:[#allocation3 + $0x150] sm:$0xff] %vm2312_vm5, %v2235_v24  ;;  %v2701_v24 = vld [vmem:[#allocation2 + $0x90] sm:$0xff] }
 0x341   : > { %2545 = vrot.lane.b32.xlu2 %v2402_v56, %s4929_s21  ;;  %v2702_v56 = vld [vmem:[#allocation2 + $0x98] sm:$0xff] }
 0x342   : > { %2543 = vrot.lane.b32.xlu1 %v2401_v26, %s4929_s21 }
 0x343   : > { %v2480_v35 = vpop.permute.xlu2 %2479  ;;  %2541 = vrot.lane.b32.xlu0 %v2400_v2, %s4929_s21 }
 0x344   : > { %2640 = vst.msk [vmem:[#allocation3 + $0x10] sm:$0xff] %vm2637_vm6, %v2480_v35  ;;  %v2243_v37 = vpop.permute.xlu1 %2242  ;;  %v2706_v35 = vld [vmem:[#allocation2 + $0xb8] sm:$0xff] }
 0x345   : > { %2359 = vst.msk [vmem:[#allocation3 + $0x170] sm:$0xff] %vm2312_vm5, %v2243_v37  ;;  %v2241_v47 = vpop.permute.xlu0 %2240 }
 0x346   : > { %2358 = vst.msk [vmem:[#allocation3 + $0x168] sm:$0xff] %vm2312_vm5, %v2241_v47  ;;  %v2704_v47 = vld [vmem:[#allocation2 + $0xa8] sm:$0xff] }
 0x349   : > { %2551 = vrot.lane.b32.xlu2 %v2405_v13, %s4929_s21  ;;  %v2705_v13 = vld [vmem:[#allocation2 + $0xb0] sm:$0xff] }
 0x34a   : > { %2549 = vrot.lane.b32.xlu1 %v2404_v52, %s4929_s21 }
 0x34b   : > { %v2486_v63 = vpop.permute.xlu2 %2485  ;;  %2547 = vrot.lane.b32.xlu0 %v2403_v23, %s4929_s21 }
 0x34c   : > { %2643 = vst.msk [vmem:[#allocation3 + $0x28] sm:$0xff] %vm2637_vm6, %v2486_v63  ;;  %v2249_v1 = vpop.permute.xlu1 %2248  ;;  %v2709_v63 = vld [vmem:[#allocation2 + $0xd0] sm:$0xff] }
 0x34d   : > { %2362 = vst.msk [vmem:[#allocation3 + $0x188] sm:$0xff] %vm2312_vm5, %v2249_v1  ;;  %v2247_v46 = vpop.permute.xlu0 %2246 }
 0x34e   : > { %2361 = vst.msk [vmem:[#allocation3 + $0x180] sm:$0xff] %vm2312_vm5, %v2247_v46 }
 0x351   : > { %2557 = vrot.lane.b32.xlu2 %v2408_v18, %s4929_s21 }
 0x352   : > { %2555 = vrot.lane.b32.xlu1 %v2407_v31, %s4929_s21  ;;  %v2712_v31 = vld [vmem:[#allocation2 + $0xe8] sm:$0xff] }
 0x353   : > { %v2492_v38 = vpop.permute.xlu2 %2491  ;;  %2553 = vrot.lane.b32.xlu0 %v2406_v36, %s4929_s21 }
 0x354   : > { %2646 = vst.msk [vmem:[#allocation3 + $0x40] sm:$0xff] %vm2637_vm6, %v2492_v38  ;;  %v2255_v33 = vpop.permute.xlu1 %2254  ;;  %v2711_v38 = vld [vmem:[#allocation2 + $0xe0] sm:$0xff] }
 0x355   : > { %2365 = vst.msk [vmem:[#allocation3 + $0x1a0] sm:$0xff] %vm2312_vm5, %v2255_v33  ;;  %v2253_v51 = vpop.permute.xlu0 %2252  ;;  %v2710_v33 = vld [vmem:[#allocation2 + $0xd8] sm:$0xff] }
 0x356   : > { %2364 = vst.msk [vmem:[#allocation3 + $0x198] sm:$0xff] %vm2312_vm5, %v2253_v51 }
 0x359   : > { %2563 = vrot.lane.b32.xlu2 %v2411_v61, %s4929_s21 }
 0x35a   : > { %2561 = vrot.lane.b32.xlu1 %v2410_v54, %s4929_s21  ;;  %v2715_v54 = vld [vmem:[#allocation2 + $0x100] sm:$0xff] }
 0x35b   : > { %v2498_v8 = vpop.permute.xlu2 %2497  ;;  %2559 = vrot.lane.b32.xlu0 %v2409_v11, %s4929_s21 }
 0x35c   : > { %2649 = vst.msk [vmem:[#allocation3 + $0x58] sm:$0xff] %vm2637_vm6, %v2498_v8  ;;  %v2478_v10 = vpop.permute.xlu1 %2477  ;;  %v2714_v8 = vld [vmem:[#allocation2 + $0xf8] sm:$0xff] }
 0x35d   : > { %2639 = vst.msk [vmem:[#allocation3 + $0x8] sm:$0xff] %vm2637_vm6, %v2478_v10  ;;  %v2476_v27 = vpop.permute.xlu0 %2475  ;;  %v2713_v10 = vld [vmem:[#allocation2 + $0xf0] sm:$0xff] }
 0x35e   : > { %2638 = vst.msk [vmem:[#allocation3] sm:$0xff] %vm2637_vm6, %v2476_v27 }
 0x361   : > { %2569 = vrot.lane.b32.xlu2 %v2414_v28, %s4929_s21 }
 0x362   : > { %2567 = vrot.lane.b32.xlu1 %v2413_v32, %s4929_s21  ;;  %v2718_v32 = vld [vmem:[#allocation2 + $0x118] sm:$0xff] }
 0x363   : > { %v2504_v55 = vpop.permute.xlu2 %2503  ;;  %2565 = vrot.lane.b32.xlu0 %v2412_v45, %s4929_s21 }
 0x364   : > { %2652 = vst.msk [vmem:[#allocation3 + $0x70] sm:$0xff] %vm2637_vm6, %v2504_v55  ;;  %v2484_v58 = vpop.permute.xlu1 %2483  ;;  %v2717_v55 = vld [vmem:[#allocation2 + $0x110] sm:$0xff] }
 0x365   : > { %2642 = vst.msk [vmem:[#allocation3 + $0x20] sm:$0xff] %vm2637_vm6, %v2484_v58  ;;  %v2482_v43 = vpop.permute.xlu0 %2481  ;;  %v2716_v58 = vld [vmem:[#allocation2 + $0x108] sm:$0xff] }
 0x366   : > { %2641 = vst.msk [vmem:[#allocation3 + $0x18] sm:$0xff] %vm2637_vm6, %v2482_v43 }
 0x369   : > { %2575 = vrot.lane.b32.xlu2 %v2417_v42, %s4929_s21 }
 0x36a   : > { %2573 = vrot.lane.b32.xlu1 %v2416_v7, %s4929_s21  ;;  %v2721_v7 = vld [vmem:[#allocation2 + $0x130] sm:$0xff] }
 0x36b   : > { %v2510_v44 = vpop.permute.xlu2 %2509  ;;  %2571 = vrot.lane.b32.xlu0 %v2415_v21, %s4929_s21 }
 0x36c   : > { %2655 = vst.msk [vmem:[#allocation3 + $0x88] sm:$0xff] %vm2637_vm6, %v2510_v44  ;;  %v2490_v22 = vpop.permute.xlu1 %2489  ;;  %v2720_v44 = vld [vmem:[#allocation2 + $0x128] sm:$0xff] }
 0x36d   : > { %2645 = vst.msk [vmem:[#allocation3 + $0x38] sm:$0xff] %vm2637_vm6, %v2490_v22  ;;  %v2488_v60 = vpop.permute.xlu0 %2487  ;;  %v2719_v22 = vld [vmem:[#allocation2 + $0x120] sm:$0xff] }
 0x36e   : > { %2644 = vst.msk [vmem:[#allocation3 + $0x30] sm:$0xff] %vm2637_vm6, %v2488_v60 }
 0x371   : > { %2581 = vrot.lane.b32.xlu2 %v2420_v53, %s4929_s21 }
 0x372   : > { %2579 = vrot.lane.b32.xlu1 %v2419_v0, %s4929_s21  ;;  %v2724_v0 = vld [vmem:[#allocation2 + $0x148] sm:$0xff] }
 0x373   : > { %v2516_v9 = vpop.permute.xlu2 %2515  ;;  %2577 = vrot.lane.b32.xlu0 %v2418_v4, %s4929_s21 }
 0x374   : > { %2658 = vst.msk [vmem:[#allocation3 + $0xa0] sm:$0xff] %vm2637_vm6, %v2516_v9  ;;  %v2496_v17 = vpop.permute.xlu1 %2495  ;;  %v2723_v9 = vld [vmem:[#allocation2 + $0x140] sm:$0xff] }
 0x375   : > { %2648 = vst.msk [vmem:[#allocation3 + $0x50] sm:$0xff] %vm2637_vm6, %v2496_v17  ;;  %v2494_v25 = vpop.permute.xlu0 %2493  ;;  %v2722_v17 = vld [vmem:[#allocation2 + $0x138] sm:$0xff] }
 0x376   : > { %2647 = vst.msk [vmem:[#allocation3 + $0x48] sm:$0xff] %vm2637_vm6, %v2494_v25 }
 0x379   : > { %2804 = vrot.lane.b32.xlu2 %v2694_v20, %s4930_s22 }
 0x37a   : > { %2802 = vrot.lane.b32.xlu1 %v2693_v5, %s4930_s22  ;;  %v2727_v5 = vld [vmem:[#allocation2 + $0x160] sm:$0xff] }
 0x37b   : > { %v2522_v30 = vpop.permute.xlu2 %2521  ;;  %2800 = vrot.lane.b32.xlu0 %v2692_v62, %s4930_s22 }
 0x37c   : > { %2661 = vst.msk [vmem:[#allocation3 + $0xb8] sm:$0xff] %vm2637_vm6, %v2522_v30  ;;  %v2502_v12 = vpop.permute.xlu1 %2501  ;;  %v2726_v30 = vld [vmem:[#allocation2 + $0x158] sm:$0xff] }
 0x37d   : > { %2651 = vst.msk [vmem:[#allocation3 + $0x68] sm:$0xff] %vm2637_vm6, %v2502_v12  ;;  %v2500_v41 = vpop.permute.xlu0 %2499  ;;  %v2725_v12 = vld [vmem:[#allocation2 + $0x150] sm:$0xff] }
 0x37e   : > { %2650 = vst.msk [vmem:[#allocation3 + $0x60] sm:$0xff] %vm2637_vm6, %v2500_v41 }
 0x381   : > { %2810 = vrot.lane.b32.xlu2 %v2697_v40, %s4930_s22 }
 0x382   : > { %2808 = vrot.lane.b32.xlu1 %v2696_v19, %s4930_s22  ;;  %v2730_v19 = vld [vmem:[#allocation2 + $0x178] sm:$0xff] }
 0x383   : > { %v2528_v50 = vpop.permute.xlu2 %2527  ;;  %2806 = vrot.lane.b32.xlu0 %v2695_v49, %s4930_s22 }
 0x384   : > { %2664 = vst.msk [vmem:[#allocation3 + $0xd0] sm:$0xff] %vm2637_vm6, %v2528_v50  ;;  %v2508_v29 = vpop.permute.xlu1 %2507  ;;  %v2729_v50 = vld [vmem:[#allocation2 + $0x170] sm:$0xff] }
 0x385   : > { %2654 = vst.msk [vmem:[#allocation3 + $0x80] sm:$0xff] %vm2637_vm6, %v2508_v29  ;;  %v2506_v59 = vpop.permute.xlu0 %2505  ;;  %v2728_v29 = vld [vmem:[#allocation2 + $0x168] sm:$0xff] }
 0x386   : > { %2653 = vst.msk [vmem:[#allocation3 + $0x78] sm:$0xff] %vm2637_vm6, %v2506_v59 }
 0x389   : > { %2816 = vrot.lane.b32.xlu2 %v2700_v57, %s4930_s22 }
 0x38a   : > { %2814 = vrot.lane.b32.xlu1 %v2699_v39, %s4930_s22  ;;  %v2733_v39 = vld [vmem:[#allocation2 + $0x190] sm:$0xff] }
 0x38b   : > { %v2534_v6 = vpop.permute.xlu2 %2533  ;;  %2812 = vrot.lane.b32.xlu0 %v2698_v3, %s4930_s22 }
 0x38c   : > { %2667 = vst.msk [vmem:[#allocation3 + $0xe8] sm:$0xff] %vm2637_vm6, %v2534_v6  ;;  %v2514_v48 = vpop.permute.xlu1 %2513  ;;  %v2732_v6 = vld [vmem:[#allocation2 + $0x188] sm:$0xff] }
 0x38d   : > { %2657 = vst.msk [vmem:[#allocation3 + $0x98] sm:$0xff] %vm2637_vm6, %v2514_v48  ;;  %v2512_v16 = vpop.permute.xlu0 %2511  ;;  %v2731_v48 = vld [vmem:[#allocation2 + $0x180] sm:$0xff] }
 0x38e   : > { %2656 = vst.msk [vmem:[#allocation3 + $0x90] sm:$0xff] %vm2637_vm6, %v2512_v16 }
 0x391   : > { %2822 = vrot.lane.b32.xlu2 %v2703_v14, %s4930_s22 }
 0x392   : > { %2820 = vrot.lane.b32.xlu1 %v2702_v56, %s4930_s22  ;;  %v2736_v56 = vld [vmem:[#allocation2 + $0x1a8] sm:$0xff] }
 0x393   : > { %v2540_v26 = vpop.permute.xlu2 %2539  ;;  %2818 = vrot.lane.b32.xlu0 %v2701_v24, %s4930_s22 }
 0x394   : > { %2670 = vst.msk [vmem:[#allocation3 + $0x100] sm:$0xff] %vm2637_vm6, %v2540_v26  ;;  %v2520_v2 = vpop.permute.xlu1 %2519  ;;  %v2735_v26 = vld [vmem:[#allocation2 + $0x1a0] sm:$0xff] }
 0x395   : > { %2660 = vst.msk [vmem:[#allocation3 + $0xb0] sm:$0xff] %vm2637_vm6, %v2520_v2  ;;  %v2518_v37 = vpop.permute.xlu0 %2517  ;;  %v2734_v2 = vld [vmem:[#allocation2 + $0x198] sm:$0xff] }
 0x396   : > { %2659 = vst.msk [vmem:[#allocation3 + $0xa8] sm:$0xff] %vm2637_vm6, %v2518_v37 }
 0x399   : > { %2828 = vrot.lane.b32.xlu2 %v2706_v35, %s4930_s22 }
 0x39a   : > { %2826 = vrot.lane.b32.xlu1 %v2705_v13, %s4930_s22  ;;  %v2739_v13 = vld [vmem:[#allocation2 + $0x1c0] sm:$0xff] }
 0x39b   : > { %v2546_v52 = vpop.permute.xlu2 %2545  ;;  %2824 = vrot.lane.b32.xlu0 %v2704_v47, %s4930_s22 }
 0x39c   : > { %2673 = vst.msk [vmem:[#allocation3 + $0x118] sm:$0xff] %vm2637_vm6, %v2546_v52  ;;  %v2526_v23 = vpop.permute.xlu1 %2525  ;;  %v2738_v52 = vld [vmem:[#allocation2 + $0x1b8] sm:$0xff] }
 0x39d   : > { %2663 = vst.msk [vmem:[#allocation3 + $0xc8] sm:$0xff] %vm2637_vm6, %v2526_v23  ;;  %v2524_v1 = vpop.permute.xlu0 %2523  ;;  %v2737_v23 = vld [vmem:[#allocation2 + $0x1b0] sm:$0xff] }
 0x39e   : > { %2662 = vst.msk [vmem:[#allocation3 + $0xc0] sm:$0xff] %vm2637_vm6, %v2524_v1 }
 0x3a1   : > { %2834 = vrot.lane.b32.xlu2 %v2709_v63, %s4930_s22 }
 0x3a2   : > { %2832 = vrot.lane.b32.xlu1 %v2708_v34, %s4930_s22  ;;  %v2742_v34 = vld [vmem:[#allocation2 + $0x1d8] sm:$0xff] }
 0x3a3   : > { %v2552_v18 = vpop.permute.xlu2 %2551  ;;  %2830 = vrot.lane.b32.xlu0 %v2707_v15, %s4930_s22 }
 0x3a4   : > { %2676 = vst.msk [vmem:[#allocation3 + $0x130] sm:$0xff] %vm2637_vm6, %v2552_v18  ;;  %v2532_v46 = vpop.permute.xlu1 %2531  ;;  %v2741_v18 = vld [vmem:[#allocation2 + $0x1d0] sm:$0xff] }
 0x3a5   : > { %2666 = vst.msk [vmem:[#allocation3 + $0xe0] sm:$0xff] %vm2637_vm6, %v2532_v46  ;;  %v2530_v36 = vpop.permute.xlu0 %2529  ;;  %v2740_v46 = vld [vmem:[#allocation2 + $0x1c8] sm:$0xff] }
 0x3a6   : > { %2665 = vst.msk [vmem:[#allocation3 + $0xd8] sm:$0xff] %vm2637_vm6, %v2530_v36 }
 0x3a9   : > { %2840 = vrot.lane.b32.xlu2 %v2712_v31, %s4930_s22 }
 0x3aa   : > { %2838 = vrot.lane.b32.xlu1 %v2711_v38, %s4930_s22  ;;  %v2745_v38 = vld [vmem:[#allocation2 + $0x1f0] sm:$0xff] }
 0x3ab   : > { %v2558_v61 = vpop.permute.xlu2 %2557  ;;  %2836 = vrot.lane.b32.xlu0 %v2710_v33, %s4930_s22 }
 0x3ac   : > { %2679 = vst.msk [vmem:[#allocation3 + $0x148] sm:$0xff] %vm2637_vm6, %v2558_v61  ;;  %v2538_v51 = vpop.permute.xlu1 %2537  ;;  %v2744_v61 = vld [vmem:[#allocation2 + $0x1e8] sm:$0xff] }
 0x3ad   : > { %2669 = vst.msk [vmem:[#allocation3 + $0xf8] sm:$0xff] %vm2637_vm6, %v2538_v51  ;;  %v2536_v11 = vpop.permute.xlu0 %2535  ;;  %v2743_v51 = vld [vmem:[#allocation2 + $0x1e0] sm:$0xff] }
 0x3ae   : > { %2668 = vst.msk [vmem:[#allocation3 + $0xf0] sm:$0xff] %vm2637_vm6, %v2536_v11 }
 0x3b1   : > { %2846 = vrot.lane.b32.xlu2 %v2715_v54, %s4930_s22 }
 0x3b2   : > { %2844 = vrot.lane.b32.xlu1 %v2714_v8, %s4930_s22  ;;  %v3019_v8 = vld [vmem:[#allocation2 + $0x59] sm:$0xff] }
 0x3b3   : > { %v2564_v28 = vpop.permute.xlu2 %2563  ;;  %2842 = vrot.lane.b32.xlu0 %v2713_v10, %s4930_s22 }
 0x3b4   : > { %2682 = vst.msk [vmem:[#allocation3 + $0x160] sm:$0xff] %vm2637_vm6, %v2564_v28  ;;  %v2544_v27 = vpop.permute.xlu1 %2543  ;;  %v3018_v28 = vld [vmem:[#allocation2 + $0x51] sm:$0xff] }
 0x3b5   : > { %2672 = vst.msk [vmem:[#allocation3 + $0x110] sm:$0xff] %vm2637_vm6, %v2544_v27  ;;  %v2542_v45 = vpop.permute.xlu0 %2541  ;;  %v3017_v27 = vld [vmem:[#allocation2 + $0x49] sm:$0xff] }
 0x3b6   : > { %2671 = vst.msk [vmem:[#allocation3 + $0x108] sm:$0xff] %vm2637_vm6, %v2542_v45 }
 0x3b9   : > { %2852 = vrot.lane.b32.xlu2 %v2718_v32, %s4930_s22 }
 0x3ba   : > { %2850 = vrot.lane.b32.xlu1 %v2717_v55, %s4930_s22  ;;  %v3022_v55 = vld [vmem:[#allocation2 + $0x71] sm:$0xff] }
 0x3bb   : > { %v2570_v42 = vpop.permute.xlu2 %2569  ;;  %2848 = vrot.lane.b32.xlu0 %v2716_v58, %s4930_s22 }
 0x3bc   : > { %2685 = vst.msk [vmem:[#allocation3 + $0x178] sm:$0xff] %vm2637_vm6, %v2570_v42  ;;  %v2550_v43 = vpop.permute.xlu1 %2549  ;;  %v3021_v42 = vld [vmem:[#allocation2 + $0x69] sm:$0xff] }
 0x3bd   : > { %2675 = vst.msk [vmem:[#allocation3 + $0x128] sm:$0xff] %vm2637_vm6, %v2550_v43  ;;  %v2548_v21 = vpop.permute.xlu0 %2547  ;;  %v3020_v43 = vld [vmem:[#allocation2 + $0x61] sm:$0xff] }
 0x3be   : > { %2674 = vst.msk [vmem:[#allocation3 + $0x120] sm:$0xff] %vm2637_vm6, %v2548_v21 }
 0x3c1   : > { %2858 = vrot.lane.b32.xlu2 %v2721_v7, %s4930_s22 }
 0x3c2   : > { %2856 = vrot.lane.b32.xlu1 %v2720_v44, %s4930_s22  ;;  %v3025_v44 = vld [vmem:[#allocation2 + $0x89] sm:$0xff] }
 0x3c3   : > { %v2576_v53 = vpop.permute.xlu2 %2575  ;;  %2854 = vrot.lane.b32.xlu0 %v2719_v22, %s4930_s22 }
 0x3c4   : > { %2688 = vst.msk [vmem:[#allocation3 + $0x190] sm:$0xff] %vm2637_vm6, %v2576_v53  ;;  %v2556_v60 = vpop.permute.xlu1 %2555  ;;  %v3024_v53 = vld [vmem:[#allocation2 + $0x81] sm:$0xff] }
 0x3c5   : > { %2678 = vst.msk [vmem:[#allocation3 + $0x140] sm:$0xff] %vm2637_vm6, %v2556_v60  ;;  %v2554_v4 = vpop.permute.xlu0 %2553  ;;  %v3023_v60 = vld [vmem:[#allocation2 + $0x79] sm:$0xff] }
 0x3c6   : > { %2677 = vst.msk [vmem:[#allocation3 + $0x138] sm:$0xff] %vm2637_vm6, %v2554_v4 }
 0x3c9   : > { %2864 = vrot.lane.b32.xlu2 %v2724_v0, %s4930_s22 }
 0x3ca   : > { %2862 = vrot.lane.b32.xlu1 %v2723_v9, %s4930_s22  ;;  %v3028_v9 = vld [vmem:[#allocation2 + $0xa1] sm:$0xff] }
 0x3cb   : > { %v2582_v20 = vpop.permute.xlu2 %2581  ;;  %2860 = vrot.lane.b32.xlu0 %v2722_v17, %s4930_s22 }
 0x3cc   : > { %2691 = vst.msk [vmem:[#allocation3 + $0x1a8] sm:$0xff] %vm2637_vm6, %v2582_v20  ;;  %v2562_v25 = vpop.permute.xlu1 %2561  ;;  %v3027_v20 = vld [vmem:[#allocation2 + $0x99] sm:$0xff] }
 0x3cd   : > { %2681 = vst.msk [vmem:[#allocation3 + $0x158] sm:$0xff] %vm2637_vm6, %v2562_v25  ;;  %v2560_v62 = vpop.permute.xlu0 %2559  ;;  %v3026_v25 = vld [vmem:[#allocation2 + $0x91] sm:$0xff] }
 0x3ce   : > { %2680 = vst.msk [vmem:[#allocation3 + $0x150] sm:$0xff] %vm2637_vm6, %v2560_v62 }
 0x3d1   : > { %2870 = vrot.lane.b32.xlu2 %v2727_v5, %s4930_s22 }
 0x3d2   : > { %2868 = vrot.lane.b32.xlu1 %v2726_v30, %s4930_s22  ;;  %v3031_v30 = vld [vmem:[#allocation2 + $0xb9] sm:$0xff] }
 0x3d3   : > { %v2805_v40 = vpop.permute.xlu2 %2804  ;;  %2866 = vrot.lane.b32.xlu0 %v2725_v12, %s4930_s22 }
 0x3d4   : > { %2965 = vst.msk [vmem:[#allocation3 + $0x10] sm:$0xff] %vm2962_vm7, %v2805_v40  ;;  %v2568_v41 = vpop.permute.xlu1 %2567  ;;  %v3030_v40 = vld [vmem:[#allocation2 + $0xb1] sm:$0xff] }
 0x3d5   : > { %2684 = vst.msk [vmem:[#allocation3 + $0x170] sm:$0xff] %vm2637_vm6, %v2568_v41  ;;  %v2566_v49 = vpop.permute.xlu0 %2565  ;;  %v3029_v41 = vld [vmem:[#allocation2 + $0xa9] sm:$0xff] }
 0x3d6   : > { %2683 = vst.msk [vmem:[#allocation3 + $0x168] sm:$0xff] %vm2637_vm6, %v2566_v49 }
 0x3d9   : > { %2876 = vrot.lane.b32.xlu2 %v2730_v19, %s4930_s22 }
 0x3da   : > { %2874 = vrot.lane.b32.xlu1 %v2729_v50, %s4930_s22  ;;  %v3034_v50 = vld [vmem:[#allocation2 + $0xd1] sm:$0xff] }
 0x3db   : > { %v2811_v57 = vpop.permute.xlu2 %2810  ;;  %2872 = vrot.lane.b32.xlu0 %v2728_v29, %s4930_s22 }
 0x3dc   : > { %2968 = vst.msk [vmem:[#allocation3 + $0x28] sm:$0xff] %vm2962_vm7, %v2811_v57  ;;  %v2574_v59 = vpop.permute.xlu1 %2573  ;;  %v3033_v57 = vld [vmem:[#allocation2 + $0xc9] sm:$0xff] }
 0x3dd   : > { %2687 = vst.msk [vmem:[#allocation3 + $0x188] sm:$0xff] %vm2637_vm6, %v2574_v59  ;;  %v2572_v3 = vpop.permute.xlu0 %2571  ;;  %v3032_v59 = vld [vmem:[#allocation2 + $0xc1] sm:$0xff] }
 0x3de   : > { %2686 = vst.msk [vmem:[#allocation3 + $0x180] sm:$0xff] %vm2637_vm6, %v2572_v3 }
 0x3e1   : > { %2882 = vrot.lane.b32.xlu2 %v2733_v39, %s4930_s22 }
 0x3e2   : > { %2880 = vrot.lane.b32.xlu1 %v2732_v6, %s4930_s22  ;;  %v3037_v6 = vld [vmem:[#allocation2 + $0xe9] sm:$0xff] }
 0x3e3   : > { %v2817_v14 = vpop.permute.xlu2 %2816  ;;  %2878 = vrot.lane.b32.xlu0 %v2731_v48, %s4930_s22 }
 0x3e4   : > { %2971 = vst.msk [vmem:[#allocation3 + $0x40] sm:$0xff] %vm2962_vm7, %v2817_v14  ;;  %v2580_v16 = vpop.permute.xlu1 %2579  ;;  %v3036_v14 = vld [vmem:[#allocation2 + $0xe1] sm:$0xff] }
 0x3e5   : > { %2690 = vst.msk [vmem:[#allocation3 + $0x1a0] sm:$0xff] %vm2637_vm6, %v2580_v16  ;;  %v2578_v24 = vpop.permute.xlu0 %2577  ;;  %v3035_v16 = vld [vmem:[#allocation2 + $0xd9] sm:$0xff] }
 0x3e6   : > { %2689 = vst.msk [vmem:[#allocation3 + $0x198] sm:$0xff] %vm2637_vm6, %v2578_v24 }
 0x3e9   : > { %2888 = vrot.lane.b32.xlu2 %v2736_v56, %s4930_s22 }
 0x3ea   : > { %2886 = vrot.lane.b32.xlu1 %v2735_v26, %s4930_s22  ;;  %v3040_v26 = vld [vmem:[#allocation2 + $0x101] sm:$0xff] }
 0x3eb   : > { %v2823_v35 = vpop.permute.xlu2 %2822  ;;  %2884 = vrot.lane.b32.xlu0 %v2734_v2, %s4930_s22 }
 0x3ec   : > { %2974 = vst.msk [vmem:[#allocation3 + $0x58] sm:$0xff] %vm2962_vm7, %v2823_v35  ;;  %v2803_v37 = vpop.permute.xlu1 %2802  ;;  %v3039_v35 = vld [vmem:[#allocation2 + $0xf9] sm:$0xff] }
 0x3ed   : > { %2964 = vst.msk [vmem:[#allocation3 + $0x8] sm:$0xff] %vm2962_vm7, %v2803_v37  ;;  %v2801_v47 = vpop.permute.xlu0 %2800  ;;  %v3038_v37 = vld [vmem:[#allocation2 + $0xf1] sm:$0xff] }
 0x3ee   : > { %2963 = vst.msk [vmem:[#allocation3] sm:$0xff] %vm2962_vm7, %v2801_v47 }
 0x3f1   : > { %2894 = vrot.lane.b32.xlu2 %v2739_v13, %s4930_s22 }
 0x3f2   : > { %2892 = vrot.lane.b32.xlu1 %v2738_v52, %s4930_s22  ;;  %v3043_v52 = vld [vmem:[#allocation2 + $0x119] sm:$0xff] }
 0x3f3   : > { %v2829_v63 = vpop.permute.xlu2 %2828  ;;  %2890 = vrot.lane.b32.xlu0 %v2737_v23, %s4930_s22 }
 0x3f4   : > { %2977 = vst.msk [vmem:[#allocation3 + $0x70] sm:$0xff] %vm2962_vm7, %v2829_v63  ;;  %v2809_v1 = vpop.permute.xlu1 %2808  ;;  %v3042_v63 = vld [vmem:[#allocation2 + $0x111] sm:$0xff] }
 0x3f5   : > { %2967 = vst.msk [vmem:[#allocation3 + $0x20] sm:$0xff] %vm2962_vm7, %v2809_v1  ;;  %v2807_v15 = vpop.permute.xlu0 %2806  ;;  %v3041_v1 = vld [vmem:[#allocation2 + $0x109] sm:$0xff] }
 0x3f6   : > { %2966 = vst.msk [vmem:[#allocation3 + $0x18] sm:$0xff] %vm2962_vm7, %v2807_v15 }
 0x3f9   : > { %2900 = vrot.lane.b32.xlu2 %v2742_v34, %s4930_s22 }
 0x3fa   : > { %2898 = vrot.lane.b32.xlu1 %v2741_v18, %s4930_s22  ;;  %v3046_v18 = vld [vmem:[#allocation2 + $0x131] sm:$0xff] }
 0x3fb   : > { %v2835_v31 = vpop.permute.xlu2 %2834  ;;  %2896 = vrot.lane.b32.xlu0 %v2740_v46, %s4930_s22 }
 0x3fc   : > { %2980 = vst.msk [vmem:[#allocation3 + $0x88] sm:$0xff] %vm2962_vm7, %v2835_v31  ;;  %v2815_v36 = vpop.permute.xlu1 %2814  ;;  %v3045_v31 = vld [vmem:[#allocation2 + $0x129] sm:$0xff] }
 0x3fd   : > { %2970 = vst.msk [vmem:[#allocation3 + $0x38] sm:$0xff] %vm2962_vm7, %v2815_v36  ;;  %v2813_v33 = vpop.permute.xlu0 %2812  ;;  %v3044_v36 = vld [vmem:[#allocation2 + $0x121] sm:$0xff] }
 0x3fe   : > { %2969 = vst.msk [vmem:[#allocation3 + $0x30] sm:$0xff] %vm2962_vm7, %v2813_v33 }
 0x401   : > { %2906 = vrot.lane.b32.xlu2 %v2745_v38, %s4930_s22 }
 0x402   : > { %2904 = vrot.lane.b32.xlu1 %v2744_v61, %s4930_s22  ;;  %v3049_v61 = vld [vmem:[#allocation2 + $0x149] sm:$0xff] }
 0x403   : > { %v2841_v54 = vpop.permute.xlu2 %2840  ;;  %2902 = vrot.lane.b32.xlu0 %v2743_v51, %s4930_s22 }
 0x404   : > { %2983 = vst.msk [vmem:[#allocation3 + $0xa0] sm:$0xff] %vm2962_vm7, %v2841_v54  ;;  %v2821_v11 = vpop.permute.xlu1 %2820  ;;  %v3048_v54 = vld [vmem:[#allocation2 + $0x141] sm:$0xff] }
 0x405   : > { %2973 = vst.msk [vmem:[#allocation3 + $0x50] sm:$0xff] %vm2962_vm7, %v2821_v11  ;;  %v2819_v10 = vpop.permute.xlu0 %2818  ;;  %v3047_v11 = vld [vmem:[#allocation2 + $0x139] sm:$0xff] }
 0x406   : > { %2972 = vst.msk [vmem:[#allocation3 + $0x48] sm:$0xff] %vm2962_vm7, %v2819_v10 }
 0x409   : > { %3129 = vrot.lane.b32.xlu2 %v3019_v8, %s4931_s23 }
 0x40a   : > { %3127 = vrot.lane.b32.xlu1 %v3018_v28, %s4931_s23  ;;  %v3400_v28 = vld [vmem:[%s6752_s4 + $0x20] sm:$0xf] }
 0x40b   : > { %v2847_v32 = vpop.permute.xlu2 %2846  ;;  %3125 = vrot.lane.b32.xlu0 %v3017_v27, %s4931_s23  ;;  %v3052_v27 = vld [vmem:[#allocation2 + $0x161] sm:$0xff]  ;;  %4625 = vmatpush.msk.msra.mxu0 %vm3564_vm8, %v3400_v28 }
 0x40c   : > { %2986 = vst.msk [vmem:[#allocation3 + $0xb8] sm:$0xff] %vm2962_vm7, %v2847_v32  ;;  %v2827_v45 = vpop.permute.xlu1 %2826  ;;  %4845 = vmatpush.msk.msra.mxu1 %vm3564_vm8, %v3400_v28  ;;  %4846 = vmatpush.msk.msra.mxu2 %vm3564_vm8, %v3400_v28 }
 0x40d   : > { %2976 = vst.msk [vmem:[#allocation3 + $0x68] sm:$0xff] %vm2962_vm7, %v2827_v45  ;;  %v2825_v58 = vpop.permute.xlu0 %2824  ;;  %v3051_v45 = vld [vmem:[#allocation2 + $0x159] sm:$0xff]  ;;  %4847 = vmatpush.msk.msra.mxu3 %vm3564_vm8, %v3400_v28 }
 0x40e   : > { %2975 = vst.msk [vmem:[#allocation3 + $0x60] sm:$0xff] %vm2962_vm7, %v2825_v58  ;;  %v3398_v58 = vld [vmem:[%s6752_s4 + $0x10] sm:$0xff] }
 0x411   : > { %3135 = vrot.lane.b32.xlu2 %v3022_v55, %s4931_s23  ;;  %v3399_v55 = vld [vmem:[%s6752_s4 + $0x18] sm:$0xff] }
 0x412   : > { %3133 = vrot.lane.b32.xlu1 %v3021_v42, %s4931_s23  ;;  %3580 = vmatpush.msra.mxu0 %v3399_v55  ;;  %v3050_v42 = vld [vmem:[#allocation2 + $0x151] sm:$0xff] }
 0x413   : > { %v2853_v7 = vpop.permute.xlu2 %2852  ;;  %3131 = vrot.lane.b32.xlu0 %v3020_v43, %s4931_s23  ;;  %v3397_v43 = vld [vmem:[%s6752_s4 + $0x8] sm:$0xff]  ;;  %4848 = vmatpush.msra.mxu1 %v3399_v55 }
 0x414   : > { %2989 = vst.msk [vmem:[#allocation3 + $0xd0] sm:$0xff] %vm2962_vm7, %v2853_v7  ;;  %v2833_v21 = vpop.permute.xlu1 %2832  ;;  %3581 = vmatpush.msra.mxu0 %v3398_v58  ;;  %4849 = vmatpush.msra.mxu2 %v3399_v55 }
 0x415   : > { %2979 = vst.msk [vmem:[#allocation3 + $0x80] sm:$0xff] %vm2962_vm7, %v2833_v21  ;;  %v2831_v22 = vpop.permute.xlu0 %2830  ;;  %4851 = vmatpush.msra.mxu1 %v3398_v58  ;;  %4850 = vmatpush.msra.mxu3 %v3399_v55 }
 0x416   : > { %2978 = vst.msk [vmem:[#allocation3 + $0x78] sm:$0xff] %vm2962_vm7, %v2831_v22  ;;  %3582 = vmatpush.msra.mxu0 %v3397_v43  ;;  %v3055_v22 = vld [vmem:[#allocation2 + $0x179] sm:$0xff]  ;;  %4852 = vmatpush.msra.mxu2 %v3398_v58 }
 0x417   : > { %4854 = vmatpush.msra.mxu1 %v3397_v43  ;;  %4853 = vmatpush.msra.mxu3 %v3398_v58  ;;  %v3753_v58 = vld [vmem:[%s6751_s3 + $0x30] sm:$0xff] }
 0x418   : > { %4855 = vmatpush.msra.mxu2 %v3397_v43 }
 0x419   : > { %3141 = vrot.lane.b32.xlu2 %v3025_v44, %s4931_s23  ;;  %v3396_v44 = vld [vmem:[%s6752_s4] sm:$0xff]  ;;  %4856 = vmatpush.msra.mxu3 %v3397_v43 }
 0x41a   : > { %3139 = vrot.lane.b32.xlu1 %v3024_v53, %s4931_s23  ;;  %3583 = vmatpush.msra.mxu0 %v3396_v44 }
 0x41b   : > { %v2859_v0 = vpop.permute.xlu2 %2858  ;;  %3137 = vrot.lane.b32.xlu0 %v3023_v60, %s4931_s23  ;;  %v3054_v60 = vld [vmem:[#allocation2 + $0x171] sm:$0xff]  ;;  %4857 = vmatpush.msra.mxu1 %v3396_v44 }
 0x41c   : > { %2992 = vst.msk [vmem:[#allocation3 + $0xe8] sm:$0xff] %vm2962_vm7, %v2859_v0  ;;  %v2839_v4 = vpop.permute.xlu1 %2838  ;;  %v3053_v0 = vld [vmem:[#allocation2 + $0x169] sm:$0xff]  ;;  %4858 = vmatpush.msra.mxu2 %v3396_v44  ;;  %4859 = vmatpush.msra.mxu3 %v3396_v44 }
 0x41d   : > { %2982 = vst.msk [vmem:[#allocation3 + $0x98] sm:$0xff] %vm2962_vm7, %v2839_v4  ;;  %v2837_v17 = vpop.permute.xlu0 %2836  ;;  %v3757_v44 = vld [vmem:[%s6751_s3 + $0x50] sm:$0xff] }
 0x41e   : > { %2981 = vst.msk [vmem:[#allocation3 + $0x90] sm:$0xff] %vm2962_vm7, %v2837_v17  ;;  %v625_v17 = vld [vmem:[%s5852_s20 + $0x18] sm:$0xff] }
 0x41f   : > { %631 = vst.msk [vmem:[#allocation2 + $0x1f8] sm:$0xff] %vm507_vm0, %v625_v17 }
 0x421   : > { %3147 = vrot.lane.b32.xlu2 %v3028_v9, %s4931_s23 }
 0x422   : > { %3145 = vrot.lane.b32.xlu1 %v3027_v20, %s4931_s23  ;;  %v3058_v20 = vld [vmem:[#allocation2 + $0x191] sm:$0xff] }
 0x423   : > { %v2865_v5 = vpop.permute.xlu2 %2864  ;;  %3143 = vrot.lane.b32.xlu0 %v3026_v25, %s4931_s23 }
 0x424   : > { %2995 = vst.msk [vmem:[#allocation3 + $0x100] sm:$0xff] %vm2962_vm7, %v2865_v5  ;;  %v2845_v62 = vpop.permute.xlu1 %2844  ;;  %v3057_v5 = vld [vmem:[#allocation2 + $0x189] sm:$0xff] }
 0x425   : > { %2985 = vst.msk [vmem:[#allocation3 + $0xb0] sm:$0xff] %vm2962_vm7, %v2845_v62  ;;  %v2843_v12 = vpop.permute.xlu0 %2842  ;;  %v3056_v62 = vld [vmem:[#allocation2 + $0x181] sm:$0xff] }
 0x426   : > { %2984 = vst.msk [vmem:[#allocation3 + $0xa8] sm:$0xff] %vm2962_vm7, %v2843_v12 }
 0x429   : > { %3153 = vrot.lane.b32.xlu2 %v3031_v30, %s4931_s23 }
 0x42a   : > { %3151 = vrot.lane.b32.xlu1 %v3030_v40, %s4931_s23  ;;  %v3061_v40 = vld [vmem:[#allocation2 + $0x1a9] sm:$0xff] }
 0x42b   : > { %v2871_v19 = vpop.permute.xlu2 %2870  ;;  %3149 = vrot.lane.b32.xlu0 %v3029_v41, %s4931_s23 }
 0x42c   : > { %2998 = vst.msk [vmem:[#allocation3 + $0x118] sm:$0xff] %vm2962_vm7, %v2871_v19  ;;  %v2851_v49 = vpop.permute.xlu1 %2850  ;;  %v3060_v19 = vld [vmem:[#allocation2 + $0x1a1] sm:$0xff] }
 0x42d   : > { %2988 = vst.msk [vmem:[#allocation3 + $0xc8] sm:$0xff] %vm2962_vm7, %v2851_v49  ;;  %v2849_v29 = vpop.permute.xlu0 %2848  ;;  %v4932_v49 = vmov 0  }
 0x42e   : > { %2987 = vst.msk [vmem:[#allocation3 + $0xc0] sm:$0xff] %vm2962_vm7, %v2849_v29  ;;  %4898 = vset.pattern.permute.xlu1 %v4932_v49  ;;  %4899 = vset.pattern.permute.xlu2 %v4932_v49 }
 0x42f   : > { %4897 = vset.pattern.permute.xlu0 %v4932_v49 }
 0x431   : > { %3159 = vrot.lane.b32.xlu2 %v3034_v50, %s4931_s23  ;;  %v3059_v50 = vld [vmem:[#allocation2 + $0x199] sm:$0xff] }
 0x432   : > { %3157 = vrot.lane.b32.xlu1 %v3033_v57, %s4931_s23 }
 0x433   : > { %v2877_v39 = vpop.permute.xlu2 %2876  ;;  %3155 = vrot.lane.b32.xlu0 %v3032_v59, %s4931_s23  ;;  %v3064_v59 = vld [vmem:[#allocation2 + $0x1c1] sm:$0xff] }
 0x434   : > { %3001 = vst.msk [vmem:[#allocation3 + $0x130] sm:$0xff] %vm2962_vm7, %v2877_v39  ;;  %v2857_v3 = vpop.permute.xlu1 %2856 }
 0x435   : > { %2991 = vst.msk [vmem:[#allocation3 + $0xe0] sm:$0xff] %vm2962_vm7, %v2857_v3  ;;  %v2855_v48 = vpop.permute.xlu0 %2854  ;;  %v3063_v3 = vld [vmem:[#allocation2 + $0x1b9] sm:$0xff] }
 0x436   : > { %2990 = vst.msk [vmem:[#allocation3 + $0xd8] sm:$0xff] %vm2962_vm7, %v2855_v48 }
 0x439   : > { %3165 = vrot.lane.b32.xlu2 %v3037_v6, %s4931_s23  ;;  %v3062_v6 = vld [vmem:[#allocation2 + $0x1b1] sm:$0xff] }
 0x43a   : > { %3163 = vrot.lane.b32.xlu1 %v3036_v14, %s4931_s23 }
 0x43b   : > { %v2883_v56 = vpop.permute.xlu2 %2882  ;;  %3161 = vrot.lane.b32.xlu0 %v3035_v16, %s4931_s23  ;;  %v3067_v16 = vld [vmem:[#allocation2 + $0x1d9] sm:$0xff] }
 0x43c   : > { %3004 = vst.msk [vmem:[#allocation3 + $0x148] sm:$0xff] %vm2962_vm7, %v2883_v56  ;;  %v2863_v24 = vpop.permute.xlu1 %2862 }
 0x43d   : > { %2994 = vst.msk [vmem:[#allocation3 + $0xf8] sm:$0xff] %vm2962_vm7, %v2863_v24  ;;  %v2861_v2 = vpop.permute.xlu0 %2860 }
 0x43e   : > { %2993 = vst.msk [vmem:[#allocation3 + $0xf0] sm:$0xff] %vm2962_vm7, %v2861_v2  ;;  %v3065_v2 = vld [vmem:[#allocation2 + $0x1c9] sm:$0xff] }
 0x441   : > { %3171 = vrot.lane.b32.xlu2 %v3040_v26, %s4931_s23  ;;  %v3066_v26 = vld [vmem:[#allocation2 + $0x1d1] sm:$0xff] }
 0x442   : > { %3169 = vrot.lane.b32.xlu1 %v3039_v35, %s4931_s23 }
 0x443   : > { %v2889_v13 = vpop.permute.xlu2 %2888  ;;  %3167 = vrot.lane.b32.xlu0 %v3038_v37, %s4931_s23 }
 0x444   : > { %3007 = vst.msk [vmem:[#allocation3 + $0x160] sm:$0xff] %vm2962_vm7, %v2889_v13  ;;  %v2869_v47 = vpop.permute.xlu1 %2868 }
 0x445   : > { %2997 = vst.msk [vmem:[#allocation3 + $0x110] sm:$0xff] %vm2962_vm7, %v2869_v47  ;;  %v2867_v23 = vpop.permute.xlu0 %2866  ;;  %v3070_v47 = vld [vmem:[#allocation2 + $0x1f1] sm:$0xff] }
 0x446   : > { %2996 = vst.msk [vmem:[#allocation3 + $0x108] sm:$0xff] %vm2962_vm7, %v2867_v23  ;;  %v3069_v23 = vld [vmem:[#allocation2 + $0x1e9] sm:$0xff] }
 0x449   : > { %3177 = vrot.lane.b32.xlu2 %v3043_v52, %s4931_s23 }
 0x44a   : > { %3175 = vrot.lane.b32.xlu1 %v3042_v63, %s4931_s23  ;;  %v3068_v63 = vld [vmem:[#allocation2 + $0x1e1] sm:$0xff] }
 0x44b   : > { %v2895_v34 = vpop.permute.xlu2 %2894  ;;  %3173 = vrot.lane.b32.xlu0 %v3041_v1, %s4931_s23 }
 0x44c   : > { %3010 = vst.msk [vmem:[#allocation3 + $0x178] sm:$0xff] %vm2962_vm7, %v2895_v34  ;;  %v2875_v15 = vpop.permute.xlu1 %2874 }
 0x44d   : > { %3000 = vst.msk [vmem:[#allocation3 + $0x128] sm:$0xff] %vm2962_vm7, %v2875_v15  ;;  %v2873_v46 = vpop.permute.xlu0 %2872  ;;  %v3749_v15 = vld [vmem:[%s6751_s3 + $0x10] sm:$0xff] }
 0x44e   : > { %2999 = vst.msk [vmem:[#allocation3 + $0x120] sm:$0xff] %vm2962_vm7, %v2873_v46 }
 0x451   : > { %3183 = vrot.lane.b32.xlu2 %v3046_v18, %s4931_s23 }
 0x452   : > { %3181 = vrot.lane.b32.xlu1 %v3045_v31, %s4931_s23  ;;  %v3748_v31 = vld [vmem:[%s6751_s3 + $0x8] sm:$0xff] }
 0x453   : > { %v2901_v38 = vpop.permute.xlu2 %2900  ;;  %3179 = vrot.lane.b32.xlu0 %v3044_v36, %s4931_s23  ;;  %v3747_v36 = vld [vmem:[%s6751_s3] sm:$0xff] }
 0x454   : > { %3013 = vst.msk [vmem:[#allocation3 + $0x190] sm:$0xff] %vm2962_vm7, %v2901_v38  ;;  %v2881_v33 = vpop.permute.xlu1 %2880 }
 0x455   : > { %3003 = vst.msk [vmem:[#allocation3 + $0x140] sm:$0xff] %vm2962_vm7, %v2881_v33  ;;  %v2879_v51 = vpop.permute.xlu0 %2878 }
 0x456   : > { %3002 = vst.msk [vmem:[#allocation3 + $0x138] sm:$0xff] %vm2962_vm7, %v2879_v51 }
 0x459   : > { %3189 = vrot.lane.b32.xlu2 %v3049_v61, %s4931_s23  ;;  %v3751_v61 = vld [vmem:[%s6751_s3 + $0x20] sm:$0xff] }
 0x45a   : > { %3187 = vrot.lane.b32.xlu1 %v3048_v54, %s4931_s23 }
 0x45b   : > { %v2907_v8 = vpop.permute.xlu2 %2906  ;;  %3185 = vrot.lane.b32.xlu0 %v3047_v11, %s4931_s23  ;;  %v3750_v11 = vld [vmem:[%s6751_s3 + $0x18] sm:$0xff] }
 0x45c   : > { %3016 = vst.msk [vmem:[#allocation3 + $0x1a8] sm:$0xff] %vm2962_vm7, %v2907_v8  ;;  %v2887_v10 = vpop.permute.xlu1 %2886  ;;  %v3752_v8 = vld [vmem:[%s6751_s3 + $0x28] sm:$0xff] }
 0x45d   : > { %3006 = vst.msk [vmem:[#allocation3 + $0x158] sm:$0xff] %vm2962_vm7, %v2887_v10  ;;  %v2885_v32 = vpop.permute.xlu0 %2884 }
 0x45e   : > { %3005 = vst.msk [vmem:[#allocation3 + $0x150] sm:$0xff] %vm2962_vm7, %v2885_v32  ;;  %v3754_v32 = vld [vmem:[%s6751_s3 + $0x38] sm:$0xff] }
 0x461   : > { %3195 = vrot.lane.b32.xlu2 %v3052_v27, %s4931_s23 }
 0x462   : > { %3193 = vrot.lane.b32.xlu1 %v3051_v45, %s4931_s23 }
 0x463   : > { %v3130_v7 = vpop.permute.xlu2 %3129  ;;  %3191 = vrot.lane.b32.xlu0 %v3050_v42, %s4931_s23  ;;  %v3755_v42 = vld [vmem:[%s6751_s3 + $0x40] sm:$0xff] }
 0x464   : > { %3290 = vst.msk [vmem:[#allocation3 + $0x10] sm:$0xff] %vm3287_vm9, %v3130_v7  ;;  %v2893_v21 = vpop.permute.xlu1 %2892 }
 0x465   : > { %3009 = vst.msk [vmem:[#allocation3 + $0x170] sm:$0xff] %vm2962_vm7, %v2893_v21  ;;  %v2891_v53 = vpop.permute.xlu0 %2890 }
 0x466   : > { %3008 = vst.msk [vmem:[#allocation3 + $0x168] sm:$0xff] %vm2962_vm7, %v2891_v53 }
 0x469   : > { %3201 = vrot.lane.b32.xlu2 %v3055_v22, %s4931_s23 }
 0x46a   : > { %3199 = vrot.lane.b32.xlu1 %v3054_v60, %s4931_s23  ;;  %v3756_v60 = vld [vmem:[%s6751_s3 + $0x48] sm:$0xff] }
 0x46b   : > { %v3136_v4 = vpop.permute.xlu2 %3135  ;;  %3197 = vrot.lane.b32.xlu0 %v3053_v0, %s4931_s23  ;;  %v3344_v46 = vld [vmem:[#allocation3 + $0x10] sm:$0xff]  ;;  %v3758_v0 = vld [vmem:[%s6751_s3 + $0x58] sm:$0xff] }
 0x46c   : > { %3293 = vst.msk [vmem:[#allocation3 + $0x28] sm:$0xff] %vm3287_vm9, %v3136_v4  ;;  %v2899_v9 = vpop.permute.xlu1 %2898 }
 0x46d   : > { %3012 = vst.msk [vmem:[#allocation3 + $0x188] sm:$0xff] %vm2962_vm7, %v2899_v9  ;;  %v2897_v25 = vpop.permute.xlu0 %2896 }
 0x46e   : > { %3011 = vst.msk [vmem:[#allocation3 + $0x180] sm:$0xff] %vm2962_vm7, %v2897_v25 }
 0x471   : > { %3207 = vrot.lane.b32.xlu2 %v3058_v20, %s4931_s23  ;;  %v3760_v20 = vld [vmem:[%s6751_s3 + $0x68] sm:$0xff] }
 0x472   : > { %3205 = vrot.lane.b32.xlu1 %v3057_v5, %s4931_s23 }
 0x473   : > { %v3142_v30 = vpop.permute.xlu2 %3141  ;;  %3203 = vrot.lane.b32.xlu0 %v3056_v62, %s4931_s23  ;;  %v3347_v53 = vld [vmem:[#allocation3 + $0x28] sm:$0xff]  ;;  %v3759_v62 = vld [vmem:[%s6751_s3 + $0x60] sm:$0xff] }
 0x474   : > { %3296 = vst.msk [vmem:[#allocation3 + $0x40] sm:$0xff] %vm3287_vm9, %v3142_v30  ;;  %v2905_v12 = vpop.permute.xlu1 %2904  ;;  %v3761_v30 = vld [vmem:[%s6751_s3 + $0x70] sm:$0xff] }
 0x475   : > { %3015 = vst.msk [vmem:[#allocation3 + $0x1a0] sm:$0xff] %vm2962_vm7, %v2905_v12  ;;  %v2903_v41 = vpop.permute.xlu0 %2902 }
 0x476   : > { %3014 = vst.msk [vmem:[#allocation3 + $0x198] sm:$0xff] %vm2962_vm7, %v2903_v41 }
 0x479   : > { %3213 = vrot.lane.b32.xlu2 %v3061_v40, %s4931_s23 }
 0x47a   : > { %3211 = vrot.lane.b32.xlu1 %v3060_v19, %s4931_s23  ;;  %v3763_v19 = vld [vmem:[%s6751_s3 + $0x80] sm:$0xff] }
 0x47b   : > { %v3148_v29 = vpop.permute.xlu2 %3147  ;;  %3209 = vrot.lane.b32.xlu0 %v3059_v50, %s4931_s23 }
 0x47c   : > { %3299 = vst.msk [vmem:[#allocation3 + $0x58] sm:$0xff] %vm3287_vm9, %v3148_v29  ;;  %v3128_v57 = vpop.permute.xlu1 %3127  ;;  %v3762_v29 = vld [vmem:[%s6751_s3 + $0x78] sm:$0xff] }
 0x47d   : > { %3289 = vst.msk [vmem:[#allocation3 + $0x8] sm:$0xff] %vm3287_vm9, %v3128_v57  ;;  %v3126_v39 = vpop.permute.xlu0 %3125  ;;  %v3764_v57 = vld [vmem:[%s6751_s3 + $0x88] sm:$0xff] }
 0x47e   : > { %3288 = vst.msk [vmem:[#allocation3] sm:$0xff] %vm3287_vm9, %v3126_v39 }
 0x481   : > { %3219 = vrot.lane.b32.xlu2 %v3064_v59, %s4931_s23 }
 0x482   : > { %3217 = vrot.lane.b32.xlu1 %v3063_v3, %s4931_s23 }
 0x483   : > { %v3154_v48 = vpop.permute.xlu2 %3153  ;;  %3215 = vrot.lane.b32.xlu0 %v3062_v6, %s4931_s23  ;;  %v3766_v6 = vld [vmem:[%s6751_s3 + $0x98] sm:$0xff] }
 0x484   : > { %3302 = vst.msk [vmem:[#allocation3 + $0x70] sm:$0xff] %vm3287_vm9, %v3154_v48  ;;  %v3134_v14 = vpop.permute.xlu1 %3133  ;;  %v3343_v13 = vld [vmem:[#allocation3 + $0x8] sm:$0xff] }
 0x485   : > { %3292 = vst.msk [vmem:[#allocation3 + $0x20] sm:$0xff] %vm3287_vm9, %v3134_v14  ;;  %v3132_v56 = vpop.permute.xlu0 %3131  ;;  %v3342_v24 = vld [vmem:[#allocation3] sm:$0xff] }
 0x486   : > { %3291 = vst.msk [vmem:[#allocation3 + $0x18] sm:$0xff] %vm3287_vm9, %v3132_v56  ;;  %4626 = vmatmul.msk.f32.vlgmr.msra.gmra.mxu0 %vm3401_vm10, %v3342_v24  ;;  %v3350_v14 = vld [vmem:[#allocation3 + $0x40] sm:$0xff]  ;;  %v3767_v56 = vld [vmem:[%s6751_s3 + $0xa0] sm:$0xff] }
 0x489   : > { %3225 = vrot.lane.b32.xlu2 %v3067_v16, %s4931_s23  ;;  %v3765_v16 = vld [vmem:[%s6751_s3 + $0x90] sm:$0xff] }
 0x48a   : > { %3223 = vrot.lane.b32.xlu1 %v3066_v26, %s4931_s23 }
 0x48b   : > { %v3160_v35 = vpop.permute.xlu2 %3159  ;;  %3221 = vrot.lane.b32.xlu0 %v3065_v2, %s4931_s23  ;;  %v3356_v21 = vld [vmem:[#allocation3 + $0x70] sm:$0xff] }
 0x48c   : > { %3305 = vst.msk [vmem:[#allocation3 + $0x88] sm:$0xff] %vm3287_vm9, %v3160_v35  ;;  %v3140_v37 = vpop.permute.xlu1 %3139  ;;  %v3346_v55 = vld [vmem:[#allocation3 + $0x20] sm:$0xff] }
 0x48d   : > { %3295 = vst.msk [vmem:[#allocation3 + $0x38] sm:$0xff] %vm3287_vm9, %v3140_v37  ;;  %v3138_v52 = vpop.permute.xlu0 %3137  ;;  %v3345_v54 = vld [vmem:[#allocation3 + $0x18] sm:$0xff]  ;;  %v3769_v35 = vld [vmem:[%s6751_s3 + $0xb0] sm:$0xff] }
 0x48e   : > { %3294 = vst.msk [vmem:[#allocation3 + $0x30] sm:$0xff] %vm3287_vm9, %v3138_v52  ;;  %4627 = vmatmul.msk.f32.gmra.mxu0 %vm3401_vm10, %v3343_v13  ;;  %v3768_v52 = vld [vmem:[%s6751_s3 + $0xa8] sm:$0xff] }
 0x491   : > { %3231 = vrot.lane.b32.xlu2 %v3070_v47, %s4931_s23 }
 0x492   : > { %3229 = vrot.lane.b32.xlu1 %v3069_v23, %s4931_s23  ;;  %v3770_v23 = vld [vmem:[%s6751_s3 + $0xb8] sm:$0xff] }
 0x493   : > { %v3166_v1 = vpop.permute.xlu2 %3165  ;;  %3227 = vrot.lane.b32.xlu0 %v3068_v63, %s4931_s23  ;;  %v3359_v3 = vld [vmem:[#allocation3 + $0x88] sm:$0xff] }
 0x494   : > { %3308 = vst.msk [vmem:[#allocation3 + $0xa0] sm:$0xff] %vm3287_vm9, %v3166_v1  ;;  %v3146_v34 = vpop.permute.xlu1 %3145  ;;  %v3349_v50 = vld [vmem:[#allocation3 + $0x38] sm:$0xff] }
 0x495   : > { %3298 = vst.msk [vmem:[#allocation3 + $0x50] sm:$0xff] %vm3287_vm9, %v3146_v34  ;;  %v3144_v18 = vpop.permute.xlu0 %3143  ;;  %v3348_v5 = vld [vmem:[#allocation3 + $0x30] sm:$0xff] }
 0x496   : > { %3297 = vst.msk [vmem:[#allocation3 + $0x48] sm:$0xff] %vm3287_vm9, %v3144_v18  ;;  %4628 = vmatmul.msk.f32.gmra.mxu0 %vm3401_vm10, %v3344_v46  ;;  %v3772_v46 = vld [vmem:[%s6751_s3 + $0xc8] sm:$0xff] }
 0x499   : > { %3813 = vperm.xlu2 %4899, %v3749_v15  }
 0x49a   : > { %3808 = vperm.xlu1 %4898, %v3748_v31  }
 0x49b   : > { %v3172_v38 = vpop.permute.xlu2 %3171  ;;  %3803 = vperm.xlu0 %4897, %v3747_v36  }
 0x49c   : > { %3311 = vst.msk [vmem:[#allocation3 + $0xb8] sm:$0xff] %vm3287_vm9, %v3172_v38  ;;  %v3152_v33 = vpop.permute.xlu1 %3151  ;;  %v3352_v36 = vld [vmem:[#allocation3 + $0x50] sm:$0xff] }
 0x49d   : > { %3301 = vst.msk [vmem:[#allocation3 + $0x68] sm:$0xff] %vm3287_vm9, %v3152_v33  ;;  %v3150_v51 = vpop.permute.xlu0 %3149  ;;  %v3351_v13 = vld [vmem:[#allocation3 + $0x48] sm:$0xff]  ;;  %v3771_v38 = vld [vmem:[%s6751_s3 + $0xc0] sm:$0xff]  ;;  %v3773_v33 = vld [vmem:[%s6751_s3 + $0xd0] sm:$0xff] }
 0x49e   : > { %3300 = vst.msk [vmem:[#allocation3 + $0x60] sm:$0xff] %vm3287_vm9, %v3150_v51  ;;  %4629 = vmatmul.msk.f32.gmra.mxu0 %vm3401_vm10, %v3345_v54  ;;  %v3362_v54 = vld [vmem:[#allocation3 + $0xa0] sm:$0xff] }
 0x4a1   : > { %3823 = vperm.xlu2 %4899, %v3751_v61  }
 0x4a2   : > { %3818 = vperm.xlu1 %4898, %v3750_v11   ;;  %v3775_v11 = vld [vmem:[%s6751_s3 + $0xe0] sm:$0xff] }
 0x4a3   : > { %v3178_v10 = vpop.permute.xlu2 %3177  ;;  %3828 = vperm.xlu0 %4897, %v3752_v8  }
 0x4a4   : > { %3314 = vst.msk [vmem:[#allocation3 + $0xd0] sm:$0xff] %vm3287_vm9, %v3178_v10  ;;  %v3158_v28 = vpop.permute.xlu1 %3157  ;;  %v3355_v27 = vld [vmem:[#allocation3 + $0x68] sm:$0xff]  ;;  %v3353_v10 = vld [vmem:[#allocation3 + $0x58] sm:$0xff] }
 0x4a5   : > { %3304 = vst.msk [vmem:[#allocation3 + $0x80] sm:$0xff] %vm3287_vm9, %v3158_v28  ;;  %4639 = vmatmul.msk.f32.vlgmr.msra.gmra.mxu1 %vm3401_vm10, %v3355_v27  ;;  %v3156_v45 = vpop.permute.xlu0 %3155  ;;  %v3774_v27 = vld [vmem:[%s6751_s3 + $0xd8] sm:$0xff] }
 0x4a6   : > { %3303 = vst.msk [vmem:[#allocation3 + $0x78] sm:$0xff] %vm3287_vm9, %v3156_v45  ;;  %4630 = vmatmul.msk.f32.gmra.mxu0 %vm3401_vm10, %v3346_v55 }
 0x4a9   : > { %3838 = vperm.xlu2 %4899, %v3754_v32   ;;  %v3776_v32 = vld [vmem:[%s6751_s3 + $0xe8] sm:$0xff] }
 0x4aa   : > { %3833 = vperm.xlu1 %4898, %v3753_v58  }
 0x4ab   : > { %v3184_v43 = vpop.permute.xlu2 %3183  ;;  %3843 = vperm.xlu0 %4897, %v3755_v42   ;;  %v3778_v42 = vld [vmem:[%s6751_s3 + $0xf8] sm:$0xff] }
 0x4ac   : > { %3317 = vst.msk [vmem:[#allocation3 + $0xe8] sm:$0xff] %vm3287_vm9, %v3184_v43  ;;  %v3164_v7 = vpop.permute.xlu1 %3163  ;;  %v3358_v41 = vld [vmem:[#allocation3 + $0x80] sm:$0xff] }
 0x4ad   : > { %3307 = vst.msk [vmem:[#allocation3 + $0x98] sm:$0xff] %vm3287_vm9, %v3164_v7  ;;  %4640 = vmatmul.msk.f32.gmra.mxu1 %vm3401_vm10, %v3356_v21  ;;  %v3162_v22 = vpop.permute.xlu0 %3161  ;;  %v3357_v17 = vld [vmem:[#allocation3 + $0x78] sm:$0xff]  ;;  %v3354_v7 = vld [vmem:[#allocation3 + $0x60] sm:$0xff] }
 0x4ae   : > { %3306 = vst.msk [vmem:[#allocation3 + $0x90] sm:$0xff] %vm3287_vm9, %v3162_v22  ;;  %4631 = vmatmul.msk.f32.gmra.mxu0 %vm3401_vm10, %v3347_v53  ;;  %v3779_v22 = vld [vmem:[%s6751_s3 + $0x100] sm:$0xff] }
 0x4b1   : > { %3853 = vperm.xlu2 %4899, %v3757_v44   ;;  %v3777_v44 = vld [vmem:[%s6751_s3 + $0xf0] sm:$0xff] }
 0x4b2   : > { %3848 = vperm.xlu1 %4898, %v3756_v60  }
 0x4b3   : > { %v3190_v4 = vpop.permute.xlu2 %3189  ;;  %3858 = vperm.xlu0 %4897, %v3758_v0   ;;  %v3371_v28 = vld [vmem:[#allocation3 + $0xe8] sm:$0xff] }
 0x4b4   : > { %3320 = vst.msk [vmem:[#allocation3 + $0x100] sm:$0xff] %vm3287_vm9, %v3190_v4  ;;  %v3170_v9 = vpop.permute.xlu1 %3169  ;;  %v3361_v15 = vld [vmem:[#allocation3 + $0x98] sm:$0xff]  ;;  %v3781_v4 = vld [vmem:[%s6751_s3 + $0x110] sm:$0xff] }
 0x4b5   : > { %3310 = vst.msk [vmem:[#allocation3 + $0xb0] sm:$0xff] %vm3287_vm9, %v3170_v9  ;;  %4641 = vmatmul.msk.f32.gmra.mxu1 %vm3401_vm10, %v3357_v17  ;;  %v3168_v25 = vpop.permute.xlu0 %3167  ;;  %v3360_v2 = vld [vmem:[#allocation3 + $0x90] sm:$0xff] }
 0x4b6   : > { %3309 = vst.msk [vmem:[#allocation3 + $0xa8] sm:$0xff] %vm3287_vm9, %v3168_v25  ;;  %4632 = vmatmul.msk.f32.gmra.mxu0 %vm3401_vm10, %v3348_v5  ;;  %v3782_v25 = vld [vmem:[%s6751_s3 + $0x118] sm:$0xff] }
 0x4b9   : > { %3868 = vperm.xlu2 %4899, %v3760_v20   ;;  %v3780_v20 = vld [vmem:[%s6751_s3 + $0x108] sm:$0xff] }
 0x4ba   : > { %3863 = vperm.xlu1 %4898, %v3759_v62   ;;  %v3365_v62 = vld [vmem:[#allocation3 + $0xb8] sm:$0xff] }
 0x4bb   : > { %v3196_v12 = vpop.permute.xlu2 %3195  ;;  %3873 = vperm.xlu0 %4897, %v3761_v30  }
 0x4bc   : > { %3323 = vst.msk [vmem:[#allocation3 + $0x118] sm:$0xff] %vm3287_vm9, %v3196_v12  ;;  %v3176_v40 = vpop.permute.xlu1 %3175  ;;  %v3364_v0 = vld [vmem:[#allocation3 + $0xb0] sm:$0xff]  ;;  %v3784_v12 = vld [vmem:[%s6751_s3 + $0x128] sm:$0xff] }
 0x4bd   : > { %3313 = vst.msk [vmem:[#allocation3 + $0xc8] sm:$0xff] %vm3287_vm9, %v3176_v40  ;;  %4642 = vmatmul.msk.f32.gmra.mxu1 %vm3401_vm10, %v3358_v41  ;;  %v3174_v49 = vpop.permute.xlu0 %3173  ;;  %v3363_v58 = vld [vmem:[#allocation3 + $0xa8] sm:$0xff]  ;;  %v3374_v41 = vld [vmem:[#allocation3 + $0x100] sm:$0xff] }
 0x4be   : > { %3312 = vst.msk [vmem:[#allocation3 + $0xc0] sm:$0xff] %vm3287_vm9, %v3174_v49  ;;  %4633 = vmatmul.msk.f32.gmra.mxu0 %vm3401_vm10, %v3349_v50  ;;  %v3783_v49 = vld [vmem:[%s6751_s3 + $0x120] sm:$0xff]  ;;  %v3785_v50 = vld [vmem:[%s6751_s3 + $0x130] sm:$0xff] }
 0x4c1   : > { %3883 = vperm.xlu2 %4899, %v3763_v19  }
 0x4c2   : > { %3878 = vperm.xlu1 %4898, %v3762_v29  }
 0x4c3   : > { %v3202_v59 = vpop.permute.xlu2 %3201  ;;  %3888 = vperm.xlu0 %4897, %v3764_v57  }
 0x4c4   : > { %3326 = vst.msk [vmem:[#allocation3 + $0x130] sm:$0xff] %vm3287_vm9, %v3202_v59  ;;  %v3182_v39 = vpop.permute.xlu1 %3181 }
 0x4c5   : > { %3316 = vst.msk [vmem:[#allocation3 + $0xe0] sm:$0xff] %vm3287_vm9, %v3182_v39  ;;  %4643 = vmatmul.msk.f32.gmra.mxu1 %vm3401_vm10, %v3359_v3  ;;  %v3180_v48 = vpop.permute.xlu0 %3179  ;;  %v3366_v57 = vld [vmem:[#allocation3 + $0xc0] sm:$0xff]  ;;  %v3787_v39 = vld [vmem:[%s6751_s3 + $0x140] sm:$0xff] }
 0x4c6   : > { %3315 = vst.msk [vmem:[#allocation3 + $0xd8] sm:$0xff] %vm3287_vm9, %v3180_v48  ;;  %4634 = vmatmul.msk.f32.gmra.mxu0 %vm3401_vm10, %v3350_v14  ;;  %v3786_v48 = vld [vmem:[%s6751_s3 + $0x138] sm:$0xff] }
 0x4c9   : > { %3898 = vperm.xlu2 %4899, %v3766_v6  }
 0x4ca   : > { %3893 = vperm.xlu1 %4898, %v3765_v16   ;;  %v3788_v16 = vld [vmem:[%s6751_s3 + $0x148] sm:$0xff] }
 0x4cb   : > { %v3208_v24 = vpop.permute.xlu2 %3207  ;;  %3903 = vperm.xlu0 %4897, %v3767_v56  }
 0x4cc   : > { %3329 = vst.msk [vmem:[#allocation3 + $0x148] sm:$0xff] %vm3287_vm9, %v3208_v24  ;;  %v3188_v26 = vpop.permute.xlu1 %3187  ;;  %v3370_v18 = vld [vmem:[#allocation3 + $0xe0] sm:$0xff]  ;;  %v3367_v24 = vld [vmem:[#allocation3 + $0xc8] sm:$0xff] }
 0x4cd   : > { %3319 = vst.msk [vmem:[#allocation3 + $0xf8] sm:$0xff] %vm3287_vm9, %v3188_v26  ;;  %4644 = vmatmul.msk.f32.gmra.mxu1 %vm3401_vm10, %v3360_v2  ;;  %v3186_v37 = vpop.permute.xlu0 %3185  ;;  %v3369_v47 = vld [vmem:[#allocation3 + $0xd8] sm:$0xff] }
 0x4ce   : > { %3318 = vst.msk [vmem:[#allocation3 + $0xf0] sm:$0xff] %vm3287_vm9, %v3186_v37  ;;  %4635 = vmatmul.msk.f32.gmra.mxu0 %vm3401_vm10, %v3351_v13  ;;  %4653 = vmatmul.msk.f32.vlgmr.msra.gmra.mxu2 %vm3401_vm10, %v3369_v47  ;;  %v3789_v47 = vld [vmem:[%s6751_s3 + $0x150] sm:$0xff] }
 0x4d1   : > { %3913 = vperm.xlu2 %4899, %v3769_v35   ;;  %v3790_v35 = vld [vmem:[%s6751_s3 + $0x158] sm:$0xff] }
 0x4d2   : > { %3908 = vperm.xlu1 %4898, %v3768_v52  }
 0x4d3   : > { %v3214_v63 = vpop.permute.xlu2 %3213  ;;  %v3383_v1 = vld [vmem:[#allocation3 + $0x148] sm:$0xff]  ;;  %3918 = vperm.xlu0 %4897, %v3770_v23   ;;  %v3791_v23 = vld [vmem:[%s6751_s3 + $0x160] sm:$0xff] }
 0x4d4   : > { %3332 = vst.msk [vmem:[#allocation3 + $0x160] sm:$0xff] %vm3287_vm9, %v3214_v63  ;;  %v3194_v34 = vpop.permute.xlu1 %3193  ;;  %4667 = vmatmul.msk.f32.vlgmr.msra.gmra.mxu3 %vm3401_vm10, %v3383_v1  ;;  %v3373_v17 = vld [vmem:[#allocation3 + $0xf8] sm:$0xff]  ;;  %v3368_v1 = vld [vmem:[#allocation3 + $0xd0] sm:$0xff] }
 0x4d5   : > { %3322 = vst.msk [vmem:[#allocation3 + $0x110] sm:$0xff] %vm3287_vm9, %v3194_v34  ;;  %4645 = vmatmul.msk.f32.gmra.mxu1 %vm3401_vm10, %v3361_v15  ;;  %v3192_v31 = vpop.permute.xlu0 %3191  ;;  %v3372_v21 = vld [vmem:[#allocation3 + $0xf0] sm:$0xff] }
 0x4d6   : > { %3321 = vst.msk [vmem:[#allocation3 + $0x108] sm:$0xff] %vm3287_vm9, %v3192_v31  ;;  %4636 = vmatmul.msk.f32.gmra.mxu0 %vm3401_vm10, %v3352_v36  ;;  %4654 = vmatmul.msk.f32.gmra.mxu2 %vm3401_vm10, %v3370_v18  ;;  %v3377_v36 = vld [vmem:[#allocation3 + $0x118] sm:$0xff] }
 0x4d9   : > { %3928 = vperm.xlu2 %4899, %v3772_v46   ;;  %v3793_v46 = vld [vmem:[%s6751_s3 + $0x170] sm:$0xff] }
 0x4da   : > { %3923 = vperm.xlu1 %4898, %v3771_v38   ;;  %v3792_v38 = vld [vmem:[%s6751_s3 + $0x168] sm:$0xff] }
 0x4db   : > { %v3220_v61 = vpop.permute.xlu2 %3219  ;;  %3933 = vperm.xlu0 %4897, %v3773_v33   ;;  %v3386_v2 = vld [vmem:[#allocation3 + $0x160] sm:$0xff] }
 0x4dc   : > { %3335 = vst.msk [vmem:[#allocation3 + $0x178] sm:$0xff] %vm3287_vm9, %v3220_v61  ;;  %v3200_v51 = vpop.permute.xlu1 %3199  ;;  %v3376_v13 = vld [vmem:[#allocation3 + $0x110] sm:$0xff] }
 0x4dd   : > { %3325 = vst.msk [vmem:[#allocation3 + $0x128] sm:$0xff] %vm3287_vm9, %v3200_v51  ;;  %4646 = vmatmul.msk.f32.gmra.mxu1 %vm3401_vm10, %v3362_v54  ;;  %v3198_v8 = vpop.permute.xlu0 %3197  ;;  %v3375_v6 = vld [vmem:[#allocation3 + $0x108] sm:$0xff] }
 0x4de   : > { %3324 = vst.msk [vmem:[#allocation3 + $0x120] sm:$0xff] %vm3287_vm9, %v3198_v8  ;;  %4637 = vmatmul.msk.f32.gmra.mxu0 %vm3401_vm10, %v3353_v10  ;;  %4655 = vmatmul.msk.f32.gmra.mxu2 %vm3401_vm10, %v3371_v28  ;;  %v3794_v8 = vld [vmem:[%s6751_s3 + $0x178] sm:$0xff] }
 0x4e1   : > { %3943 = vperm.xlu2 %4899, %v3775_v11  }
 0x4e2   : > { %3938 = vperm.xlu1 %4898, %v3774_v27  }
 0x4e3   : > { %v3226_v45 = vpop.permute.xlu2 %3225  ;;  %3948 = vperm.xlu0 %4897, %v3776_v32  }
 0x4e4   : > { %3338 = vst.msk [vmem:[#allocation3 + $0x190] sm:$0xff] %vm3287_vm9, %v3226_v45  ;;  %v3206_v55 = vpop.permute.xlu1 %3205 }
 0x4e5   : > { %3328 = vst.msk [vmem:[#allocation3 + $0x140] sm:$0xff] %vm3287_vm9, %v3206_v55  ;;  %4647 = vmatmul.msk.f32.gmra.mxu1 %vm3401_vm10, %v3363_v58  ;;  %v3204_v43 = vpop.permute.xlu0 %3203  ;;  %v3796_v58 = vld [vmem:[%s6751_s3 + $0x188] sm:$0xff] }
 0x4e6   : > { %3327 = vst.msk [vmem:[#allocation3 + $0x138] sm:$0xff] %vm3287_vm9, %v3204_v43  ;;  %4638 = vmatmul.msk.f32.gmra.mxu0 %vm3401_vm10, %v3354_v7  ;;  %4656 = vmatmul.msk.f32.gmra.mxu2 %vm3401_vm10, %v3372_v21  ;;  %v3378_v43 = vld [vmem:[#allocation3 + $0x120] sm:$0xff]  ;;  %v3795_v7 = vld [vmem:[%s6751_s3 + $0x180] sm:$0xff] }
 0x4e9   : > { %3958 = vperm.xlu2 %4899, %v3778_v42  }
 0x4ea   : > { %3953 = vperm.xlu1 %4898, %v3777_v44  }
 0x4eb   : > { %v3232_v53 = vpop.permute.xlu2 %3231  ;;  %3963 = vperm.xlu0 %4897, %v3779_v22  }
 0x4ec   : > { %3341 = vst.msk [vmem:[#allocation3 + $0x1a8] sm:$0xff] %vm3287_vm9, %v3232_v53  ;;  %v3212_v60 = vpop.permute.xlu1 %3211  ;;  %v3797_v53 = vld [vmem:[%s6751_s3 + $0x190] sm:$0xff] }
 0x4ed   : > { %3331 = vst.msk [vmem:[#allocation3 + $0x158] sm:$0xff] %vm3287_vm9, %v3212_v60  ;;  %4648 = vmatmul.msk.f32.gmra.mxu1 %vm3401_vm10, %v3364_v0  ;;  %v3210_v9 = vpop.permute.xlu0 %3209 }
 0x4ee   : > { %3330 = vst.msk [vmem:[#allocation3 + $0x150] sm:$0xff] %vm3287_vm9, %v3210_v9  ;;  %4657 = vmatmul.msk.f32.gmra.mxu2 %vm3401_vm10, %v3373_v17 }
 0x4f1   : > { %3973 = vperm.xlu2 %4899, %v3781_v4   ;;  %v3389_v4 = vld [vmem:[#allocation3 + $0x178] sm:$0xff] }
 0x4f2   : > { %3968 = vperm.xlu1 %4898, %v3780_v20   ;;  %v3799_v20 = vld [vmem:[%s6751_s3 + $0x1a0] sm:$0xff] }
 0x4f3   : > { %3978 = vperm.xlu0 %4897, %v3782_v25   ;;  %v6408_v30 = vpop.permute.xlu2 %3813 }
 0x4f4   : > { %v3218_v5 = vpop.permute.xlu1 %3217  ;;  %v3385_v59 = vld [vmem:[#allocation3 + $0x158] sm:$0xff] }
 0x4f5   : > { %3334 = vst.msk [vmem:[#allocation3 + $0x170] sm:$0xff] %vm3287_vm9, %v3218_v5  ;;  %4649 = vmatmul.msk.f32.gmra.mxu1 %vm3401_vm10, %v3365_v62  ;;  %v3216_v40 = vpop.permute.xlu0 %3215  ;;  %v3384_v19 = vld [vmem:[#allocation3 + $0x150] sm:$0xff]  ;;  %v3379_v5 = vld [vmem:[#allocation3 + $0x128] sm:$0xff] }
 0x4f6   : > { %3333 = vst.msk [vmem:[#allocation3 + $0x168] sm:$0xff] %vm3287_vm9, %v3216_v40  ;;  %4658 = vmatmul.msk.f32.gmra.mxu2 %vm3401_vm10, %v3374_v41  ;;  %4668 = vmatmul.msk.f32.gmra.mxu3 %vm3401_vm10, %v3384_v19  ;;  %v3798_v62 = vld [vmem:[%s6751_s3 + $0x198] sm:$0xff] }
 0x4f9   : > { %3988 = vperm.xlu2 %4899, %v3784_v12  }
 0x4fa   : > { %3983 = vperm.xlu1 %4898, %v3783_v49   ;;  %v3800_v49 = vld [vmem:[%s6751_s3 + $0x1a8] sm:$0xff] }
 0x4fb   : > { %3993 = vperm.xlu0 %4897, %v3785_v50   ;;  %v6430_v14 = vpop.permute.xlu2 %3823 }
 0x4fc   : > { %v3224_v29 = vpop.permute.xlu1 %3223  ;;  %v3388_v45 = vld [vmem:[#allocation3 + $0x170] sm:$0xff] }
 0x4fd   : > { %3337 = vst.msk [vmem:[#allocation3 + $0x188] sm:$0xff] %vm3287_vm9, %v3224_v29  ;;  %4650 = vmatmul.msk.f32.gmra.mxu1 %vm3401_vm10, %v3366_v57  ;;  %v3222_v3 = vpop.permute.xlu0 %3221  ;;  %v3387_v15 = vld [vmem:[#allocation3 + $0x168] sm:$0xff] }
 0x4fe   : > { %3336 = vst.msk [vmem:[#allocation3 + $0x180] sm:$0xff] %vm3287_vm9, %v3222_v3  ;;  %4659 = vmatmul.msk.f32.gmra.mxu2 %vm3401_vm10, %v3375_v6  ;;  %4669 = vmatmul.msk.f32.gmra.mxu3 %vm3401_vm10, %v3385_v59  ;;  %v3380_v3 = vld [vmem:[#allocation3 + $0x130] sm:$0xff] }
 0x501   : > { %4003 = vperm.xlu2 %4899, %v3787_v39  }
 0x502   : > { %3998 = vperm.xlu1 %4898, %v3786_v48  }
 0x503   : > { %4008 = vperm.xlu0 %4897, %v3788_v16   ;;  %v3585_v26 = vpop.f32.mrf.mxu0  ;;  %v6449_v52 = vpop.permute.xlu2 %3838 }
 0x504   : > { %v3230_v56 = vpop.permute.xlu1 %3229 }
 0x505   : > { %3340 = vst.msk [vmem:[#allocation3 + $0x1a0] sm:$0xff] %vm3287_vm9, %v3230_v56  ;;  %4651 = vmatmul.msk.f32.gmra.mxu1 %vm3401_vm10, %v3367_v24  ;;  %v3228_v37 = vpop.permute.xlu0 %3227  ;;  %v3390_v57 = vld [vmem:[#allocation3 + $0x180] sm:$0xff] }
 0x506   : > { %3339 = vst.msk [vmem:[#allocation3 + $0x198] sm:$0xff] %vm3287_vm9, %v3228_v37  ;;  %4660 = vmatmul.msk.f32.gmra.mxu2 %vm3401_vm10, %v3376_v13  ;;  %4670 = vmatmul.msk.f32.gmra.mxu3 %vm3401_vm10, %v3386_v2  ;;  %v3391_v37 = vld [vmem:[#allocation3 + $0x188] sm:$0xff] }
 0x509   : > { %4018 = vperm.xlu2 %4899, %v3790_v35  }
 0x50a   : > { %4013 = vperm.xlu1 %4898, %v3789_v47  }
 0x50b   : > { %4023 = vperm.xlu0 %4897, %v3791_v23   ;;  %v3588_v34 = vpop.f32.mrf.mxu0  ;;  %v6472_v10 = vpop.permute.xlu2 %3853 }
 0x50c   : > { %v3809_v63 = vpop.permute.xlu1 %3808 }
 0x50d   : > { %4652 = vmatmul.msk.f32.gmra.mxu1 %vm3401_vm10, %v3368_v1  ;;  %v4072_v18 = vmul.f32 %v3809_v63, %v3588_v34  ;;  %v3804_v31 = vpop.permute.xlu0 %3803 }
 0x50e   : > { %v4071_v61 = vmul.f32 %v3804_v31, %v3585_v26  ;;  %4661 = vmatmul.msk.f32.gmra.mxu2 %vm3401_vm10, %v3377_v36  ;;  %4671 = vmatmul.msk.f32.gmra.mxu3 %vm3401_vm10, %v3387_v15 }
 0x50f   : > { %v4294_v33 = vmul.f32 %v4072_v18, %v4072_v18 }
 0x510   : > { %v4687_v51 = vpack.c.bf16 %v4072_v18, %v4071_v61  ;;  %v4233_v54 = vadd.f32 %v4072_v18, %v4071_v61  ;;  %v4293_v11 = vmul.f32 %v4071_v61, %v4071_v61  ;;  %v3382_v61 = vld [vmem:[#allocation3 + $0x140] sm:$0xff] }
 0x511   : > { %4033 = vperm.xlu2 %4899, %v3793_v46  }
 0x512   : > { %4028 = vperm.xlu1 %4898, %v3792_v38   ;;  %4688 = vst [vmem:[%s6467_s17] sm:$0xff] %v4687_v51   ;;  %v4347_v28 = vadd.f32 %v4294_v33, %v4293_v11  ;;  %v3392_v38 = vld [vmem:[#allocation3 + $0x190] sm:$0xff] }
 0x513   : > { %4038 = vperm.xlu0 %4897, %v3794_v8   ;;  %v3591_v32 = vpop.f32.mrf.mxu0  ;;  %v6489_v9 = vpop.permute.xlu2 %3868 }
 0x514   : > { %v3819_v27 = vpop.permute.xlu1 %3818  ;;  %v4073_v55 = vmul.f32 %v6408_v30, %v3591_v32 }
 0x515   : > { %v3829_v42 = vpop.permute.xlu0 %3828 }
 0x516   : > { %v4234_v21 = vadd.f32 %v4233_v54, %v4073_v55  ;;  %v4295_v44 = vmul.f32 %v4073_v55, %v4073_v55  ;;  %4662 = vmatmul.msk.f32.gmra.mxu2 %vm3401_vm10, %v3378_v43  ;;  %4672 = vmatmul.msk.f32.gmra.mxu3 %vm3401_vm10, %v3388_v45  ;;  %v3393_v45 = vld [vmem:[#allocation3 + $0x198] sm:$0xff] }
 0x518   : > { %v4348_v22 = vadd.f32 %v4347_v28, %v4295_v44 }
 0x519   : > { %4048 = vperm.xlu2 %4899, %v3796_v58  }
 0x51a   : > { %4043 = vperm.xlu1 %4898, %v3795_v7  }
 0x51b   : > { %4053 = vperm.xlu0 %4897, %v3797_v53   ;;  %v3594_v0 = vpop.f32.mrf.mxu0  ;;  %v3884_v6 = vpop.permute.xlu2 %3883 }
 0x51c   : > { %v6487_v60 = vpop.permute.xlu1 %3833  ;;  %v4074_v17 = vmul.f32 %v3819_v27, %v3594_v0 }
 0x51d   : > { %v6494_v25 = vpop.permute.xlu0 %3843 }
 0x51e   : > { %v4692_v30 = vpack.c.bf16 %v4074_v17, %v4073_v55  ;;  %v4235_v12 = vadd.f32 %v4234_v21, %v4074_v17  ;;  %v4296_v40 = vmul.f32 %v4074_v17, %v4074_v17  ;;  %4663 = vmatmul.msk.f32.gmra.mxu2 %vm3401_vm10, %v3379_v5  ;;  %4673 = vmatmul.msk.f32.gmra.mxu3 %vm3401_vm10, %v3389_v4 }
 0x520   : > { %4819 = vst [vmem:[%s6467_s17 + $0x8] sm:$0xff] %v4692_v30   ;;  %v4349_v41 = vadd.f32 %v4348_v22, %v4296_v40 }
 0x521   : > { %4063 = vperm.xlu2 %4899, %v3799_v20  }
 0x522   : > { %4058 = vperm.xlu1 %4898, %v3798_v62   ;;  %v6502_v19 = vpop.f32.mrf.mxu1 }
 0x523   : > { %4068 = vperm.xlu0 %4897, %v3800_v49   ;;  %v3597_v29 = vpop.f32.mrf.mxu0  ;;  %v3899_v1 = vpop.permute.xlu2 %3898 }
 0x524   : > { %v6507_v50 = vpop.permute.xlu1 %3848  ;;  %v4075_v59 = vmul.f32 %v6430_v14, %v3597_v29  ;;  %v3381_v14 = vld [vmem:[#allocation3 + $0x138] sm:$0xff] }
 0x525   : > { %v6510_v39 = vpop.permute.xlu0 %3858 }
 0x526   : > { %v4236_v48 = vadd.f32 %v4235_v12, %v4075_v59  ;;  %v4297_v16 = vmul.f32 %v4075_v59, %v4075_v59  ;;  %4664 = vmatmul.msk.f32.gmra.mxu2 %vm3401_vm10, %v3380_v3  ;;  %4674 = vmatmul.msk.f32.gmra.mxu3 %vm3401_vm10, %v3390_v57  ;;  %v3395_v12 = vld [vmem:[#allocation3 + $0x1a8] sm:$0xff] }
 0x528   : > { %v4350_v56 = vadd.f32 %v4349_v41, %v4297_v16 }
 0x52a   : > { %v3627_v24 = vpop.f32.mrf.mxu1 }
 0x52b   : > { %v3600_v2 = vpop.f32.mrf.mxu0  ;;  %v6530_v11 = vpop.permute.xlu2 %3913 }
 0x52c   : > { %v6514_v26 = vpop.permute.xlu1 %3863  ;;  %v4076_v35 = vmul.f32 %v3829_v42, %v3600_v2 }
 0x52d   : > { %v3874_v13 = vpop.permute.xlu0 %3873 }
 0x52e   : > { %v4697_v47 = vpack.c.bf16 %v4076_v35, %v4075_v59  ;;  %v6516_v23 = vadd.f32 %v4236_v48, %v4076_v35  ;;  %v4298_v63 = vmul.f32 %v4076_v35, %v4076_v35  ;;  %4665 = vmatmul.msk.f32.gmra.mxu2 %vm3401_vm10, %v3381_v14  ;;  %4675 = vmatmul.msk.f32.gmra.mxu3 %vm3401_vm10, %v3391_v37 }
 0x52f   : > { %v6521_v46 = vmul.f32 %v3874_v13, %v3627_v24 }
 0x530   : > { %4820 = vst [vmem:[%s6467_s17 + $0x10] sm:$0xff] %v4697_v47   ;;  %v4351_v34 = vadd.f32 %v4350_v56, %v4298_v63 }
 0x532   : > { %v3630_v15 = vpop.f32.mrf.mxu1 }
 0x533   : > { %v3603_v31 = vpop.f32.mrf.mxu0  ;;  %v6542_v53 = vpop.permute.xlu2 %3928 }
 0x534   : > { %v3879_v18 = vpop.permute.xlu1 %3878  ;;  %v4077_v27 = vmul.f32 %v6487_v60, %v3603_v31 }
 0x535   : > { %v6523_v36 = vmul.f32 %v3879_v18, %v3630_v15  ;;  %v3889_v51 = vpop.permute.xlu0 %3888 }
 0x536   : > { %4666 = vmatmul.msk.f32.gmra.mxu2 %vm3401_vm10, %v3382_v61  ;;  %4676 = vmatmul.msk.f32.gmra.mxu3 %vm3401_vm10, %v3392_v38  ;;  %v4299_v3 = vmul.f32 %v4077_v27, %v4077_v27  ;;  %v4238_v24 = vadd.f32 %v6516_v23, %v4077_v27 }
 0x537   : > { %v4722_v33 = vpack.c.bf16 %v6523_v36, %v6521_v46 }
 0x538   : > { %v4352_v35 = vadd.f32 %v4351_v34, %v4299_v3 }
 0x539   : > { %4825 = vst [vmem:[%s6467_s17 + $0x38] sm:$0xff] %v4722_v33  }
 0x53a   : > { %v3633_v54 = vpop.f32.mrf.mxu1 }
 0x53b   : > { %v3606_v28 = vpop.f32.mrf.mxu0  ;;  %v6536_v43 = vmul.f32 %v3884_v6, %v3633_v54  ;;  %v3944_v62 = vpop.permute.xlu2 %3943 }
 0x53c   : > { %v3894_v8 = vpop.permute.xlu1 %3893  ;;  %v4078_v32 = vmul.f32 %v6449_v52, %v3606_v28  ;;  %v3394_v52 = vld [vmem:[#allocation3 + $0x1a0] sm:$0xff] }
 0x53d   : > { %v3904_v58 = vpop.permute.xlu0 %3903 }
 0x53e   : > { %v4702_v55 = vpack.c.bf16 %v4078_v32, %v4077_v27  ;;  %4677 = vmatmul.msk.f32.gmra.mxu3 %vm3401_vm10, %v3393_v45  ;;  %v4300_v16 = vmul.f32 %v4078_v32, %v4078_v32  ;;  %v4239_v14 = vadd.f32 %v4238_v24, %v4078_v32 }
 0x540   : > { %4821 = vst [vmem:[%s6467_s17 + $0x18] sm:$0xff] %v4702_v55  }
 0x542   : > { %v3636_v42 = vpop.f32.mrf.mxu1 }
 0x543   : > { %v6538_v7 = vmul.f32 %v3889_v51, %v3636_v42  ;;  %v3609_v44 = vpop.f32.mrf.mxu0  ;;  %v6567_v6 = vpop.permute.xlu2 %3958 }
 0x544   : > { %v3909_v21 = vpop.permute.xlu1 %3908  ;;  %v4079_v20 = vmul.f32 %v6494_v25, %v3609_v44 }
 0x545   : > { %v4727_v22 = vpack.c.bf16 %v6538_v7, %v6536_v43  ;;  %v6546_v0 = vpop.permute.xlu0 %3918 }
 0x546   : > { %4678 = vmatmul.msk.f32.gmra.mxu3 %vm3401_vm10, %v3394_v52  ;;  %v4301_v37 = vmul.f32 %v4079_v20, %v4079_v20  ;;  %v4240_v18 = vadd.f32 %v4239_v14, %v4079_v20 }
 0x547   : > { %4826 = vst [vmem:[%s6467_s17 + $0x40] sm:$0xff] %v4727_v22  }
 0x54a   : > { %v3639_v60 = vpop.f32.mrf.mxu1 }
 0x54b   : > { %v3612_v17 = vpop.f32.mrf.mxu0  ;;  %v6554_v41 = vmul.f32 %v3894_v8, %v3639_v60 }
 0x54c   : > { %v6548_v4 = vpop.permute.xlu1 %3923  ;;  %v4080_v5 = vmul.f32 %v6507_v50, %v3612_v17 }
 0x54d   : > { %v6564_v50 = vpop.permute.xlu0 %3933 }
 0x54e   : > { %v4707_v30 = vpack.c.bf16 %v4080_v5, %v4079_v20  ;;  %4679 = vmatmul.msk.f32.gmra.mxu3 %vm3401_vm10, %v3395_v12  ;;  %v4302_v15 = vmul.f32 %v4080_v5, %v4080_v5  ;;  %v4241_v61 = vadd.f32 %v4240_v18, %v4080_v5 }
 0x550   : > { %4822 = vst [vmem:[%s6467_s17 + $0x20] sm:$0xff] %v4707_v30  }
 0x551   : > { %v6556_v49 = vpop.f32.mrf.mxu2 }
 0x552   : > { %v3642_v40 = vpop.f32.mrf.mxu1 }
 0x553   : > { %v6558_v29 = vmul.f32 %v3899_v1, %v3642_v40  ;;  %v3615_v59 = vpop.f32.mrf.mxu0  ;;  %v4353_v1 = vadd.f32 %v4352_v35, %v4300_v16  ;;  %v4308_v16 = vmul.f32 %v6523_v36, %v6523_v36 }
 0x554   : > { %v6560_v57 = vpop.permute.xlu1 %3938  ;;  %v4081_v47 = vmul.f32 %v6472_v10, %v3615_v59  ;;  %v6579_v10 = vpop.permute.xlu2 %3973 }
 0x555   : > { %v4732_v25 = vpack.c.bf16 %v6558_v29, %v6554_v41  ;;  %v3949_v31 = vpop.permute.xlu0 %3948  ;;  %v4354_v33 = vadd.f32 %v4353_v1, %v4301_v37  ;;  %v4309_v37 = vmul.f32 %v6536_v43, %v6536_v43 }
 0x556   : > { %v4303_v51 = vmul.f32 %v4081_v47, %v4081_v47 }
 0x557   : > { %4827 = vst [vmem:[%s6467_s17 + $0x48] sm:$0xff] %v4732_v25   ;;  %v4355_v54 = vadd.f32 %v4354_v33, %v4302_v15  ;;  %v4307_v25 = vmul.f32 %v6521_v46, %v6521_v46 }
 0x559   : > { %v3669_v56 = vpop.f32.mrf.mxu2  ;;  %v4356_v44 = vadd.f32 %v4355_v54, %v4303_v51  ;;  %v4312_v54 = vmul.f32 %v6558_v29, %v6558_v29 }
 0x55a   : > { %v3645_v48 = vpop.f32.mrf.mxu1  ;;  %v6581_v27 = vmul.f32 %v3944_v62, %v3669_v56 }
 0x55b   : > { %v3618_v13 = vpop.f32.mrf.mxu0  ;;  %v6575_v8 = vmul.f32 %v3904_v58, %v3645_v48  ;;  %v4084_v58 = vmul.f32 %v6489_v9, %v6502_v19 }
 0x55c   : > { %v6570_v2 = vpop.permute.xlu1 %3953  ;;  %v4082_v63 = vmul.f32 %v6510_v39, %v3618_v13  ;;  %v4242_v39 = vadd.f32 %v4241_v61, %v4081_v47  ;;  %v6604_v56 = vpop.permute.xlu2 %3988 }
 0x55d   : > { %v4306_v30 = vmul.f32 %v4084_v58, %v4084_v58  ;;  %v3964_v12 = vpop.permute.xlu0 %3963 }
 0x55e   : > { %v4712_v38 = vpack.c.bf16 %v4082_v63, %v4081_v47  ;;  %v4304_v32 = vmul.f32 %v4082_v63, %v4082_v63  ;;  %v4243_v22 = vadd.f32 %v4242_v39, %v4082_v63  ;;  %v6610_v47 = vpop.f32.mrf.mxu3 }
 0x560   : > { %4823 = vst [vmem:[%s6467_s17 + $0x28] sm:$0xff] %v4712_v38   ;;  %v4357_v17 = vadd.f32 %v4356_v44, %v4304_v32 }
 0x561   : > { %v3672_v34 = vpop.f32.mrf.mxu2 }
 0x562   : > { %v3648_v23 = vpop.f32.mrf.mxu1  ;;  %v6583_v45 = vmul.f32 %v3949_v31, %v3672_v34 }
 0x563   : > { %v6577_v28 = vmul.f32 %v3909_v21, %v3648_v23  ;;  %v3621_v42 = vpop.f32.mrf.mxu0 }
 0x564   : > { %v6585_v55 = vpop.permute.xlu1 %3968  ;;  %v4757_v52 = vpack.c.bf16 %v6583_v45, %v6581_v27  ;;  %v4083_v60 = vmul.f32 %v6514_v26, %v3621_v42  ;;  %v6636_v39 = vpop.permute.xlu2 %4003 }
 0x565   : > { %v4737_v21 = vpack.c.bf16 %v6577_v28, %v6575_v8  ;;  %v6620_v61 = vpop.permute.xlu0 %3978 }
 0x566   : > { %4832 = vst [vmem:[%s6467_s17 + $0x70] sm:$0xff] %v4757_v52   ;;  %v4717_v20 = vpack.c.bf16 %v4084_v58, %v4083_v60  ;;  %v4244_v5 = vadd.f32 %v4243_v22, %v4083_v60  ;;  %v4305_v62 = vmul.f32 %v4083_v60, %v4083_v60  ;;  %v4314_v22 = vmul.f32 %v6577_v28, %v6577_v28 }
 0x567   : > { %4828 = vst [vmem:[%s6467_s17 + $0x50] sm:$0xff] %v4737_v21  }
 0x568   : > { %4824 = vst [vmem:[%s6467_s17 + $0x30] sm:$0xff] %v4717_v20   ;;  %v4245_v9 = vadd.f32 %v4244_v5, %v4084_v58  ;;  %v4358_v19 = vadd.f32 %v4357_v17, %v4305_v62 }
 0x569   : > { %v3675_v59 = vpop.f32.mrf.mxu2 }
 0x56a   : > { %v3651_v40 = vpop.f32.mrf.mxu1  ;;  %v4246_v3 = vadd.f32 %v4245_v9, %v6521_v46  ;;  %v4359_v48 = vadd.f32 %v4358_v19, %v4306_v30  ;;  %v4310_v46 = vmul.f32 %v6538_v7, %v6538_v7  ;;  %v6623_v51 = vmul.f32 %v6570_v2, %v3675_v59 }
 0x56b   : > { %v4093_v18 = vmul.f32 %v6530_v11, %v3651_v40 }
 0x56c   : > { %v6600_v26 = vpop.permute.xlu1 %3983  ;;  %v4247_v24 = vadd.f32 %v4246_v3, %v6523_v36  ;;  %v4360_v35 = vadd.f32 %v4359_v48, %v4307_v25  ;;  %v4311_v36 = vmul.f32 %v6554_v41, %v6554_v41  ;;  %v4019_v62 = vpop.permute.xlu2 %4018 }
 0x56d   : > { %v6645_v52 = vpop.permute.xlu0 %3993  ;;  %v4315_v20 = vmul.f32 %v4093_v18, %v4093_v18 }
 0x56e   : > { %v4248_v13 = vadd.f32 %v4247_v24, %v6536_v43  ;;  %v4361_v14 = vadd.f32 %v4360_v35, %v4308_v16 }
 0x570   : > { %v4362_v63 = vadd.f32 %v4361_v14, %v4309_v37  ;;  %v4249_v1 = vadd.f32 %v4248_v13, %v6538_v7 }
 0x571   : > { %v3678_v31 = vpop.f32.mrf.mxu2 }
 0x572   : > { %v3654_v15 = vpop.f32.mrf.mxu1  ;;  %v4250_v38 = vadd.f32 %v4249_v1, %v6554_v41  ;;  %v4363_v33 = vadd.f32 %v4362_v63, %v4310_v46  ;;  %v6626_v7 = vmul.f32 %v6567_v6, %v3678_v31  ;;  %v4313_v6 = vmul.f32 %v6575_v8, %v6575_v8 }
 0x573   : > { %v4094_v43 = vmul.f32 %v6546_v0, %v3654_v15  ;;  %v4098_v63 = vmul.f32 %v6560_v57, %v6556_v49 }
 0x574   : > { %v4251_v11 = vadd.f32 %v4250_v38, %v6558_v29  ;;  %v4364_v34 = vadd.f32 %v4363_v33, %v4311_v36  ;;  %v4762_v0 = vpack.c.bf16 %v6626_v7, %v6623_v51  ;;  %v6634_v41 = vpop.permute.xlu1 %3998 }
 0x575   : > { %v4742_v23 = vpack.c.bf16 %v4094_v43, %v4093_v18  ;;  %v4316_v24 = vmul.f32 %v4094_v43, %v4094_v43 }
 0x576   : > { %v4365_v2 = vadd.f32 %v4364_v34, %v4312_v54  ;;  %4833 = vst [vmem:[%s6467_s17 + $0x78] sm:$0xff] %v4762_v0   ;;  %v4252_v32 = vadd.f32 %v4251_v11, %v6575_v8  ;;  %v4320_v54 = vmul.f32 %v4098_v63, %v4098_v63  ;;  %v4321_v0 = vmul.f32 %v6581_v27, %v6581_v27 }
 0x577   : > { %4829 = vst [vmem:[%s6467_s17 + $0x58] sm:$0xff] %v4742_v23  }
 0x578   : > { %v4366_v42 = vadd.f32 %v4365_v2, %v4313_v6  ;;  %v4253_v44 = vadd.f32 %v4252_v32, %v6577_v28 }
 0x579   : > { %v3681_v21 = vpop.f32.mrf.mxu2  ;;  %v3711_v29 = vpop.f32.mrf.mxu3 }
 0x57a   : > { %v3657_v58 = vpop.f32.mrf.mxu1  ;;  %v4367_v60 = vadd.f32 %v4366_v42, %v4314_v22  ;;  %v4254_v17 = vadd.f32 %v4253_v44, %v4093_v18  ;;  %v4103_v25 = vmul.f32 %v3964_v12, %v3681_v21 }
 0x57b   : > { %v4095_v8 = vmul.f32 %v6548_v4, %v3657_v58 }
 0x57c   : > { %v4014_v5 = vpop.permute.xlu1 %4013  ;;  %v4368_v9 = vadd.f32 %v4367_v60, %v4315_v20  ;;  %v4255_v16 = vadd.f32 %v4254_v17, %v4094_v43 }
 0x57d   : > { %v6649_v28 = vmul.f32 %v4014_v5, %v3711_v29  ;;  %v4317_v14 = vmul.f32 %v4095_v8, %v4095_v8 }
 0x57e   : > { %v4369_v13 = vadd.f32 %v4368_v9, %v4316_v24  ;;  %v4256_v12 = vadd.f32 %v4255_v16, %v4095_v8 }
 0x580   : > { %v4370_v1 = vadd.f32 %v4369_v13, %v4317_v14 }
 0x581   : > { %v3684_v19 = vpop.f32.mrf.mxu2  ;;  %v3714_v40 = vpop.f32.mrf.mxu3 }
 0x582   : > { %v3660_v30 = vpop.f32.mrf.mxu1  ;;  %v6652_v3 = vmul.f32 %v6585_v55, %v3684_v19  ;;  %v6654_v48 = vmul.f32 %v4019_v62, %v3714_v40 }
 0x583   : > { %v4096_v59 = vmul.f32 %v6542_v53, %v3660_v30  ;;  %v6660_v53 = vpop.permute.xlu0 %4008 }
 0x584   : > { %v4767_v37 = vpack.c.bf16 %v6652_v3, %v4103_v25  ;;  %v4792_v4 = vpack.c.bf16 %v6654_v48, %v6649_v28  ;;  %v4029_v6 = vpop.permute.xlu1 %4028 }
 0x585   : > { %v4747_v35 = vpack.c.bf16 %v4096_v59, %v4095_v8  ;;  %v4318_v55 = vmul.f32 %v4096_v59, %v4096_v59  ;;  %v4257_v15 = vadd.f32 %v4256_v12, %v4096_v59  ;;  %v4034_v8 = vpop.permute.xlu2 %4033  ;;  %v4325_v59 = vmul.f32 %v4103_v25, %v4103_v25 }
 0x586   : > { %4834 = vst [vmem:[%s6467_s17 + $0x80] sm:$0xff] %v4767_v37  }
 0x587   : > { %4830 = vst [vmem:[%s6467_s17 + $0x60] sm:$0xff] %v4747_v35   ;;  %v4371_v43 = vadd.f32 %v4370_v1, %v4318_v55  ;;  %v4326_v55 = vmul.f32 %v6652_v3, %v6652_v3 }
 0x588   : > { %4839 = vst [vmem:[%s6467_s17 + $0xa8] sm:$0xff] %v4792_v4  }
 0x589   : > { %v3687_v36 = vpop.f32.mrf.mxu2  ;;  %v3717_v18 = vpop.f32.mrf.mxu3 }
 0x58a   : > { %v3663_v46 = vpop.f32.mrf.mxu1  ;;  %v4105_v29 = vmul.f32 %v6579_v10, %v3687_v36  ;;  %v4323_v10 = vmul.f32 %v6623_v51, %v6623_v51 }
 0x58b   : > { %v4097_v31 = vmul.f32 %v6564_v50, %v3663_v46  ;;  %v4024_v57 = vpop.permute.xlu0 %4023  ;;  %v4322_v50 = vmul.f32 %v6583_v45, %v6583_v45 }
 0x58c   : > { %v6675_v44 = vmul.f32 %v4024_v57, %v3717_v18  ;;  %v4327_v1 = vmul.f32 %v4105_v29, %v4105_v29 }
 0x58d   : > { %v4752_v38 = vpack.c.bf16 %v4098_v63, %v4097_v31  ;;  %v4258_v33 = vadd.f32 %v4257_v15, %v4097_v31  ;;  %v4319_v23 = vmul.f32 %v4097_v31, %v4097_v31 }
 0x58f   : > { %4831 = vst [vmem:[%s6467_s17 + $0x68] sm:$0xff] %v4752_v38   ;;  %v4259_v11 = vadd.f32 %v4258_v33, %v4098_v63  ;;  %v4372_v34 = vadd.f32 %v4371_v43, %v4319_v23  ;;  %v4049_v43 = vpop.permute.xlu2 %4048  ;;  %v4044_v33 = vpop.permute.xlu1 %4043 }
 0x591   : > { %v4260_v2 = vadd.f32 %v4259_v11, %v6581_v27  ;;  %v4373_v49 = vadd.f32 %v4372_v34, %v4320_v54  ;;  %v3690_v42 = vpop.f32.mrf.mxu2  ;;  %v3720_v21 = vpop.f32.mrf.mxu3 }
 0x592   : > { %v4106_v22 = vmul.f32 %v6620_v61, %v3690_v42  ;;  %v6678_v27 = vmul.f32 %v4029_v6, %v3720_v21  ;;  %v4324_v61 = vmul.f32 %v6626_v7, %v6626_v7 }
 0x593   : > { %v4261_v32 = vadd.f32 %v4260_v2, %v6583_v45  ;;  %v4374_v58 = vadd.f32 %v4373_v49, %v4321_v0  ;;  %v4039_v19 = vpop.permute.xlu0 %4038 }
 0x594   : > { %v4772_v17 = vpack.c.bf16 %v4106_v22, %v4105_v29  ;;  %v4797_v20 = vpack.c.bf16 %v6678_v27, %v6675_v44  ;;  %v4328_v18 = vmul.f32 %v4106_v22, %v4106_v22 }
 0x595   : > { %v4375_v60 = vadd.f32 %v4374_v58, %v4322_v50  ;;  %v4262_v45 = vadd.f32 %v4261_v32, %v6623_v51 }
 0x596   : > { %4835 = vst [vmem:[%s6467_s17 + $0x88] sm:$0xff] %v4772_v17  }
 0x597   : > { %4840 = vst [vmem:[%s6467_s17 + $0xb0] sm:$0xff] %v4797_v20   ;;  %v4376_v30 = vadd.f32 %v4375_v60, %v4323_v10  ;;  %v4263_v9 = vadd.f32 %v4262_v45, %v6626_v7 }
 0x599   : > { %v3693_v5 = vpop.f32.mrf.mxu2  ;;  %v3723_v62 = vpop.f32.mrf.mxu3  ;;  %v4377_v40 = vadd.f32 %v4376_v30, %v4324_v61  ;;  %v4264_v16 = vadd.f32 %v4263_v9, %v4103_v25 }
 0x59a   : > { %v4107_v37 = vmul.f32 %v6600_v26, %v3693_v5  ;;  %v6691_v4 = vmul.f32 %v4034_v8, %v3723_v62  ;;  %v4335_v8 = vmul.f32 %v6649_v28, %v6649_v28 }
 0x59b   : > { %v4378_v14 = vadd.f32 %v4377_v40, %v4325_v59  ;;  %v4265_v25 = vadd.f32 %v4264_v16, %v6652_v3 }
 0x59c   : > { %v4329_v54 = vmul.f32 %v4107_v37, %v4107_v37 }
 0x59d   : > { %v4379_v46 = vadd.f32 %v4378_v14, %v4326_v55  ;;  %v4266_v15 = vadd.f32 %v4265_v25, %v4105_v29 }
 0x59f   : > { %v4267_v36 = vadd.f32 %v4266_v15, %v4106_v22 }
 0x5a1   : > { %v3696_v24 = vpop.f32.mrf.mxu2  ;;  %v3726_v35 = vpop.f32.mrf.mxu3  ;;  %v4268_v23 = vadd.f32 %v4267_v36, %v4107_v37 }
 0x5a2   : > { %v4108_v51 = vmul.f32 %v6604_v56, %v3696_v24  ;;  %v6694_v13 = vmul.f32 %v4039_v19, %v3726_v35  ;;  %v4380_v56 = vadd.f32 %v4379_v46, %v4327_v1 }
 0x5a4   : > { %v4777_v12 = vpack.c.bf16 %v4108_v51, %v4107_v37  ;;  %v4802_v7 = vpack.c.bf16 %v6694_v13, %v6691_v4  ;;  %v4381_v31 = vadd.f32 %v4380_v56, %v4328_v18  ;;  %v4330_v57 = vmul.f32 %v4108_v51, %v4108_v51 }
 0x5a5   : > { %v4269_v32 = vadd.f32 %v4268_v23, %v4108_v51  ;;  %v4337_v51 = vmul.f32 %v6675_v44, %v6675_v44 }
 0x5a6   : > { %4836 = vst [vmem:[%s6467_s17 + $0x90] sm:$0xff] %v4777_v12   ;;  %v4382_v49 = vadd.f32 %v4381_v31, %v4329_v54 }
 0x5a7   : > { %4841 = vst [vmem:[%s6467_s17 + $0xb8] sm:$0xff] %v4802_v7   ;;  %v4338_v7 = vmul.f32 %v6678_v27, %v6678_v27 }
 0x5a8   : > { %v4383_v42 = vadd.f32 %v4382_v49, %v4330_v57 }
 0x5a9   : > { %v3699_v26 = vpop.f32.mrf.mxu2  ;;  %v3729_v63 = vpop.f32.mrf.mxu3 }
 0x5aa   : > { %v4109_v3 = vmul.f32 %v6645_v52, %v3699_v26  ;;  %v4119_v0 = vmul.f32 %v4044_v33, %v3729_v63  ;;  %v4112_v52 = vmul.f32 %v6660_v53, %v6610_v47  ;;  %v4054_v47 = vpop.permute.xlu0 %4053  ;;  %v4059_v53 = vpop.permute.xlu1 %4058  ;;  %v4340_v63 = vmul.f32 %v6694_v13, %v6694_v13 }
 0x5ac   : > { %v4331_v58 = vmul.f32 %v4109_v3, %v4109_v3  ;;  %v4270_v21 = vadd.f32 %v4269_v32, %v4109_v3  ;;  %v4334_v30 = vmul.f32 %v4112_v52, %v4112_v52  ;;  %v4341_v56 = vmul.f32 %v4119_v0, %v4119_v0 }
 0x5b1   : > { %v3702_v38 = vpop.f32.mrf.mxu2  ;;  %v3732_v34 = vpop.f32.mrf.mxu3 }
 0x5b2   : > { %v4110_v11 = vmul.f32 %v6634_v41, %v3702_v38  ;;  %v4120_v2 = vmul.f32 %v4049_v43, %v3732_v34  ;;  %v4384_v41 = vadd.f32 %v4383_v42, %v4331_v58  ;;  %v4064_v38 = vpop.permute.xlu2 %4063 }
 0x5b4   : > { %v4782_v6 = vpack.c.bf16 %v4110_v11, %v4109_v3  ;;  %v4807_v50 = vpack.c.bf16 %v4120_v2, %v4119_v0  ;;  %v4332_v29 = vmul.f32 %v4110_v11, %v4110_v11  ;;  %v4271_v60 = vadd.f32 %v4270_v21, %v4110_v11  ;;  %v4069_v3 = vpop.permute.xlu0 %4068 }
 0x5b5   : > { %v4342_v31 = vmul.f32 %v4120_v2, %v4120_v2 }
 0x5b6   : > { %4837 = vst [vmem:[%s6467_s17 + $0x98] sm:$0xff] %v4782_v6   ;;  %v4385_v45 = vadd.f32 %v4384_v41, %v4332_v29 }
 0x5b7   : > { %4842 = vst [vmem:[%s6467_s17 + $0xc0] sm:$0xff] %v4807_v50  }
 0x5b9   : > { %v3705_v22 = vpop.f32.mrf.mxu2  ;;  %v3735_v20 = vpop.f32.mrf.mxu3 }
 0x5ba   : > { %v4111_v17 = vmul.f32 %v6636_v39, %v3705_v22  ;;  %v4336_v39 = vmul.f32 %v6654_v48, %v6654_v48  ;;  %v4121_v35 = vmul.f32 %v4054_v47, %v3735_v20 }
 0x5bc   : > { %v4787_v5 = vpack.c.bf16 %v4112_v52, %v4111_v17  ;;  %v4272_v62 = vadd.f32 %v4271_v60, %v4111_v17  ;;  %v4333_v10 = vmul.f32 %v4111_v17, %v4111_v17  ;;  %v4343_v23 = vmul.f32 %v4121_v35, %v4121_v35 }
 0x5be   : > { %4838 = vst [vmem:[%s6467_s17 + $0xa0] sm:$0xff] %v4787_v5   ;;  %v4273_v9 = vadd.f32 %v4272_v62, %v4112_v52  ;;  %v4386_v61 = vadd.f32 %v4385_v45, %v4333_v10 }
 0x5c0   : > { %v4274_v19 = vadd.f32 %v4273_v9, %v6649_v28  ;;  %v4387_v40 = vadd.f32 %v4386_v61, %v4334_v30 }
 0x5c1   : > { %v3738_v24 = vpop.f32.mrf.mxu3 }
 0x5c2   : > { %v4275_v59 = vadd.f32 %v4274_v19, %v6654_v48  ;;  %v4388_v16 = vadd.f32 %v4387_v40, %v4335_v8  ;;  %v4122_v37 = vmul.f32 %v4059_v53, %v3738_v24  ;;  %v4339_v48 = vmul.f32 %v6691_v4, %v6691_v4 }
 0x5c4   : > { %v4276_v14 = vadd.f32 %v4275_v59, %v6675_v44  ;;  %v4389_v12 = vadd.f32 %v4388_v16, %v4336_v39  ;;  %v4812_v28 = vpack.c.bf16 %v4122_v37, %v4121_v35  ;;  %v4344_v49 = vmul.f32 %v4122_v37, %v4122_v37 }
 0x5c6   : > { %v4390_v55 = vadd.f32 %v4389_v12, %v4337_v51  ;;  %v4277_v25 = vadd.f32 %v4276_v14, %v6678_v27  ;;  %4843 = vst [vmem:[%s6467_s17 + $0xc8] sm:$0xff] %v4812_v28  }
 0x5c8   : > { %v4278_v46 = vadd.f32 %v4277_v25, %v6691_v4  ;;  %v4391_v26 = vadd.f32 %v4390_v55, %v4338_v7 }
 0x5c9   : > { %v3741_v15 = vpop.f32.mrf.mxu3 }
 0x5ca   : > { %v4279_v44 = vadd.f32 %v4278_v46, %v6694_v13  ;;  %v4392_v1 = vadd.f32 %v4391_v26, %v4339_v48  ;;  %v4123_v4 = vmul.f32 %v4064_v38, %v3741_v15 }
 0x5cc   : > { %v4280_v36 = vadd.f32 %v4279_v44, %v4119_v0  ;;  %v4393_v18 = vadd.f32 %v4392_v1, %v4340_v63  ;;  %v4345_v32 = vmul.f32 %v4123_v4, %v4123_v4 }
 0x5ce   : > { %v4281_v43 = vadd.f32 %v4280_v36, %v4120_v2  ;;  %v4394_v27 = vadd.f32 %v4393_v18, %v4341_v56 }
 0x5d0   : > { %v4282_v33 = vadd.f32 %v4281_v43, %v4121_v35  ;;  %v4395_v54 = vadd.f32 %v4394_v27, %v4342_v31 }
 0x5d1   : > { %v3744_v57 = vpop.f32.mrf.mxu3 }
 0x5d2   : > { %v4396_v11 = vadd.f32 %v4395_v54, %v4343_v23  ;;  %v4283_v34 = vadd.f32 %v4282_v33, %v4122_v37  ;;  %v4124_v13 = vmul.f32 %v4069_v3, %v3744_v57 }
 0x5d4   : > { %v4397_v6 = vadd.f32 %v4396_v11, %v4344_v49  ;;  %v4284_v50 = vadd.f32 %v4283_v34, %v4123_v4  ;;  %v4817_v0 = vpack.c.bf16 %v4124_v13, %v4123_v4  ;;  %v4346_v42 = vmul.f32 %v4124_v13, %v4124_v13 }
 0x5d6   : > { %v4398_v58 = vadd.f32 %v4397_v6, %v4345_v32  ;;  %v4285_v2 = vadd.f32 %v4284_v50, %v4124_v13  ;;  %4844 = vst [vmem:[%s6467_s17 + $0xd0] sm:$0xff] %v4817_v0   ;;  %s500_s17 = scalar_lea.vmem %s6755_s7, %s6761_s24 }
 0x5d8   : > { %v4286_v21 = vrot.slane %v4285_v2, 4  ;;  %v4399_v29 = vadd.f32 %v4398_v58, %v4346_v42 }
 0x5da   : > { %v4287_v22 = vadd.f32 %v4286_v21, %v4285_v2  ;;  %v4400_v52 = vrot.slane %v4399_v29, 4 }
 0x5dc   : > { %v4288_v41 = vrot.slane %v4287_v22, 2  ;;  %v4401_v60 = vadd.f32 %v4400_v52, %v4399_v29 }
 0x5de   : > { %v4289_v17 = vadd.f32 %v4288_v41, %v4287_v22  ;;  %v4402_v20 = vrot.slane %v4401_v60, 2 }
 0x5e0   : > { %v4290_v45 = vrot.slane %v4289_v17, 1  ;;  %v4403_v5 = vadd.f32 %v4402_v20, %v4401_v60 }
 0x5e2   : > { %v4291_v62 = vadd.f32 %v4290_v45, %v4289_v17  ;;  %v4404_v10 = vrot.slane %v4403_v5, 1 }
 0x5e4   : > { %4292 = vst [vmem:[%s494_s15] sm:$0x1] %v4291_v62  ;;  %v4405_v30 = vadd.f32 %v4404_v10, %v4403_v5 }
 0x5e6   : > { %4406 = vst [vmem:[%s500_s17] sm:$0x1] %v4405_v30 }
 0x5e7 PF: > { %s18_s26 = sadd.s32 1, %s4922_s26   ;;  %s6756_s24 = smov %s4918_s25 }
 0x5e8   : > { %p15_p5 = scmp.ge.s32.totalorder %s18_s26, 4   ;;  %s6757_s25 = smov %s6759_s27 }
 0x5ea   :  { %17 = sbr.rel (!%p15_p5) target bundleno = 2 (0x2), region = 103 }

// kernel: double_conv_pallas.3
= control target key start
LH: loop header
LB: loop body
LE: loop exit
PB: predicated region body
PF: predicated region fallthrough
CT: control target
= control target key end

     0   :  { %s6222_s17 = smov 0   ;;  %s6224_s18 = smov 0   ;;  %s8120_s0 = inlined_call_operand.vmem [shape: bf16[2,432,128], index: 0, kind: input, shape index: {}, may-alias: {0,1,2}]   ;;  %s8121_s1 = inlined_call_operand.vmem [shape: bf16[2,432,128], index: 1, kind: input, shape index: {}, may-alias: {0,1,2}]   ;;  %s8122_s2 = inlined_call_operand.vmem [shape: bf16[2,432,128], index: 2, kind: input, shape index: {}, may-alias: {0,1,2}]   ;;  %s8123_s3 = inlined_call_operand.vmem [shape: f32[432,1], index: 3, kind: input, shape index: {}, may-alias: {3,4,5}]   ;;  %s8124_s4 = inlined_call_operand.vmem [shape: f32[432,1], index: 4, kind: input, shape index: {}, may-alias: {3,4,5}]   ;;  %s8125_s5 = inlined_call_operand.vmem [shape: f32[432,1], index: 5, kind: input, shape index: {}, may-alias: {3,4,5}]   ;;  %s8126_s6 = inlined_call_operand.vmem [shape: f32[1,128], index: 6, kind: input, shape index: {}]   ;;  %s8127_s7 = inlined_call_operand.vmem [shape: f32[1,128], index: 7, kind: input, shape index: {}]   ;;  %s8128_s8 = inlined_call_operand.vmem [shape: f32[1152,128], index: 8, kind: input, shape index: {}]   ;;  %s8129_s9 = inlined_call_operand.vmem [shape: bf16[2,432,128], index: 9, kind: output, shape index: {0}]   ;;  %s8130_s10 = inlined_call_operand.vmem [shape: f32[2,1,1,128], index: 10, kind: output, shape index: {1}]   ;;  %s8131_s11 = inlined_call_operand.vmem [shape: f32[2,1,1,128], index: 11, kind: output, shape index: {2}]  }
   0x1   :  { %s6226_s19 = smov 0  }
   0x2 LB: > { %s34_s20 = sadd.s32 1, %s6155_s18  ;;  %p5709_p0 = scmp.ge.s32.totalorder %s6159_s19, 1  ;;  %s6159_s19 = sphi %s6226_s19, %s22_s19   ;;  %s6155_s18 = sphi %s6224_s18, %s8283_s18   ;;  %s6151_s17 = sphi %s6222_s17, %s8282_s17  }
   0x3   : > { %p36_p1 = scmp.ge.s32.totalorder %s34_s20, 2  ;;  %p498_p2 = scmp.lt.s32.totalorder %s6159_s19, 3 }
   0x5   : > { %s8285_s20 = smov (%p36_p1, %s34_s20), 0  ;;  %p499_p3 = pnand %p5709_p0, %p498_p2 }
   0x7   : > { %502 = sbr.rel (%p499_p3) target bundleno = 1305 (0x519), region = 56 }
   0xc   : > { %v1099_v0 = vld [vmem:[%s8124_s4 + $0xd0] sm:$0xff]  ;;  %v1097_v2 = vld [vmem:[%s8124_s4 + $0xc0] sm:$0xff]  ;;  %p612_p4 = scmp.lt.s32.totalorder %s6151_s17, 1  ;;  %v6161_v3 = vmov 0   ;;  %v1084_v5 = vld [vmem:[%s8124_s4 + $0x58] sm:$0xff] }
   0xd   : > { %v1083_v1 = vld [vmem:[%s8124_s4 + $0x50] sm:$0xff]  ;;  %6125 = vset.pattern.permute.xlu2 %v6161_v3  ;;  %6124 = vset.pattern.permute.xlu1 %v6161_v3  ;;  %v1098_v6 = vld [vmem:[%s8124_s4 + $0xc8] sm:$0xff]  ;;  %v1100_v7 = vld [vmem:[%s8124_s4 + $0xd8] sm:$0xff] }
   0xe   : > { %6123 = vset.pattern.permute.xlu0 %v6161_v3  ;;  %1259 = vperm.xlu2 %6125, %v1099_v0   ;;  %s8287_s17 = smov (!%p612_p4, %s6151_s17), 1  ;;  %v749_v4 = vld [vmem:[%s8123_s3 + $0x10] sm:$0xff]  ;;  %v1085_v8 = vld [vmem:[%s8124_s4 + $0x60] sm:$0xff]  ;;  %v750_v9 = vld [vmem:[%s8123_s3 + $0x18] sm:$0xff] }
   0xf   : > { %1179 = vperm.xlu1 %6124, %v1083_v1   ;;  %1249 = vperm.xlu0 %6123, %v1097_v2   ;;  %v1112_v10 = vld [vmem:[%s8124_s4 + $0x138] sm:$0xff]  ;;  %v1111_v11 = vld [vmem:[%s8124_s4 + $0x130] sm:$0xff]  ;;  %v751_v12 = vld [vmem:[%s8123_s3 + $0x20] sm:$0xff]  ;;  %s6333_s30 = smul.u32 216, %s8287_s17  ;;  %s702_s24 = scalar_lea.vmem %s8130_s10, %s8287_s17 }
  0x10   : > { %v752_v13 = vld [vmem:[%s8123_s3 + $0x28] sm:$0xff]  ;;  %v1101_v14 = vld [vmem:[%s8124_s4 + $0xe0] sm:$0xff]  ;;  %v1087_v17 = vld [vmem:[%s8124_s4 + $0x70] sm:$0xff] }
  0x11   : > { %v1086_v15 = vld [vmem:[%s8124_s4 + $0x68] sm:$0xff]  ;;  %v1113_v18 = vld [vmem:[%s8124_s4 + $0x140] sm:$0xff]  ;;  %v1088_v19 = vld [vmem:[%s8124_s4 + $0x78] sm:$0xff]  ;;  %s6354_s28 = scalar_lea.vmem %s8121_s1, %s6333_s30  ;;  %s6378_s25 = scalar_lea.vmem %s8120_s0, %s6333_s30 }
  0x12   : > { %v1102_v16 = vld [vmem:[%s8124_s4 + $0xe8] sm:$0xff]  ;;  %v6305_v21 = vld [vmem:[%s8124_s4] sm:$0xff]  ;;  %v1115_v22 = vld [vmem:[%s8124_s4 + $0x150] sm:$0xff]  ;;  %s5723_s29 = sadd.s32 192, %s6333_s30  ;;  %s7846_s22 = scalar_lea.vmem %s8129_s9, %s6333_s30 }
  0x13   : > { %v1114_v20 = vld [vmem:[%s8124_s4 + $0x148] sm:$0xff]  ;;  %v1103_v24 = vld [vmem:[%s8124_s4 + $0xf0] sm:$0xff]  ;;  %v1104_v26 = vld [vmem:[%s8124_s4 + $0xf8] sm:$0xff]  ;;  %s7020_s15 = scalar_lea.vmem %s8122_s2, %s5723_s29  ;;  %s708_s29 = scalar_lea.vmem %s8131_s11, %s8287_s17 }
  0x14   : > { %v6314_v23 = vld [vmem:[%s8124_s4 + $0x8] sm:$0xff]  ;;  %v6323_v25 = vld [vmem:[%s8124_s4 + $0x10] sm:$0xff]  ;;  %v1089_v27 = vld [vmem:[%s8124_s4 + $0x80] sm:$0xff] }
  0x15   : > { %v1105_v28 = vld [vmem:[%s8124_s4 + $0x100] sm:$0xff]  ;;  %v3064_v29 = vld [vmem:[%s8128_s8 + $0x78] sm:$0xff]  ;;  %v3063_v30 = vld [vmem:[%s8128_s8 + $0x70] sm:$0xff] }
  0x16   : > { %765 = vperm.xlu2 %6125, %v749_v4   ;;  %v1090_v31 = vld [vmem:[%s8124_s4 + $0x88] sm:$0xff]  ;;  %v1116_v32 = vld [vmem:[%s8124_s4 + $0x158] sm:$0xff]  ;;  %6047 = vmatpush.msra.mxu1 %v3064_v29  ;;  %v3061_v36 = vld [vmem:[%s8128_s8 + $0x60] sm:$0xff] }
  0x17   : > { %1184 = vperm.xlu1 %6124, %v1084_v5   ;;  %1254 = vperm.xlu0 %6123, %v1098_v6   ;;  %v6357_v33 = vld [vmem:[%s6354_s28 + $0x68] sm:$0xff]   ;;  %v1091_v37 = vld [vmem:[%s8124_s4 + $0x90] sm:$0xff]  ;;  %v6372_v38 = vld [vmem:[%s8126_s6] ss:$0 sm:$0xff] }
  0x18   : > { %6048 = vmatpush.msra.mxu2 %v3064_v29  ;;  %3193 = vmatpush.msra.mxu0 %v3064_v29  ;;  %v3062_v34 = vld [vmem:[%s8128_s8 + $0x68] sm:$0xff]  ;;  %v5790_v35 = vunpack.c.l.bf16 %v6357_v33  ;;  %v3060_v39 = vld [vmem:[%s8128_s8 + $0x58] sm:$0xff]  ;;  %v1117_v40 = vld [vmem:[%s8124_s4 + $0x160] sm:$0xff]  ;;  %v5791_v63 = vunpack.c.h.bf16 %v6357_v33 }
  0x19   : > { %6049 = vmatpush.msra.mxu3 %v3064_v29  ;;  %6050 = vmatpush.msra.mxu1 %v3063_v30  ;;  %v6389_v41 = vld [vmem:[%s8124_s4 + $0x18] sm:$0xff]  ;;  %v3059_v43 = vld [vmem:[%s8128_s8 + $0x50] sm:$0xff]  ;;  %v6396_v44 = vld [vmem:[%s6378_s25 + $0x8] sm:$0xff]  }
  0x1a   : > { %6051 = vmatpush.msra.mxu2 %v3063_v30  ;;  %3194 = vmatpush.msra.mxu0 %v3063_v30  ;;  %v933_v42 = vmul.f32 %v6372_v38, %v5790_v35  ;;  %v6402_v45 = vld [vmem:[%s8127_s7] ss:$0 sm:$0xff]  ;;  %v3058_v46 = vld [vmem:[%s8128_s8 + $0x48] sm:$0xff]  ;;  %v5730_v48 = vunpack.c.l.bf16 %v6396_v44  ;;  %v3056_v57 = vld [vmem:[%s8128_s8 + $0x38] sm:$0xff]  ;;  %v934_v5 = vmul.f32 %v6372_v38, %v5791_v63 }
  0x1b   : > { %6053 = vmatpush.msra.mxu1 %v3062_v34  ;;  %6052 = vmatpush.msra.mxu3 %v3063_v30  ;;  %v6412_v49 = vld [vmem:[%s8126_s6] ss:$0 sm:$0xff]  ;;  %v1118_v50 = vld [vmem:[%s8124_s4 + $0x168] sm:$0xff]  ;;  %v3055_v58 = vld [vmem:[%s8128_s8 + $0x30] sm:$0xff] }
  0x1c   : > { %6054 = vmatpush.msra.mxu2 %v3062_v34  ;;  %3195 = vmatpush.msra.mxu0 %v3062_v34  ;;  %v991_v47 = vadd.f32 %v6402_v45, %v933_v42  ;;  %v3057_v51 = vld [vmem:[%s8128_s8 + $0x40] sm:$0xff]  ;;  %v1106_v53 = vld [vmem:[%s8124_s4 + $0x108] sm:$0xff]  ;;  %v727_v55 = vmul.f32 %v6412_v49, %v5730_v48  ;;  %v1107_v2 = vld [vmem:[%s8124_s4 + $0x110] sm:$0xff] }
  0x1d   : > { %6056 = vmatpush.msra.mxu1 %v3061_v36  ;;  %6055 = vmatpush.msra.mxu3 %v3062_v34  ;;  %v6423_v52 = vld [vmem:[%s8124_s4 + $0x20] sm:$0xff]  ;;  %v3054_v59 = vld [vmem:[%s8128_s8 + $0x28] sm:$0xff]  ;;  %v1092_v3 = vld [vmem:[%s8124_s4 + $0x98] sm:$0xff] }
  0x1e   : > { %1264 = vperm.xlu2 %6125, %v1100_v7   ;;  %6057 = vmatpush.msra.mxu2 %v3061_v36  ;;  %v1045_v54 = vmax.f32 %v991_v47, 0.0  ;;  %v6432_v56 = vld [vmem:[%s8127_s7] ss:$0 sm:$0xff]  ;;  %v6449_v0 = vld [vmem:[%s8124_s4 + $0x28] sm:$0xff]  ;;  %v3052_v6 = vld [vmem:[%s8128_s8 + $0x18] sm:$0xff] }
  0x1f   : > { %1189 = vperm.xlu1 %6124, %v1085_v8   ;;  %770 = vperm.xlu0 %6123, %v750_v9   ;;  %v737_v62 = vadd.f32 %v6432_v56, %v727_v55  ;;  %v3053_v1 = vld [vmem:[%s8128_s8 + $0x20] sm:$0xff]  ;;  %v6466_v7 = vld [vmem:[%s6354_s28 + $0x98] sm:$0xff]   ;;  %v5997_v8 = vld [vmem:[%s6354_s28 + $0x28] sm:$0xff]  }
  0x20   : > { %6059 = vmatpush.msra.mxu1 %v3060_v39  ;;  %3196 = vmatpush.msra.mxu0 %v3061_v36  ;;  %v6004_v9 = vld [vmem:[%s6354_s28 + $0x60] sm:$0xff]   ;;  %v6494_v29 = vld [vmem:[%s6378_s25 + $0x10] sm:$0xff]  }
  0x21   : > { %6060 = vmatpush.msra.mxu2 %v3060_v39  ;;  %6058 = vmatpush.msra.mxu3 %v3061_v36  ;;  %v743_v4 = vmax.f32 %v737_v62, 0.0  ;;  %v5735_v34 = vunpack.c.h.bf16 %v6494_v29  ;;  %v6509_v42 = vld [vmem:[%s8124_s4 + $0x30] sm:$0xff] }
  0x22   : > { %6062 = vmatpush.msra.mxu1 %v3059_v43  ;;  %3197 = vmatpush.msra.mxu0 %v3060_v39 }
  0x23   : > { %6063 = vmatpush.msra.mxu2 %v3059_v43  ;;  %6061 = vmatpush.msra.mxu3 %v3060_v39  ;;  %v1094_v39 = vld [vmem:[%s8124_s4 + $0xa8] sm:$0xff]  ;;  %v730_v47 = vmul.f32 %v6412_v49, %v5735_v34 }
  0x24   : > { %6065 = vmatpush.msra.mxu1 %v3058_v46  ;;  %3198 = vmatpush.msra.mxu0 %v3059_v43 }
  0x25   : > { %6066 = vmatpush.msra.mxu2 %v3058_v46  ;;  %6064 = vmatpush.msra.mxu3 %v3059_v43 }
  0x26   : > { %1324 = vperm.xlu2 %6125, %v1112_v10   ;;  %6068 = vmatpush.msra.mxu1 %v3057_v51  ;;  %v3051_v10 = vld [vmem:[%s8128_s8 + $0x10] sm:$0xff] }
  0x27   : > { %1319 = vperm.xlu1 %6124, %v1111_v11   ;;  %775 = vperm.xlu0 %6123, %v751_v12  }
  0x28   : > { %6069 = vmatpush.msra.mxu2 %v3057_v51  ;;  %3199 = vmatpush.msra.mxu0 %v3058_v46 }
  0x29   : > { %6071 = vmatpush.msra.mxu1 %v3056_v57  ;;  %6067 = vmatpush.msra.mxu3 %v3058_v46 }
  0x2a   : > { %6072 = vmatpush.msra.mxu2 %v3056_v57  ;;  %3200 = vmatpush.msra.mxu0 %v3057_v51 }
  0x2b   : > { %6074 = vmatpush.msra.mxu1 %v3055_v58  ;;  %6070 = vmatpush.msra.mxu3 %v3057_v51 }
  0x2c   : > { %6075 = vmatpush.msra.mxu2 %v3055_v58  ;;  %3201 = vmatpush.msra.mxu0 %v3056_v57 }
  0x2d   : > { %6077 = vmatpush.msra.mxu1 %v3054_v59  ;;  %6073 = vmatpush.msra.mxu3 %v3056_v57 }
  0x2e   : > { %780 = vperm.xlu2 %6125, %v752_v13   ;;  %6078 = vmatpush.msra.mxu2 %v3054_v59  ;;  %v992_v13 = vadd.f32 %v6402_v45, %v934_v5  ;;  %v1121_v5 = vld [vmem:[%s8124_s4 + $0x180] sm:$0xff] }
  0x2f   : > { %1269 = vperm.xlu1 %6124, %v1101_v14   ;;  %1194 = vperm.xlu0 %6123, %v1086_v15   ;;  %v5815_v14 = vunpack.c.h.bf16 %v6466_v7  ;;  %v3050_v15 = vld [vmem:[%s8128_s8 + $0x8] sm:$0xff] }
  0x30   : > { %6080 = vmatpush.msra.mxu1 %v3053_v1  ;;  %3202 = vmatpush.msra.mxu0 %v3055_v58 }
  0x31   : > { %6081 = vmatpush.msra.mxu2 %v3053_v1  ;;  %6076 = vmatpush.msra.mxu3 %v3055_v58 }
  0x32   : > { %6083 = vmatpush.msra.mxu1 %v3052_v6  ;;  %3203 = vmatpush.msra.mxu0 %v3054_v59 }
  0x33   : > { %6084 = vmatpush.msra.mxu2 %v3052_v6  ;;  %6079 = vmatpush.msra.mxu3 %v3054_v59 }
  0x34   : > { %6086 = vmatpush.msra.mxu1 %v3051_v10  ;;  %3204 = vmatpush.msra.mxu0 %v3053_v1 }
  0x35   : > { %6087 = vmatpush.msra.mxu2 %v3051_v10  ;;  %6082 = vmatpush.msra.mxu3 %v3053_v1 }
  0x36   : > { %1274 = vperm.xlu2 %6125, %v1102_v16   ;;  %v5758_v16 = vunpack.c.l.bf16 %v5997_v8  ;;  %6089 = vmatpush.msra.mxu1 %v3050_v15 }
  0x37   : > { %1199 = vperm.xlu1 %6124, %v1087_v17   ;;  %1329 = vperm.xlu0 %6123, %v1113_v18   ;;  %v5786_v17 = vunpack.c.l.bf16 %v6004_v9  ;;  %v1108_v18 = vld [vmem:[%s8124_s4 + $0x118] sm:$0xff] }
  0x38   : > { %6090 = vmatpush.msra.mxu2 %v3050_v15  ;;  %3205 = vmatpush.msra.mxu0 %v3052_v6 }
  0x39   : > { %6085 = vmatpush.msra.mxu3 %v3052_v6  ;;  %v6533_v6 = vld [vmem:[%s8124_s4 + $0x38] sm:$0xff] }
  0x3a   : > { %3206 = vmatpush.msra.mxu0 %v3051_v10 }
  0x3b   : > { %6088 = vmatpush.msra.mxu3 %v3051_v10 }
  0x3c   : > { %3207 = vmatpush.msra.mxu0 %v3050_v15 }
  0x3d   : > { %6091 = vmatpush.msra.mxu3 %v3050_v15 }
  0x3e   : > { %1204 = vperm.xlu2 %6125, %v1088_v19   ;;  %v3049_v19 = vld [vmem:[%s8128_s8] sm:$0xff] }
  0x3f   : > { %1334 = vperm.xlu1 %6124, %v1114_v20   ;;  %1129 = vperm.xlu0 %6123, %v6305_v21   ;;  %v1093_v20 = vld [vmem:[%s8124_s4 + $0xa0] sm:$0xff] }
  0x40   : > { %6092 = vmatpush.msra.mxu1 %v3049_v19  ;;  %6093 = vmatpush.msra.mxu2 %v3049_v19 }
  0x41   : > { %3208 = vmatpush.msra.mxu0 %v3049_v19  ;;  %6094 = vmatpush.msra.mxu3 %v3049_v19 }
  0x46   : > { %1339 = vperm.xlu2 %6125, %v1115_v22   ;;  %v1119_v22 = vld [vmem:[%s8124_s4 + $0x170] sm:$0xff] }
  0x47   : > { %1134 = vperm.xlu1 %6124, %v6314_v23   ;;  %1279 = vperm.xlu0 %6123, %v1103_v24   ;;  %v1046_v24 = vmax.f32 %v992_v13, 0.0 }
  0x4e   : > { %1139 = vperm.xlu2 %6125, %v6323_v25  }
  0x4f   : > { %1284 = vperm.xlu1 %6124, %v1104_v26   ;;  %1209 = vperm.xlu0 %6123, %v1089_v27   ;;  %v946_v26 = vmul.f32 %v6372_v38, %v5815_v14  ;;  %v917_v27 = vmul.f32 %v6372_v38, %v5758_v16  ;;  %v6542_v14 = vld [vmem:[%s6354_s28 + $0x38] sm:$0xff]   ;;  %v5814_v16 = vunpack.c.l.bf16 %v6466_v7  ;;  %v6554_v7 = vld [vmem:[%s8124_s4 + $0x40] sm:$0xff] }
  0x51   : > { %v1004_v33 = vadd.f32 %v6402_v45, %v946_v26  ;;  %v975_v35 = vadd.f32 %v6402_v45, %v917_v27 }
  0x53   : > { %v1058_v46 = vmax.f32 %v1004_v33, 0.0  ;;  %v1029_v48 = vmax.f32 %v975_v35, 0.0  ;;  %v945_v33 = vmul.f32 %v6372_v38, %v5814_v16 }
  0x56   : > { %1289 = vperm.xlu2 %6125, %v1105_v28   ;;  %v931_v28 = vmul.f32 %v6372_v38, %v5786_v17 }
  0x57   : > { %1214 = vperm.xlu1 %6124, %v1090_v31   ;;  %1344 = vperm.xlu0 %6123, %v1116_v32   ;;  %v5759_v31 = vunpack.c.h.bf16 %v5997_v8  ;;  %v1109_v8 = vld [vmem:[%s8124_s4 + $0x120] sm:$0xff] }
  0x58   : > { %v989_v36 = vadd.f32 %v6402_v45, %v931_v28 }
  0x59   : > { %v918_v43 = vmul.f32 %v6372_v38, %v5759_v31  ;;  %v1110_v31 = vld [vmem:[%s8124_s4 + $0x128] sm:$0xff] }
  0x5b   : > { %v976_v57 = vadd.f32 %v6402_v45, %v918_v43  ;;  %v1003_v43 = vadd.f32 %v6402_v45, %v945_v33 }
  0x5e   : > { %1219 = vperm.xlu2 %6125, %v1091_v37   ;;  %v5787_v37 = vunpack.c.h.bf16 %v6004_v9 }
  0x5f   : > { %1349 = vperm.xlu1 %6124, %v1117_v40   ;;  %1144 = vperm.xlu0 %6123, %v6389_v41   ;;  %v1120_v40 = vld [vmem:[%s8124_s4 + $0x178] sm:$0xff] }
  0x60   : > { %v932_v51 = vmul.f32 %v6372_v38, %v5787_v37 }
  0x66   : > { %1354 = vperm.xlu2 %6125, %v1118_v50   ;;  %v1043_v50 = vmax.f32 %v989_v36, 0.0 }
  0x67   : > { %1149 = vperm.xlu1 %6124, %v6423_v52   ;;  %1294 = vperm.xlu0 %6123, %v1106_v53   ;;  %v6515_v53 = vld [vmem:[%s6354_s28 + $0x30] sm:$0xff]  }
  0x68   : > { %v1260_v60 = vpop.permute.xlu2 %1259  ;;  %v5762_v62 = vunpack.c.l.bf16 %v6515_v53 }
  0x69   : > { %v1423_v61 = vmul.f32 %v1260_v60, %v1045_v54  ;;  %v6518_v54 = vld [vmem:[%s6354_s28 + $0x70] sm:$0xff]  }
  0x6a   : > { %v5795_v63 = vunpack.c.h.bf16 %v6518_v54  ;;  %v919_v10 = vmul.f32 %v6372_v38, %v5762_v62 }
  0x6b   : > { %1477 = vst [vmem:[#allocation2 + $0x100] sm:$0xff] %v1423_v61  ;;  %v740_v61 = vadd.f32 %v6432_v56, %v730_v47 }
  0x6d   : > { %v746_v9 = vmax.f32 %v740_v61, 0.0  ;;  %v6578_v61 = vld [vmem:[%s8124_s4 + $0x48] sm:$0xff] }
  0x6e   : > { %1154 = vperm.xlu2 %6125, %v6449_v0  }
  0x6f   : > { %1299 = vperm.xlu1 %6124, %v1107_v2   ;;  %1224 = vperm.xlu0 %6123, %v1092_v3   ;;  %v990_v3 = vadd.f32 %v6402_v45, %v932_v51  ;;  %v5794_v51 = vunpack.c.l.bf16 %v6518_v54  ;;  %v1096_v54 = vld [vmem:[%s8124_s4 + $0xb8] sm:$0xff] }
  0x70   : > { %v766_v11 = vpop.permute.xlu2 %765 }
  0x71   : > { %v785_v12 = vmul.f32 %v766_v11, %v743_v4  ;;  %v5731_v4 = vunpack.c.h.bf16 %v6396_v44  ;;  %v936_v44 = vmul.f32 %v6372_v38, %v5795_v63  ;;  %v1030_v11 = vmax.f32 %v976_v57, 0.0 }
  0x72   : > { %v935_v63 = vmul.f32 %v6372_v38, %v5794_v51 }
  0x73   : > { %791 = vst [vmem:[#allocation2 + $0x10] sm:$0xff] %v785_v12  ;;  %v1044_v12 = vmax.f32 %v990_v3, 0.0  ;;  %v728_v13 = vmul.f32 %v6412_v49, %v5731_v4  ;;  %v1057_v3 = vmax.f32 %v1003_v43, 0.0  ;;  %v3128_v43 = vld [vmem:[%s8128_s8 + $0x278] sm:$0xff] }
  0x74   : > { %3909 = vmatpush.msrb.mxu0 %v3128_v43 }
  0x75   : > { %v738_v28 = vadd.f32 %v6432_v56, %v728_v13 }
  0x76   : > { %1304 = vperm.xlu2 %6125, %v1108_v18  }
  0x77   : > { %1229 = vperm.xlu1 %6124, %v1093_v20   ;;  %1359 = vperm.xlu0 %6123, %v1119_v22   ;;  %v977_v20 = vadd.f32 %v6402_v45, %v919_v10  ;;  %v994_v22 = vadd.f32 %v6402_v45, %v936_v44  ;;  %v744_v36 = vmax.f32 %v738_v28, 0.0  ;;  %v6600_v10 = vld [vmem:[%s6354_s28 + $0xa0] sm:$0xff]   ;;  %v3095_v44 = vld [vmem:[%s8128_s8 + $0x170] sm:$0xff] }
  0x78   : > { %v1265_v30 = vpop.permute.xlu2 %1264  ;;  %v1125_v28 = vld [vmem:[%s8124_s4 + $0x1a0] sm:$0xff] }
  0x79   : > { %v1424_v32 = vmul.f32 %v1265_v30, %v1046_v24  ;;  %v5767_v24 = vunpack.c.h.bf16 %v6542_v14  ;;  %v5734_v30 = vunpack.c.l.bf16 %v6494_v29  ;;  %v1048_v34 = vmax.f32 %v994_v22, 0.0 }
  0x7a   : > { %v1031_v35 = vmax.f32 %v977_v20, 0.0 }
  0x7b   : > { %1478 = vst [vmem:[#allocation2 + $0x108] sm:$0xff] %v1424_v32  ;;  %v1095_v32 = vld [vmem:[%s8124_s4 + $0xb0] sm:$0xff]  ;;  %v922_v29 = vmul.f32 %v6372_v38, %v5767_v24  ;;  %v729_v37 = vmul.f32 %v6412_v49, %v5734_v30 }
  0x7d   : > { %v739_v49 = vadd.f32 %v6432_v56, %v729_v37  ;;  %v1122_v56 = vld [vmem:[%s8124_s4 + $0x188] sm:$0xff] }
  0x7e   : > { %1234 = vperm.xlu2 %6125, %v1094_v39   ;;  %v6567_v39 = vld [vmem:[%s6354_s28 + $0xa8] sm:$0xff]  }
  0x7f   : > { %1364 = vperm.xlu1 %6124, %v1120_v40   ;;  %1159 = vperm.xlu0 %6123, %v6509_v42   ;;  %v745_v4 = vmax.f32 %v739_v49, 0.0 }
  0x80   : > { %v1325_v55 = vpop.permute.xlu2 %1324 }
  0x81   : > { %v1180_v58 = vpop.permute.xlu1 %1179  ;;  %v1250_v59 = vpop.permute.xlu0 %1249  ;;  %v1436_v60 = vmul.f32 %v1325_v55, %v1058_v46  ;;  %v5822_v55 = vunpack.c.l.bf16 %v6567_v39 }
  0x82   : > { %v1407_v1 = vmul.f32 %v1180_v58, %v1029_v48  ;;  %v1421_v2 = vmul.f32 %v1250_v59, %v1043_v50  ;;  %v980_v50 = vadd.f32 %v6402_v45, %v922_v29  ;;  %v5763_v59 = vunpack.c.h.bf16 %v6515_v53 }
  0x83   : > { %1490 = vst [vmem:[#allocation2 + $0x168] sm:$0xff] %v1436_v60 }
  0x84   : > { %1461 = vst [vmem:[#allocation2 + $0x80] sm:$0xff] %v1407_v1  ;;  %v1034_v53 = vmax.f32 %v980_v50, 0.0  ;;  %v949_v1 = vmul.f32 %v6372_v38, %v5822_v55 }
  0x85   : > { %1475 = vst [vmem:[#allocation2 + $0xf0] sm:$0xff] %v1421_v2  ;;  %v3096_v2 = vld [vmem:[%s8128_s8 + $0x178] sm:$0xff] }
  0x86   : > { %1369 = vperm.xlu2 %6125, %v1121_v5   ;;  %v920_v5 = vmul.f32 %v6372_v38, %v5763_v59  ;;  %3551 = vmatpush.msrb.mxu2 %v3096_v2  ;;  %v5819_v59 = vunpack.c.h.bf16 %v6600_v10  ;;  %v748_v2 = vld [vmem:[%s8123_s3 + $0x8] sm:$0xff] }
  0x87   : > { %1164 = vperm.xlu1 %6124, %v6533_v6   ;;  %1309 = vperm.xlu0 %6123, %v1109_v8   ;;  %v6594_v8 = vld [vmem:[%s6354_s28 + $0x8] sm:$0xff]  }
  0x88   : > { %v781_v15 = vpop.permute.xlu2 %780  ;;  %3552 = vmatpush.msrb.mxu2 %v3095_v44  ;;  %v978_v24 = vadd.f32 %v6402_v45, %v920_v5  ;;  %v747_v5 = vld [vmem:[%s8123_s3] sm:$0xff] }
  0x89   : > { %v1185_v17 = vpop.permute.xlu1 %1184  ;;  %v1255_v18 = vpop.permute.xlu0 %1254  ;;  %v788_v19 = vmul.f32 %v781_v15, %v746_v9  ;;  %v3080_v9 = vld [vmem:[%s8128_s8 + $0xf8] sm:$0xff] }
  0x8a   : > { %v1408_v26 = vmul.f32 %v1185_v17, %v1030_v11  ;;  %v1422_v27 = vmul.f32 %v1255_v18, %v1044_v12  ;;  %v5766_v12 = vunpack.c.l.bf16 %v6542_v14  ;;  %3372 = vmatpush.msrb.mxu1 %v3080_v9  ;;  %v993_v17 = vadd.f32 %v6402_v45, %v935_v63  ;;  %v1124_v14 = vld [vmem:[%s8124_s4 + $0x198] sm:$0xff]  ;;  %v1621_v63 = vld [vmem:[#allocation2 + $0x107] sm:$0xff] }
  0x8b   : > { %794 = vst [vmem:[#allocation2 + $0x28] sm:$0xff] %v788_v19  ;;  %v1007_v18 = vadd.f32 %v6402_v45, %v949_v1  ;;  %v5742_v19 = vunpack.c.l.bf16 %v6594_v8 }
  0x8c   : > { %1462 = vst [vmem:[#allocation2 + $0x88] sm:$0xff] %v1408_v26  ;;  %v5818_v26 = vunpack.c.l.bf16 %v6600_v10  ;;  %v921_v33 = vmul.f32 %v6372_v38, %v5766_v12  ;;  %v948_v10 = vmul.f32 %v6372_v38, %v5819_v59  ;;  %v3127_v12 = vld [vmem:[%s8128_s8 + $0x270] sm:$0xff] }
  0x8d   : > { %1476 = vst [vmem:[#allocation2 + $0xf8] sm:$0xff] %v1422_v27  ;;  %v909_v29 = vmul.f32 %v6372_v38, %v5742_v19  ;;  %3910 = vmatpush.msrb.mxu0 %v3127_v12  ;;  %v3093_v19 = vld [vmem:[%s8128_s8 + $0x160] sm:$0xff] }
  0x8e   : > { %1169 = vperm.xlu2 %6125, %v6554_v7   ;;  %v947_v37 = vmul.f32 %v6372_v38, %v5818_v26  ;;  %v979_v51 = vadd.f32 %v6402_v45, %v921_v33 }
  0x8f   : > { %1314 = vperm.xlu1 %6124, %v1110_v31   ;;  %1239 = vperm.xlu0 %6123, %v1095_v32   ;;  %v1123_v32 = vld [vmem:[%s8124_s4 + $0x190] sm:$0xff]  ;;  %v967_v49 = vadd.f32 %v6402_v45, %v909_v29 }
  0x90   : > { %v1275_v40 = vpop.permute.xlu2 %1274 }
  0x91   : > { %v1190_v46 = vpop.permute.xlu1 %1189  ;;  %v771_v47 = vpop.permute.xlu0 %770  ;;  %v1426_v48 = vmul.f32 %v1275_v40, %v1048_v34  ;;  %v1061_v34 = vmax.f32 %v1007_v18, 0.0  ;;  %v6624_v40 = vld [vmem:[%s6354_s28 + $0x80] sm:$0xff]   ;;  %v1021_v9 = vmax.f32 %v967_v49, 0.0  ;;  %v3112_v18 = vld [vmem:[%s8128_s8 + $0x1f8] sm:$0xff] }
  0x92   : > { %v1409_v57 = vmul.f32 %v1190_v46, %v1031_v35  ;;  %v786_v58 = vmul.f32 %v771_v47, %v744_v36  ;;  %v1047_v35 = vmax.f32 %v993_v17, 0.0  ;;  %v1032_v36 = vmax.f32 %v978_v24, 0.0  ;;  %v3079_v46 = vld [vmem:[%s8128_s8 + $0xf0] sm:$0xff]  ;;  %v6633_v47 = vld [vmem:[%s6354_s28] sm:$0xff]   ;;  %v3078_v17 = vld [vmem:[%s8128_s8 + $0xe8] sm:$0xff]  ;;  %3730 = vmatpush.msrb.mxu3 %v3112_v18 }
  0x93   : > { %1480 = vst [vmem:[#allocation2 + $0x118] sm:$0xff] %v1426_v48  ;;  %v1605_v60 = vld [vmem:[#allocation2 + $0x87] sm:$0xff]  ;;  %3373 = vmatpush.msrb.mxu1 %v3079_v46  ;;  %v5739_v24 = vunpack.c.h.bf16 %v6633_v47 }
  0x94   : > { %1463 = vst [vmem:[#allocation2 + $0x90] sm:$0xff] %v1409_v57  ;;  %3251 = vmatmul.f32.vlgmr.msra.gmra.mxu1 %v1605_v60  ;;  %v1619_v62 = vld [vmem:[#allocation2 + $0xf7] sm:$0xff]  ;;  %v1620_v31 = vld [vmem:[#allocation2 + $0xff] sm:$0xff]  ;;  %v3094_v48 = vld [vmem:[%s8128_s8 + $0x168] sm:$0xff]  ;;  %v5802_v60 = vunpack.c.l.bf16 %v6624_v40 }
  0x95   : > { %792 = vst [vmem:[#allocation2 + $0x18] sm:$0xff] %v786_v58  ;;  %3293 = vmatmul.f32.vlgmr.msra.gmra.mxu2 %v1619_v62  ;;  %3374 = vmatpush.msrb.mxu1 %v3078_v17  ;;  %v5719_v18 = vld [vmem:[%s8125_s5 + $0x1a8] sm:$0xff] }
  0x96   : > { %1174 = vperm.xlu2 %6125, %v6578_v61   ;;  %3553 = vmatpush.msrb.mxu2 %v3094_v48  ;;  %v939_v44 = vmul.f32 %v6372_v38, %v5802_v60  ;;  %v908_v48 = vmul.f32 %v6372_v38, %v5739_v24 }
  0x97   : > { %1244 = vperm.xlu1 %6124, %v1096_v54   ;;  %1374 = vperm.xlu0 %6123, %v1122_v56   ;;  %v1005_v56 = vadd.f32 %v6402_v45, %v947_v37  ;;  %v5716_v37 = vld [vmem:[%s8125_s5 + $0x190] sm:$0xff] }
  0x98   : > { %v1205_v11 = vpop.permute.xlu2 %1204  ;;  %3554 = vmatpush.msrb.mxu2 %v3093_v19 }
  0x99   : > { %v1320_v13 = vpop.permute.xlu1 %1319  ;;  %v776_v15 = vpop.permute.xlu0 %775  ;;  %v1412_v16 = vmul.f32 %v1205_v11, %v1034_v53  ;;  %v5738_v53 = vunpack.c.l.bf16 %v6633_v47  ;;  %v6656_v11 = vld [vmem:[%s6354_s28 + $0x48] sm:$0xff]  }
  0x9a   : > { %v1435_v20 = vmul.f32 %v1320_v13, %v1057_v3  ;;  %v787_v22 = vmul.f32 %v776_v15, %v745_v4  ;;  %v1126_v4 = vld [vmem:[%s8124_s4 + $0x1a8] sm:$0xff]  ;;  %v1033_v13 = vmax.f32 %v979_v51, 0.0  ;;  %v1059_v15 = vmax.f32 %v1005_v56, 0.0  ;;  %v3092_v56 = vld [vmem:[%s8128_s8 + $0x158] sm:$0xff] }
  0x9b   : > { %1466 = vst [vmem:[#allocation2 + $0xa8] sm:$0xff] %v1412_v16  ;;  %v1606_v27 = vld [vmem:[#allocation2 + $0x8f] sm:$0xff]  ;;  %v907_v16 = vmul.f32 %v6372_v38, %v5738_v53  ;;  %3555 = vmatpush.msrb.mxu2 %v3092_v56 }
  0x9c   : > { %1489 = vst [vmem:[#allocation2 + $0x160] sm:$0xff] %v1435_v20  ;;  %v1591_v30 = vld [vmem:[#allocation2 + $0x17] sm:$0xff]  ;;  %3254 = vmatmul.f32.gmra.mxu1 %v1606_v27  ;;  %v5715_v47 = vld [vmem:[%s8125_s5 + $0x188] sm:$0xff] }
  0x9d   : > { %793 = vst [vmem:[#allocation2 + $0x20] sm:$0xff] %v787_v22  ;;  %3209 = vmatmul.f32.vlgmr.msra.gmra.mxu0 %v1591_v30  ;;  %3296 = vmatmul.f32.gmra.mxu2 %v1620_v31  ;;  %v6672_v20 = vld [vmem:[%s6354_s28 + $0x78] sm:$0xff]   ;;  %v997_v30 = vadd.f32 %v6402_v45, %v939_v44  ;;  %v5774_v31 = vunpack.c.l.bf16 %v6656_v11  ;;  %v3110_v53 = vld [vmem:[%s8128_s8 + $0x1e8] sm:$0xff] }
  0x9e   : > { %1389 = vperm.xlu2 %6125, %v1125_v28   ;;  %v1006_v28 = vadd.f32 %v6402_v45, %v948_v10  ;;  %v5798_v29 = vunpack.c.l.bf16 %v6672_v20 }
  0x9f   : > { %1384 = vperm.xlu1 %6124, %v1124_v14   ;;  %1379 = vperm.xlu0 %6123, %v1123_v32   ;;  %v925_v51 = vmul.f32 %v6372_v38, %v5774_v31 }
  0xa0   : > { %v1340_v50 = vpop.permute.xlu2 %1339  ;;  %v1060_v49 = vmax.f32 %v1006_v28, 0.0  ;;  %v937_v60 = vmul.f32 %v6372_v38, %v5798_v29  ;;  %v3109_v29 = vld [vmem:[%s8128_s8 + $0x1e0] sm:$0xff] }
  0xa1   : > { %v1270_v55 = vpop.permute.xlu1 %1269  ;;  %v1195_v57 = vpop.permute.xlu0 %1194  ;;  %v1439_v58 = vmul.f32 %v1340_v50, %v1061_v34  ;;  %v965_v34 = vadd.f32 %v6402_v45, %v907_v16  ;;  %v1051_v50 = vmax.f32 %v997_v30, 0.0  ;;  %v983_v10 = vadd.f32 %v6402_v45, %v925_v51  ;;  %v3076_v30 = vld [vmem:[%s8128_s8 + $0xd8] sm:$0xff] }
  0xa2   : > { %v1425_v62 = vmul.f32 %v1270_v55, %v1047_v35  ;;  %v1410_v54 = vmul.f32 %v1195_v57, %v1032_v36  ;;  %v5714_v36 = vld [vmem:[%s8125_s5 + $0x180] sm:$0xff]  ;;  %v3111_v57 = vld [vmem:[%s8128_s8 + $0x1f0] sm:$0xff]  ;;  %v995_v16 = vadd.f32 %v6402_v45, %v937_v60  ;;  %v5823_v60 = vunpack.c.h.bf16 %v6567_v39 }
  0xa3   : > { %1493 = vst [vmem:[#allocation2 + $0x180] sm:$0xff] %v1439_v58  ;;  %v1633_v1 = vld [vmem:[#allocation2 + $0x167] sm:$0xff]  ;;  %v1019_v59 = vmax.f32 %v965_v34, 0.0  ;;  %3731 = vmatpush.msrb.mxu3 %v3111_v57  ;;  %v3091_v34 = vld [vmem:[%s8128_s8 + $0x150] sm:$0xff] }
  0xa4   : > { %1479 = vst [vmem:[#allocation2 + $0x110] sm:$0xff] %v1425_v62  ;;  %v1592_v3 = vld [vmem:[#allocation2 + $0x1f] sm:$0xff]  ;;  %3335 = vmatmul.f32.vlgmr.msra.gmra.mxu3 %v1633_v1  ;;  %v1593_v43 = vld [vmem:[#allocation2 + $0x27] sm:$0xff]  ;;  %v6702_v62 = vld [vmem:[%s6354_s28 + $0xb0] sm:$0xff]   ;;  %3556 = vmatpush.msrb.mxu2 %v3091_v34 }
  0xa5   : > { %1464 = vst [vmem:[#allocation2 + $0x98] sm:$0xff] %v1410_v54  ;;  %3212 = vmatmul.f32.gmra.mxu0 %v1592_v3  ;;  %3299 = vmatmul.f32.gmra.mxu2 %v1621_v63  ;;  %v6692_v55 = vld [vmem:[%s6354_s28 + $0x40] sm:$0xff]   ;;  %v3126_v58 = vld [vmem:[%s8128_s8 + $0x268] sm:$0xff]  ;;  %v5799_v3 = vunpack.c.h.bf16 %v6672_v20  ;;  %v5827_v12 = vunpack.c.h.bf16 %v6702_v62  ;;  %v5717_v20 = vld [vmem:[%s8125_s5 + $0x198] sm:$0xff] }
  0xa6   : > { %760 = vperm.xlu2 %6125, %v748_v2   ;;  %v3077_v54 = vld [vmem:[%s8128_s8 + $0xe0] sm:$0xff]  ;;  %v966_v2 = vadd.f32 %v6402_v45, %v908_v48  ;;  %3911 = vmatpush.msrb.mxu0 %v3126_v58  ;;  %v5770_v44 = vunpack.c.l.bf16 %v6692_v55 }
  0xa7   : > { %1394 = vperm.xlu0 %6123, %v1126_v4   ;;  %755 = vperm.xlu1 %6124, %v747_v5   ;;  %v3125_v63 = vld [vmem:[%s8128_s8 + $0x260] sm:$0xff]  ;;  %v938_v24 = vmul.f32 %v6372_v38, %v5799_v3  ;;  %v952_v28 = vmul.f32 %v6372_v38, %v5827_v12  ;;  %v3074_v12 = vld [vmem:[%s8128_s8 + $0xc8] sm:$0xff] }
  0xa8   : > { %v1140_v22 = vpop.permute.xlu2 %1139  ;;  %3375 = vmatpush.msrb.mxu1 %v3077_v54  ;;  %3732 = vmatpush.msrb.mxu3 %v3110_v53  ;;  %v1020_v31 = vmax.f32 %v966_v2, 0.0  ;;  %v6760_v2 = vld [vmem:[%s6354_s28 + $0x88] sm:$0xff]  }
  0xa9   : > { %v1200_v26 = vpop.permute.xlu1 %1199  ;;  %v1330_v27 = vpop.permute.xlu0 %1329  ;;  %v1399_v14 = vmul.f32 %v1140_v22, %v1021_v9  ;;  %3912 = vmatpush.msrb.mxu0 %v3125_v63  ;;  %v5718_v22 = vld [vmem:[%s8125_s5 + $0x1a0] sm:$0xff]  ;;  %v1010_v51 = vadd.f32 %v6402_v45, %v952_v28 }
  0xaa   : > { %v1411_v32 = vmul.f32 %v1200_v26, %v1033_v13  ;;  %v1437_v33 = vmul.f32 %v1330_v27, %v1059_v15  ;;  %v1037_v27 = vmax.f32 %v983_v10, 0.0  ;;  %3376 = vmatpush.msrb.mxu1 %v3076_v30  ;;  %3733 = vmatpush.msrb.mxu3 %v3109_v29  ;;  %v3123_v10 = vld [vmem:[%s8128_s8 + $0x250] sm:$0xff] }
  0xab   : > { %1453 = vst [vmem:[#allocation2 + $0x40] sm:$0xff] %v1399_v14  ;;  %v1622_v35 = vld [vmem:[#allocation2 + $0x10f] sm:$0xff]  ;;  %v1623_v26 = vld [vmem:[#allocation2 + $0x117] sm:$0xff]  ;;  %v923_v14 = vmul.f32 %v6372_v38, %v5770_v44  ;;  %v1064_v63 = vmax.f32 %v1010_v51, 0.0  ;;  %v5826_v44 = vunpack.c.l.bf16 %v6702_v62 }
  0xac   : > { %1465 = vst [vmem:[#allocation2 + $0xa0] sm:$0xff] %v1411_v32  ;;  %v1607_v46 = vld [vmem:[#allocation2 + $0x97] sm:$0xff]  ;;  %v1049_v32 = vmax.f32 %v995_v16, 0.0 }
  0xad   : > { %1491 = vst [vmem:[#allocation2 + $0x170] sm:$0xff] %v1437_v33  ;;  %3215 = vmatmul.f32.gmra.mxu0 %v1593_v43  ;;  %3257 = vmatmul.f32.gmra.mxu1 %v1607_v46  ;;  %v6738_v33 = vld [vmem:[%s6354_s28 + $0x10] sm:$0xff]  }
  0xae   : > { %3302 = vmatmul.f32.gmra.mxu2 %v1622_v35  ;;  %1561 = vperm.xlu2 %6125, %v5716_v37   ;;  %v3124_v35 = vld [vmem:[%s8128_s8 + $0x258] sm:$0xff]  ;;  %v996_v37 = vadd.f32 %v6402_v45, %v938_v24  ;;  %v3075_v43 = vld [vmem:[%s8128_s8 + $0xd0] sm:$0xff]  ;;  %v5747_v57 = vunpack.c.h.bf16 %v6738_v33 }
  0xaf   : > { %1551 = vperm.xlu0 %6123, %v5714_v36   ;;  %1556 = vperm.xlu1 %6124, %v5715_v47   ;;  %v3107_v30 = vld [vmem:[%s8128_s8 + $0x1d0] sm:$0xff] }
  0xb0   : > { %v1290_v1 = vpop.permute.xlu2 %1289  ;;  %3913 = vmatpush.msrb.mxu0 %v3124_v35  ;;  %3377 = vmatpush.msrb.mxu1 %v3075_v43  ;;  %v6796_v29 = vld [vmem:[%s6354_s28 + $0x50] sm:$0xff]   ;;  %v3122_v35 = vld [vmem:[%s8128_s8 + $0x248] sm:$0xff] }
  0xb1   : > { %v1335_v4 = vpop.permute.xlu1 %1334  ;;  %v1130_v5 = vpop.permute.xlu0 %1129  ;;  %v1429_v9 = vmul.f32 %v1290_v1, %v1051_v50  ;;  %v981_v50 = vadd.f32 %v6402_v45, %v923_v14  ;;  %v912_v1 = vmul.f32 %v6372_v38, %v5747_v57  ;;  %v5746_v57 = vunpack.c.l.bf16 %v6738_v33  ;;  %v6822_v33 = vld [vmem:[%s6354_s28 + $0xc0] sm:$0xff]  }
  0xb2   : > { %v1438_v13 = vmul.f32 %v1335_v4, %v1060_v49  ;;  %v1397_v15 = vmul.f32 %v1130_v5, %v1019_v59  ;;  %v5771_v59 = vunpack.c.h.bf16 %v6692_v55  ;;  %v1050_v55 = vmax.f32 %v996_v37, 0.0  ;;  %v3090_v5 = vld [vmem:[%s8128_s8 + $0x148] sm:$0xff]  ;;  %3914 = vmatpush.msrb.mxu0 %v3123_v10  ;;  %3378 = vmatpush.msrb.mxu1 %v3074_v12  ;;  %v6848_v12 = vld [vmem:[%s8127_s7] ss:$0 sm:$0xff] }
  0xb3   : > { %1483 = vst [vmem:[#allocation2 + $0x130] sm:$0xff] %v1429_v9  ;;  %v1608_v17 = vld [vmem:[#allocation2 + $0x9f] sm:$0xff]  ;;  %v1609_v53 = vld [vmem:[#allocation2 + $0xa7] sm:$0xff]  ;;  %v1035_v3 = vmax.f32 %v981_v50, 0.0  ;;  %v950_v4 = vmul.f32 %v6372_v38, %v5823_v60  ;;  %3557 = vmatpush.msrb.mxu2 %v3090_v5  ;;  %v5806_v5 = vunpack.c.l.bf16 %v6760_v2 }
  0xb4   : > { %1492 = vst [vmem:[#allocation2 + $0x178] sm:$0xff] %v1438_v13  ;;  %v1634_v19 = vld [vmem:[#allocation2 + $0x16f] sm:$0xff]  ;;  %v924_v39 = vmul.f32 %v6372_v38, %v5771_v59  ;;  %v3108_v9 = vld [vmem:[%s8128_s8 + $0x1d8] sm:$0xff]  ;;  %3915 = vmatpush.msrb.mxu0 %v3122_v35 }
  0xb5   : > { %1451 = vst [vmem:[#allocation2 + $0x30] sm:$0xff] %v1397_v15  ;;  %3260 = vmatmul.f32.gmra.mxu1 %v1608_v17  ;;  %3338 = vmatmul.f32.gmra.mxu3 %v1634_v19  ;;  %v970_v17 = vadd.f32 %v6402_v45, %v912_v1 }
  0xb6   : > { %3305 = vmatmul.f32.gmra.mxu2 %v1623_v26  ;;  %1576 = vperm.xlu2 %6125, %v5719_v18   ;;  %v5743_v18 = vunpack.c.h.bf16 %v6594_v8  ;;  %v982_v62 = vadd.f32 %v6402_v45, %v924_v39  ;;  %v951_v26 = vmul.f32 %v6372_v38, %v5826_v44  ;;  %v3072_v39 = vld [vmem:[%s8128_s8 + $0xb8] sm:$0xff] }
  0xb7   : > { %1566 = vperm.xlu0 %6123, %v5717_v20   ;;  %1571 = vperm.xlu1 %6124, %v5718_v22   ;;  %v1008_v20 = vadd.f32 %v6402_v45, %v950_v4  ;;  %v3105_v4 = vld [vmem:[%s8128_s8 + $0x1c0] sm:$0xff] }
  0xb8   : > { %v1220_v36 = vpop.permute.xlu2 %1219  ;;  %3734 = vmatpush.msrb.mxu3 %v3108_v9  ;;  %v910_v14 = vmul.f32 %v6372_v38, %v5743_v18  ;;  %v1009_v37 = vadd.f32 %v6402_v45, %v951_v26  ;;  %v3087_v9 = vld [vmem:[%s8128_s8 + $0x130] sm:$0xff]  ;;  %v6865_v26 = vld [vmem:[%s6354_s28 + $0x20] sm:$0xff]  }
  0xb9   : > { %v1135_v46 = vpop.permute.xlu1 %1134  ;;  %v1280_v47 = vpop.permute.xlu0 %1279  ;;  %v1415_v48 = vmul.f32 %v1220_v36, %v1037_v27  ;;  %v1024_v27 = vmax.f32 %v970_v17, 0.0  ;;  %v1062_v34 = vmax.f32 %v1008_v20, 0.0 }
  0xba   : > { %v1398_v58 = vmul.f32 %v1135_v46, %v1020_v31  ;;  %v1427_v49 = vmul.f32 %v1280_v47, %v1049_v32  ;;  %v3089_v31 = vld [vmem:[%s8128_s8 + $0x140] sm:$0xff]  ;;  %v1036_v32 = vmax.f32 %v982_v62, 0.0  ;;  %3735 = vmatpush.msrb.mxu3 %v3107_v30  ;;  %v3071_v30 = vld [vmem:[%s8128_s8 + $0xb0] sm:$0xff] }
  0xbb   : > { %1469 = vst [vmem:[#allocation2 + $0xc0] sm:$0xff] %v1415_v48  ;;  %v1635_v54 = vld [vmem:[#allocation2 + $0x177] sm:$0xff]  ;;  %v1636_v8 = vld [vmem:[#allocation2 + $0x17f] sm:$0xff]  ;;  %3558 = vmatpush.msrb.mxu2 %v3089_v31  ;;  %v968_v48 = vadd.f32 %v6402_v45, %v910_v14 }
  0xbc   : > { %1452 = vst [vmem:[#allocation2 + $0x38] sm:$0xff] %v1398_v58  ;;  %v1594_v56 = vld [vmem:[#allocation2 + $0x2f] sm:$0xff]  ;;  %v5803_v58 = vunpack.c.h.bf16 %v6624_v40  ;;  %v3088_v40 = vld [vmem:[%s8128_s8 + $0x138] sm:$0xff] }
  0xbd   : > { %1481 = vst [vmem:[#allocation2 + $0x120] sm:$0xff] %v1427_v49  ;;  %3218 = vmatmul.f32.gmra.mxu0 %v1594_v56  ;;  %3263 = vmatmul.f32.gmra.mxu1 %v1609_v53  ;;  %v1063_v53 = vmax.f32 %v1009_v37, 0.0  ;;  %v3104_v14 = vld [vmem:[%s8128_s8 + $0x1b8] sm:$0xff] }
  0xbe   : > { %3341 = vmatmul.f32.gmra.mxu3 %v1635_v54  ;;  %4870 = vperm.xlu2 %6125, %v6323_v25   ;;  %v6818_v54 = vld [vmem:[%s8126_s6] ss:$0 sm:$0xff]  ;;  %v6878_v31 = vld [vmem:[%s6354_s28 + $0xb8] sm:$0xff]  }
  0xbf   : > { %4860 = vperm.xlu0 %6123, %v6305_v21   ;;  %4865 = vperm.xlu1 %6124, %v6314_v23   ;;  %v5807_v21 = vunpack.c.h.bf16 %v6760_v2  ;;  %v911_v1 = vmul.f32 %v6818_v54, %v5746_v57  ;;  %v5834_v2 = vunpack.c.l.bf16 %v6822_v33 }
  0xc0   : > { %v1355_v25 = vpop.permute.xlu2 %1354  ;;  %3559 = vmatpush.msrb.mxu2 %v3088_v40 }
  0xc1   : > { %v1285_v13 = vpop.permute.xlu1 %1284  ;;  %v1210_v15 = vpop.permute.xlu0 %1209  ;;  %v1442_v16 = vmul.f32 %v1355_v25, %v1064_v63  ;;  %v942_v28 = vmul.f32 %v6372_v38, %v5807_v21  ;;  %v3073_v38 = vld [vmem:[%s8128_s8 + $0xc0] sm:$0xff]  ;;  %v1022_v63 = vmax.f32 %v968_v48, 0.0  ;;  %v4815_v21 = vld [vmem:[%s8124_s4 + $0x58] sm:$0xff]  ;;  %v5778_v48 = vunpack.c.l.bf16 %v6796_v29 }
  0xc2   : > { %v1428_v23 = vmul.f32 %v1285_v13, %v1050_v55  ;;  %v1413_v19 = vmul.f32 %v1210_v15, %v1035_v3  ;;  %3379 = vmatpush.msrb.mxu1 %v3073_v38  ;;  %v940_v55 = vmul.f32 %v6818_v54, %v5803_v58  ;;  %v3121_v3 = vld [vmem:[%s8128_s8 + $0x240] sm:$0xff]  ;;  %3560 = vmatpush.msrb.mxu2 %v3087_v9 }
  0xc3   : > { %1496 = vst [vmem:[#allocation2 + $0x198] sm:$0xff] %v1442_v16  ;;  %v1595_v22 = vld [vmem:[#allocation2 + $0x37] sm:$0xff]  ;;  %v1000_v50 = vadd.f32 %v6402_v45, %v942_v28  ;;  %v1596_v59 = vld [vmem:[#allocation2 + $0x3f] sm:$0xff]  ;;  %3916 = vmatpush.msrb.mxu0 %v3121_v3  ;;  %v969_v16 = vadd.f32 %v6848_v12, %v911_v1 }
  0xc4   : > { %1482 = vst [vmem:[#allocation2 + $0x128] sm:$0xff] %v1428_v23  ;;  %v1624_v24 = vld [vmem:[#allocation2 + $0x11f] sm:$0xff]  ;;  %3380 = vmatpush.msrb.mxu1 %v3072_v39  ;;  %v998_v17 = vadd.f32 %v6848_v12, %v940_v55  ;;  %v4814_v23 = vld [vmem:[%s8124_s4 + $0x50] sm:$0xff]  ;;  %v3070_v55 = vld [vmem:[%s8128_s8 + $0xa8] sm:$0xff] }
  0xc5   : > { %1467 = vst [vmem:[#allocation2 + $0xb0] sm:$0xff] %v1413_v19  ;;  %3221 = vmatmul.f32.gmra.mxu0 %v1595_v22  ;;  %3308 = vmatmul.f32.gmra.mxu2 %v1624_v24  ;;  %v1054_v45 = vmax.f32 %v1000_v50, 0.0  ;;  %v941_v19 = vmul.f32 %v6818_v54, %v5806_v5  ;;  %v955_v24 = vmul.f32 %v6818_v54, %v5834_v2  ;;  %v3120_v28 = vld [vmem:[%s8128_s8 + $0x238] sm:$0xff]  ;;  %v5830_v50 = vunpack.c.l.bf16 %v6878_v31  ;;  %v3085_v3 = vld [vmem:[%s8128_s8 + $0x120] sm:$0xff]  ;;  %v3102_v39 = vld [vmem:[%s8128_s8 + $0x1a8] sm:$0xff] }
  0xc6   : > { %3344 = vmatmul.f32.gmra.mxu3 %v1636_v8  ;;  %4885 = vperm.xlu2 %6125, %v6449_v0   ;;  %v3106_v0 = vld [vmem:[%s8128_s8 + $0x1c8] sm:$0xff]  ;;  %v1023_v8 = vmax.f32 %v969_v16, 0.0  ;;  %v6911_v1 = vld [vmem:[%s6354_s28 + $0x18] sm:$0xff]  }
  0xc7   : > { %4875 = vperm.xlu0 %6123, %v6389_v41   ;;  %4880 = vperm.xlu1 %6124, %v6423_v52   ;;  %v5779_v41 = vunpack.c.h.bf16 %v6796_v29  ;;  %v999_v35 = vadd.f32 %v6848_v12, %v941_v19  ;;  %v4817_v29 = vld [vmem:[%s8124_s4 + $0x68] sm:$0xff] }
  0xc8   : > { %v1155_v36 = vpop.permute.xlu2 %1154  ;;  %3736 = vmatpush.msrb.mxu3 %v3106_v0  ;;  %3917 = vmatpush.msrb.mxu0 %v3120_v28  ;;  %v3084_v28 = vld [vmem:[%s8128_s8 + $0x118] sm:$0xff] }
  0xc9   : > { %v1215_v43 = vpop.permute.xlu1 %1214  ;;  %v1345_v46 = vpop.permute.xlu0 %1344  ;;  %v1402_v47 = vmul.f32 %v1155_v36, %v1024_v27  ;;  %v928_v56 = vmul.f32 %v6818_v54, %v5779_v41  ;;  %v1052_v27 = vmax.f32 %v998_v17, 0.0  ;;  %3381 = vmatpush.msrb.mxu1 %v3071_v30  ;;  %v4821_v17 = vld [vmem:[%s8124_s4 + $0x88] sm:$0xff]  ;;  %v3101_v30 = vld [vmem:[%s8128_s8 + $0x1a0] sm:$0xff] }
  0xca   : > { %v1414_v52 = vmul.f32 %v1215_v43, %v1036_v32  ;;  %v1440_v51 = vmul.f32 %v1345_v46, %v1062_v34  ;;  %3737 = vmatpush.msrb.mxu3 %v3105_v4  ;;  %v3086_v32 = vld [vmem:[%s8128_s8 + $0x128] sm:$0xff]  ;;  %v1013_v43 = vadd.f32 %v6848_v12, %v955_v24 }
  0xcb   : > { %1456 = vst [vmem:[#allocation2 + $0x58] sm:$0xff] %v1402_v47  ;;  %v1625_v49 = vld [vmem:[#allocation2 + $0x127] sm:$0xff]  ;;  %v1626_v62 = vld [vmem:[#allocation2 + $0x12f] sm:$0xff]  ;;  %3561 = vmatpush.msrb.mxu2 %v3086_v32  ;;  %3382 = vmatpush.msrb.mxu1 %v3070_v55  ;;  %v3100_v55 = vld [vmem:[%s8128_s8 + $0x198] sm:$0xff] }
  0xcc   : > { %1468 = vst [vmem:[#allocation2 + $0xb8] sm:$0xff] %v1414_v52  ;;  %v1610_v60 = vld [vmem:[#allocation2 + $0xaf] sm:$0xff]  ;;  %3738 = vmatpush.msrb.mxu3 %v3104_v14  ;;  %v4816_v52 = vld [vmem:[%s8124_s4 + $0x60] sm:$0xff] }
  0xcd   : > { %1494 = vst [vmem:[#allocation2 + $0x188] sm:$0xff] %v1440_v51  ;;  %3224 = vmatmul.f32.gmra.mxu0 %v1596_v59  ;;  %3266 = vmatmul.f32.gmra.mxu1 %v1610_v60  ;;  %v4818_v51 = vld [vmem:[%s8124_s4 + $0x70] sm:$0xff]  ;;  %v3118_v24 = vld [vmem:[%s8128_s8 + $0x228] sm:$0xff]  ;;  %v3117_v32 = vld [vmem:[%s8128_s8 + $0x220] sm:$0xff] }
  0xce   : > { %3311 = vmatmul.f32.gmra.mxu2 %v1625_v49  ;;  %4900 = vperm.xlu2 %6125, %v6554_v7   ;;  %v1067_v49 = vmax.f32 %v1013_v43, 0.0  ;;  %v3103_v60 = vld [vmem:[%s8128_s8 + $0x1b0] sm:$0xff] }
  0xcf   : > { %4890 = vperm.xlu0 %6123, %v6509_v42   ;;  %4895 = vperm.xlu1 %6124, %v6533_v6   ;;  %v986_v42 = vadd.f32 %v6848_v12, %v928_v56  ;;  %v5775_v6 = vunpack.c.h.bf16 %v6656_v11  ;;  %v1053_v56 = vmax.f32 %v999_v35, 0.0  ;;  %v6950_v14 = vld [vmem:[%s6354_s28 + $0xd0] sm:$0xff]  }
  0xd0   : > { %v1305_v7 = vpop.permute.xlu2 %1304  ;;  %3739 = vmatpush.msrb.mxu3 %v3103_v60  ;;  %3562 = vmatpush.msrb.mxu2 %v3085_v3  ;;  %v3083_v3 = vld [vmem:[%s8128_s8 + $0x110] sm:$0xff] }
  0xd1   : > { %v1350_v10 = vpop.permute.xlu1 %1349  ;;  %v1145_v25 = vpop.permute.xlu0 %1144  ;;  %v1432_v44 = vmul.f32 %v1305_v7, %v1054_v45  ;;  %v1040_v20 = vmax.f32 %v986_v42, 0.0  ;;  %v926_v22 = vmul.f32 %v6818_v54, %v5775_v6  ;;  %v3119_v45 = vld [vmem:[%s8128_s8 + $0x230] sm:$0xff]  ;;  %v5831_v7 = vunpack.c.h.bf16 %v6878_v31 }
  0xd2   : > { %v1441_v13 = vmul.f32 %v1350_v10, %v1063_v53  ;;  %v1400_v15 = vmul.f32 %v1145_v25, %v1022_v63  ;;  %v927_v53 = vmul.f32 %v6818_v54, %v5778_v48  ;;  %v953_v63 = vmul.f32 %v6818_v54, %v5830_v50  ;;  %3918 = vmatpush.msrb.mxu0 %v3119_v45  ;;  %v6959_v31 = vld [vmem:[%s6354_s28 + $0x90] sm:$0xff]   ;;  %v6987_v45 = vld [vmem:[%s6354_s28 + $0x58] sm:$0xff]  }
  0xd3   : > { %1486 = vst [vmem:[#allocation2 + $0x148] sm:$0xff] %v1432_v44  ;;  %v1611_v18 = vld [vmem:[#allocation2 + $0xb7] sm:$0xff]  ;;  %v984_v37 = vadd.f32 %v6848_v12, %v926_v22  ;;  %v1612_v58 = vld [vmem:[#allocation2 + $0xbf] sm:$0xff]  ;;  %v5750_v44 = vunpack.c.l.bf16 %v6911_v1  ;;  %v5755_v42 = vunpack.c.h.bf16 %v6865_v26  ;;  %3740 = vmatpush.msrb.mxu3 %v3102_v39  ;;  %3563 = vmatpush.msrb.mxu2 %v3084_v28  ;;  %v5751_v48 = vunpack.c.h.bf16 %v6911_v1  ;;  %v3082_v28 = vld [vmem:[%s8128_s8 + $0x108] sm:$0xff] }
  0xd4   : > { %1495 = vst [vmem:[#allocation2 + $0x190] sm:$0xff] %v1441_v13  ;;  %v1637_v11 = vld [vmem:[#allocation2 + $0x187] sm:$0xff]  ;;  %v985_v13 = vadd.f32 %v6848_v12, %v927_v53  ;;  %3919 = vmatpush.msrb.mxu0 %v3118_v24  ;;  %v5810_v50 = vunpack.c.l.bf16 %v6959_v31  ;;  %v3116_v39 = vld [vmem:[%s8128_s8 + $0x218] sm:$0xff] }
  0xd5   : > { %1454 = vst [vmem:[#allocation2 + $0x48] sm:$0xff] %v1400_v15  ;;  %3269 = vmatmul.f32.gmra.mxu1 %v1611_v18  ;;  %3347 = vmatmul.f32.gmra.mxu3 %v1637_v11  ;;  %v1038_v40 = vmax.f32 %v984_v37, 0.0  ;;  %v1011_v15 = vadd.f32 %v6848_v12, %v953_v63  ;;  %v4820_v11 = vld [vmem:[%s8124_s4 + $0x80] sm:$0xff]  ;;  %v916_v22 = vmul.f32 %v6818_v54, %v5755_v42  ;;  %v5782_v42 = vunpack.c.l.bf16 %v6987_v45  ;;  %v6135_v24 = vld [vmem:[%s8124_s4 + $0xb8] sm:$0xff] }
  0xd6   : > { %3314 = vmatmul.f32.gmra.mxu2 %v1626_v62  ;;  %4915 = vperm.xlu2 %6125, %v4815_v21   ;;  %v4819_v21 = vld [vmem:[%s8124_s4 + $0x78] sm:$0xff]  ;;  %v914_v63 = vmul.f32 %v6818_v54, %v5751_v48  ;;  %v943_v1 = vmul.f32 %v6818_v54, %v5810_v50  ;;  %v4828_v50 = vld [vmem:[%s8124_s4 + $0xc0] sm:$0xff] }
  0xd7   : > { %4905 = vperm.xlu0 %6123, %v6578_v61   ;;  %4910 = vperm.xlu1 %6124, %v4814_v23   ;;  %v5754_v61 = vunpack.c.l.bf16 %v6865_v26  ;;  %v954_v23 = vmul.f32 %v6818_v54, %v5831_v7  ;;  %v3069_v26 = vld [vmem:[%s8128_s8 + $0xa0] sm:$0xff]  ;;  %v974_v43 = vadd.f32 %v6848_v12, %v916_v22  ;;  %v5811_v7 = vunpack.c.h.bf16 %v6959_v31  ;;  %v3099_v22 = vld [vmem:[%s8128_s8 + $0x190] sm:$0xff] }
  0xd8   : > { %v1235_v34 = vpop.permute.xlu2 %1234  ;;  %3383 = vmatpush.msrb.mxu1 %v3069_v26  ;;  %3741 = vmatpush.msrb.mxu3 %v3101_v30  ;;  %v3115_v30 = vld [vmem:[%s8128_s8 + $0x210] sm:$0xff] }
  0xd9   : > { %v1150_v38 = vpop.permute.xlu1 %1149  ;;  %v1295_v0 = vpop.permute.xlu0 %1294  ;;  %v1418_v36 = vmul.f32 %v1235_v34, %v1040_v20  ;;  %v915_v59 = vmul.f32 %v6818_v54, %v5754_v61  ;;  %v913_v20 = vmul.f32 %v6818_v54, %v5750_v44  ;;  %v1012_v35 = vadd.f32 %v6848_v12, %v954_v23  ;;  %3920 = vmatpush.msrb.mxu0 %v3117_v32 }
  0xda   : > { %v1401_v46 = vmul.f32 %v1150_v38, %v1023_v8  ;;  %v1430_v47 = vmul.f32 %v1295_v0, %v1052_v27  ;;  %v1039_v8 = vmax.f32 %v985_v13, 0.0  ;;  %v1065_v27 = vmax.f32 %v1011_v15, 0.0  ;;  %3742 = vmatpush.msrb.mxu3 %v3100_v55  ;;  %3564 = vmatpush.msrb.mxu2 %v3083_v3  ;;  %v3097_v3 = vld [vmem:[%s8128_s8 + $0x180] sm:$0xff] }
  0xdb   : > { %1472 = vst [vmem:[#allocation2 + $0xd8] sm:$0xff] %v1418_v36  ;;  %v1638_v41 = vld [vmem:[#allocation2 + $0x18f] sm:$0xff]  ;;  %v973_v25 = vadd.f32 %v6848_v12, %v915_v59  ;;  %v1639_v19 = vld [vmem:[#allocation2 + $0x197] sm:$0xff]  ;;  %v971_v37 = vadd.f32 %v6848_v12, %v913_v20  ;;  %v5842_v61 = vunpack.c.l.bf16 %v6950_v14  ;;  %v1028_v59 = vmax.f32 %v974_v43, 0.0  ;;  %3921 = vmatpush.msrb.mxu0 %v3116_v39 }
  0xdc   : > { %1455 = vst [vmem:[#allocation2 + $0x50] sm:$0xff] %v1401_v46  ;;  %v6895_v57 = vld [vmem:[#allocation2 + $0x47] sm:$0xff]  ;;  %v972_v13 = vadd.f32 %v6848_v12, %v914_v63  ;;  %v1001_v15 = vadd.f32 %v6848_v12, %v943_v1  ;;  %v944_v23 = vmul.f32 %v6818_v54, %v5811_v7  ;;  %v929_v20 = vmul.f32 %v6818_v54, %v5782_v42 }
  0xdd   : > { %1484 = vst [vmem:[#allocation2 + $0x138] sm:$0xff] %v1430_v47  ;;  %3227 = vmatmul.f32.gmra.mxu0 %v6895_v57  ;;  %3272 = vmatmul.f32.gmra.mxu1 %v1612_v58  ;;  %v1027_v62 = vmax.f32 %v973_v25, 0.0  ;;  %v959_v60 = vmul.f32 %v6818_v54, %v5842_v61  ;;  %v1025_v53 = vmax.f32 %v971_v37, 0.0  ;;  %v7057_v61 = vld [vmem:[%s8126_s6] ss:$0 sm:$0xff]  ;;  %v3114_v39 = vld [vmem:[%s8128_s8 + $0x208] sm:$0xff] }
  0xde   : > { %3350 = vmatmul.f32.gmra.mxu3 %v1638_v41  ;;  %4930 = vperm.xlu2 %6125, %v4818_v51   ;;  %v4824_v51 = vld [vmem:[%s8124_s4 + $0xa0] sm:$0xff]  ;;  %v1026_v26 = vmax.f32 %v972_v13, 0.0  ;;  %v1002_v32 = vadd.f32 %v6848_v12, %v944_v23  ;;  %v987_v43 = vadd.f32 %v6848_v12, %v929_v20  ;;  %v4831_v23 = vld [vmem:[%s8124_s4 + $0xd8] sm:$0xff] }
  0xdf   : > { %4920 = vperm.xlu0 %6123, %v4816_v52   ;;  %4925 = vperm.xlu1 %6124, %v4817_v29   ;;  %v4822_v52 = vld [vmem:[%s8124_s4 + $0x90] sm:$0xff]  ;;  %v1017_v44 = vadd.f32 %v6848_v12, %v959_v60 }
  0xe0   : > { %v1370_v4 = vpop.permute.xlu2 %1369  ;;  %3743 = vmatpush.msrb.mxu3 %v3099_v22  ;;  %3565 = vmatpush.msrb.mxu2 %v3082_v28  ;;  %v1041_v63 = vmax.f32 %v987_v43, 0.0 }
  0xe1   : > { %v1300_v5 = vpop.permute.xlu1 %1299  ;;  %v1225_v9 = vpop.permute.xlu0 %1224  ;;  %v1445_v10 = vmul.f32 %v1370_v4, %v1067_v49  ;;  %v4823_v49 = vld [vmem:[%s8124_s4 + $0x98] sm:$0xff]  ;;  %3922 = vmatpush.msrb.mxu0 %v3115_v30 }
  0xe2   : > { %v1431_v6 = vmul.f32 %v1300_v5, %v1053_v56  ;;  %v1416_v2 = vmul.f32 %v1225_v9, %v1038_v40  ;;  %v3068_v56 = vld [vmem:[%s8128_s8 + $0x98] sm:$0xff]  ;;  %v1066_v40 = vmax.f32 %v1012_v35, 0.0  ;;  %v3067_v5 = vld [vmem:[%s8128_s8 + $0x90] sm:$0xff]  ;;  %v3098_v35 = vld [vmem:[%s8128_s8 + $0x188] sm:$0xff] }
  0xe3   : > { %1499 = vst [vmem:[#allocation2 + $0x1b0] sm:$0xff] %v1445_v10  ;;  %v6928_v16 = vld [vmem:[#allocation2 + $0x4f] sm:$0xff]  ;;  %v6979_v58 = vld [vmem:[#allocation2 + $0x57] sm:$0xff]  ;;  %3384 = vmatpush.msrb.mxu1 %v3068_v56  ;;  %3744 = vmatpush.msrb.mxu3 %v3098_v35 }
  0xe4   : > { %1485 = vst [vmem:[#allocation2 + $0x140] sm:$0xff] %v1431_v6  ;;  %v1627_v18 = vld [vmem:[#allocation2 + $0x137] sm:$0xff]  ;;  %v6017_v56 = vld [vmem:[%s6354_s28 + $0xc8] sm:$0xff]   ;;  %3923 = vmatpush.msrb.mxu0 %v3114_v39 }
  0xe5   : > { %1470 = vst [vmem:[#allocation2 + $0xc8] sm:$0xff] %v1416_v2  ;;  %3230 = vmatmul.f32.gmra.mxu0 %v6928_v16  ;;  %3317 = vmatmul.f32.gmra.mxu2 %v1627_v18  ;;  %v5838_v42 = vunpack.c.l.bf16 %v6017_v56 }
  0xe6   : > { %3353 = vmatmul.f32.gmra.mxu3 %v1639_v19  ;;  %4945 = vperm.xlu2 %6125, %v4821_v17  }
  0xe7   : > { %4935 = vperm.xlu0 %6123, %v4819_v21   ;;  %4940 = vperm.xlu1 %6124, %v4820_v11   ;;  %v4825_v21 = vld [vmem:[%s8124_s4 + $0xa8] sm:$0xff]  ;;  %v4826_v11 = vld [vmem:[%s8124_s4 + $0xb0] sm:$0xff] }
  0xe8   : > { %v1170_v34 = vpop.permute.xlu2 %1169  ;;  %3385 = vmatpush.msrb.mxu1 %v3067_v5  ;;  %v5839_v5 = vunpack.c.h.bf16 %v6017_v56  ;;  %3745 = vmatpush.msrb.mxu3 %v3097_v3 }
  0xe9   : > { %v1230_v38 = vpop.permute.xlu1 %1229  ;;  %v1360_v0 = vpop.permute.xlu0 %1359  ;;  %v6965_v36 = vmul.f32 %v1170_v34, %v1027_v62  ;;  %v1071_v62 = vmax.f32 %v1017_v44, 0.0  ;;  %v3066_v34 = vld [vmem:[%s8128_s8 + $0x88] sm:$0xff] }
  0xea   : > { %v1417_v46 = vmul.f32 %v1230_v38, %v1039_v8  ;;  %v1443_v47 = vmul.f32 %v1360_v0, %v1065_v27  ;;  %v1055_v8 = vmax.f32 %v1001_v15, 0.0  ;;  %v7038_v27 = vld [vmem:[%s7020_s15 + $0x8] sm:$0xff]   ;;  %3386 = vmatpush.msrb.mxu1 %v3066_v34 }
  0xeb   : > { %1459 = vst [vmem:[#allocation2 + $0x70] sm:$0xff] %v6965_v36  ;;  %v1628_v41 = vld [vmem:[#allocation2 + $0x13f] sm:$0xff]  ;;  %v1629_v19 = vld [vmem:[#allocation2 + $0x147] sm:$0xff] }
  0xec   : > { %1471 = vst [vmem:[#allocation2 + $0xd0] sm:$0xff] %v1417_v46  ;;  %v1613_v29 = vld [vmem:[#allocation2 + $0xc7] sm:$0xff]  ;;  %v5850_v46 = vunpack.c.l.bf16 %v7038_v27 }
  0xed   : > { %1497 = vst [vmem:[#allocation2 + $0x1a0] sm:$0xff] %v1443_v47  ;;  %3233 = vmatmul.f32.gmra.mxu0 %v6979_v58  ;;  %3275 = vmatmul.f32.gmra.mxu1 %v1613_v29  ;;  %v4830_v29 = vld [vmem:[%s8124_s4 + $0xd0] sm:$0xff] }
  0xee   : > { %3320 = vmatmul.f32.gmra.mxu2 %v1628_v41  ;;  %4960 = vperm.xlu2 %6125, %v4824_v51   ;;  %v5783_v41 = vunpack.c.h.bf16 %v6987_v45  ;;  %v1523_v45 = vmul.f32 %v7057_v61, %v5850_v46 }
  0xef   : > { %4950 = vperm.xlu0 %6123, %v4822_v52   ;;  %4955 = vperm.xlu1 %6124, %v4823_v49   ;;  %v5835_v52 = vunpack.c.h.bf16 %v6822_v33  ;;  %v4829_v49 = vld [vmem:[%s8124_s4 + $0xc8] sm:$0xff]  ;;  %v7079_v33 = vld [vmem:[%s8127_s7] ss:$0 sm:$0xff] }
  0xf0   : > { %v1175_v4 = vpop.permute.xlu2 %1174  ;;  %v930_v1 = vmul.f32 %v6818_v54, %v5783_v41  ;;  %v1533_v44 = vadd.f32 %v7079_v33, %v1523_v45 }
  0xf1   : > { %v1365_v9 = vpop.permute.xlu1 %1364  ;;  %v1160_v10 = vpop.permute.xlu0 %1159  ;;  %v7008_v25 = vmul.f32 %v1175_v4, %v1028_v59  ;;  %v956_v55 = vmul.f32 %v6818_v54, %v5835_v52  ;;  %v3065_v4 = vld [vmem:[%s8128_s8 + $0x80] sm:$0xff]  ;;  %v4834_v52 = vld [vmem:[%s8124_s4 + $0xf0] sm:$0xff] }
  0xf2   : > { %v1444_v6 = vmul.f32 %v1365_v9, %v1066_v40  ;;  %v7012_v2 = vmul.f32 %v1160_v10, %v1025_v53  ;;  %v3081_v40 = vld [vmem:[%s8128_s8 + $0x100] sm:$0xff]  ;;  %v1056_v53 = vmax.f32 %v1002_v32, 0.0  ;;  %3387 = vmatpush.msrb.mxu1 %v3065_v4  ;;  %v988_v15 = vadd.f32 %v6848_v12, %v930_v1  ;;  %v3144_v32 = vld [vmem:[%s8128_s8 + $0x2f8] sm:$0xff] }
  0xf3   : > { %1460 = vst [vmem:[#allocation2 + $0x78] sm:$0xff] %v7008_v25  ;;  %v1614_v17 = vld [vmem:[#allocation2 + $0xcf] sm:$0xff]  ;;  %v1615_v60 = vld [vmem:[#allocation2 + $0xd7] sm:$0xff]  ;;  %3566 = vmatpush.msrb.mxu2 %v3081_v40  ;;  %v1539_v22 = vmax.f32 %v1533_v44, 0.0  ;;  %v5845_v40 = vld [vmem:[%s7020_s15] sm:$0xff]  }
  0xf4   : > { %1498 = vst [vmem:[#allocation2 + $0x1a8] sm:$0xff] %v1444_v6  ;;  %v1640_v18 = vld [vmem:[#allocation2 + $0x19f] sm:$0xff]  ;;  %v1042_v28 = vmax.f32 %v988_v15, 0.0  ;;  %4088 = vmatpush.msra.mxu1 %v3144_v32  ;;  %v5846_v3 = vunpack.c.l.bf16 %v5845_v40  ;;  %v5847_v39 = vunpack.c.h.bf16 %v5845_v40 }
  0xf5   : > { %1457 = vst [vmem:[#allocation2 + $0x60] sm:$0xff] %v7012_v2  ;;  %3278 = vmatmul.f32.gmra.mxu1 %v1614_v17  ;;  %3356 = vmatmul.f32.gmra.mxu3 %v1640_v18  ;;  %v1014_v17 = vadd.f32 %v6848_v12, %v956_v55 }
  0xf6   : > { %3323 = vmatmul.f32.gmra.mxu2 %v1629_v19  ;;  %4975 = vperm.xlu2 %6125, %v6135_v24   ;;  %v4832_v19 = vld [vmem:[%s8124_s4 + $0xe0] sm:$0xff]  ;;  %v957_v24 = vmul.f32 %v6818_v54, %v5838_v42  ;;  %v4839_v42 = vld [vmem:[%s8124_s4 + $0x118] sm:$0xff]  ;;  %v1522_v15 = vmul.f32 %v7057_v61, %v5847_v39 }
  0xf7   : > { %4965 = vperm.xlu0 %6123, %v4825_v21   ;;  %4970 = vperm.xlu1 %6124, %v4826_v11   ;;  %v4833_v21 = vld [vmem:[%s8124_s4 + $0xe8] sm:$0xff]  ;;  %v1068_v30 = vmax.f32 %v1014_v17, 0.0  ;;  %v1700_v39 = vld [vmem:[#allocation2 + $0x20] sm:$0xff] }
  0xf8   : > { %v1390_v31 = vpop.permute.xlu2 %1389  ;;  %v1015_v43 = vadd.f32 %v6848_v12, %v957_v24  ;;  %v4840_v24 = vld [vmem:[%s8124_s4 + $0x120] sm:$0xff] }
  0xf9   : > { %v1165_v38 = vpop.permute.xlu1 %1164  ;;  %v1310_v0 = vpop.permute.xlu0 %1309  ;;  %v1449_v37 = vmul.f32 %v1390_v31, %v1071_v62  ;;  %v958_v62 = vmul.f32 %v6818_v54, %v5839_v5  ;;  %v3176_v31 = vld [vmem:[%s8128_s8 + $0x3f8] sm:$0xff] }
  0xfa   : > { %v7060_v47 = vmul.f32 %v1165_v38, %v1026_v26  ;;  %v1433_v48 = vmul.f32 %v1310_v0, %v1055_v8  ;;  %v3160_v26 = vld [vmem:[%s8128_s8 + $0x378] sm:$0xff]  ;;  %v3113_v8 = vld [vmem:[%s8128_s8 + $0x200] sm:$0xff]  ;;  %4446 = vmatpush.msra.mxu3 %v3176_v31  ;;  %v1069_v45 = vmax.f32 %v1015_v43, 0.0  ;;  %v3175_v43 = vld [vmem:[%s8128_s8 + $0x3f0] sm:$0xff] }
  0xfb   : > { %1503 = vst [vmem:[#allocation2 + $0x1d0] sm:$0xff] %v1449_v37  ;;  %v1641_v51 = vld [vmem:[#allocation2 + $0x1a7] sm:$0xff]  ;;  %v1642_v20 = vld [vmem:[#allocation2 + $0x1af] sm:$0xff]  ;;  %v1016_v35 = vadd.f32 %v6848_v12, %v958_v62  ;;  %4267 = vmatpush.msra.mxu2 %v3160_v26  ;;  %3924 = vmatpush.msrb.mxu0 %v3113_v8 }
  0xfc   : > { %1458 = vst [vmem:[#allocation2 + $0x68] sm:$0xff] %v7060_v47  ;;  %v7074_v59 = vld [vmem:[#allocation2 + $0x5f] sm:$0xff]  ;;  %4447 = vmatpush.msra.mxu3 %v3175_v43  ;;  %v3190_v43 = vld [vmem:[%s8128_s8 + $0x468] sm:$0xff] }
  0xfd   : > { %1487 = vst [vmem:[#allocation2 + $0x150] sm:$0xff] %v1433_v48  ;;  %3236 = vmatmul.f32.gmra.mxu0 %v7074_v59  ;;  %3281 = vmatmul.f32.gmra.mxu1 %v1615_v60  ;;  %v4835_v60 = vld [vmem:[%s8124_s4 + $0xf8] sm:$0xff] }
  0xfe   : > { %3359 = vmatmul.f32.gmra.mxu3 %v1641_v51  ;;  %4990 = vperm.xlu2 %6125, %v4830_v29   ;;  %v4836_v51 = vld [vmem:[%s8124_s4 + $0x100] sm:$0xff] }
  0xff   : > { %4980 = vperm.xlu0 %6123, %v4828_v50   ;;  %4985 = vperm.xlu1 %6124, %v4829_v49   ;;  %v5843_v50 = vunpack.c.h.bf16 %v6950_v14  ;;  %v1070_v14 = vmax.f32 %v1016_v35, 0.0  ;;  %v3159_v35 = vld [vmem:[%s8128_s8 + $0x370] sm:$0xff] }
 0x100   : > { %v761_v7 = vpop.permute.xlu2 %760  ;;  %4268 = vmatpush.msra.mxu2 %v3159_v35 }
 0x101   : > { %v1315_v9 = vpop.permute.xlu1 %1314  ;;  %v1240_v10 = vpop.permute.xlu0 %1239  ;;  %v960_v56 = vmul.f32 %v6818_v54, %v5843_v50  ;;  %v4837_v54 = vld [vmem:[%s8124_s4 + $0x108] sm:$0xff]  ;;  %v3143_v50 = vld [vmem:[%s8128_s8 + $0x2f0] sm:$0xff] }
 0x102   : > { %v1434_v6 = vmul.f32 %v1315_v9, %v1056_v53  ;;  %v1419_v13 = vmul.f32 %v1240_v10, %v1041_v63  ;;  %v3192_v53 = vld [vmem:[%s8128_s8 + $0x478] sm:$0xff]  ;;  %4089 = vmatpush.msra.mxu1 %v3143_v50 }
 0x103   : > { %v7101_v18 = vld [vmem:[#allocation2 + $0x67] sm:$0xff]  ;;  %v7136_v29 = vld [vmem:[#allocation2 + $0x6f] sm:$0xff]  ;;  %4625 = vmatpush.msra.mxu0 %v3192_v53  ;;  %v1018_v5 = vadd.f32 %v6848_v12, %v960_v56  ;;  %v7151_v10 = vld [vmem:[#allocation2 + $0x77] sm:$0xff] }
 0x104   : > { %1488 = vst [vmem:[#allocation2 + $0x158] sm:$0xff] %v1434_v6  ;;  %v1630_v11 = vld [vmem:[#allocation2 + $0x14f] sm:$0xff] }
 0x105   : > { %1473 = vst [vmem:[#allocation2 + $0xe0] sm:$0xff] %v1419_v13  ;;  %3239 = vmatmul.f32.gmra.mxu0 %v7101_v18  ;;  %3326 = vmatmul.f32.gmra.mxu2 %v1630_v11  ;;  %v4838_v12 = vld [vmem:[%s8124_s4 + $0x110] sm:$0xff]  ;;  %v1521_v13 = vmul.f32 %v7057_v61, %v5846_v3  ;;  %v1072_v17 = vmax.f32 %v1018_v5, 0.0  ;;  %v4848_v5 = vld [vmem:[%s8124_s4 + $0x160] sm:$0xff] }
 0x106   : > { %3362 = vmatmul.f32.gmra.mxu3 %v1642_v20  ;;  %5005 = vperm.xlu2 %6125, %v4833_v21   ;;  %v5851_v20 = vunpack.c.h.bf16 %v7038_v27  ;;  %v4841_v27 = vld [vmem:[%s8124_s4 + $0x128] sm:$0xff] }
 0x107   : > { %4995 = vperm.xlu0 %6123, %v4831_v23   ;;  %5000 = vperm.xlu1 %6124, %v4832_v19   ;;  %v1531_v23 = vadd.f32 %v7079_v33, %v1521_v13  ;;  %v1532_v19 = vadd.f32 %v7079_v33, %v1522_v15  ;;  %v2025_v15 = vld [vmem:[#allocation2 + $0x40] sm:$0xff] }
 0x108   : > { %v1562_v34 = vpop.permute.xlu2 %1561 }
 0x109   : > { %v1245_v38 = vpop.permute.xlu1 %1244  ;;  %v1375_v0 = vpop.permute.xlu0 %1374  ;;  %v1581_v37 = vmul.f32 %v1562_v34, %v1539_v22  ;;  %v7165_v22 = vld [vmem:[#allocation2 + $0x7f] sm:$0xff]  ;;  %v1537_v31 = vmax.f32 %v1531_v23, 0.0  ;;  %v1538_v32 = vmax.f32 %v1532_v19, 0.0  ;;  %v1524_v34 = vmul.f32 %v7057_v61, %v5851_v20  ;;  %v4850_v19 = vld [vmem:[%s8124_s4 + $0x170] sm:$0xff]  ;;  %v3158_v20 = vld [vmem:[%s8128_s8 + $0x368] sm:$0xff] }
 0x10a   : > { %v1420_v46 = vmul.f32 %v1245_v38, %v1042_v28  ;;  %v1446_v48 = vmul.f32 %v1375_v0, %v1068_v30  ;;  %v4842_v28 = vld [vmem:[%s8124_s4 + $0x130] sm:$0xff]  ;;  %v1807_v30 = vld [vmem:[#allocation2 + $0x19] sm:$0xff]  ;;  %4269 = vmatpush.msra.mxu2 %v3158_v20 }
 0x10b   : > { %1587 = vst [vmem:[#allocation2 + $0x1f0] sm:$0xff] %v1581_v37  ;;  %v1631_v41 = vld [vmem:[#allocation2 + $0x157] sm:$0xff]  ;;  %v1632_v6 = vld [vmem:[#allocation2 + $0x15f] sm:$0xff]  ;;  %v1534_v61 = vadd.f32 %v7079_v33, %v1524_v34  ;;  %v4853_v34 = vld [vmem:[%s8124_s4 + $0x188] sm:$0xff] }
 0x10c   : > { %1474 = vst [vmem:[#allocation2 + $0xe8] sm:$0xff] %v1420_v46  ;;  %v1616_v49 = vld [vmem:[#allocation2 + $0xdf] sm:$0xff] }
 0x10d   : > { %1500 = vst [vmem:[#allocation2 + $0x1b8] sm:$0xff] %v1446_v48  ;;  %3242 = vmatmul.f32.gmra.mxu0 %v7136_v29  ;;  %3284 = vmatmul.f32.gmra.mxu1 %v1616_v49  ;;  %v4845_v49 = vld [vmem:[%s8124_s4 + $0x148] sm:$0xff]  ;;  %v1540_v56 = vmax.f32 %v1534_v61, 0.0  ;;  %v1917_v23 = vld [vmem:[#allocation2 + $0x3f] sm:$0xff] }
 0x10e   : > { %3329 = vmatmul.f32.gmra.mxu2 %v1631_v41  ;;  %5020 = vperm.xlu2 %6125, %v4836_v51   ;;  %v1699_v41 = vld [vmem:[#allocation2 + $0x18] sm:$0xff]  ;;  %v1808_v33 = vld [vmem:[#allocation2 + $0x21] sm:$0xff] }
 0x10f   : > { %5010 = vperm.xlu0 %6123, %v4834_v52   ;;  %5015 = vperm.xlu1 %6124, %v4835_v60   ;;  %v7193_v52 = vld [vmem:[#allocation2 + $0x30] sm:$0xff]  ;;  %v4843_v51 = vld [vmem:[%s8124_s4 + $0x138] sm:$0xff]  ;;  %v4857_v61 = vld [vmem:[%s8124_s4 + $0x1a8] sm:$0xff] }
 0x110   : > { %v1577_v63 = vpop.permute.xlu2 %1576 }
 0x111   : > { %v1385_v1 = vpop.permute.xlu1 %1384  ;;  %v1380_v55 = vpop.permute.xlu0 %1379 }
 0x112   : > { %v1448_v4 = vmul.f32 %v1385_v1, %v1070_v14  ;;  %v1447_v7 = vmul.f32 %v1380_v55, %v1069_v45  ;;  %v7201_v60 = vpop.f32.mrf.mxu1  ;;  %v1915_v14 = vld [vmem:[#allocation2 + $0x2f] sm:$0xff]  ;;  %v4844_v45 = vld [vmem:[%s8124_s4 + $0x140] sm:$0xff] }
 0x113   : > { %v1617_v9 = vld [vmem:[#allocation2 + $0xe7] sm:$0xff]  ;;  %v7170_v26 = vld [vmem:[#allocation2 + $0xef] sm:$0xff] }
 0x114   : > { %1502 = vst [vmem:[#allocation2 + $0x1c8] sm:$0xff] %v1448_v4  ;;  %v1643_v44 = vld [vmem:[#allocation2 + $0x1b7] sm:$0xff] }
 0x115   : > { %1501 = vst [vmem:[#allocation2 + $0x1c0] sm:$0xff] %v1447_v7  ;;  %3245 = vmatmul.f32.gmra.mxu0 %v7151_v10  ;;  %3287 = vmatmul.f32.gmra.mxu1 %v1617_v9  ;;  %v3191_v1 = vld [vmem:[%s8128_s8 + $0x470] sm:$0xff]  ;;  %v2024_v4 = vld [vmem:[#allocation2 + $0x38] sm:$0xff] }
 0x116   : > { %3332 = vmatmul.f32.gmra.mxu2 %v1632_v6  ;;  %3365 = vmatmul.f32.gmra.mxu3 %v1643_v44  ;;  %v4846_v7 = vld [vmem:[%s8124_s4 + $0x150] sm:$0xff]  ;;  %v4847_v44 = vld [vmem:[%s8124_s4 + $0x158] sm:$0xff] }
 0x117   : > { %5025 = vperm.xlu0 %6123, %v4837_v54   ;;  %5035 = vperm.xlu2 %6125, %v4839_v42   ;;  %v1809_v9 = vld [vmem:[#allocation2 + $0x29] sm:$0xff]  ;;  %v1916_v54 = vld [vmem:[#allocation2 + $0x37] sm:$0xff] }
 0x118   : > { %5030 = vperm.xlu1 %6124, %v4838_v12   ;;  %v7184_v38 = vpop.f32.mrf.mxu2  ;;  %4626 = vmatpush.msra.mxu0 %v3191_v1  ;;  %v1701_v12 = vld [vmem:[#allocation2 + $0x28] sm:$0xff]  ;;  %v1814_v1 = vld [vmem:[#allocation2 + $0x51] sm:$0xff] }
 0x119   : > { %v1395_v21 = vpop.permute.xlu0 %1394  ;;  %v756_v11 = vpop.permute.xlu1 %755 }
 0x11a   : > { %v1450_v62 = vmul.f32 %v1395_v21, %v1072_v17  ;;  %v7207_v40 = vpop.f32.mrf.mxu0  ;;  %v7223_v42 = vpop.f32.mrf.mxu1  ;;  %v4849_v17 = vld [vmem:[%s8124_s4 + $0x168] sm:$0xff]  ;;  %v4851_v21 = vld [vmem:[%s8124_s4 + $0x178] sm:$0xff]  ;;  %4627 = vmatpush.msra.mxu0 %v3190_v43 }
 0x11b   : > { %v1810_v11 = vld [vmem:[#allocation2 + $0x31] sm:$0xff]  ;;  %v2034_v43 = vld [vmem:[#allocation2 + $0x88] sm:$0xff] }
 0x11c   : > { %1504 = vst [vmem:[#allocation2 + $0x1d8] sm:$0xff] %v1450_v62  ;;  %v1644_v8 = vld [vmem:[#allocation2 + $0x1bf] sm:$0xff] }
 0x11d   : > { %3248 = vmatmul.f32.gmra.mxu0 %v7165_v22  ;;  %3290 = vmatmul.f32.gmra.mxu1 %v7170_v26 }
 0x11e   : > { %3368 = vmatmul.f32.gmra.mxu3 %v1644_v8  ;;  %3567 = vmatmul.f32.vlgmr.msrb.gmra.mxu2 %v1807_v30  ;;  %v3174_v8 = vld [vmem:[%s8128_s8 + $0x3e8] sm:$0xff]  ;;  %v4852_v30 = vld [vmem:[%s8124_s4 + $0x180] sm:$0xff] }
 0x11f   : > { %5040 = vperm.xlu0 %6123, %v4840_v24   ;;  %5050 = vperm.xlu2 %6125, %v4842_v28   ;;  %v2026_v28 = vld [vmem:[#allocation2 + $0x48] sm:$0xff] }
 0x120   : > { %5045 = vperm.xlu1 %6124, %v4841_v27   ;;  %v7212_v55 = vpop.f32.mrf.mxu2  ;;  %v4854_v27 = vld [vmem:[%s8124_s4 + $0x190] sm:$0xff]  ;;  %4448 = vmatpush.msra.mxu3 %v3174_v8  ;;  %v2033_v8 = vld [vmem:[#allocation2 + $0x80] sm:$0xff] }
 0x121   : > { %v1552_v0 = vpop.permute.xlu0 %1551  ;;  %v1557_v37 = vpop.permute.xlu1 %1556 }
 0x122   : > { %v1579_v46 = vmul.f32 %v1552_v0, %v1537_v31  ;;  %v1580_v48 = vmul.f32 %v1557_v37, %v1538_v32  ;;  %v7225_v6 = vpop.f32.mrf.mxu0  ;;  %v1811_v32 = vld [vmem:[#allocation2 + $0x39] sm:$0xff]  ;;  %v3142_v0 = vld [vmem:[%s8128_s8 + $0x2e8] sm:$0xff] }
 0x123   : > { %4090 = vmatpush.msra.mxu1 %v3142_v0  ;;  %v1710_v0 = vld [vmem:[#allocation2 + $0x70] sm:$0xff] }
 0x124   : > { %1585 = vst [vmem:[#allocation2 + $0x1e0] sm:$0xff] %v1579_v46 }
 0x125   : > { %1586 = vst [vmem:[#allocation2 + $0x1e8] sm:$0xff] %v1580_v48  ;;  %3388 = vmatmul.f32.vlgmr.msrb.gmra.mxu1 %v1699_v41  ;;  %3925 = vmatmul.f32.vlgmr.msrb.gmra.mxu0 %v7193_v52  ;;  %v2027_v48 = vld [vmem:[#allocation2 + $0x50] sm:$0xff]  ;;  %v1812_v41 = vld [vmem:[#allocation2 + $0x41] sm:$0xff] }
 0x126   : > { %3570 = vmatmul.f32.gmra.mxu2 %v1808_v33  ;;  %3746 = vmatmul.f32.vlgmr.msrb.gmra.mxu3 %v1915_v14  ;;  %v2028_v33 = vld [vmem:[#allocation2 + $0x58] sm:$0xff] }
 0x127   : > { %5055 = vperm.xlu0 %6123, %v4843_v51   ;;  %5065 = vperm.xlu2 %6125, %v4845_v49   ;;  %v7254_v31 = vpop.f32.mrf.mxu3 }
 0x128   : > { %5060 = vperm.xlu1 %6124, %v4844_v45   ;;  %v7227_v13 = vpop.f32.mrf.mxu2  ;;  %8132 = vst [vmem:[#allocation4_spill] sm:$0xff] %v7254_v31  ;;  %v1813_v45 = vld [vmem:[#allocation2 + $0x49] sm:$0xff]  ;;  %v1827_v31 = vld [vmem:[#allocation2 + $0xb9] sm:$0xff] }
 0x129   : > { %v1567_v53 = vpop.permute.xlu0 %1566  ;;  %v1572_v63 = vpop.permute.xlu1 %1571 }
 0x12a   : > { %v1582_v3 = vmul.f32 %v1567_v53, %v1540_v56  ;;  %v7238_v62 = vpop.f32.mrf.mxu1  ;;  %v7243_v24 = vpop.f32.mrf.mxu0  ;;  %v3157_v63 = vld [vmem:[%s8128_s8 + $0x360] sm:$0xff] }
 0x12b   : > { %4270 = vmatpush.msra.mxu2 %v3157_v63 }
 0x12c   : > { %1588 = vst [vmem:[#allocation2 + $0x1f8] sm:$0xff] %v1582_v3 }
 0x12d   : > { %3391 = vmatmul.f32.gmra.mxu1 %v1700_v39  ;;  %3928 = vmatmul.f32.gmra.mxu0 %v2024_v4 }
 0x12e   : > { %3573 = vmatmul.f32.gmra.mxu2 %v1809_v9  ;;  %3749 = vmatmul.f32.gmra.mxu3 %v1916_v54  ;;  %v3189_v9 = vld [vmem:[%s8128_s8 + $0x460] sm:$0xff] }
 0x12f   : > { %5070 = vperm.xlu0 %6123, %v4846_v7   ;;  %5080 = vperm.xlu2 %6125, %v4848_v5  }
 0x130   : > { %5075 = vperm.xlu1 %6124, %v4847_v44   ;;  %4628 = vmatpush.msra.mxu0 %v3189_v9  ;;  %v2036_v9 = vld [vmem:[#allocation2 + $0x98] sm:$0xff] }
 0x131   : > { %v7260_v35 = vpop.f32.mrf.mxu2 }
 0x132   : > { %v7266_v37 = vpop.f32.mrf.mxu1 }
 0x135   : > { %3394 = vmatmul.f32.gmra.mxu1 %v1701_v12  ;;  %3931 = vmatmul.f32.gmra.mxu0 %v2025_v15 }
 0x136   : > { %3576 = vmatmul.f32.gmra.mxu2 %v1810_v11  ;;  %3752 = vmatmul.f32.gmra.mxu3 %v1917_v23  ;;  %v1817_v23 = vld [vmem:[#allocation2 + $0x69] sm:$0xff] }
 0x137   : > { %5085 = vperm.xlu0 %6123, %v4849_v17   ;;  %5095 = vperm.xlu2 %6125, %v4851_v21  }
 0x138   : > { %5090 = vperm.xlu1 %6124, %v4850_v19   ;;  %v7279_v50 = vpop.f32.mrf.mxu3  ;;  %v3172_v19 = vld [vmem:[%s8128_s8 + $0x3d8] sm:$0xff] }
 0x139   : > { %8133 = vst [vmem:[#allocation5_spill] sm:$0xff] %v7279_v50  ;;  %v7285_v51 = vpop.f32.mrf.mxu2 }
 0x13a   : > { %v7271_v46 = vpop.f32.mrf.mxu0  ;;  %v7287_v49 = vpop.f32.mrf.mxu1 }
 0x13d   : > { %3397 = vmatmul.f32.gmra.mxu1 %v7193_v52  ;;  %3934 = vmatmul.f32.gmra.mxu0 %v2026_v28  ;;  %v4856_v52 = vld [vmem:[%s8124_s4 + $0x1a0] sm:$0xff] }
 0x13e   : > { %3579 = vmatmul.f32.gmra.mxu2 %v1811_v32  ;;  %3755 = vmatmul.f32.gmra.mxu3 %v6895_v57  ;;  %v4855_v57 = vld [vmem:[%s8124_s4 + $0x198] sm:$0xff] }
 0x13f   : > { %5100 = vperm.xlu0 %6123, %v4852_v30   ;;  %5110 = vperm.xlu2 %6125, %v4854_v27   ;;  %v3188_v32 = vld [vmem:[%s8128_s8 + $0x458] sm:$0xff] }
 0x140   : > { %5105 = vperm.xlu1 %6124, %v4853_v34   ;;  %4629 = vmatpush.msra.mxu0 %v3188_v32  ;;  %v2037_v32 = vld [vmem:[#allocation2 + $0xa0] sm:$0xff] }
 0x141   : > { %v7292_v56 = vpop.f32.mrf.mxu3 }
 0x142   : > { %v7289_v14 = vpop.f32.mrf.mxu0  ;;  %8134 = vst [vmem:[#allocation6_spill] sm:$0xff] %v7292_v56 }
 0x145   : > { %3400 = vmatmul.f32.gmra.mxu1 %v2024_v4  ;;  %3937 = vmatmul.f32.gmra.mxu0 %v2027_v48  ;;  %v3141_v4 = vld [vmem:[%s8128_s8 + $0x2e0] sm:$0xff] }
 0x146   : > { %3582 = vmatmul.f32.gmra.mxu2 %v1812_v41  ;;  %3758 = vmatmul.f32.gmra.mxu3 %v6928_v16 }
 0x147   : > { %5115 = vperm.xlu0 %6123, %v4855_v57   ;;  %5125 = vperm.xlu2 %6125, %v4857_v61   ;;  %v1926_v57 = vld [vmem:[#allocation2 + $0x87] sm:$0xff] }
 0x148   : > { %5120 = vperm.xlu1 %6124, %v4856_v52   ;;  %v7294_v53 = vpop.f32.mrf.mxu2  ;;  %4091 = vmatpush.msra.mxu1 %v3141_v4  ;;  %v2035_v52 = vld [vmem:[#allocation2 + $0x90] sm:$0xff] }
 0x149   : > { %v7308_v39 = vpop.f32.mrf.mxu3 }
 0x14a   : > { %v7296_v16 = vpop.f32.mrf.mxu1  ;;  %v7306_v3 = vpop.f32.mrf.mxu0  ;;  %8135 = vst [vmem:[#allocation7_spill] sm:$0xff] %v7308_v39 }
 0x14d   : > { %3403 = vmatmul.f32.gmra.mxu1 %v2025_v15  ;;  %3940 = vmatmul.f32.gmra.mxu0 %v2028_v33  ;;  %v1816_v15 = vld [vmem:[#allocation2 + $0x61] sm:$0xff] }
 0x14e   : > { %3585 = vmatmul.f32.gmra.mxu2 %v1813_v45  ;;  %3761 = vmatmul.f32.gmra.mxu3 %v6979_v58  ;;  %v3173_v58 = vld [vmem:[%s8128_s8 + $0x3e0] sm:$0xff]  ;;  %v1927_v45 = vld [vmem:[#allocation2 + $0x8f] sm:$0xff] }
 0x14f   : > { %4449 = vmatpush.msra.mxu3 %v3173_v58 }
 0x151   : > { %v7313_v7 = vpop.f32.mrf.mxu2  ;;  %4450 = vmatpush.msra.mxu3 %v3172_v19 }
 0x152   : > { %v7315_v5 = vpop.f32.mrf.mxu1 }
 0x155   : > { %3406 = vmatmul.f32.gmra.mxu1 %v2026_v28  ;;  %3943 = vmatmul.f32.gmra.mxu0 %v7012_v2  ;;  %v1818_v28 = vld [vmem:[#allocation2 + $0x71] sm:$0xff] }
 0x156   : > { %3588 = vmatmul.f32.gmra.mxu2 %v1814_v1  ;;  %3764 = vmatmul.f32.gmra.mxu3 %v7074_v59  ;;  %v1815_v59 = vld [vmem:[#allocation2 + $0x59] sm:$0xff] }
 0x158   : > { %v7324_v44 = vpop.f32.mrf.mxu3 }
 0x159   : > { %8136 = vst [vmem:[#allocation8_spill] sm:$0xff] %v7324_v44  ;;  %v7326_v12 = vpop.f32.mrf.mxu2  ;;  %v1825_v44 = vld [vmem:[#allocation2 + $0xa9] sm:$0xff] }
 0x15a   : > { %v7322_v54 = vpop.f32.mrf.mxu0  ;;  %v7330_v17 = vpop.f32.mrf.mxu1 }
 0x15d   : > { %3409 = vmatmul.f32.gmra.mxu1 %v2027_v48  ;;  %3946 = vmatmul.f32.gmra.mxu0 %v7060_v47 }
 0x15e   : > { %3591 = vmatmul.f32.gmra.mxu2 %v1815_v59  ;;  %3767 = vmatmul.f32.gmra.mxu3 %v7101_v18  ;;  %v1821_v59 = vld [vmem:[#allocation2 + $0x89] sm:$0xff] }
 0x161   : > { %v7334_v21 = vpop.f32.mrf.mxu3 }
 0x162   : > { %v7332_v18 = vpop.f32.mrf.mxu0  ;;  %8137 = vst [vmem:[#allocation9_spill] sm:$0xff] %v7334_v21 }
 0x165   : > { %3412 = vmatmul.f32.gmra.mxu1 %v2028_v33  ;;  %3949 = vmatmul.f32.gmra.mxu0 %v6965_v36  ;;  %v3156_v36 = vld [vmem:[%s8128_s8 + $0x358] sm:$0xff]  ;;  %v1820_v33 = vld [vmem:[#allocation2 + $0x81] sm:$0xff] }
 0x166   : > { %3594 = vmatmul.f32.gmra.mxu2 %v1816_v15  ;;  %3770 = vmatmul.f32.gmra.mxu3 %v7136_v29  ;;  %v1928_v15 = vld [vmem:[#allocation2 + $0x97] sm:$0xff] }
 0x167   : > { %4271 = vmatpush.msra.mxu2 %v3156_v36  ;;  %v3139_v36 = vld [vmem:[%s8128_s8 + $0x2d0] sm:$0xff] }
 0x168   : > { %v7336_v11 = vpop.f32.mrf.mxu2 }
 0x16a   : > { %v7344_v29 = vpop.f32.mrf.mxu1  ;;  %v7349_v20 = vpop.f32.mrf.mxu0 }
 0x16d   : > { %3415 = vmatmul.f32.gmra.mxu1 %v7012_v2  ;;  %3952 = vmatmul.f32.gmra.mxu0 %v7008_v25  ;;  %v3140_v2 = vld [vmem:[%s8128_s8 + $0x2d8] sm:$0xff] }
 0x16e   : > { %3597 = vmatmul.f32.gmra.mxu2 %v1817_v23  ;;  %3773 = vmatmul.f32.gmra.mxu3 %v7151_v10  ;;  %v7354_v10 = vpop.f32.mrf.mxu3  ;;  %v3171_v23 = vld [vmem:[%s8128_s8 + $0x3d0] sm:$0xff] }
 0x16f   : > { %4092 = vmatpush.msra.mxu1 %v3140_v2  ;;  %8138 = vst [vmem:[#allocation10_spill] sm:$0xff] %v7354_v10  ;;  %4451 = vmatpush.msra.mxu3 %v3171_v23  ;;  %v1930_v23 = vld [vmem:[#allocation2 + $0xa7] sm:$0xff] }
 0x171   : > { %v7357_v30 = vpop.f32.mrf.mxu2  ;;  %4093 = vmatpush.msra.mxu1 %v3139_v36 }
 0x172   : > { %v7360_v27 = vpop.f32.mrf.mxu1 }
 0x175   : > { %3418 = vmatmul.f32.gmra.mxu1 %v7060_v47  ;;  %3955 = vmatmul.f32.gmra.mxu0 %v2033_v8  ;;  %v1819_v47 = vld [vmem:[#allocation2 + $0x79] sm:$0xff] }
 0x176   : > { %3600 = vmatmul.f32.gmra.mxu2 %v1818_v28  ;;  %3776 = vmatmul.f32.gmra.mxu3 %v7165_v22 }
 0x178   : > { %v7367_v48 = vpop.f32.mrf.mxu3 }
 0x179   : > { %8139 = vst [vmem:[#allocation11_spill] sm:$0xff] %v7367_v48  ;;  %v7369_v22 = vpop.f32.mrf.mxu2  ;;  %v1931_v48 = vld [vmem:[#allocation2 + $0xaf] sm:$0xff] }
 0x17a   : > { %v7365_v34 = vpop.f32.mrf.mxu0  ;;  %v7371_v61 = vpop.f32.mrf.mxu1 }
 0x17d   : > { %3421 = vmatmul.f32.gmra.mxu1 %v1710_v0  ;;  %3958 = vmatmul.f32.gmra.mxu0 %v2034_v43  ;;  %v1822_v0 = vld [vmem:[#allocation2 + $0x91] sm:$0xff] }
 0x17e   : > { %3603 = vmatmul.f32.gmra.mxu2 %v1819_v47  ;;  %3779 = vmatmul.f32.gmra.mxu3 %v1926_v57  ;;  %v1929_v47 = vld [vmem:[#allocation2 + $0x9f] sm:$0xff]  ;;  %v3187_v57 = vld [vmem:[%s8128_s8 + $0x450] sm:$0xff] }
 0x17f   : > { %4630 = vmatpush.msra.mxu0 %v3187_v57 }
 0x181   : > { %v7376_v63 = vpop.f32.mrf.mxu3 }
 0x182   : > { %v7373_v41 = vpop.f32.mrf.mxu0  ;;  %8140 = vst [vmem:[#allocation12_spill] sm:$0xff] %v7376_v63  ;;  %v1824_v63 = vld [vmem:[#allocation2 + $0xa1] sm:$0xff] }
 0x185   : > { %3424 = vmatmul.f32.gmra.mxu1 %v7008_v25  ;;  %3961 = vmatmul.f32.gmra.mxu0 %v2035_v52  ;;  %v3155_v25 = vld [vmem:[%s8128_s8 + $0x350] sm:$0xff] }
 0x186   : > { %3606 = vmatmul.f32.gmra.mxu2 %v1820_v33  ;;  %3782 = vmatmul.f32.gmra.mxu3 %v1927_v45 }
 0x187   : > { %4272 = vmatpush.msra.mxu2 %v3155_v25  ;;  %v2038_v25 = vld [vmem:[#allocation2 + $0xa8] sm:$0xff] }
 0x188   : > { %v7378_v1 = vpop.f32.mrf.mxu2 }
 0x189   : > { %8141 = vst [vmem:[#allocation13_spill] sm:$0xff] %v7378_v1  ;;  %v7393_v19 = vpop.f32.mrf.mxu3  ;;  %v2046_v1 = vld [vmem:[#allocation2 + $0xe8] sm:$0xff] }
 0x18a   : > { %v7380_v58 = vpop.f32.mrf.mxu0  ;;  %v7382_v4 = vpop.f32.mrf.mxu1  ;;  %8142 = vst [vmem:[#allocation14_spill] sm:$0xff] %v7393_v19  ;;  %v2039_v19 = vld [vmem:[#allocation2 + $0xb0] sm:$0xff] }
 0x18d   : > { %3427 = vmatmul.f32.gmra.mxu1 %v2033_v8  ;;  %3964 = vmatmul.f32.gmra.mxu0 %v2036_v9 }
 0x18e   : > { %3609 = vmatmul.f32.gmra.mxu2 %v1821_v59  ;;  %3785 = vmatmul.f32.gmra.mxu3 %v1928_v15 }
 0x191   : > { %v7395_v2 = vpop.f32.mrf.mxu2 }
 0x192   : > { %8143 = vst [vmem:[#allocation15_spill] sm:$0xff] %v7395_v2  ;;  %v7397_v8 = vpop.f32.mrf.mxu0  ;;  %v7399_v28 = vpop.f32.mrf.mxu1  ;;  %v1936_v2 = vld [vmem:[#allocation2 + $0xd7] sm:$0xff] }
 0x195   : > { %3430 = vmatmul.f32.gmra.mxu1 %v2034_v43  ;;  %3967 = vmatmul.f32.gmra.mxu0 %v2037_v32  ;;  %v1823_v43 = vld [vmem:[#allocation2 + $0x99] sm:$0xff] }
 0x196   : > { %3612 = vmatmul.f32.gmra.mxu2 %v1822_v0  ;;  %3788 = vmatmul.f32.gmra.mxu3 %v1929_v47 }
 0x199   : > { %v7404_v33 = vpop.f32.mrf.mxu2  ;;  %v7406_v45 = vpop.f32.mrf.mxu3 }
 0x19a   : > { %8144 = vst [vmem:[#allocation16_spill] sm:$0xff] %v7404_v33  ;;  %v7408_v59 = vpop.f32.mrf.mxu0  ;;  %v7410_v15 = vpop.f32.mrf.mxu1  ;;  %v1829_v33 = vld [vmem:[#allocation2 + $0xc9] sm:$0xff] }
 0x19b   : > { %8145 = vst [vmem:[#allocation17_spill] sm:$0xff] %v7406_v45 }
 0x19d   : > { %3433 = vmatmul.f32.gmra.mxu1 %v2035_v52  ;;  %3970 = vmatmul.f32.gmra.mxu0 %v2038_v25  ;;  %v3154_v52 = vld [vmem:[%s8128_s8 + $0x348] sm:$0xff] }
 0x19e   : > { %3615 = vmatmul.f32.gmra.mxu2 %v1823_v43  ;;  %3791 = vmatmul.f32.gmra.mxu3 %v1930_v23  ;;  %v3170_v43 = vld [vmem:[%s8128_s8 + $0x3c8] sm:$0xff] }
 0x19f   : > { %4273 = vmatpush.msra.mxu2 %v3154_v52  ;;  %4452 = vmatpush.msra.mxu3 %v3170_v43 }
 0x1a1   : > { %v7412_v36 = vpop.f32.mrf.mxu3  ;;  %v3568_v0 = vpop.f32.mrf.mxu2 }
 0x1a2   : > { %8146 = vst [vmem:[#allocation18_spill] sm:$0xff] %v7412_v36  ;;  %v7414_v47 = vpop.f32.mrf.mxu0  ;;  %v3389_v57 = vpop.f32.mrf.mxu1 }
 0x1a3   : > { %v3390_v45 = vadd.f32 %v3389_v57, %v7207_v40  ;;  %v2040_v57 = vld [vmem:[#allocation2 + $0xb8] sm:$0xff] }
 0x1a5   : > { %3436 = vmatmul.f32.gmra.mxu1 %v2036_v9  ;;  %3973 = vmatmul.f32.gmra.mxu0 %v2039_v19  ;;  %v3569_v23 = vadd.f32 %v3568_v0, %v3390_v45  ;;  %v1932_v45 = vld [vmem:[#allocation2 + $0xb7] sm:$0xff] }
 0x1a6   : > { %3618 = vmatmul.f32.gmra.mxu2 %v1824_v63  ;;  %3794 = vmatmul.f32.gmra.mxu3 %v1931_v48  ;;  %v3138_v63 = vld [vmem:[%s8128_s8 + $0x2c8] sm:$0xff] }
 0x1a7   : > { %4094 = vmatpush.msra.mxu1 %v3138_v63 }
 0x1a9   : > { %v3571_v36 = vpop.f32.mrf.mxu2  ;;  %v3747_v10 = vpop.f32.mrf.mxu3 }
 0x1aa   : > { %v7423_v40 = vadd.f32 %v3747_v10, %v3569_v23  ;;  %v7428_v48 = vpop.f32.mrf.mxu0  ;;  %v3392_v9 = vpop.f32.mrf.mxu1  ;;  %v3186_v10 = vld [vmem:[%s8128_s8 + $0x448] sm:$0xff] }
 0x1ab   : > { %v3393_v21 = vadd.f32 %v3392_v9, %v7225_v6  ;;  %4631 = vmatpush.msra.mxu0 %v3186_v10  ;;  %v2041_v6 = vld [vmem:[#allocation2 + $0xc0] sm:$0xff]  ;;  %v1826_v9 = vld [vmem:[#allocation2 + $0xb1] sm:$0xff] }
 0x1ad   : > { %3439 = vmatmul.f32.gmra.mxu1 %v2037_v32  ;;  %3976 = vmatmul.f32.gmra.mxu0 %v2040_v57  ;;  %v3572_v0 = vadd.f32 %v3571_v36, %v3393_v21 }
 0x1ae   : > { %3621 = vmatmul.f32.gmra.mxu2 %v1825_v44  ;;  %3797 = vmatmul.f32.gmra.mxu3 %v1932_v45  ;;  %v1933_v44 = vld [vmem:[#allocation2 + $0xbf] sm:$0xff] }
 0x1b1   : > { %v3574_v52 = vpop.f32.mrf.mxu2  ;;  %v3750_v43 = vpop.f32.mrf.mxu3 }
 0x1b2   : > { %v7434_v23 = vadd.f32 %v3750_v43, %v3572_v0  ;;  %v7436_v63 = vpop.f32.mrf.mxu0  ;;  %v3395_v39 = vpop.f32.mrf.mxu1  ;;  %v2042_v43 = vld [vmem:[#allocation2 + $0xc8] sm:$0xff] }
 0x1b3   : > { %v3396_v32 = vadd.f32 %v3395_v39, %v7243_v24  ;;  %v1934_v24 = vld [vmem:[#allocation2 + $0xc7] sm:$0xff] }
 0x1b5   : > { %3442 = vmatmul.f32.gmra.mxu1 %v2038_v25  ;;  %3979 = vmatmul.f32.gmra.mxu0 %v2041_v6  ;;  %v3575_v45 = vadd.f32 %v3574_v52, %v3396_v32  ;;  %v3153_v32 = vld [vmem:[%s8128_s8 + $0x340] sm:$0xff] }
 0x1b6   : > { %3624 = vmatmul.f32.gmra.mxu2 %v1826_v9  ;;  %3800 = vmatmul.f32.gmra.mxu3 %v1933_v44 }
 0x1b7   : > { %4274 = vmatpush.msra.mxu2 %v3153_v32  ;;  %v2044_v32 = vld [vmem:[#allocation2 + $0xd8] sm:$0xff] }
 0x1b9   : > { %v3577_v56 = vpop.f32.mrf.mxu2  ;;  %v3753_v21 = vpop.f32.mrf.mxu3 }
 0x1ba   : > { %v7439_v36 = vadd.f32 %v3753_v21, %v3575_v45  ;;  %v7441_v10 = vpop.f32.mrf.mxu0  ;;  %v3398_v0 = vpop.f32.mrf.mxu1 }
 0x1bb   : > { %v3399_v50 = vadd.f32 %v3398_v0, %v7271_v46  ;;  %v1828_v46 = vld [vmem:[#allocation2 + $0xc1] sm:$0xff] }
 0x1bd   : > { %3445 = vmatmul.f32.gmra.mxu1 %v2039_v19  ;;  %3982 = vmatmul.f32.gmra.mxu0 %v2042_v43  ;;  %v3578_v39 = vadd.f32 %v3577_v56, %v3399_v50  ;;  %v2043_v19 = vld [vmem:[#allocation2 + $0xd0] sm:$0xff]  ;;  %v3169_v50 = vld [vmem:[%s8128_s8 + $0x3c0] sm:$0xff] }
 0x1be   : > { %3627 = vmatmul.f32.gmra.mxu2 %v1827_v31  ;;  %3803 = vmatmul.f32.gmra.mxu3 %v1934_v24  ;;  %v1935_v31 = vld [vmem:[#allocation2 + $0xcf] sm:$0xff]  ;;  %v3137_v56 = vld [vmem:[%s8128_s8 + $0x2c0] sm:$0xff] }
 0x1bf   : > { %4453 = vmatpush.msra.mxu3 %v3169_v50  ;;  %4095 = vmatpush.msra.mxu1 %v3137_v56 }
 0x1c1   : > { %v3580_v25 = vpop.f32.mrf.mxu2  ;;  %v3756_v9 = vpop.f32.mrf.mxu3 }
 0x1c2   : > { %v7444_v52 = vadd.f32 %v3756_v9, %v3578_v39  ;;  %v7449_v44 = vpop.f32.mrf.mxu0  ;;  %v3401_v45 = vpop.f32.mrf.mxu1 }
 0x1c3   : > { %v3402_v21 = vadd.f32 %v3401_v45, %v7289_v14 }
 0x1c5   : > { %3448 = vmatmul.f32.gmra.mxu1 %v2040_v57  ;;  %3985 = vmatmul.f32.gmra.mxu0 %v2043_v19  ;;  %v3581_v0 = vadd.f32 %v3580_v25, %v3402_v21  ;;  %v3185_v25 = vld [vmem:[%s8128_s8 + $0x440] sm:$0xff] }
 0x1c6   : > { %3630 = vmatmul.f32.gmra.mxu2 %v1828_v46  ;;  %3806 = vmatmul.f32.gmra.mxu3 %v1935_v31 }
 0x1c7   : > { %4632 = vmatpush.msra.mxu0 %v3185_v25 }
 0x1c9   : > { %v3583_v24 = vpop.f32.mrf.mxu2  ;;  %v3759_v39 = vpop.f32.mrf.mxu3 }
 0x1ca   : > { %v7458_v9 = vadd.f32 %v3759_v39, %v3581_v0  ;;  %v7460_v14 = vpop.f32.mrf.mxu0  ;;  %v3404_v57 = vpop.f32.mrf.mxu1  ;;  %v1830_v39 = vld [vmem:[#allocation2 + $0xd1] sm:$0xff] }
 0x1cb   : > { %v3405_v45 = vadd.f32 %v3404_v57, %v7306_v3  ;;  %v2045_v3 = vld [vmem:[#allocation2 + $0xe0] sm:$0xff] }
 0x1cc   : > { %v1937_v57 = vld [vmem:[#allocation2 + $0xdf] sm:$0xff] }
 0x1cd   : > { %3451 = vmatmul.f32.gmra.mxu1 %v2041_v6  ;;  %3988 = vmatmul.f32.gmra.mxu0 %v2044_v32  ;;  %v3584_v46 = vadd.f32 %v3583_v24, %v3405_v45 }
 0x1ce   : > { %3633 = vmatmul.f32.gmra.mxu2 %v1829_v33  ;;  %3809 = vmatmul.f32.gmra.mxu3 %v1936_v2  ;;  %v7473_v2 = vadd.f32 %v7414_v47, %v7423_v40  ;;  %v3168_v47 = vld [vmem:[%s8128_s8 + $0x3b8] sm:$0xff] }
 0x1cf   : > { %v3136_v40 = vld [vmem:[%s8128_s8 + $0x2b8] sm:$0xff]  ;;  %4454 = vmatpush.msra.mxu3 %v3168_v47 }
 0x1d0   : > { %4096 = vmatpush.msra.mxu1 %v3136_v40  ;;  %v2048_v40 = vld [vmem:[#allocation2 + $0xf8] sm:$0xff] }
 0x1d1   : > { %v3586_v21 = vpop.f32.mrf.mxu2  ;;  %v3762_v31 = vpop.f32.mrf.mxu3 }
 0x1d2   : > { %v7466_v50 = vadd.f32 %v3762_v31, %v3584_v46  ;;  %v7468_v56 = vpop.f32.mrf.mxu0  ;;  %v3407_v0 = vpop.f32.mrf.mxu1 }
 0x1d3   : > { %v3408_v6 = vadd.f32 %v3407_v0, %v7322_v54  ;;  %v1938_v0 = vld [vmem:[#allocation2 + $0xe7] sm:$0xff] }
 0x1d5   : > { %3454 = vmatmul.f32.gmra.mxu1 %v2042_v43  ;;  %3991 = vmatmul.f32.gmra.mxu0 %v2045_v3  ;;  %v3587_v33 = vadd.f32 %v3586_v21, %v3408_v6  ;;  %v1831_v43 = vld [vmem:[#allocation2 + $0xd9] sm:$0xff] }
 0x1d6   : > { %3636 = vmatmul.f32.gmra.mxu2 %v1830_v39  ;;  %3812 = vmatmul.f32.gmra.mxu3 %v1937_v57  ;;  %v3152_v21 = vld [vmem:[%s8128_s8 + $0x338] sm:$0xff] }
 0x1d7   : > { %4275 = vmatpush.msra.mxu2 %v3152_v21 }
 0x1d9   : > { %v3589_v24 = vpop.f32.mrf.mxu2  ;;  %v3765_v45 = vpop.f32.mrf.mxu3 }
 0x1da   : > { %v7475_v25 = vadd.f32 %v3765_v45, %v3587_v33  ;;  %v7477_v46 = vpop.f32.mrf.mxu0  ;;  %v3410_v31 = vpop.f32.mrf.mxu1 }
 0x1db   : > { %v3411_v54 = vadd.f32 %v3410_v31, %v7332_v18  ;;  %v7491_v18 = vadd.f32 %v7428_v48, %v7434_v23  ;;  %v2047_v31 = vld [vmem:[#allocation2 + $0xf0] sm:$0xff]  ;;  %v3184_v48 = vld [vmem:[%s8128_s8 + $0x438] sm:$0xff] }
 0x1dc   : > { %4633 = vmatpush.msra.mxu0 %v3184_v48 }
 0x1dd   : > { %3457 = vmatmul.f32.gmra.mxu1 %v2043_v19  ;;  %3994 = vmatmul.f32.gmra.mxu0 %v2046_v1  ;;  %v3590_v6 = vadd.f32 %v3589_v24, %v3411_v54  ;;  %v7504_v24 = vadd.f32 %v7436_v63, %v7439_v36  ;;  %v7513_v63 = vadd.f32 %v7441_v10, %v7444_v52  ;;  %v3151_v10 = vld [vmem:[%s8128_s8 + $0x330] sm:$0xff] }
 0x1de   : > { %3639 = vmatmul.f32.gmra.mxu2 %v1831_v43  ;;  %3815 = vmatmul.f32.gmra.mxu3 %v1938_v0  ;;  %v1832_v0 = vld [vmem:[#allocation2 + $0xe1] sm:$0xff] }
 0x1df   : > { %4276 = vmatpush.msra.mxu2 %v3151_v10 }
 0x1e1   : > { %v3592_v19 = vpop.f32.mrf.mxu2  ;;  %v3768_v39 = vpop.f32.mrf.mxu3 }
 0x1e2   : > { %v7493_v57 = vadd.f32 %v3768_v39, %v3590_v6  ;;  %v7495_v33 = vpop.f32.mrf.mxu0  ;;  %v3413_v45 = vpop.f32.mrf.mxu1  ;;  %v1833_v6 = vld [vmem:[#allocation2 + $0xe9] sm:$0xff]  ;;  %v1940_v39 = vld [vmem:[#allocation2 + $0xf7] sm:$0xff] }
 0x1e3   : > { %v3414_v43 = vadd.f32 %v3413_v45, %v7349_v20 }
 0x1e5   : > { %3460 = vmatmul.f32.gmra.mxu1 %v2044_v32  ;;  %3997 = vmatmul.f32.gmra.mxu0 %v2047_v31  ;;  %v3593_v23 = vadd.f32 %v3592_v19, %v3414_v43 }
 0x1e6   : > { %3642 = vmatmul.f32.gmra.mxu2 %v1832_v0  ;;  %3818 = vmatmul.f32.gmra.mxu3 %v7170_v26 }
 0x1e9   : > { %v3595_v54 = vpop.f32.mrf.mxu2  ;;  %v3771_v21 = vpop.f32.mrf.mxu3 }
 0x1ea   : > { %v7506_v47 = vadd.f32 %v3771_v21, %v3593_v23  ;;  %v7508_v20 = vpop.f32.mrf.mxu0  ;;  %v3416_v32 = vpop.f32.mrf.mxu1  ;;  %v2049_v23 = vld [vmem:[#allocation2 + $0x100] sm:$0xff] }
 0x1eb   : > { %v3417_v26 = vadd.f32 %v3416_v32, %v7365_v34  ;;  %v1941_v21 = vld [vmem:[#allocation2 + $0xff] sm:$0xff] }
 0x1ed   : > { %3463 = vmatmul.f32.gmra.mxu1 %v2045_v3  ;;  %4000 = vmatmul.f32.gmra.mxu0 %v2048_v40  ;;  %v3596_v19 = vadd.f32 %v3595_v54, %v3417_v26  ;;  %v1834_v3 = vld [vmem:[#allocation2 + $0xf1] sm:$0xff]  ;;  %v7525_v54 = vadd.f32 %v7449_v44, %v7458_v9 }
 0x1ee   : > { %3645 = vmatmul.f32.gmra.mxu2 %v1833_v6  ;;  %3821 = vmatmul.f32.gmra.mxu3 %v1940_v39  ;;  %v3135_v44 = vld [vmem:[%s8128_s8 + $0x2b0] sm:$0xff] }
 0x1ef   : > { %4097 = vmatpush.msra.mxu1 %v3135_v44 }
 0x1f1   : > { %v3598_v36 = vpop.f32.mrf.mxu2  ;;  %v3774_v45 = vpop.f32.mrf.mxu3 }
 0x1f2   : > { %v7515_v43 = vadd.f32 %v3774_v45, %v3596_v19  ;;  %v7517_v0 = vpop.f32.mrf.mxu0  ;;  %v3419_v48 = vpop.f32.mrf.mxu1  ;;  %v2050_v19 = vld [vmem:[#allocation2 + $0x108] sm:$0xff]  ;;  %v1835_v45 = vld [vmem:[#allocation2 + $0xf9] sm:$0xff] }
 0x1f3   : > { %v3420_v34 = vadd.f32 %v3419_v48, %v7373_v41  ;;  %v3167_v41 = vld [vmem:[%s8128_s8 + $0x3b0] sm:$0xff]  ;;  %v1942_v48 = vld [vmem:[#allocation2 + $0x107] sm:$0xff] }
 0x1f4   : > { %4455 = vmatpush.msra.mxu3 %v3167_v41  ;;  %v1836_v41 = vld [vmem:[#allocation2 + $0x101] sm:$0xff] }
 0x1f5   : > { %3466 = vmatmul.f32.gmra.mxu1 %v2046_v1  ;;  %4003 = vmatmul.f32.gmra.mxu0 %v2049_v23  ;;  %v3599_v52 = vadd.f32 %v3598_v36, %v3420_v34  ;;  %v7540_v34 = vadd.f32 %v7460_v14, %v7466_v50  ;;  %v7552_v50 = vadd.f32 %v7468_v56, %v7475_v25 }
 0x1f6   : > { %3648 = vmatmul.f32.gmra.mxu2 %v1834_v3  ;;  %3824 = vmatmul.f32.gmra.mxu3 %v1941_v21 }
 0x1f9   : > { %v3601_v32 = vpop.f32.mrf.mxu2  ;;  %v3777_v26 = vpop.f32.mrf.mxu3 }
 0x1fa   : > { %v7527_v6 = vadd.f32 %v3777_v26, %v3599_v52  ;;  %v7532_v1 = vpop.f32.mrf.mxu0  ;;  %v3422_v39 = vpop.f32.mrf.mxu1  ;;  %v2051_v26 = vld [vmem:[#allocation2 + $0x110] sm:$0xff] }
 0x1fb   : > { %v3423_v36 = vadd.f32 %v3422_v39, %v7380_v58  ;;  %v3183_v58 = vld [vmem:[%s8128_s8 + $0x430] sm:$0xff] }
 0x1fc   : > { %4634 = vmatpush.msra.mxu0 %v3183_v58  ;;  %v1943_v39 = vld [vmem:[#allocation2 + $0x10f] sm:$0xff]  ;;  %v1944_v58 = vld [vmem:[#allocation2 + $0x117] sm:$0xff] }
 0x1fd   : > { %3469 = vmatmul.f32.gmra.mxu1 %v2047_v31  ;;  %4006 = vmatmul.f32.gmra.mxu0 %v2050_v19  ;;  %v3602_v9 = vadd.f32 %v3601_v32, %v3423_v36 }
 0x1fe   : > { %3651 = vmatmul.f32.gmra.mxu2 %v1835_v45  ;;  %3827 = vmatmul.f32.gmra.mxu3 %v1942_v48 }
 0x201   : > { %v3604_v3 = vpop.f32.mrf.mxu2  ;;  %v3780_v21 = vpop.f32.mrf.mxu3 }
 0x202   : > { %v7542_v10 = vadd.f32 %v3780_v21, %v3602_v9  ;;  %v7547_v31 = vpop.f32.mrf.mxu0  ;;  %v3425_v52 = vpop.f32.mrf.mxu1  ;;  %v2052_v21 = vld [vmem:[#allocation2 + $0x118] sm:$0xff] }
 0x203   : > { %v3426_v32 = vadd.f32 %v3425_v52, %v7397_v8 }
 0x205   : > { %3472 = vmatmul.f32.gmra.mxu1 %v2048_v40  ;;  %4009 = vmatmul.f32.gmra.mxu0 %v2051_v26  ;;  %v3605_v14 = vadd.f32 %v3604_v3, %v3426_v32  ;;  %v1837_v40 = vld [vmem:[#allocation2 + $0x109] sm:$0xff] }
 0x206   : > { %3654 = vmatmul.f32.gmra.mxu2 %v1836_v41  ;;  %3830 = vmatmul.f32.gmra.mxu3 %v1943_v39  ;;  %v3150_v32 = vld [vmem:[%s8128_s8 + $0x328] sm:$0xff] }
 0x207   : > { %4277 = vmatpush.msra.mxu2 %v3150_v32 }
 0x209   : > { %v3607_v36 = vpop.f32.mrf.mxu2  ;;  %v3783_v45 = vpop.f32.mrf.mxu3 }
 0x20a   : > { %v7554_v48 = vadd.f32 %v3783_v45, %v3605_v14  ;;  %v7556_v44 = vpop.f32.mrf.mxu0  ;;  %v3428_v9 = vpop.f32.mrf.mxu1  ;;  %v1838_v14 = vld [vmem:[#allocation2 + $0x111] sm:$0xff]  ;;  %v1945_v45 = vld [vmem:[#allocation2 + $0x11f] sm:$0xff] }
 0x20b   : > { %v3429_v8 = vadd.f32 %v3428_v9, %v7408_v59  ;;  %v2053_v59 = vld [vmem:[#allocation2 + $0x120] sm:$0xff]  ;;  %v3134_v9 = vld [vmem:[%s8128_s8 + $0x2a8] sm:$0xff] }
 0x20c   : > { %4098 = vmatpush.msra.mxu1 %v3134_v9 }
 0x20d   : > { %3475 = vmatmul.f32.gmra.mxu1 %v2049_v23  ;;  %4012 = vmatmul.f32.gmra.mxu0 %v2052_v21  ;;  %v3608_v3 = vadd.f32 %v3607_v36, %v3429_v8  ;;  %v3166_v36 = vld [vmem:[%s8128_s8 + $0x3a8] sm:$0xff] }
 0x20e   : > { %3657 = vmatmul.f32.gmra.mxu2 %v1837_v40  ;;  %3833 = vmatmul.f32.gmra.mxu3 %v1944_v58 }
 0x20f   : > { %4456 = vmatpush.msra.mxu3 %v3166_v36 }
 0x211   : > { %v3610_v52 = vpop.f32.mrf.mxu2  ;;  %v3786_v56 = vpop.f32.mrf.mxu3 }
 0x212   : > { %v7559_v25 = vadd.f32 %v3786_v56, %v3608_v3  ;;  %v7564_v41 = vpop.f32.mrf.mxu0  ;;  %v3431_v39 = vpop.f32.mrf.mxu1  ;;  %v2054_v56 = vld [vmem:[#allocation2 + $0x128] sm:$0xff] }
 0x213   : > { %v3432_v23 = vadd.f32 %v3431_v39, %v7201_v60  ;;  %v1839_v39 = vld [vmem:[#allocation2 + $0x119] sm:$0xff] }
 0x215   : > { %3478 = vmatmul.f32.gmra.mxu1 %v2050_v19  ;;  %4015 = vmatmul.f32.gmra.mxu0 %v2053_v59  ;;  %v3611_v8 = vadd.f32 %v3610_v52, %v3432_v23  ;;  %v3182_v52 = vld [vmem:[%s8128_s8 + $0x428] sm:$0xff] }
 0x216   : > { %3660 = vmatmul.f32.gmra.mxu2 %v1838_v14  ;;  %3836 = vmatmul.f32.gmra.mxu3 %v1945_v45  ;;  %v1946_v14 = vld [vmem:[#allocation2 + $0x127] sm:$0xff] }
 0x217   : > { %4635 = vmatpush.msra.mxu0 %v3182_v52 }
 0x219   : > { %v3613_v40 = vpop.f32.mrf.mxu2  ;;  %v3789_v58 = vpop.f32.mrf.mxu3 }
 0x21a   : > { %v7573_v60 = vadd.f32 %v3789_v58, %v3611_v8  ;;  %v7575_v19 = vpop.f32.mrf.mxu0  ;;  %v3434_v3 = vpop.f32.mrf.mxu1 }
 0x21b   : > { %8147 = vst [vmem:[#allocation19_spill] sm:$0xff] %v7575_v19  ;;  %v3435_v32 = vadd.f32 %v3434_v3, %v7223_v42  ;;  %v2055_v42 = vld [vmem:[#allocation2 + $0x130] sm:$0xff]  ;;  %v1840_v3 = vld [vmem:[#allocation2 + $0x121] sm:$0xff] }
 0x21c   : > { %v1947_v19 = vld [vmem:[#allocation2 + $0x12f] sm:$0xff] }
 0x21d   : > { %3481 = vmatmul.f32.gmra.mxu1 %v2051_v26  ;;  %4018 = vmatmul.f32.gmra.mxu0 %v2054_v56  ;;  %v3614_v23 = vadd.f32 %v3613_v40, %v3435_v32 }
 0x21e   : > { %3663 = vmatmul.f32.gmra.mxu2 %v1839_v39  ;;  %3839 = vmatmul.f32.gmra.mxu3 %v1946_v14 }
 0x221   : > { %v3616_v45 = vpop.f32.mrf.mxu2  ;;  %v3792_v36 = vpop.f32.mrf.mxu3 }
 0x222   : > { %v7581_v9 = vadd.f32 %v3792_v36, %v3614_v23  ;;  %v7583_v8 = vpop.f32.mrf.mxu0  ;;  %v3437_v58 = vpop.f32.mrf.mxu1  ;;  %v2056_v36 = vld [vmem:[#allocation2 + $0x138] sm:$0xff] }
 0x223   : > { %8149 = vst [vmem:[#allocation21_spill] sm:$0xff] %v7583_v8  ;;  %v3438_v26 = vadd.f32 %v3437_v58, %v7238_v62  ;;  %v1948_v62 = vld [vmem:[#allocation2 + $0x137] sm:$0xff] }
 0x224   : > { %8148 = vst [vmem:[#allocation20_spill] sm:$0xff] %v7581_v9  ;;  %v1841_v9 = vld [vmem:[#allocation2 + $0x129] sm:$0xff] }
 0x225   : > { %3484 = vmatmul.f32.gmra.mxu1 %v2052_v21  ;;  %4021 = vmatmul.f32.gmra.mxu0 %v2055_v42  ;;  %v3617_v39 = vadd.f32 %v3616_v45, %v3438_v26  ;;  %v3149_v21 = vld [vmem:[%s8128_s8 + $0x320] sm:$0xff] }
 0x226   : > { %3666 = vmatmul.f32.gmra.mxu2 %v1840_v3  ;;  %3842 = vmatmul.f32.gmra.mxu3 %v1947_v19  ;;  %v3165_v19 = vld [vmem:[%s8128_s8 + $0x3a0] sm:$0xff] }
 0x227   : > { %4278 = vmatpush.msra.mxu2 %v3149_v21  ;;  %4457 = vmatpush.msra.mxu3 %v3165_v19 }
 0x229   : > { %v3619_v14 = vpop.f32.mrf.mxu2  ;;  %v3795_v40 = vpop.f32.mrf.mxu3 }
 0x22a   : > { %v7586_v32 = vadd.f32 %v3795_v40, %v3617_v39  ;;  %v7588_v52 = vpop.f32.mrf.mxu0  ;;  %v3440_v23 = vpop.f32.mrf.mxu1  ;;  %v2057_v39 = vld [vmem:[#allocation2 + $0x140] sm:$0xff] }
 0x22b   : > { %v3441_v8 = vadd.f32 %v3440_v23, %v7266_v37  ;;  %v1842_v23 = vld [vmem:[#allocation2 + $0x131] sm:$0xff] }
 0x22d   : > { %3487 = vmatmul.f32.gmra.mxu1 %v2053_v59  ;;  %4024 = vmatmul.f32.gmra.mxu0 %v2056_v36  ;;  %v3620_v45 = vadd.f32 %v3619_v14, %v3441_v8  ;;  %v3133_v59 = vld [vmem:[%s8128_s8 + $0x2a0] sm:$0xff] }
 0x22e   : > { %3669 = vmatmul.f32.gmra.mxu2 %v1841_v9  ;;  %3845 = vmatmul.f32.gmra.mxu3 %v1948_v62  ;;  %v1949_v8 = vld [vmem:[#allocation2 + $0x13f] sm:$0xff] }
 0x22f   : > { %4099 = vmatpush.msra.mxu1 %v3133_v59  ;;  %v3181_v14 = vld [vmem:[%s8128_s8 + $0x420] sm:$0xff] }
 0x230   : > { %4636 = vmatpush.msra.mxu0 %v3181_v14 }
 0x231   : > { %v3622_v58 = vpop.f32.mrf.mxu2  ;;  %v3798_v26 = vpop.f32.mrf.mxu3 }
 0x232   : > { %v7597_v37 = vadd.f32 %v3798_v26, %v3620_v45  ;;  %v7602_v3 = vpop.f32.mrf.mxu0  ;;  %v3443_v9 = vpop.f32.mrf.mxu1 }
 0x233   : > { %8150 = vst [vmem:[#allocation22_spill] sm:$0xff] %v7602_v3  ;;  %v3444_v40 = vadd.f32 %v3443_v9, %v7287_v49  ;;  %v2058_v49 = vld [vmem:[#allocation2 + $0x148] sm:$0xff]  ;;  %v1843_v9 = vld [vmem:[#allocation2 + $0x139] sm:$0xff] }
 0x235   : > { %3490 = vmatmul.f32.gmra.mxu1 %v2054_v56  ;;  %4027 = vmatmul.f32.gmra.mxu0 %v2057_v39  ;;  %v3623_v62 = vadd.f32 %v3622_v58, %v3444_v40 }
 0x236   : > { %3672 = vmatmul.f32.gmra.mxu2 %v1842_v23  ;;  %3848 = vmatmul.f32.gmra.mxu3 %v1949_v8  ;;  %v1950_v23 = vld [vmem:[#allocation2 + $0x147] sm:$0xff] }
 0x239   : > { %v3625_v21 = vpop.f32.mrf.mxu2  ;;  %v3801_v19 = vpop.f32.mrf.mxu3 }
 0x23a   : > { %v7608_v45 = vadd.f32 %v3801_v19, %v3623_v62  ;;  %v7610_v26 = vpop.f32.mrf.mxu0  ;;  %v3446_v59 = vpop.f32.mrf.mxu1  ;;  %v2059_v19 = vld [vmem:[#allocation2 + $0x150] sm:$0xff] }
 0x23b   : > { %8152 = vst [vmem:[#allocation24_spill] sm:$0xff] %v7610_v26  ;;  %v3447_v56 = vadd.f32 %v3446_v59, %v7296_v16  ;;  %v1951_v16 = vld [vmem:[#allocation2 + $0x14f] sm:$0xff] }
 0x23c   : > { %8151 = vst [vmem:[#allocation23_spill] sm:$0xff] %v7608_v45  ;;  %v1844_v45 = vld [vmem:[#allocation2 + $0x141] sm:$0xff] }
 0x23d   : > { %3493 = vmatmul.f32.gmra.mxu1 %v2055_v42  ;;  %4030 = vmatmul.f32.gmra.mxu0 %v2058_v49  ;;  %v3626_v8 = vadd.f32 %v3625_v21, %v3447_v56  ;;  %v3148_v42 = vld [vmem:[%s8128_s8 + $0x318] sm:$0xff] }
 0x23e   : > { %3675 = vmatmul.f32.gmra.mxu2 %v1843_v9  ;;  %3851 = vmatmul.f32.gmra.mxu3 %v1950_v23 }
 0x23f   : > { %4279 = vmatpush.msra.mxu2 %v3148_v42 }
 0x241   : > { %v3628_v3 = vpop.f32.mrf.mxu2  ;;  %v3804_v58 = vpop.f32.mrf.mxu3 }
 0x242   : > { %v7613_v40 = vadd.f32 %v3804_v58, %v3626_v8  ;;  %v7615_v14 = vpop.f32.mrf.mxu0  ;;  %v3449_v62 = vpop.f32.mrf.mxu1  ;;  %v1845_v58 = vld [vmem:[#allocation2 + $0x149] sm:$0xff] }
 0x243   : > { %v3450_v26 = vadd.f32 %v3449_v62, %v7315_v5  ;;  %v3164_v5 = vld [vmem:[%s8128_s8 + $0x398] sm:$0xff] }
 0x244   : > { %4458 = vmatpush.msra.mxu3 %v3164_v5  ;;  %v1952_v62 = vld [vmem:[#allocation2 + $0x157] sm:$0xff]  ;;  %v2061_v5 = vld [vmem:[#allocation2 + $0x160] sm:$0xff] }
 0x245   : > { %3496 = vmatmul.f32.gmra.mxu1 %v2056_v36  ;;  %4033 = vmatmul.f32.gmra.mxu0 %v2059_v19  ;;  %v3629_v21 = vadd.f32 %v3628_v3, %v3450_v26  ;;  %v3132_v3 = vld [vmem:[%s8128_s8 + $0x298] sm:$0xff] }
 0x246   : > { %3678 = vmatmul.f32.gmra.mxu2 %v1844_v45  ;;  %3854 = vmatmul.f32.gmra.mxu3 %v1951_v16  ;;  %v2060_v45 = vld [vmem:[#allocation2 + $0x158] sm:$0xff] }
 0x247   : > { %4100 = vmatpush.msra.mxu1 %v3132_v3 }
 0x249   : > { %v3631_v59 = vpop.f32.mrf.mxu2  ;;  %v3807_v56 = vpop.f32.mrf.mxu3 }
 0x24a   : > { %v7621_v9 = vadd.f32 %v3807_v56, %v3629_v21  ;;  %v7626_v36 = vpop.f32.mrf.mxu0  ;;  %v3452_v23 = vpop.f32.mrf.mxu1 }
 0x24b   : > { %8153 = vst [vmem:[#allocation25_spill] sm:$0xff] %v7626_v36  ;;  %v3453_v8 = vadd.f32 %v3452_v23, %v7330_v17  ;;  %v3180_v17 = vld [vmem:[%s8128_s8 + $0x418] sm:$0xff] }
 0x24c   : > { %4637 = vmatpush.msra.mxu0 %v3180_v17 }
 0x24d   : > { %3499 = vmatmul.f32.gmra.mxu1 %v2057_v39  ;;  %4036 = vmatmul.f32.gmra.mxu0 %v2060_v45  ;;  %v3632_v26 = vadd.f32 %v3631_v59, %v3453_v8 }
 0x24e   : > { %3681 = vmatmul.f32.gmra.mxu2 %v1845_v58  ;;  %3857 = vmatmul.f32.gmra.mxu3 %v1952_v62  ;;  %v1846_v58 = vld [vmem:[#allocation2 + $0x151] sm:$0xff]  ;;  %v1953_v62 = vld [vmem:[#allocation2 + $0x15f] sm:$0xff] }
 0x251   : > { %v3634_v16 = vpop.f32.mrf.mxu2  ;;  %v3810_v42 = vpop.f32.mrf.mxu3 }
 0x252   : > { %v7632_v21 = vadd.f32 %v3810_v42, %v3632_v26  ;;  %v7637_v39 = vpop.f32.mrf.mxu0  ;;  %v3455_v56 = vpop.f32.mrf.mxu1 }
 0x253   : > { %8155 = vst [vmem:[#allocation27_spill] sm:$0xff] %v7637_v39  ;;  %v3456_v23 = vadd.f32 %v3455_v56, %v7344_v29  ;;  %v2062_v39 = vld [vmem:[#allocation2 + $0x168] sm:$0xff] }
 0x254   : > { %8154 = vst [vmem:[#allocation26_spill] sm:$0xff] %v7632_v21  ;;  %v1847_v21 = vld [vmem:[#allocation2 + $0x159] sm:$0xff]  ;;  %v1954_v29 = vld [vmem:[#allocation2 + $0x167] sm:$0xff] }
 0x255   : > { %3502 = vmatmul.f32.gmra.mxu1 %v2058_v49  ;;  %4039 = vmatmul.f32.gmra.mxu0 %v2061_v5  ;;  %v3635_v59 = vadd.f32 %v3634_v16, %v3456_v23 }
 0x256   : > { %3684 = vmatmul.f32.gmra.mxu2 %v1846_v58  ;;  %3860 = vmatmul.f32.gmra.mxu3 %v1953_v62 }
 0x259   : > { %v3637_v8 = vpop.f32.mrf.mxu2  ;;  %v3813_v3 = vpop.f32.mrf.mxu3 }
 0x25a   : > { %v7640_v26 = vadd.f32 %v3813_v3, %v3635_v59  ;;  %v7642_v42 = vpop.f32.mrf.mxu0  ;;  %v3458_v36 = vpop.f32.mrf.mxu1  ;;  %v1848_v59 = vld [vmem:[#allocation2 + $0x161] sm:$0xff]  ;;  %v2063_v3 = vld [vmem:[#allocation2 + $0x170] sm:$0xff] }
 0x25b   : > { %8156 = vst [vmem:[#allocation28_spill] sm:$0xff] %v7642_v42  ;;  %v3459_v17 = vadd.f32 %v3458_v36, %v7360_v27  ;;  %v1955_v27 = vld [vmem:[#allocation2 + $0x16f] sm:$0xff] }
 0x25c   : > { %v3163_v36 = vld [vmem:[%s8128_s8 + $0x390] sm:$0xff] }
 0x25d   : > { %3505 = vmatmul.f32.gmra.mxu1 %v2059_v19  ;;  %4042 = vmatmul.f32.gmra.mxu0 %v2062_v39  ;;  %v3638_v49 = vadd.f32 %v3637_v8, %v3459_v17  ;;  %v3147_v19 = vld [vmem:[%s8128_s8 + $0x310] sm:$0xff] }
 0x25e   : > { %3687 = vmatmul.f32.gmra.mxu2 %v1847_v21  ;;  %3863 = vmatmul.f32.gmra.mxu3 %v1954_v29  ;;  %v3131_v21 = vld [vmem:[%s8128_s8 + $0x290] sm:$0xff] }
 0x25f   : > { %4280 = vmatpush.msra.mxu2 %v3147_v19  ;;  %4459 = vmatpush.msra.mxu3 %v3163_v36 }
 0x260   : > { %4101 = vmatpush.msra.mxu1 %v3131_v21 }
 0x261   : > { %v3640_v56 = vpop.f32.mrf.mxu2  ;;  %v3816_v58 = vpop.f32.mrf.mxu3 }
 0x262   : > { %v7645_v16 = vadd.f32 %v3816_v58, %v3638_v49  ;;  %v7647_v23 = vpop.f32.mrf.mxu0  ;;  %v3461_v62 = vpop.f32.mrf.mxu1  ;;  %v2064_v58 = vld [vmem:[#allocation2 + $0x178] sm:$0xff] }
 0x263   : > { %v3462_v42 = vadd.f32 %v3461_v62, %v7371_v61 }
 0x265   : > { %3508 = vmatmul.f32.gmra.mxu1 %v2060_v45  ;;  %4045 = vmatmul.f32.gmra.mxu0 %v2063_v3  ;;  %v3641_v8 = vadd.f32 %v3640_v56, %v3462_v42  ;;  %v3179_v42 = vld [vmem:[%s8128_s8 + $0x410] sm:$0xff] }
 0x266   : > { %3690 = vmatmul.f32.gmra.mxu2 %v1848_v59  ;;  %3866 = vmatmul.f32.gmra.mxu3 %v1955_v27  ;;  %v1849_v59 = vld [vmem:[#allocation2 + $0x169] sm:$0xff]  ;;  %v1956_v27 = vld [vmem:[#allocation2 + $0x177] sm:$0xff] }
 0x267   : > { %4638 = vmatpush.msra.mxu0 %v3179_v42 }
 0x269   : > { %v3643_v61 = vpop.f32.mrf.mxu2  ;;  %v3819_v45 = vpop.f32.mrf.mxu3 }
 0x26a   : > { %v7659_v17 = vadd.f32 %v3819_v45, %v3641_v8  ;;  %v7661_v29 = vpop.f32.mrf.mxu0  ;;  %v3464_v49 = vpop.f32.mrf.mxu1 }
 0x26b   : > { %8157 = vst [vmem:[#allocation29_spill] sm:$0xff] %v7661_v29  ;;  %v3465_v62 = vadd.f32 %v3464_v49, %v7382_v4  ;;  %v2065_v4 = vld [vmem:[#allocation2 + $0x180] sm:$0xff]  ;;  %v1850_v49 = vld [vmem:[#allocation2 + $0x171] sm:$0xff] }
 0x26c   : > { %v1957_v29 = vld [vmem:[#allocation2 + $0x17f] sm:$0xff] }
 0x26d   : > { %3511 = vmatmul.f32.gmra.mxu1 %v2061_v5  ;;  %4048 = vmatmul.f32.gmra.mxu0 %v2064_v58  ;;  %v3644_v56 = vadd.f32 %v3643_v61, %v3465_v62 }
 0x26e   : > { %3693 = vmatmul.f32.gmra.mxu2 %v1849_v59  ;;  %3869 = vmatmul.f32.gmra.mxu3 %v1956_v27 }
 0x271   : > { %v3646_v19 = vpop.f32.mrf.mxu2  ;;  %v3822_v36 = vpop.f32.mrf.mxu3 }
 0x272   : > { %v7667_v21 = vadd.f32 %v3822_v36, %v3644_v56  ;;  %v7669_v8 = vpop.f32.mrf.mxu0  ;;  %v3467_v45 = vpop.f32.mrf.mxu1  ;;  %v2066_v36 = vld [vmem:[#allocation2 + $0x188] sm:$0xff] }
 0x273   : > { %8159 = vst [vmem:[#allocation31_spill] sm:$0xff] %v7669_v8  ;;  %v3468_v5 = vadd.f32 %v3467_v45, %v7399_v28  ;;  %v1958_v28 = vld [vmem:[#allocation2 + $0x187] sm:$0xff] }
 0x274   : > { %8158 = vst [vmem:[#allocation30_spill] sm:$0xff] %v7667_v21  ;;  %v1851_v21 = vld [vmem:[#allocation2 + $0x179] sm:$0xff] }
 0x275   : > { %3514 = vmatmul.f32.gmra.mxu1 %v2062_v39  ;;  %4051 = vmatmul.f32.gmra.mxu0 %v2065_v4  ;;  %v3647_v59 = vadd.f32 %v3646_v19, %v3468_v5  ;;  %v3146_v39 = vld [vmem:[%s8128_s8 + $0x308] sm:$0xff] }
 0x276   : > { %3696 = vmatmul.f32.gmra.mxu2 %v1850_v49  ;;  %3872 = vmatmul.f32.gmra.mxu3 %v1957_v29  ;;  %v3162_v29 = vld [vmem:[%s8128_s8 + $0x388] sm:$0xff] }
 0x277   : > { %4281 = vmatpush.msra.mxu2 %v3146_v39  ;;  %4460 = vmatpush.msra.mxu3 %v3162_v29 }
 0x279   : > { %v3649_v27 = vpop.f32.mrf.mxu2  ;;  %v3825_v61 = vpop.f32.mrf.mxu3 }
 0x27a   : > { %v7672_v62 = vadd.f32 %v3825_v61, %v3647_v59  ;;  %v7674_v42 = vpop.f32.mrf.mxu0  ;;  %v3470_v56 = vpop.f32.mrf.mxu1  ;;  %v2067_v59 = vld [vmem:[#allocation2 + $0x190] sm:$0xff] }
 0x27b   : > { %v3471_v8 = vadd.f32 %v3470_v56, %v7410_v15  ;;  %v1852_v56 = vld [vmem:[#allocation2 + $0x181] sm:$0xff] }
 0x27d   : > { %3517 = vmatmul.f32.gmra.mxu1 %v2063_v3  ;;  %4054 = vmatmul.f32.gmra.mxu0 %v2066_v36  ;;  %v3650_v19 = vadd.f32 %v3649_v27, %v3471_v8  ;;  %v3130_v3 = vld [vmem:[%s8128_s8 + $0x288] sm:$0xff] }
 0x27e   : > { %3699 = vmatmul.f32.gmra.mxu2 %v1851_v21  ;;  %3875 = vmatmul.f32.gmra.mxu3 %v1958_v28  ;;  %v1959_v8 = vld [vmem:[#allocation2 + $0x18f] sm:$0xff] }
 0x27f   : > { %4102 = vmatpush.msra.mxu1 %v3130_v3  ;;  %v3178_v27 = vld [vmem:[%s8128_s8 + $0x408] sm:$0xff] }
 0x280   : > { %4639 = vmatpush.msra.mxu0 %v3178_v27 }
 0x281   : > { %v3652_v45 = vpop.f32.mrf.mxu2  ;;  %v3828_v5 = vpop.f32.mrf.mxu3 }
 0x282   : > { %v7683_v15 = vadd.f32 %v3828_v5, %v3650_v19  ;;  %v7688_v21 = vpop.f32.mrf.mxu0  ;;  %v3473_v49 = vpop.f32.mrf.mxu1 }
 0x283   : > { %8160 = vst [vmem:[#allocation32_spill] sm:$0xff] %v7688_v21  ;;  %v3474_v61 = vadd.f32 %v3473_v49, %v7184_v38  ;;  %v2068_v38 = vld [vmem:[#allocation2 + $0x198] sm:$0xff]  ;;  %v1853_v49 = vld [vmem:[#allocation2 + $0x189] sm:$0xff] }
 0x285   : > { %3520 = vmatmul.f32.gmra.mxu1 %v2064_v58  ;;  %4057 = vmatmul.f32.gmra.mxu0 %v2067_v59  ;;  %v3653_v28 = vadd.f32 %v3652_v45, %v3474_v61 }
 0x286   : > { %3702 = vmatmul.f32.gmra.mxu2 %v1852_v56  ;;  %3878 = vmatmul.f32.gmra.mxu3 %v1959_v8  ;;  %v1960_v56 = vld [vmem:[#allocation2 + $0x197] sm:$0xff] }
 0x289   : > { %v3655_v39 = vpop.f32.mrf.mxu2  ;;  %v3831_v29 = vpop.f32.mrf.mxu3 }
 0x28a   : > { %v7694_v19 = vadd.f32 %v3831_v29, %v3653_v28  ;;  %v7696_v5 = vpop.f32.mrf.mxu0  ;;  %v3476_v3 = vpop.f32.mrf.mxu1  ;;  %v2069_v29 = vld [vmem:[#allocation2 + $0x1a0] sm:$0xff] }
 0x28b   : > { %8162 = vst [vmem:[#allocation34_spill] sm:$0xff] %v7696_v5  ;;  %v3477_v58 = vadd.f32 %v3476_v3, %v7212_v55  ;;  %v1961_v55 = vld [vmem:[#allocation2 + $0x19f] sm:$0xff] }
 0x28c   : > { %8161 = vst [vmem:[#allocation33_spill] sm:$0xff] %v7694_v19  ;;  %v1854_v19 = vld [vmem:[#allocation2 + $0x191] sm:$0xff] }
 0x28d   : > { %3523 = vmatmul.f32.gmra.mxu1 %v2065_v4  ;;  %4060 = vmatmul.f32.gmra.mxu0 %v2068_v38  ;;  %v3656_v8 = vadd.f32 %v3655_v39, %v3477_v58  ;;  %v3145_v58 = vld [vmem:[%s8128_s8 + $0x300] sm:$0xff] }
 0x28e   : > { %3705 = vmatmul.f32.gmra.mxu2 %v1853_v49  ;;  %3881 = vmatmul.f32.gmra.mxu3 %v1960_v56 }
 0x28f   : > { %4282 = vmatpush.msra.mxu2 %v3145_v58  ;;  %v2071_v58 = vld [vmem:[#allocation2 + $0x1b0] sm:$0xff] }
 0x291   : > { %v3658_v21 = vpop.f32.mrf.mxu2  ;;  %v3834_v45 = vpop.f32.mrf.mxu3 }
 0x292   : > { %v7699_v61 = vadd.f32 %v3834_v45, %v3656_v8  ;;  %v7701_v27 = vpop.f32.mrf.mxu0  ;;  %v3479_v28 = vpop.f32.mrf.mxu1 }
 0x293   : > { %8163 = vst [vmem:[#allocation35_spill] sm:$0xff] %v7701_v27  ;;  %v3480_v5 = vadd.f32 %v3479_v28, %v7227_v13  ;;  %v1855_v13 = vld [vmem:[#allocation2 + $0x199] sm:$0xff]  ;;  %v1963_v27 = vld [vmem:[#allocation2 + $0x1af] sm:$0xff] }
 0x295   : > { %3526 = vmatmul.f32.gmra.mxu1 %v2066_v36  ;;  %4063 = vmatmul.f32.gmra.mxu0 %v2069_v29  ;;  %v3659_v4 = vadd.f32 %v3658_v21, %v3480_v5  ;;  %v2070_v36 = vld [vmem:[#allocation2 + $0x1a8] sm:$0xff]  ;;  %v3161_v21 = vld [vmem:[%s8128_s8 + $0x380] sm:$0xff] }
 0x296   : > { %3708 = vmatmul.f32.gmra.mxu2 %v1854_v19  ;;  %3884 = vmatmul.f32.gmra.mxu3 %v1961_v55  ;;  %v1962_v19 = vld [vmem:[#allocation2 + $0x1a7] sm:$0xff] }
 0x297   : > { %v3129_v5 = vld [vmem:[%s8128_s8 + $0x280] sm:$0xff]  ;;  %4461 = vmatpush.msra.mxu3 %v3161_v21 }
 0x298   : > { %4103 = vmatpush.msra.mxu1 %v3129_v5 }
 0x299   : > { %v3661_v3 = vpop.f32.mrf.mxu2  ;;  %v3837_v49 = vpop.f32.mrf.mxu3 }
 0x29a   : > { %v7704_v39 = vadd.f32 %v3837_v49, %v3659_v4  ;;  %v7709_v56 = vpop.f32.mrf.mxu0  ;;  %v3482_v8 = vpop.f32.mrf.mxu1 }
 0x29b   : > { %8164 = vst [vmem:[#allocation36_spill] sm:$0xff] %v7709_v56  ;;  %v3483_v45 = vadd.f32 %v3482_v8, %v7260_v35  ;;  %v1856_v56 = vld [vmem:[#allocation2 + $0x1a1] sm:$0xff] }
 0x29d   : > { %3529 = vmatmul.f32.gmra.mxu1 %v2067_v59  ;;  %4066 = vmatmul.f32.gmra.mxu0 %v2070_v36  ;;  %v3662_v28 = vadd.f32 %v3661_v3, %v3483_v45  ;;  %v3177_v3 = vld [vmem:[%s8128_s8 + $0x400] sm:$0xff] }
 0x29e   : > { %3711 = vmatmul.f32.gmra.mxu2 %v1855_v13  ;;  %3887 = vmatmul.f32.gmra.mxu3 %v1962_v19 }
 0x29f   : > { %4640 = vmatpush.msra.mxu0 %v3177_v3 }
 0x2a1   : > { %v3664_v55 = vpop.f32.mrf.mxu2  ;;  %v3840_v4 = vpop.f32.mrf.mxu3 }
 0x2a2   : > { %v7718_v49 = vadd.f32 %v3840_v4, %v3662_v28  ;;  %v7720_v35 = vpop.f32.mrf.mxu0  ;;  %v3485_v59 = vpop.f32.mrf.mxu1  ;;  %v1857_v4 = vld [vmem:[#allocation2 + $0x1a9] sm:$0xff] }
 0x2a3   : > { %8165 = vst [vmem:[#allocation37_spill] sm:$0xff] %v7720_v35  ;;  %v3486_v8 = vadd.f32 %v3485_v59, %v7285_v51  ;;  %v2072_v51 = vld [vmem:[#allocation2 + $0x1b8] sm:$0xff] }
 0x2a4   : > { %v1964_v59 = vld [vmem:[#allocation2 + $0x1b7] sm:$0xff] }
 0x2a5   : > { %3532 = vmatmul.f32.gmra.mxu1 %v2068_v38  ;;  %4069 = vmatmul.f32.gmra.mxu0 %v2071_v58  ;;  %v3665_v13 = vadd.f32 %v3664_v55, %v3486_v8  ;;  %v1858_v35 = vld [vmem:[#allocation2 + $0x1b1] sm:$0xff] }
 0x2a6   : > { %3714 = vmatmul.f32.gmra.mxu2 %v1856_v56  ;;  %3890 = vmatmul.f32.gmra.mxu3 %v1963_v27 }
 0x2a9   : > { %v3667_v45 = vpop.f32.mrf.mxu2  ;;  %v3843_v19 = vpop.f32.mrf.mxu3 }
 0x2aa   : > { %v7726_v21 = vadd.f32 %v3843_v19, %v3665_v13  ;;  %v7728_v5 = vpop.f32.mrf.mxu0  ;;  %v3488_v28 = vpop.f32.mrf.mxu1  ;;  %v2073_v19 = vld [vmem:[#allocation2 + $0x1c0] sm:$0xff] }
 0x2ab   : > { %8166 = vst [vmem:[#allocation38_spill] sm:$0xff] %v7728_v5  ;;  %v3489_v38 = vadd.f32 %v3488_v28, %v7294_v53  ;;  %v1965_v53 = vld [vmem:[#allocation2 + $0x1bf] sm:$0xff] }
 0x2ad   : > { %3535 = vmatmul.f32.gmra.mxu1 %v2069_v29  ;;  %4072 = vmatmul.f32.gmra.mxu0 %v2072_v51  ;;  %v3668_v56 = vadd.f32 %v3667_v45, %v3489_v38 }
 0x2ae   : > { %3717 = vmatmul.f32.gmra.mxu2 %v1857_v4  ;;  %3893 = vmatmul.f32.gmra.mxu3 %v1964_v59 }
 0x2b1   : > { %v3670_v27 = vpop.f32.mrf.mxu2  ;;  %v3846_v55 = vpop.f32.mrf.mxu3 }
 0x2b2   : > { %v7731_v8 = vadd.f32 %v3846_v55, %v3668_v56  ;;  %v7733_v3 = vpop.f32.mrf.mxu0  ;;  %v3491_v13 = vpop.f32.mrf.mxu1  ;;  %v2074_v56 = vld [vmem:[#allocation2 + $0x1c8] sm:$0xff] }
 0x2b3   : > { %8167 = vst [vmem:[#allocation39_spill] sm:$0xff] %v7733_v3  ;;  %v3492_v5 = vadd.f32 %v3491_v13, %v7313_v7  ;;  %v1859_v3 = vld [vmem:[#allocation2 + $0x1b9] sm:$0xff]  ;;  %v1966_v7 = vld [vmem:[#allocation2 + $0x1c7] sm:$0xff] }
 0x2b5   : > { %3538 = vmatmul.f32.gmra.mxu1 %v2070_v36  ;;  %4075 = vmatmul.f32.gmra.mxu0 %v2073_v19  ;;  %v3671_v29 = vadd.f32 %v3670_v27, %v3492_v5 }
 0x2b6   : > { %3720 = vmatmul.f32.gmra.mxu2 %v1858_v35  ;;  %3896 = vmatmul.f32.gmra.mxu3 %v1965_v53 }
 0x2b9   : > { %v3673_v28 = vpop.f32.mrf.mxu2  ;;  %v3849_v4 = vpop.f32.mrf.mxu3 }
 0x2ba   : > { %v7736_v45 = vadd.f32 %v3849_v4, %v3671_v29  ;;  %v7738_v38 = vpop.f32.mrf.mxu0  ;;  %v3494_v59 = vpop.f32.mrf.mxu1  ;;  %v2075_v29 = vld [vmem:[#allocation2 + $0x1d0] sm:$0xff] }
 0x2bb   : > { %8169 = vst [vmem:[#allocation41_spill] sm:$0xff] %v7738_v38  ;;  %v3495_v55 = vadd.f32 %v3494_v59, %v7326_v12  ;;  %v1860_v38 = vld [vmem:[#allocation2 + $0x1c1] sm:$0xff]  ;;  %v1967_v12 = vld [vmem:[#allocation2 + $0x1cf] sm:$0xff] }
 0x2bc   : > { %8168 = vst [vmem:[#allocation40_spill] sm:$0xff] %v7736_v45  ;;  %v7853_v45 = vld [vmem:[#allocation2 + $0xe9] sm:$0xff] }
 0x2bd   : > { %3541 = vmatmul.f32.gmra.mxu1 %v2071_v58  ;;  %4078 = vmatmul.f32.gmra.mxu0 %v2074_v56  ;;  %v3674_v36 = vadd.f32 %v3673_v28, %v3495_v55 }
 0x2be   : > { %3723 = vmatmul.f32.gmra.mxu2 %v1859_v3  ;;  %3899 = vmatmul.f32.gmra.mxu3 %v1966_v7  ;;  %v2076_v7 = vld [vmem:[#allocation2 + $0x1d8] sm:$0xff] }
 0x2c1   : > { %v3676_v35 = vpop.f32.mrf.mxu2  ;;  %v3852_v13 = vpop.f32.mrf.mxu3 }
 0x2c2   : > { %v7741_v5 = vadd.f32 %v3852_v13, %v3674_v36  ;;  %v7743_v27 = vpop.f32.mrf.mxu0  ;;  %v3497_v53 = vpop.f32.mrf.mxu1  ;;  %v1968_v13 = vld [vmem:[#allocation2 + $0x1d7] sm:$0xff] }
 0x2c3   : > { %8171 = vst [vmem:[#allocation43_spill] sm:$0xff] %v7743_v27  ;;  %v3498_v4 = vadd.f32 %v3497_v53, %v7336_v11  ;;  %v2239_v11 = vld [vmem:[#allocation2 + $0x47] sm:$0xff] }
 0x2c4   : > { %8170 = vst [vmem:[#allocation42_spill] sm:$0xff] %v7741_v5  ;;  %v2243_v27 = vld [vmem:[#allocation2 + $0x67] sm:$0xff]  ;;  %v7838_v5 = vld [vmem:[#allocation2 + $0xd9] sm:$0xff] }
 0x2c5   : > { %3544 = vmatmul.f32.gmra.mxu1 %v2072_v51  ;;  %4081 = vmatmul.f32.gmra.mxu0 %v2075_v29  ;;  %v3677_v58 = vadd.f32 %v3676_v35, %v3498_v4 }
 0x2c6   : > { %3726 = vmatmul.f32.gmra.mxu2 %v1860_v38  ;;  %3902 = vmatmul.f32.gmra.mxu3 %v1967_v12  ;;  %v2131_v12 = vld [vmem:[#allocation2 + $0x31] sm:$0xff] }
 0x2c9   : > { %v3679_v3 = vpop.f32.mrf.mxu2  ;;  %v3855_v59 = vpop.f32.mrf.mxu3 }
 0x2ca   : > { %v7746_v28 = vadd.f32 %v3855_v59, %v3677_v58  ;;  %v7748_v56 = vpop.f32.mrf.mxu0  ;;  %v3500_v55 = vpop.f32.mrf.mxu1  ;;  %v2455_v58 = vld [vmem:[#allocation2 + $0x49] sm:$0xff] }
 0x2cb   : > { %8173 = vst [vmem:[#allocation45_spill] sm:$0xff] %v7748_v56  ;;  %v3501_v36 = vadd.f32 %v3500_v55, %v7357_v30  ;;  %v2240_v30 = vld [vmem:[#allocation2 + $0x4f] sm:$0xff] }
 0x2cc   : > { %8172 = vst [vmem:[#allocation44_spill] sm:$0xff] %v7746_v28 }
 0x2cd   : > { %3547 = vmatmul.f32.gmra.mxu1 %v2073_v19  ;;  %4084 = vmatmul.f32.gmra.mxu0 %v2076_v7  ;;  %v3680_v51 = vadd.f32 %v3679_v3, %v3501_v36  ;;  %v2347_v19 = vld [vmem:[#allocation2 + $0x48] sm:$0xff] }
 0x2ce   : > { %3905 = vmatmul.f32.gmra.mxu3 %v1968_v13  ;;  %4283 = vmatmul.f32.vlgmr.msra.gmra.mxu2 %v2239_v11 }
 0x2d1   : > { %v3682_v38 = vpop.f32.mrf.mxu2  ;;  %v3858_v53 = vpop.f32.mrf.mxu3 }
 0x2d2   : > { %v7751_v35 = vadd.f32 %v3858_v53, %v3680_v51  ;;  %v7753_v29 = vpop.f32.mrf.mxu0  ;;  %v3503_v4 = vpop.f32.mrf.mxu1  ;;  %v2132_v51 = vld [vmem:[#allocation2 + $0x39] sm:$0xff]  ;;  %v2456_v53 = vld [vmem:[#allocation2 + $0x51] sm:$0xff] }
 0x2d3   : > { %8175 = vst [vmem:[#allocation47_spill] sm:$0xff] %v7753_v29  ;;  %v3504_v59 = vadd.f32 %v3503_v4, %v7369_v22  ;;  %v8178_v29 = vld [vmem:[#allocation13_spill] sm:$0xff]  ;;  %v2348_v4 = vld [vmem:[#allocation2 + $0x50] sm:$0xff] }
 0x2d4   : > { %8174 = vst [vmem:[#allocation46_spill] sm:$0xff] %v7751_v35  ;;  %v2241_v22 = vld [vmem:[#allocation2 + $0x57] sm:$0xff] }
 0x2d5   : > { %4104 = vmatmul.f32.vlgmr.msra.gmra.mxu1 %v2131_v12  ;;  %4641 = vmatmul.f32.vlgmr.msra.gmra.mxu0 %v2455_v58  ;;  %v3683_v55 = vadd.f32 %v3682_v38, %v3504_v59 }
 0x2d6   : > { %4286 = vmatmul.f32.gmra.mxu2 %v2240_v30  ;;  %4462 = vmatmul.f32.vlgmr.msra.gmra.mxu3 %v2347_v19 }
 0x2d9   : > { %v3685_v7 = vpop.f32.mrf.mxu2  ;;  %v3861_v3 = vpop.f32.mrf.mxu3 }
 0x2da   : > { %v7756_v36 = vadd.f32 %v3861_v3, %v3683_v55  ;;  %v7758_v13 = vpop.f32.mrf.mxu0  ;;  %v3506_v11 = vpop.f32.mrf.mxu1  ;;  %v2133_v3 = vld [vmem:[#allocation2 + $0x41] sm:$0xff] }
 0x2db   : > { %8177 = vst [vmem:[#allocation49_spill] sm:$0xff] %v7758_v13  ;;  %v3507_v56 = vadd.f32 %v3506_v11, %v8178_v29  ;;  %v2457_v13 = vld [vmem:[#allocation2 + $0x59] sm:$0xff] }
 0x2dc   : > { %8176 = vst [vmem:[#allocation48_spill] sm:$0xff] %v7756_v36  ;;  %v8181_v36 = vld [vmem:[#allocation15_spill] sm:$0xff]  ;;  %v2242_v29 = vld [vmem:[#allocation2 + $0x5f] sm:$0xff] }
 0x2dd   : > { %4107 = vmatmul.f32.gmra.mxu1 %v2132_v51  ;;  %4644 = vmatmul.f32.gmra.mxu0 %v2456_v53  ;;  %v3686_v12 = vadd.f32 %v3685_v7, %v3507_v56  ;;  %v2349_v11 = vld [vmem:[#allocation2 + $0x58] sm:$0xff] }
 0x2de   : > { %4289 = vmatmul.f32.gmra.mxu2 %v2241_v22  ;;  %4465 = vmatmul.f32.gmra.mxu3 %v2348_v4 }
 0x2e1   : > { %v3688_v30 = vpop.f32.mrf.mxu2  ;;  %v3864_v38 = vpop.f32.mrf.mxu3 }
 0x2e2   : > { %v7761_v59 = vadd.f32 %v3864_v38, %v3686_v12  ;;  %v7763_v19 = vpop.f32.mrf.mxu0  ;;  %v3509_v55 = vpop.f32.mrf.mxu1  ;;  %v2458_v38 = vld [vmem:[#allocation2 + $0x61] sm:$0xff] }
 0x2e3   : > { %8180 = vst [vmem:[#allocation50_spill] sm:$0xff] %v7763_v19  ;;  %v3510_v35 = vadd.f32 %v3509_v55, %v8181_v36  ;;  %v8184_v19 = vld [vmem:[#allocation16_spill] sm:$0xff]  ;;  %v2350_v36 = vld [vmem:[#allocation2 + $0x60] sm:$0xff] }
 0x2e4   : > { %8179 = vst [vmem:[#allocation13_spill] sm:$0xff] %v7761_v59 }
 0x2e5   : > { %4110 = vmatmul.f32.gmra.mxu1 %v2133_v3  ;;  %4647 = vmatmul.f32.gmra.mxu0 %v2457_v13  ;;  %v3689_v51 = vadd.f32 %v3688_v30, %v3510_v35 }
 0x2e6   : > { %4292 = vmatmul.f32.gmra.mxu2 %v2242_v29  ;;  %4468 = vmatmul.f32.gmra.mxu3 %v2349_v11 }
 0x2e9   : > { %v3691_v22 = vpop.f32.mrf.mxu2  ;;  %v3867_v56 = vpop.f32.mrf.mxu3 }
 0x2ea   : > { %v7766_v7 = vadd.f32 %v3867_v56, %v3689_v51  ;;  %v7768_v4 = vpop.f32.mrf.mxu0  ;;  %v3512_v12 = vpop.f32.mrf.mxu1  ;;  %v2459_v51 = vld [vmem:[#allocation2 + $0x69] sm:$0xff] }
 0x2eb   : > { %8183 = vst [vmem:[#allocation51_spill] sm:$0xff] %v7768_v4  ;;  %v3513_v59 = vadd.f32 %v3512_v12, %v8184_v19  ;;  %v8187_v56 = vld [vmem:[#allocation4_spill] sm:$0xff]  ;;  %v2351_v19 = vld [vmem:[#allocation2 + $0x68] sm:$0xff] }
 0x2ec   : > { %8182 = vst [vmem:[#allocation15_spill] sm:$0xff] %v7766_v7  ;;  %v2244_v7 = vld [vmem:[#allocation2 + $0x6f] sm:$0xff] }
 0x2ed   : > { %4113 = vmatmul.f32.gmra.mxu1 %v2455_v58  ;;  %4650 = vmatmul.f32.gmra.mxu0 %v2458_v38  ;;  %v3692_v55 = vadd.f32 %v3691_v22, %v3513_v59 }
 0x2ee   : > { %4295 = vmatmul.f32.gmra.mxu2 %v2243_v27  ;;  %4471 = vmatmul.f32.gmra.mxu3 %v2350_v36 }
 0x2f1   : > { %v3694_v3 = vpop.f32.mrf.mxu2  ;;  %v3870_v29 = vpop.f32.mrf.mxu3 }
 0x2f2   : > { %v7771_v35 = vadd.f32 %v3870_v29, %v3692_v55  ;;  %v7773_v30 = vpop.f32.mrf.mxu0  ;;  %v3515_v11 = vpop.f32.mrf.mxu1  ;;  %v2460_v55 = vld [vmem:[#allocation2 + $0x71] sm:$0xff] }
 0x2f3   : > { %8186 = vst [vmem:[#allocation52_spill] sm:$0xff] %v7773_v30  ;;  %v3516_v4 = vadd.f32 %v3515_v11, %v8187_v56  ;;  %v8190_v29 = vld [vmem:[#allocation5_spill] sm:$0xff]  ;;  %v2352_v11 = vld [vmem:[#allocation2 + $0x70] sm:$0xff] }
 0x2f4   : > { %8185 = vst [vmem:[#allocation16_spill] sm:$0xff] %v7771_v35  ;;  %v2245_v35 = vld [vmem:[#allocation2 + $0x77] sm:$0xff] }
 0x2f5   : > { %4116 = vmatmul.f32.gmra.mxu1 %v2456_v53  ;;  %4653 = vmatmul.f32.gmra.mxu0 %v2459_v51  ;;  %v3695_v58 = vadd.f32 %v3694_v3, %v3516_v4 }
 0x2f6   : > { %4298 = vmatmul.f32.gmra.mxu2 %v2244_v7  ;;  %4474 = vmatmul.f32.gmra.mxu3 %v2351_v19 }
 0x2f9   : > { %v3697_v27 = vpop.f32.mrf.mxu2  ;;  %v3873_v12 = vpop.f32.mrf.mxu3 }
 0x2fa   : > { %v7776_v59 = vadd.f32 %v3873_v12, %v3695_v58  ;;  %v7778_v22 = vpop.f32.mrf.mxu0  ;;  %v3518_v36 = vpop.f32.mrf.mxu1  ;;  %v2461_v58 = vld [vmem:[#allocation2 + $0x79] sm:$0xff] }
 0x2fb   : > { %8189 = vst [vmem:[#allocation53_spill] sm:$0xff] %v7778_v22  ;;  %v3519_v30 = vadd.f32 %v3518_v36, %v8190_v29  ;;  %v8193_v12 = vld [vmem:[#allocation6_spill] sm:$0xff]  ;;  %v2353_v36 = vld [vmem:[#allocation2 + $0x78] sm:$0xff] }
 0x2fc   : > { %8188 = vst [vmem:[#allocation4_spill] sm:$0xff] %v7776_v59  ;;  %v2246_v59 = vld [vmem:[#allocation2 + $0x7f] sm:$0xff] }
 0x2fd   : > { %4119 = vmatmul.f32.gmra.mxu1 %v2457_v13  ;;  %4656 = vmatmul.f32.gmra.mxu0 %v2460_v55  ;;  %v3698_v53 = vadd.f32 %v3697_v27, %v3519_v30 }
 0x2fe   : > { %4301 = vmatmul.f32.gmra.mxu2 %v2245_v35  ;;  %4477 = vmatmul.f32.gmra.mxu3 %v2352_v11 }
 0x301   : > { %v3700_v7 = vpop.f32.mrf.mxu2  ;;  %v3876_v56 = vpop.f32.mrf.mxu3 }
 0x302   : > { %v7781_v4 = vadd.f32 %v3876_v56, %v3698_v53  ;;  %v7783_v3 = vpop.f32.mrf.mxu0  ;;  %v3521_v19 = vpop.f32.mrf.mxu1  ;;  %v2462_v53 = vld [vmem:[#allocation2 + $0x81] sm:$0xff] }
 0x303   : > { %8192 = vst [vmem:[#allocation54_spill] sm:$0xff] %v7783_v3  ;;  %v3522_v22 = vadd.f32 %v3521_v19, %v8193_v12  ;;  %v8196_v56 = vld [vmem:[#allocation7_spill] sm:$0xff]  ;;  %v2354_v19 = vld [vmem:[#allocation2 + $0x80] sm:$0xff] }
 0x304   : > { %8191 = vst [vmem:[#allocation5_spill] sm:$0xff] %v7781_v4  ;;  %v2247_v4 = vld [vmem:[#allocation2 + $0x87] sm:$0xff] }
 0x305   : > { %4122 = vmatmul.f32.gmra.mxu1 %v2458_v38  ;;  %4659 = vmatmul.f32.gmra.mxu0 %v2461_v58  ;;  %v3701_v13 = vadd.f32 %v3700_v7, %v3522_v22 }
 0x306   : > { %4304 = vmatmul.f32.gmra.mxu2 %v2246_v59  ;;  %4480 = vmatmul.f32.gmra.mxu3 %v2353_v36 }
 0x309   : > { %v3703_v35 = vpop.f32.mrf.mxu2  ;;  %v3879_v29 = vpop.f32.mrf.mxu3 }
 0x30a   : > { %v7786_v30 = vadd.f32 %v3879_v29, %v3701_v13  ;;  %v7788_v27 = vpop.f32.mrf.mxu0  ;;  %v3524_v11 = vpop.f32.mrf.mxu1  ;;  %v2463_v13 = vld [vmem:[#allocation2 + $0x89] sm:$0xff] }
 0x30b   : > { %8195 = vst [vmem:[#allocation55_spill] sm:$0xff] %v7788_v27  ;;  %v3525_v3 = vadd.f32 %v3524_v11, %v8196_v56  ;;  %v8199_v29 = vld [vmem:[#allocation8_spill] sm:$0xff]  ;;  %v2355_v11 = vld [vmem:[#allocation2 + $0x88] sm:$0xff] }
 0x30c   : > { %8194 = vst [vmem:[#allocation6_spill] sm:$0xff] %v7786_v30  ;;  %v2248_v30 = vld [vmem:[#allocation2 + $0x8f] sm:$0xff] }
 0x30d   : > { %4125 = vmatmul.f32.gmra.mxu1 %v2459_v51  ;;  %4662 = vmatmul.f32.gmra.mxu0 %v2462_v53  ;;  %v3704_v38 = vadd.f32 %v3703_v35, %v3525_v3 }
 0x30e   : > { %4307 = vmatmul.f32.gmra.mxu2 %v2247_v4  ;;  %4483 = vmatmul.f32.gmra.mxu3 %v2354_v19 }
 0x311   : > { %v3706_v59 = vpop.f32.mrf.mxu2  ;;  %v3882_v12 = vpop.f32.mrf.mxu3 }
 0x312   : > { %v7791_v22 = vadd.f32 %v3882_v12, %v3704_v38  ;;  %v7793_v7 = vpop.f32.mrf.mxu0  ;;  %v3527_v36 = vpop.f32.mrf.mxu1  ;;  %v2464_v38 = vld [vmem:[#allocation2 + $0x91] sm:$0xff] }
 0x313   : > { %8198 = vst [vmem:[#allocation56_spill] sm:$0xff] %v7793_v7  ;;  %v3528_v27 = vadd.f32 %v3527_v36, %v8199_v29  ;;  %v8202_v12 = vld [vmem:[#allocation9_spill] sm:$0xff]  ;;  %v2356_v36 = vld [vmem:[#allocation2 + $0x90] sm:$0xff] }
 0x314   : > { %8197 = vst [vmem:[#allocation7_spill] sm:$0xff] %v7791_v22  ;;  %v2249_v22 = vld [vmem:[#allocation2 + $0x97] sm:$0xff] }
 0x315   : > { %4128 = vmatmul.f32.gmra.mxu1 %v2460_v55  ;;  %4665 = vmatmul.f32.gmra.mxu0 %v2463_v13  ;;  %v3707_v51 = vadd.f32 %v3706_v59, %v3528_v27 }
 0x316   : > { %4310 = vmatmul.f32.gmra.mxu2 %v2248_v30  ;;  %4486 = vmatmul.f32.gmra.mxu3 %v2355_v11 }
 0x319   : > { %v3709_v4 = vpop.f32.mrf.mxu2  ;;  %v3885_v56 = vpop.f32.mrf.mxu3 }
 0x31a   : > { %v7796_v3 = vadd.f32 %v3885_v56, %v3707_v51  ;;  %v7798_v35 = vpop.f32.mrf.mxu0  ;;  %v3530_v19 = vpop.f32.mrf.mxu1  ;;  %v2465_v51 = vld [vmem:[#allocation2 + $0x99] sm:$0xff] }
 0x31b   : > { %8201 = vst [vmem:[#allocation57_spill] sm:$0xff] %v7798_v35  ;;  %v3531_v7 = vadd.f32 %v3530_v19, %v8202_v12  ;;  %v8205_v56 = vld [vmem:[#allocation10_spill] sm:$0xff]  ;;  %v2357_v19 = vld [vmem:[#allocation2 + $0x98] sm:$0xff] }
 0x31c   : > { %8200 = vst [vmem:[#allocation8_spill] sm:$0xff] %v7796_v3  ;;  %v2250_v3 = vld [vmem:[#allocation2 + $0x9f] sm:$0xff] }
 0x31d   : > { %4131 = vmatmul.f32.gmra.mxu1 %v2461_v58  ;;  %4668 = vmatmul.f32.gmra.mxu0 %v2464_v38  ;;  %v3710_v55 = vadd.f32 %v3709_v4, %v3531_v7 }
 0x31e   : > { %4313 = vmatmul.f32.gmra.mxu2 %v2249_v22  ;;  %4489 = vmatmul.f32.gmra.mxu3 %v2356_v36 }
 0x321   : > { %v3712_v30 = vpop.f32.mrf.mxu2  ;;  %v3888_v29 = vpop.f32.mrf.mxu3 }
 0x322   : > { %v7801_v27 = vadd.f32 %v3888_v29, %v3710_v55  ;;  %v7803_v59 = vpop.f32.mrf.mxu0  ;;  %v3533_v11 = vpop.f32.mrf.mxu1  ;;  %v2466_v55 = vld [vmem:[#allocation2 + $0xa1] sm:$0xff] }
 0x323   : > { %8204 = vst [vmem:[#allocation58_spill] sm:$0xff] %v7803_v59  ;;  %v3534_v35 = vadd.f32 %v3533_v11, %v8205_v56  ;;  %v8208_v29 = vld [vmem:[#allocation11_spill] sm:$0xff]  ;;  %v2358_v11 = vld [vmem:[#allocation2 + $0xa0] sm:$0xff] }
 0x324   : > { %8203 = vst [vmem:[#allocation9_spill] sm:$0xff] %v7801_v27  ;;  %v2251_v27 = vld [vmem:[#allocation2 + $0xa7] sm:$0xff] }
 0x325   : > { %4134 = vmatmul.f32.gmra.mxu1 %v2462_v53  ;;  %4671 = vmatmul.f32.gmra.mxu0 %v2465_v51  ;;  %v3713_v58 = vadd.f32 %v3712_v30, %v3534_v35 }
 0x326   : > { %4316 = vmatmul.f32.gmra.mxu2 %v2250_v3  ;;  %4492 = vmatmul.f32.gmra.mxu3 %v2357_v19 }
 0x329   : > { %v3715_v22 = vpop.f32.mrf.mxu2  ;;  %v3891_v12 = vpop.f32.mrf.mxu3 }
 0x32a   : > { %v7806_v7 = vadd.f32 %v3891_v12, %v3713_v58  ;;  %v7808_v4 = vpop.f32.mrf.mxu0  ;;  %v3536_v36 = vpop.f32.mrf.mxu1  ;;  %v2467_v58 = vld [vmem:[#allocation2 + $0xa9] sm:$0xff] }
 0x32b   : > { %8207 = vst [vmem:[#allocation59_spill] sm:$0xff] %v7808_v4  ;;  %v3537_v59 = vadd.f32 %v3536_v36, %v8208_v29  ;;  %v8211_v12 = vld [vmem:[#allocation12_spill] sm:$0xff]  ;;  %v2359_v36 = vld [vmem:[#allocation2 + $0xa8] sm:$0xff] }
 0x32c   : > { %8206 = vst [vmem:[#allocation10_spill] sm:$0xff] %v7806_v7  ;;  %v2252_v7 = vld [vmem:[#allocation2 + $0xaf] sm:$0xff] }
 0x32d   : > { %4137 = vmatmul.f32.gmra.mxu1 %v2463_v13  ;;  %4674 = vmatmul.f32.gmra.mxu0 %v2466_v55  ;;  %v3716_v53 = vadd.f32 %v3715_v22, %v3537_v59 }
 0x32e   : > { %4319 = vmatmul.f32.gmra.mxu2 %v2251_v27  ;;  %4495 = vmatmul.f32.gmra.mxu3 %v2358_v11 }
 0x331   : > { %v3718_v3 = vpop.f32.mrf.mxu2  ;;  %v3894_v56 = vpop.f32.mrf.mxu3 }
 0x332   : > { %v7811_v35 = vadd.f32 %v3894_v56, %v3716_v53  ;;  %v7813_v30 = vpop.f32.mrf.mxu0  ;;  %v3539_v19 = vpop.f32.mrf.mxu1  ;;  %v2468_v53 = vld [vmem:[#allocation2 + $0xb1] sm:$0xff]  ;;  %v8214_v56 = vld [vmem:[#allocation14_spill] sm:$0xff] }
 0x333   : > { %8210 = vst [vmem:[#allocation60_spill] sm:$0xff] %v7813_v30  ;;  %v3540_v4 = vadd.f32 %v3539_v19, %v8211_v12  ;;  %v2360_v19 = vld [vmem:[#allocation2 + $0xb0] sm:$0xff] }
 0x334   : > { %8209 = vst [vmem:[#allocation11_spill] sm:$0xff] %v7811_v35  ;;  %v2253_v35 = vld [vmem:[#allocation2 + $0xb7] sm:$0xff] }
 0x335   : > { %4140 = vmatmul.f32.gmra.mxu1 %v2464_v38  ;;  %4677 = vmatmul.f32.gmra.mxu0 %v2467_v58  ;;  %v3719_v13 = vadd.f32 %v3718_v3, %v3540_v4 }
 0x336   : > { %4322 = vmatmul.f32.gmra.mxu2 %v2252_v7  ;;  %4498 = vmatmul.f32.gmra.mxu3 %v2359_v36 }
 0x339   : > { %v3721_v27 = vpop.f32.mrf.mxu2  ;;  %v3897_v29 = vpop.f32.mrf.mxu3 }
 0x33a   : > { %v7816_v59 = vadd.f32 %v3897_v29, %v3719_v13  ;;  %v7818_v22 = vpop.f32.mrf.mxu0  ;;  %v3542_v11 = vpop.f32.mrf.mxu1  ;;  %v2469_v13 = vld [vmem:[#allocation2 + $0xb9] sm:$0xff] }
 0x33b   : > { %8213 = vst [vmem:[#allocation61_spill] sm:$0xff] %v7818_v22  ;;  %v3543_v30 = vadd.f32 %v3542_v11, %v8214_v56  ;;  %v8217_v29 = vld [vmem:[#allocation17_spill] sm:$0xff] }
 0x33c   : > { %8212 = vst [vmem:[#allocation12_spill] sm:$0xff] %v7816_v59  ;;  %v2254_v59 = vld [vmem:[#allocation2 + $0xbf] sm:$0xff] }
 0x33d   : > { %4143 = vmatmul.f32.gmra.mxu1 %v2465_v51  ;;  %4680 = vmatmul.f32.gmra.mxu0 %v2468_v53  ;;  %v3722_v38 = vadd.f32 %v3721_v27, %v3543_v30  ;;  %v2361_v11 = vld [vmem:[#allocation2 + $0xb8] sm:$0xff] }
 0x33e   : > { %4325 = vmatmul.f32.gmra.mxu2 %v2253_v35  ;;  %4501 = vmatmul.f32.gmra.mxu3 %v2360_v19 }
 0x341   : > { %v3724_v7 = vpop.f32.mrf.mxu2  ;;  %v3900_v12 = vpop.f32.mrf.mxu3 }
 0x342   : > { %v7821_v4 = vadd.f32 %v3900_v12, %v3722_v38  ;;  %v7823_v3 = vpop.f32.mrf.mxu0  ;;  %v3545_v36 = vpop.f32.mrf.mxu1  ;;  %v2470_v38 = vld [vmem:[#allocation2 + $0xc1] sm:$0xff] }
 0x343   : > { %8216 = vst [vmem:[#allocation62_spill] sm:$0xff] %v7823_v3  ;;  %v3546_v22 = vadd.f32 %v3545_v36, %v8217_v29  ;;  %v8220_v12 = vld [vmem:[#allocation18_spill] sm:$0xff] }
 0x344   : > { %8215 = vst [vmem:[#allocation14_spill] sm:$0xff] %v7821_v4  ;;  %v2255_v4 = vld [vmem:[#allocation2 + $0xc7] sm:$0xff] }
 0x345   : > { %4146 = vmatmul.f32.gmra.mxu1 %v2466_v55  ;;  %4683 = vmatmul.f32.gmra.mxu0 %v2469_v13  ;;  %v3725_v51 = vadd.f32 %v3724_v7, %v3546_v22  ;;  %v2362_v36 = vld [vmem:[#allocation2 + $0xc0] sm:$0xff] }
 0x346   : > { %4328 = vmatmul.f32.gmra.mxu2 %v2254_v59  ;;  %4504 = vmatmul.f32.gmra.mxu3 %v2361_v11 }
 0x349   : > { %v3727_v35 = vpop.f32.mrf.mxu2  ;;  %v3903_v56 = vpop.f32.mrf.mxu3 }
 0x34a   : > { %v7826_v30 = vadd.f32 %v3903_v56, %v3725_v51  ;;  %v7828_v27 = vpop.f32.mrf.mxu0  ;;  %v3548_v19 = vpop.f32.mrf.mxu1  ;;  %v2471_v51 = vld [vmem:[#allocation2 + $0xc9] sm:$0xff] }
 0x34b   : > { %8219 = vst [vmem:[#allocation63_spill] sm:$0xff] %v7828_v27  ;;  %v3549_v3 = vadd.f32 %v3548_v19, %v8220_v12  ;;  %v2256_v27 = vld [vmem:[#allocation2 + $0xcf] sm:$0xff] }
 0x34c   : > { %8218 = vst [vmem:[#allocation17_spill] sm:$0xff] %v7826_v30  ;;  %v2363_v30 = vld [vmem:[#allocation2 + $0xc8] sm:$0xff] }
 0x34d   : > { %4149 = vmatmul.f32.gmra.mxu1 %v2467_v58  ;;  %4686 = vmatmul.f32.gmra.mxu0 %v2470_v38  ;;  %v3728_v55 = vadd.f32 %v3727_v35, %v3549_v3 }
 0x34e   : > { %4331 = vmatmul.f32.gmra.mxu2 %v2255_v4  ;;  %4507 = vmatmul.f32.gmra.mxu3 %v2362_v36  ;;  %v7834_v36 = vld [vmem:[#allocation2 + $0xd1] sm:$0xff] }
 0x351   : > { %v3906_v59 = vpop.f32.mrf.mxu3  ;;  %v4284_v29 = vpop.f32.mrf.mxu2 }
 0x352   : > { %v7831_v22 = vadd.f32 %v3906_v59, %v3728_v55  ;;  %v4642_v7 = vpop.f32.mrf.mxu0  ;;  %v4105_v11 = vpop.f32.mrf.mxu1  ;;  %v2257_v59 = vld [vmem:[#allocation2 + $0xd7] sm:$0xff] }
 0x353   : > { %v4106_v56 = vadd.f32 %v4105_v11, %v7473_v2 }
 0x354   : > { %8221 = vst [vmem:[#allocation18_spill] sm:$0xff] %v7831_v22  ;;  %v2364_v22 = vld [vmem:[#allocation2 + $0xd0] sm:$0xff] }
 0x355   : > { %4152 = vmatmul.f32.gmra.mxu1 %v2468_v53  ;;  %4689 = vmatmul.f32.gmra.mxu0 %v2471_v51  ;;  %v4285_v19 = vadd.f32 %v4284_v29, %v4106_v56  ;;  %v4861_v29 = vpop.permute.xlu0 %4860 }
 0x356   : > { %4334 = vmatmul.f32.gmra.mxu2 %v2256_v27  ;;  %4510 = vmatmul.f32.gmra.mxu3 %v2363_v30 }
 0x359   : > { %v4287_v58 = vpop.f32.mrf.mxu2  ;;  %v4463_v4 = vpop.f32.mrf.mxu3 }
 0x35a   : > { %v4464_v12 = vadd.f32 %v4463_v4, %v4285_v19  ;;  %v4645_v3 = vpop.f32.mrf.mxu0  ;;  %v4108_v35 = vpop.f32.mrf.mxu1 }
 0x35b   : > { %v4109_v55 = vadd.f32 %v4108_v35, %v7491_v18  ;;  %v4866_v18 = vpop.permute.xlu1 %4865  ;;  %v2258_v35 = vld [vmem:[#allocation2 + $0xdf] sm:$0xff] }
 0x35c   : > { %v4643_v2 = vadd.f32 %v4642_v7, %v4464_v12 }
 0x35d   : > { %4155 = vmatmul.f32.gmra.mxu1 %v2469_v13  ;;  %4692 = vmatmul.f32.gmra.mxu0 %v7834_v36  ;;  %v4288_v53 = vadd.f32 %v4287_v58, %v4109_v55 }
 0x35e   : > { %4337 = vmatmul.f32.gmra.mxu2 %v2257_v59  ;;  %4513 = vmatmul.f32.gmra.mxu3 %v2364_v22  ;;  %v5128_v56 = vmul.f32 %v4861_v29, %v4643_v2  ;;  %v2365_v59 = vld [vmem:[#allocation2 + $0xd8] sm:$0xff] }
 0x360   : > { %v5350_v7 = vmul.f32 %v5128_v56, %v5128_v56 }
 0x361   : > { %v4290_v30 = vpop.f32.mrf.mxu2  ;;  %v4466_v27 = vpop.f32.mrf.mxu3 }
 0x362   : > { %v4467_v11 = vadd.f32 %v4466_v27, %v4288_v53  ;;  %v4648_v19 = vpop.f32.mrf.mxu0  ;;  %v4111_v28 = vpop.f32.mrf.mxu1 }
 0x363   : > { %v4112_v13 = vadd.f32 %v4111_v28, %v7504_v24 }
 0x364   : > { %v4646_v4 = vadd.f32 %v4645_v3, %v4467_v11  ;;  %v7849_v11 = vld [vmem:[#allocation2 + $0xe1] sm:$0xff] }
 0x365   : > { %4158 = vmatmul.f32.gmra.mxu1 %v2470_v38  ;;  %4695 = vmatmul.f32.gmra.mxu0 %v7838_v5  ;;  %v4291_v55 = vadd.f32 %v4290_v30, %v4112_v13 }
 0x366   : > { %v5129_v22 = vmul.f32 %v4866_v18, %v4646_v4  ;;  %4340 = vmatmul.f32.gmra.mxu2 %v2258_v35  ;;  %4516 = vmatmul.f32.gmra.mxu3 %v2365_v59  ;;  %v4871_v4 = vpop.permute.xlu2 %4870  ;;  %v2259_v35 = vld [vmem:[#allocation2 + $0xe7] sm:$0xff] }
 0x367   : > { %v2366_v59 = vld [vmem:[#allocation2 + $0xe0] sm:$0xff] }
 0x368   : > { %v5859_v58 = vpack.c.bf16 %v5129_v22, %v5128_v56  ;;  %v5290_v12 = vadd.f32 %v5129_v22, %v5128_v56  ;;  %v5351_v3 = vmul.f32 %v5129_v22, %v5129_v22 }
 0x369   : > { %v4293_v24 = vpop.f32.mrf.mxu2  ;;  %v4469_v28 = vpop.f32.mrf.mxu3 }
 0x36a   : > { %5860 = vst [vmem:[%s7846_s22] sm:$0xff] %v5859_v58   ;;  %v5404_v38 = vadd.f32 %v5351_v3, %v5350_v7  ;;  %v4470_v2 = vadd.f32 %v4469_v28, %v4291_v55  ;;  %v4651_v53 = vpop.f32.mrf.mxu0  ;;  %v4114_v29 = vpop.f32.mrf.mxu1 }
 0x36b   : > { %v4115_v18 = vadd.f32 %v4114_v29, %v7513_v63  ;;  %v4876_v63 = vpop.permute.xlu0 %4875  ;;  %v2367_v29 = vld [vmem:[#allocation2 + $0xe8] sm:$0xff] }
 0x36c   : > { %v4649_v27 = vadd.f32 %v4648_v19, %v4470_v2 }
 0x36d   : > { %4161 = vmatmul.f32.gmra.mxu1 %v2471_v51  ;;  %4698 = vmatmul.f32.gmra.mxu0 %v7849_v11  ;;  %v4294_v22 = vadd.f32 %v4293_v24, %v4115_v18 }
 0x36e   : > { %v5130_v56 = vmul.f32 %v4871_v4, %v4649_v27  ;;  %4343 = vmatmul.f32.gmra.mxu2 %v2259_v35  ;;  %4519 = vmatmul.f32.gmra.mxu3 %v2366_v59  ;;  %v2260_v27 = vld [vmem:[#allocation2 + $0xef] sm:$0xff] }
 0x370   : > { %v5291_v30 = vadd.f32 %v5290_v12, %v5130_v56  ;;  %v5352_v13 = vmul.f32 %v5130_v56, %v5130_v56 }
 0x371   : > { %v4296_v7 = vpop.f32.mrf.mxu2  ;;  %v4472_v58 = vpop.f32.mrf.mxu3 }
 0x372   : > { %v5405_v19 = vadd.f32 %v5404_v38, %v5352_v13  ;;  %v4473_v3 = vadd.f32 %v4472_v58, %v4294_v22  ;;  %v4654_v55 = vpop.f32.mrf.mxu0  ;;  %v4117_v2 = vpop.f32.mrf.mxu1 }
 0x373   : > { %v4118_v51 = vadd.f32 %v4117_v2, %v7525_v54 }
 0x374   : > { %v4652_v28 = vadd.f32 %v4651_v53, %v4473_v3  ;;  %v4881_v3 = vpop.permute.xlu1 %4880 }
 0x375   : > { %4164 = vmatmul.f32.gmra.mxu1 %v7834_v36  ;;  %4701 = vmatmul.f32.gmra.mxu0 %v7853_v45  ;;  %v4297_v53 = vadd.f32 %v4296_v7, %v4118_v51  ;;  %v7859_v36 = vld [vmem:[#allocation2 + $0xf1] sm:$0xff] }
 0x376   : > { %v5131_v12 = vmul.f32 %v4876_v63, %v4652_v28  ;;  %4346 = vmatmul.f32.gmra.mxu2 %v2260_v27  ;;  %4522 = vmatmul.f32.gmra.mxu3 %v2367_v29  ;;  %v2261_v28 = vld [vmem:[#allocation2 + $0xf7] sm:$0xff] }
 0x378   : > { %v5864_v24 = vpack.c.bf16 %v5131_v12, %v5130_v56  ;;  %v5292_v38 = vadd.f32 %v5291_v30, %v5131_v12  ;;  %v5353_v4 = vmul.f32 %v5131_v12, %v5131_v12  ;;  %v2368_v56 = vld [vmem:[#allocation2 + $0xf0] sm:$0xff] }
 0x379   : > { %v4299_v18 = vpop.f32.mrf.mxu2  ;;  %v4475_v35 = vpop.f32.mrf.mxu3 }
 0x37a   : > { %6021 = vst [vmem:[%s7846_s22 + $0x8] sm:$0xff] %v5864_v24   ;;  %v5406_v59 = vadd.f32 %v5405_v19, %v5353_v4  ;;  %v4476_v13 = vadd.f32 %v4475_v35, %v4297_v53  ;;  %v4657_v22 = vpop.f32.mrf.mxu0  ;;  %v4120_v58 = vpop.f32.mrf.mxu1  ;;  %v2262_v35 = vld [vmem:[#allocation2 + $0xff] sm:$0xff] }
 0x37b   : > { %v4121_v2 = vadd.f32 %v4120_v58, %v7540_v34  ;;  %v7864_v34 = vld [vmem:[#allocation2 + $0xf9] sm:$0xff] }
 0x37c   : > { %v4655_v54 = vadd.f32 %v4654_v55, %v4476_v13  ;;  %v2369_v13 = vld [vmem:[#allocation2 + $0xf8] sm:$0xff] }
 0x37d   : > { %4167 = vmatmul.f32.gmra.mxu1 %v7838_v5  ;;  %4704 = vmatmul.f32.gmra.mxu0 %v7859_v36  ;;  %v4300_v63 = vadd.f32 %v4299_v18, %v4121_v2  ;;  %v4886_v5 = vpop.permute.xlu2 %4885 }
 0x37e   : > { %v5132_v30 = vmul.f32 %v4881_v3, %v4655_v54  ;;  %4349 = vmatmul.f32.gmra.mxu2 %v2261_v28  ;;  %4525 = vmatmul.f32.gmra.mxu3 %v2368_v56 }
 0x380   : > { %v5293_v7 = vadd.f32 %v5292_v38, %v5132_v30  ;;  %v5354_v19 = vmul.f32 %v5132_v30, %v5132_v30 }
 0x381   : > { %v4302_v51 = vpop.f32.mrf.mxu2  ;;  %v4478_v55 = vpop.f32.mrf.mxu3 }
 0x382   : > { %v5407_v27 = vadd.f32 %v5406_v59, %v5354_v19  ;;  %v4479_v29 = vadd.f32 %v4478_v55, %v4300_v63  ;;  %v4660_v12 = vpop.f32.mrf.mxu0  ;;  %v4123_v4 = vpop.f32.mrf.mxu1  ;;  %v7872_v63 = vld [vmem:[#allocation2 + $0x101] sm:$0xff] }
 0x383   : > { %v4124_v53 = vadd.f32 %v4123_v4, %v7552_v50  ;;  %v3948_v50 = vadd.f32 %v7477_v46, %v7493_v57  ;;  %v4891_v55 = vpop.permute.xlu0 %4890 }
 0x384   : > { %v4658_v24 = vadd.f32 %v4657_v22, %v4479_v29 }
 0x385   : > { %4170 = vmatmul.f32.gmra.mxu1 %v7849_v11  ;;  %4707 = vmatmul.f32.gmra.mxu0 %v7864_v34  ;;  %v4303_v22 = vadd.f32 %v4302_v51, %v4124_v53  ;;  %v3951_v53 = vadd.f32 %v7495_v33, %v7506_v47 }
 0x386   : > { %v5133_v38 = vmul.f32 %v4886_v5, %v4658_v24  ;;  %4352 = vmatmul.f32.gmra.mxu2 %v2262_v35  ;;  %4528 = vmatmul.f32.gmra.mxu3 %v2369_v13 }
 0x388   : > { %v5869_v18 = vpack.c.bf16 %v5133_v38, %v5132_v30  ;;  %v5294_v59 = vadd.f32 %v5293_v7, %v5133_v38  ;;  %v5355_v54 = vmul.f32 %v5133_v38, %v5133_v38  ;;  %v2263_v30 = vld [vmem:[#allocation2 + $0x107] sm:$0xff] }
 0x389   : > { %v4305_v58 = vpop.f32.mrf.mxu2  ;;  %v4481_v3 = vpop.f32.mrf.mxu3  ;;  %v2370_v7 = vld [vmem:[#allocation2 + $0x100] sm:$0xff]  ;;  %v7878_v38 = vld [vmem:[#allocation2 + $0x109] sm:$0xff] }
 0x38a   : > { %6022 = vst [vmem:[%s7846_s22 + $0x10] sm:$0xff] %v5869_v18   ;;  %v5408_v2 = vadd.f32 %v5407_v27, %v5355_v54  ;;  %v4482_v28 = vadd.f32 %v4481_v3, %v4303_v22  ;;  %v4663_v11 = vpop.f32.mrf.mxu0  ;;  %v4126_v19 = vpop.f32.mrf.mxu1  ;;  %v2371_v22 = vld [vmem:[#allocation2 + $0x108] sm:$0xff] }
 0x38b   : > { %v4127_v29 = vadd.f32 %v4126_v19, %v3948_v50  ;;  %v4896_v18 = vpop.permute.xlu1 %4895  ;;  %v3954_v19 = vadd.f32 %v7508_v20, %v7515_v43 }
 0x38c   : > { %v4661_v56 = vadd.f32 %v4660_v12, %v4482_v28 }
 0x38d   : > { %4173 = vmatmul.f32.gmra.mxu1 %v7853_v45  ;;  %4710 = vmatmul.f32.gmra.mxu0 %v7872_v63  ;;  %v4306_v4 = vadd.f32 %v4305_v58, %v4127_v29 }
 0x38e   : > { %v5134_v51 = vmul.f32 %v4891_v55, %v4661_v56  ;;  %4355 = vmatmul.f32.gmra.mxu2 %v2263_v30  ;;  %4531 = vmatmul.f32.gmra.mxu3 %v2370_v7  ;;  %v7885_v30 = vld [vmem:[#allocation2 + $0x111] sm:$0xff]  ;;  %v4901_v7 = vpop.permute.xlu2 %4900 }
 0x390   : > { %v5295_v27 = vadd.f32 %v5294_v59, %v5134_v51  ;;  %v5356_v24 = vmul.f32 %v5134_v51, %v5134_v51  ;;  %v2264_v59 = vld [vmem:[#allocation2 + $0x10f] sm:$0xff] }
 0x391   : > { %v4308_v46 = vpop.f32.mrf.mxu2  ;;  %v4484_v57 = vpop.f32.mrf.mxu3 }
 0x392   : > { %v5409_v12 = vadd.f32 %v5408_v2, %v5356_v24  ;;  %v4485_v5 = vadd.f32 %v4484_v57, %v4306_v4  ;;  %v4666_v35 = vpop.f32.mrf.mxu0  ;;  %v4129_v45 = vpop.f32.mrf.mxu1 }
 0x393   : > { %v4130_v54 = vadd.f32 %v4129_v45, %v3951_v53 }
 0x394   : > { %v4664_v13 = vadd.f32 %v4663_v11, %v4485_v5 }
 0x395   : > { %4176 = vmatmul.f32.gmra.mxu1 %v7859_v36  ;;  %4713 = vmatmul.f32.gmra.mxu0 %v7878_v38  ;;  %v4309_v47 = vadd.f32 %v4308_v46, %v4130_v54  ;;  %v4906_v54 = vpop.permute.xlu0 %4905 }
 0x396   : > { %v5135_v58 = vmul.f32 %v4896_v18, %v4664_v13  ;;  %4358 = vmatmul.f32.gmra.mxu2 %v2264_v59  ;;  %4534 = vmatmul.f32.gmra.mxu3 %v2371_v22  ;;  %v7891_v18 = vld [vmem:[#allocation2 + $0x119] sm:$0xff] }
 0x397   : > { %v2266_v22 = vld [vmem:[#allocation2 + $0x11f] sm:$0xff] }
 0x398   : > { %v5874_v3 = vpack.c.bf16 %v5135_v58, %v5134_v51  ;;  %v5296_v2 = vadd.f32 %v5295_v27, %v5135_v58  ;;  %v5357_v33 = vmul.f32 %v5135_v58, %v5135_v58  ;;  %v2265_v51 = vld [vmem:[#allocation2 + $0x117] sm:$0xff] }
 0x399   : > { %v4311_v28 = vpop.f32.mrf.mxu2  ;;  %v4487_v50 = vpop.f32.mrf.mxu3  ;;  %v2372_v27 = vld [vmem:[#allocation2 + $0x110] sm:$0xff]  ;;  %v2373_v58 = vld [vmem:[#allocation2 + $0x118] sm:$0xff] }
 0x39a   : > { %6023 = vst [vmem:[%s7846_s22 + $0x18] sm:$0xff] %v5874_v3   ;;  %v5410_v11 = vadd.f32 %v5409_v12, %v5357_v33  ;;  %v4488_v56 = vadd.f32 %v4487_v50, %v4309_v47  ;;  %v4669_v36 = vpop.f32.mrf.mxu0  ;;  %v4132_v29 = vpop.f32.mrf.mxu1 }
 0x39b   : > { %v4133_v24 = vadd.f32 %v4132_v29, %v3954_v19  ;;  %v4911_v29 = vpop.permute.xlu1 %4910 }
 0x39c   : > { %v4667_v55 = vadd.f32 %v4666_v35, %v4488_v56  ;;  %v3957_v35 = vadd.f32 %v7517_v0, %v7527_v6  ;;  %v3960_v56 = vadd.f32 %v7532_v1, %v7542_v10 }
 0x39d   : > { %4179 = vmatmul.f32.gmra.mxu1 %v7864_v34  ;;  %4716 = vmatmul.f32.gmra.mxu0 %v7885_v30  ;;  %v4312_v12 = vadd.f32 %v4311_v28, %v4133_v24  ;;  %v2267_v24 = vld [vmem:[#allocation2 + $0x127] sm:$0xff] }
 0x39e   : > { %v5136_v4 = vmul.f32 %v4901_v7, %v4667_v55  ;;  %4361 = vmatmul.f32.gmra.mxu2 %v2265_v51  ;;  %4537 = vmatmul.f32.gmra.mxu3 %v2372_v27  ;;  %v7898_v55 = vld [vmem:[#allocation2 + $0x121] sm:$0xff] }
 0x39f   : > { %v2374_v51 = vld [vmem:[#allocation2 + $0x120] sm:$0xff] }
 0x3a0   : > { %v5297_v46 = vadd.f32 %v5296_v2, %v5136_v4  ;;  %v5358_v57 = vmul.f32 %v5136_v4, %v5136_v4 }
 0x3a1   : > { %v4314_v20 = vpop.f32.mrf.mxu2  ;;  %v4490_v43 = vpop.f32.mrf.mxu3 }
 0x3a2   : > { %v5411_v5 = vadd.f32 %v5410_v11, %v5358_v57  ;;  %v4491_v53 = vadd.f32 %v4490_v43, %v4312_v12  ;;  %v4672_v13 = vpop.f32.mrf.mxu0  ;;  %v4135_v34 = vpop.f32.mrf.mxu1  ;;  %v3963_v43 = vadd.f32 %v7547_v31, %v7554_v48 }
 0x3a3   : > { %v4136_v59 = vadd.f32 %v4135_v34, %v3957_v35  ;;  %v7904_v35 = vld [vmem:[#allocation2 + $0x129] sm:$0xff] }
 0x3a4   : > { %v4670_v45 = vadd.f32 %v4669_v36, %v4491_v53  ;;  %v2268_v34 = vld [vmem:[#allocation2 + $0x12f] sm:$0xff] }
 0x3a5   : > { %4182 = vmatmul.f32.gmra.mxu1 %v7872_v63  ;;  %4719 = vmatmul.f32.gmra.mxu0 %v7891_v18  ;;  %v4315_v6 = vadd.f32 %v4314_v20, %v4136_v59 }
 0x3a6   : > { %v5137_v3 = vmul.f32 %v4906_v54, %v4670_v45  ;;  %4364 = vmatmul.f32.gmra.mxu2 %v2266_v22  ;;  %4540 = vmatmul.f32.gmra.mxu3 %v2373_v58  ;;  %v2375_v54 = vld [vmem:[#allocation2 + $0x128] sm:$0xff] }
 0x3a8   : > { %v5879_v2 = vpack.c.bf16 %v5137_v3, %v5136_v4  ;;  %v5298_v33 = vadd.f32 %v5297_v46, %v5137_v3  ;;  %v5359_v0 = vmul.f32 %v5137_v3, %v5137_v3 }
 0x3a9   : > { %v4317_v47 = vpop.f32.mrf.mxu2  ;;  %v4493_v28 = vpop.f32.mrf.mxu3 }
 0x3aa   : > { %6024 = vst [vmem:[%s7846_s22 + $0x20] sm:$0xff] %v5879_v2   ;;  %v5412_v50 = vadd.f32 %v5411_v5, %v5359_v0  ;;  %v4494_v11 = vadd.f32 %v4493_v28, %v4315_v6  ;;  %v4675_v63 = vpop.f32.mrf.mxu0  ;;  %v4138_v36 = vpop.f32.mrf.mxu1  ;;  %v3966_v6 = vadd.f32 %v7556_v44, %v7559_v25 }
 0x3ab   : > { %v4139_v7 = vadd.f32 %v4138_v36, %v3960_v56 }
 0x3ac   : > { %v4673_v19 = vadd.f32 %v4672_v13, %v4494_v11  ;;  %v4916_v13 = vpop.permute.xlu2 %4915  ;;  %v4921_v11 = vpop.permute.xlu0 %4920 }
 0x3ad   : > { %4185 = vmatmul.f32.gmra.mxu1 %v7878_v38  ;;  %4722 = vmatmul.f32.gmra.mxu0 %v7898_v55  ;;  %v4318_v57 = vadd.f32 %v4317_v47, %v4139_v7 }
 0x3ae   : > { %v5138_v27 = vmul.f32 %v4911_v29, %v4673_v19  ;;  %4367 = vmatmul.f32.gmra.mxu2 %v2267_v24  ;;  %4543 = vmatmul.f32.gmra.mxu3 %v2374_v51  ;;  %v2376_v19 = vld [vmem:[#allocation2 + $0x130] sm:$0xff] }
 0x3b0   : > { %v5299_v4 = vadd.f32 %v5298_v33, %v5138_v27  ;;  %v5360_v46 = vmul.f32 %v5138_v27, %v5138_v27 }
 0x3b1   : > { %v4320_v1 = vpop.f32.mrf.mxu2  ;;  %v4496_v10 = vpop.f32.mrf.mxu3 }
 0x3b2   : > { %v5413_v12 = vadd.f32 %v5412_v50, %v5360_v46  ;;  %v4497_v20 = vadd.f32 %v4496_v10, %v4318_v57  ;;  %v4678_v5 = vpop.f32.mrf.mxu0  ;;  %v4141_v38 = vpop.f32.mrf.mxu1  ;;  %v7911_v50 = vld [vmem:[#allocation2 + $0x131] sm:$0xff] }
 0x3b3   : > { %v4142_v45 = vadd.f32 %v4141_v38, %v3963_v43  ;;  %v4926_v10 = vpop.permute.xlu1 %4925  ;;  %v2377_v43 = vld [vmem:[#allocation2 + $0x138] sm:$0xff] }
 0x3b4   : > { %v4676_v53 = vadd.f32 %v4675_v63, %v4497_v20  ;;  %v2269_v63 = vld [vmem:[#allocation2 + $0x137] sm:$0xff]  ;;  %v2270_v20 = vld [vmem:[#allocation2 + $0x13f] sm:$0xff] }
 0x3b5   : > { %4188 = vmatmul.f32.gmra.mxu1 %v7885_v30  ;;  %4725 = vmatmul.f32.gmra.mxu0 %v7904_v35  ;;  %v4321_v48 = vadd.f32 %v4320_v1, %v4142_v45  ;;  %v7917_v1 = vld [vmem:[#allocation2 + $0x139] sm:$0xff] }
 0x3b6   : > { %v5139_v59 = vmul.f32 %v4916_v13, %v4676_v53  ;;  %4370 = vmatmul.f32.gmra.mxu2 %v2268_v34  ;;  %4546 = vmatmul.f32.gmra.mxu3 %v2375_v54 }
 0x3b8   : > { %v5884_v22 = vpack.c.bf16 %v5139_v59, %v5138_v27  ;;  %v5300_v58 = vadd.f32 %v5299_v4, %v5139_v59  ;;  %v5361_v31 = vmul.f32 %v5139_v59, %v5139_v59  ;;  %v3969_v4 = vadd.f32 %v7564_v41, %v7573_v60  ;;  %v8222_v59 = vld [vmem:[#allocation20_spill] sm:$0xff] }
 0x3b9   : > { %v4323_v3 = vpop.f32.mrf.mxu2  ;;  %v4499_v2 = vpop.f32.mrf.mxu3 }
 0x3ba   : > { %6025 = vst [vmem:[%s7846_s22 + $0x28] sm:$0xff] %v5884_v22   ;;  %v5414_v33 = vadd.f32 %v5413_v12, %v5361_v31  ;;  %v4500_v0 = vadd.f32 %v4499_v2, %v4321_v48  ;;  %v4681_v30 = vpop.f32.mrf.mxu0  ;;  %v4144_v28 = vpop.f32.mrf.mxu1  ;;  %v8223_v22 = vld [vmem:[#allocation19_spill] sm:$0xff] }
 0x3bb   : > { %v4145_v56 = vadd.f32 %v4144_v28, %v3966_v6  ;;  %v4931_v2 = vpop.permute.xlu2 %4930  ;;  %v2378_v6 = vld [vmem:[#allocation2 + $0x140] sm:$0xff] }
 0x3bc   : > { %v4679_v47 = vadd.f32 %v4678_v5, %v4500_v0  ;;  %v2271_v0 = vld [vmem:[#allocation2 + $0x147] sm:$0xff] }
 0x3bd   : > { %4191 = vmatmul.f32.gmra.mxu1 %v7891_v18  ;;  %4728 = vmatmul.f32.gmra.mxu0 %v7911_v50  ;;  %v4324_v24 = vadd.f32 %v4323_v3, %v4145_v56  ;;  %v7924_v3 = vld [vmem:[#allocation2 + $0x141] sm:$0xff] }
 0x3be   : > { %v5140_v36 = vmul.f32 %v4921_v11, %v4679_v47  ;;  %4373 = vmatmul.f32.gmra.mxu2 %v2269_v63  ;;  %4549 = vmatmul.f32.gmra.mxu3 %v2376_v19 }
 0x3c0   : > { %v5301_v29 = vadd.f32 %v5300_v58, %v5140_v36  ;;  %v5362_v7 = vmul.f32 %v5140_v36, %v5140_v36  ;;  %v3972_v58 = vadd.f32 %v8223_v22, %v8222_v59  ;;  %v2380_v59 = vld [vmem:[#allocation2 + $0x150] sm:$0xff] }
 0x3c1   : > { %v4326_v44 = vpop.f32.mrf.mxu2  ;;  %v4502_v25 = vpop.f32.mrf.mxu3 }
 0x3c2   : > { %v5415_v51 = vadd.f32 %v5414_v33, %v5362_v7  ;;  %v4503_v27 = vadd.f32 %v4502_v25, %v4324_v24  ;;  %v4684_v46 = vpop.f32.mrf.mxu0  ;;  %v4147_v18 = vpop.f32.mrf.mxu1  ;;  %v7930_v25 = vld [vmem:[#allocation2 + $0x149] sm:$0xff] }
 0x3c3   : > { %v4148_v12 = vadd.f32 %v4147_v18, %v3969_v4  ;;  %v2272_v4 = vld [vmem:[#allocation2 + $0x14f] sm:$0xff] }
 0x3c4   : > { %v4682_v57 = vadd.f32 %v4681_v30, %v4503_v27 }
 0x3c5   : > { %4194 = vmatmul.f32.gmra.mxu1 %v7898_v55  ;;  %4731 = vmatmul.f32.gmra.mxu0 %v7917_v1  ;;  %v4327_v60 = vadd.f32 %v4326_v44, %v4148_v12 }
 0x3c6   : > { %v5141_v5 = vmul.f32 %v4926_v10, %v4682_v57  ;;  %4376 = vmatmul.f32.gmra.mxu2 %v2270_v20  ;;  %4552 = vmatmul.f32.gmra.mxu3 %v2377_v43 }
 0x3c8   : > { %v5889_v53 = vpack.c.bf16 %v5141_v5, %v5140_v36  ;;  %v5302_v38 = vadd.f32 %v5301_v29, %v5141_v5  ;;  %v5363_v41 = vmul.f32 %v5141_v5, %v5141_v5  ;;  %v8224_v29 = vld [vmem:[#allocation21_spill] sm:$0xff] }
 0x3c9   : > { %v4329_v13 = vpop.f32.mrf.mxu2  ;;  %v4505_v45 = vpop.f32.mrf.mxu3  ;;  %v3975_v7 = vadd.f32 %v8224_v29, %v7586_v32 }
 0x3ca   : > { %6026 = vst [vmem:[%s7846_s22 + $0x30] sm:$0xff] %v5889_v53   ;;  %v5416_v34 = vadd.f32 %v5415_v51, %v5363_v41  ;;  %v4506_v54 = vadd.f32 %v4505_v45, %v4327_v60  ;;  %v4687_v55 = vpop.f32.mrf.mxu0  ;;  %v4150_v48 = vpop.f32.mrf.mxu1 }
 0x3cb   : > { %v4151_v33 = vadd.f32 %v4150_v48, %v3972_v58  ;;  %v4936_v51 = vpop.permute.xlu0 %4935  ;;  %v4941_v45 = vpop.permute.xlu1 %4940 }
 0x3cc   : > { %v4685_v31 = vadd.f32 %v4684_v46, %v4506_v54  ;;  %v2379_v46 = vld [vmem:[#allocation2 + $0x148] sm:$0xff]  ;;  %v2273_v54 = vld [vmem:[#allocation2 + $0x157] sm:$0xff] }
 0x3cd   : > { %4197 = vmatmul.f32.gmra.mxu1 %v7904_v35  ;;  %4734 = vmatmul.f32.gmra.mxu0 %v7924_v3  ;;  %v4330_v11 = vadd.f32 %v4329_v13, %v4151_v33  ;;  %v7937_v13 = vld [vmem:[#allocation2 + $0x151] sm:$0xff]  ;;  %v8225_v33 = vld [vmem:[#allocation23_spill] sm:$0xff] }
 0x3ce   : > { %v5142_v30 = vmul.f32 %v4931_v2, %v4685_v31  ;;  %4379 = vmatmul.f32.gmra.mxu2 %v2271_v0  ;;  %4555 = vmatmul.f32.gmra.mxu3 %v2378_v6  ;;  %v8226_v0 = vld [vmem:[#allocation22_spill] sm:$0xff] }
 0x3cf   : > { %v3981_v6 = vadd.f32 %v8226_v0, %v8225_v33 }
 0x3d0   : > { %v5303_v47 = vadd.f32 %v5302_v38, %v5142_v30  ;;  %v5364_v28 = vmul.f32 %v5142_v30, %v5142_v30  ;;  %v3978_v38 = vadd.f32 %v7588_v52, %v7597_v37 }
 0x3d1   : > { %v4332_v56 = vpop.f32.mrf.mxu2  ;;  %v4508_v63 = vpop.f32.mrf.mxu3 }
 0x3d2   : > { %v5417_v19 = vadd.f32 %v5416_v34, %v5364_v28  ;;  %v4509_v36 = vadd.f32 %v4508_v63, %v4330_v11  ;;  %v4690_v24 = vpop.f32.mrf.mxu0  ;;  %v4153_v35 = vpop.f32.mrf.mxu1  ;;  %v7943_v28 = vld [vmem:[#allocation2 + $0x159] sm:$0xff] }
 0x3d3   : > { %v4154_v27 = vadd.f32 %v4153_v35, %v3975_v7  ;;  %v4946_v11 = vpop.permute.xlu2 %4945  ;;  %v2274_v63 = vld [vmem:[#allocation2 + $0x15f] sm:$0xff] }
 0x3d4   : > { %v4688_v44 = vadd.f32 %v4687_v55, %v4509_v36 }
 0x3d5   : > { %4200 = vmatmul.f32.gmra.mxu1 %v7911_v50  ;;  %4737 = vmatmul.f32.gmra.mxu0 %v7930_v25  ;;  %v4333_v12 = vadd.f32 %v4332_v56, %v4154_v27 }
 0x3d6   : > { %v5143_v57 = vmul.f32 %v4936_v51, %v4688_v44  ;;  %4382 = vmatmul.f32.gmra.mxu2 %v2272_v4  ;;  %4558 = vmatmul.f32.gmra.mxu3 %v2379_v46  ;;  %v8227_v46 = vld [vmem:[#allocation24_spill] sm:$0xff] }
 0x3d8   : > { %v5894_v18 = vpack.c.bf16 %v5143_v57, %v5142_v30  ;;  %v5304_v10 = vadd.f32 %v5303_v47, %v5143_v57  ;;  %v5365_v32 = vmul.f32 %v5143_v57, %v5143_v57  ;;  %v3984_v57 = vadd.f32 %v8227_v46, %v7613_v40 }
 0x3d9   : > { %v4335_v20 = vpop.f32.mrf.mxu2  ;;  %v4511_v43 = vpop.f32.mrf.mxu3 }
 0x3da   : > { %6027 = vst [vmem:[%s7846_s22 + $0x38] sm:$0xff] %v5894_v18   ;;  %v5418_v5 = vadd.f32 %v5417_v19, %v5365_v32  ;;  %v4512_v53 = vadd.f32 %v4511_v43, %v4333_v12  ;;  %v4693_v50 = vpop.f32.mrf.mxu0  ;;  %v4156_v60 = vpop.f32.mrf.mxu1  ;;  %v2381_v19 = vld [vmem:[#allocation2 + $0x158] sm:$0xff]  ;;  %v7950_v32 = vld [vmem:[#allocation2 + $0x161] sm:$0xff] }
 0x3db   : > { %v4157_v34 = vadd.f32 %v4156_v60, %v3978_v38  ;;  %v4951_v12 = vpop.permute.xlu0 %4950  ;;  %v2275_v43 = vld [vmem:[#allocation2 + $0x167] sm:$0xff] }
 0x3dc   : > { %v4691_v41 = vadd.f32 %v4690_v24, %v4512_v53 }
 0x3dd   : > { %4203 = vmatmul.f32.gmra.mxu1 %v7917_v1  ;;  %4740 = vmatmul.f32.gmra.mxu0 %v7937_v13  ;;  %v4336_v31 = vadd.f32 %v4335_v20, %v4157_v34 }
 0x3de   : > { %v5144_v22 = vmul.f32 %v4941_v45, %v4691_v41  ;;  %4385 = vmatmul.f32.gmra.mxu2 %v2273_v54  ;;  %4561 = vmatmul.f32.gmra.mxu3 %v2380_v59  ;;  %v3987_v54 = vadd.f32 %v7615_v14, %v7621_v9 }
 0x3e0   : > { %v5305_v58 = vadd.f32 %v5304_v10, %v5144_v22  ;;  %v5366_v55 = vmul.f32 %v5144_v22, %v5144_v22 }
 0x3e1   : > { %v4338_v52 = vpop.f32.mrf.mxu2  ;;  %v4514_v37 = vpop.f32.mrf.mxu3 }
 0x3e2   : > { %v5419_v48 = vadd.f32 %v5418_v5, %v5366_v55  ;;  %v4515_v2 = vadd.f32 %v4514_v37, %v4336_v31  ;;  %v4696_v30 = vpop.f32.mrf.mxu0  ;;  %v4159_v1 = vpop.f32.mrf.mxu1  ;;  %v2382_v5 = vld [vmem:[#allocation2 + $0x160] sm:$0xff]  ;;  %v2383_v37 = vld [vmem:[#allocation2 + $0x168] sm:$0xff] }
 0x3e3   : > { %v4160_v56 = vadd.f32 %v4159_v1, %v3981_v6  ;;  %v4956_v55 = vpop.permute.xlu1 %4955  ;;  %v8228_v1 = vld [vmem:[#allocation26_spill] sm:$0xff] }
 0x3e4   : > { %v4694_v47 = vadd.f32 %v4693_v50, %v4515_v2 }
 0x3e5   : > { %4206 = vmatmul.f32.gmra.mxu1 %v7924_v3  ;;  %4743 = vmatmul.f32.gmra.mxu0 %v7943_v28  ;;  %v4339_v44 = vadd.f32 %v4338_v52, %v4160_v56  ;;  %v2276_v52 = vld [vmem:[#allocation2 + $0x16f] sm:$0xff] }
 0x3e6   : > { %v5145_v36 = vmul.f32 %v4946_v11, %v4694_v47  ;;  %4388 = vmatmul.f32.gmra.mxu2 %v2274_v63  ;;  %4564 = vmatmul.f32.gmra.mxu3 %v2381_v19  ;;  %v8229_v11 = vld [vmem:[#allocation25_spill] sm:$0xff] }
 0x3e7   : > { %v3990_v56 = vadd.f32 %v8229_v11, %v8228_v1 }
 0x3e8   : > { %v5899_v29 = vpack.c.bf16 %v5145_v36, %v5144_v22  ;;  %v5306_v7 = vadd.f32 %v5305_v58, %v5145_v36  ;;  %v5367_v24 = vmul.f32 %v5145_v36, %v5145_v36  ;;  %v7956_v58 = vld [vmem:[#allocation2 + $0x169] sm:$0xff]  ;;  %v7963_v36 = vld [vmem:[#allocation2 + $0x171] sm:$0xff] }
 0x3e9   : > { %v4341_v35 = vpop.f32.mrf.mxu2  ;;  %v4517_v51 = vpop.f32.mrf.mxu3 }
 0x3ea   : > { %6028 = vst [vmem:[%s7846_s22 + $0x40] sm:$0xff] %v5899_v29   ;;  %v5420_v27 = vadd.f32 %v5419_v48, %v5367_v24  ;;  %v4518_v4 = vadd.f32 %v4517_v51, %v4339_v44  ;;  %v4699_v3 = vpop.f32.mrf.mxu0  ;;  %v4162_v10 = vpop.f32.mrf.mxu1  ;;  %v2277_v24 = vld [vmem:[#allocation2 + $0x177] sm:$0xff] }
 0x3eb   : > { %v4163_v20 = vadd.f32 %v4162_v10, %v3984_v57  ;;  %v4961_v29 = vpop.permute.xlu2 %4960  ;;  %v2384_v44 = vld [vmem:[#allocation2 + $0x170] sm:$0xff]  ;;  %v8230_v10 = vld [vmem:[#allocation27_spill] sm:$0xff] }
 0x3ec   : > { %v4697_v18 = vadd.f32 %v4696_v30, %v4518_v4 }
 0x3ed   : > { %4209 = vmatmul.f32.gmra.mxu1 %v7930_v25  ;;  %4746 = vmatmul.f32.gmra.mxu0 %v7950_v32  ;;  %v4342_v41 = vadd.f32 %v4341_v35, %v4163_v20 }
 0x3ee   : > { %v5146_v53 = vmul.f32 %v4951_v12, %v4697_v18  ;;  %4391 = vmatmul.f32.gmra.mxu2 %v2275_v43  ;;  %4567 = vmatmul.f32.gmra.mxu3 %v2382_v5  ;;  %v3993_v12 = vadd.f32 %v8230_v10, %v7640_v26  ;;  %v7969_v5 = vld [vmem:[#allocation2 + $0x179] sm:$0xff] }
 0x3ef   : > { %v8232_v10 = vld [vmem:[#allocation30_spill] sm:$0xff] }
 0x3f0   : > { %v5307_v38 = vadd.f32 %v5306_v7, %v5146_v53  ;;  %v5368_v50 = vmul.f32 %v5146_v53, %v5146_v53 }
 0x3f1   : > { %v4344_v40 = vpop.f32.mrf.mxu2  ;;  %v4520_v60 = vpop.f32.mrf.mxu3 }
 0x3f2   : > { %v5421_v45 = vadd.f32 %v5420_v27, %v5368_v50  ;;  %v4521_v34 = vadd.f32 %v4520_v60, %v4342_v41  ;;  %v4702_v59 = vpop.f32.mrf.mxu0  ;;  %v4165_v25 = vpop.f32.mrf.mxu1  ;;  %v2278_v50 = vld [vmem:[#allocation2 + $0x17f] sm:$0xff] }
 0x3f3   : > { %v4166_v31 = vadd.f32 %v4165_v25, %v3987_v54  ;;  %v2385_v41 = vld [vmem:[#allocation2 + $0x178] sm:$0xff] }
 0x3f4   : > { %v4700_v22 = vadd.f32 %v4699_v3, %v4521_v34 }
 0x3f5   : > { %4212 = vmatmul.f32.gmra.mxu1 %v7937_v13  ;;  %4749 = vmatmul.f32.gmra.mxu0 %v7956_v58  ;;  %v4345_v9 = vadd.f32 %v4344_v40, %v4166_v31 }
 0x3f6   : > { %v5147_v48 = vmul.f32 %v4956_v55, %v4700_v22  ;;  %4394 = vmatmul.f32.gmra.mxu2 %v2276_v52  ;;  %4570 = vmatmul.f32.gmra.mxu3 %v2383_v37  ;;  %v8231_v55 = vld [vmem:[#allocation28_spill] sm:$0xff] }
 0x3f7   : > { %v3996_v31 = vadd.f32 %v8231_v55, %v7645_v16  ;;  %v8234_v55 = vld [vmem:[#allocation31_spill] sm:$0xff] }
 0x3f8   : > { %v5904_v2 = vpack.c.bf16 %v5147_v48, %v5146_v53  ;;  %v5308_v33 = vadd.f32 %v5307_v38, %v5147_v48  ;;  %v5369_v14 = vmul.f32 %v5147_v48, %v5147_v48  ;;  %v4966_v53 = vpop.permute.xlu0 %4965  ;;  %v7976_v48 = vld [vmem:[#allocation2 + $0x181] sm:$0xff] }
 0x3f9   : > { %v4347_v0 = vpop.f32.mrf.mxu2  ;;  %v4523_v6 = vpop.f32.mrf.mxu3 }
 0x3fa   : > { %6029 = vst [vmem:[%s7846_s22 + $0x48] sm:$0xff] %v5904_v2   ;;  %v5422_v30 = vadd.f32 %v5421_v45, %v5369_v14  ;;  %v4524_v47 = vadd.f32 %v4523_v6, %v4345_v9  ;;  %v4705_v13 = vpop.f32.mrf.mxu0  ;;  %v4168_v19 = vpop.f32.mrf.mxu1  ;;  %v2279_v14 = vld [vmem:[#allocation2 + $0x187] sm:$0xff] }
 0x3fb   : > { %v4169_v7 = vadd.f32 %v4168_v19, %v3990_v56  ;;  %v4971_v2 = vpop.permute.xlu1 %4970  ;;  %v2386_v9 = vld [vmem:[#allocation2 + $0x180] sm:$0xff] }
 0x3fc   : > { %v4703_v63 = vadd.f32 %v4702_v59, %v4524_v47 }
 0x3fd   : > { %4215 = vmatmul.f32.gmra.mxu1 %v7943_v28  ;;  %4752 = vmatmul.f32.gmra.mxu0 %v7963_v36  ;;  %v4348_v4 = vadd.f32 %v4347_v0, %v4169_v7  ;;  %v4976_v7 = vpop.permute.xlu2 %4975 }
 0x3fe   : > { %v5148_v35 = vmul.f32 %v4961_v29, %v4703_v63  ;;  %4397 = vmatmul.f32.gmra.mxu2 %v2277_v24  ;;  %4573 = vmatmul.f32.gmra.mxu3 %v2384_v44  ;;  %v7982_v29 = vld [vmem:[#allocation2 + $0x189] sm:$0xff] }
 0x3ff   : > { %v2280_v44 = vld [vmem:[#allocation2 + $0x18f] sm:$0xff] }
 0x400   : > { %v5309_v51 = vadd.f32 %v5308_v33, %v5148_v35  ;;  %v5370_v27 = vmul.f32 %v5148_v35, %v5148_v35 }
 0x401   : > { %v4350_v46 = vpop.f32.mrf.mxu2  ;;  %v4526_v57 = vpop.f32.mrf.mxu3 }
 0x402   : > { %v5423_v3 = vadd.f32 %v5422_v30, %v5370_v27  ;;  %v4527_v18 = vadd.f32 %v4526_v57, %v4348_v4  ;;  %v4708_v20 = vpop.f32.mrf.mxu0  ;;  %v4171_v28 = vpop.f32.mrf.mxu1 }
 0x403   : > { %v4172_v38 = vadd.f32 %v4171_v28, %v3993_v12  ;;  %v8233_v12 = vld [vmem:[#allocation29_spill] sm:$0xff] }
 0x404   : > { %v4706_v43 = vadd.f32 %v4705_v13, %v4527_v18  ;;  %v3999_v13 = vadd.f32 %v7647_v23, %v7659_v17 }
 0x405   : > { %4218 = vmatmul.f32.gmra.mxu1 %v7950_v32  ;;  %4755 = vmatmul.f32.gmra.mxu0 %v7969_v5  ;;  %v4351_v34 = vadd.f32 %v4350_v46, %v4172_v38  ;;  %v4981_v38 = vpop.permute.xlu0 %4980 }
 0x406   : > { %v5149_v40 = vmul.f32 %v4966_v53, %v4706_v43  ;;  %4400 = vmatmul.f32.gmra.mxu2 %v2278_v50  ;;  %4576 = vmatmul.f32.gmra.mxu3 %v2385_v41  ;;  %v7989_v53 = vld [vmem:[#allocation2 + $0x191] sm:$0xff] }
 0x407   : > { %v2281_v41 = vld [vmem:[#allocation2 + $0x197] sm:$0xff] }
 0x408   : > { %v5909_v60 = vpack.c.bf16 %v5149_v40, %v5148_v35  ;;  %v5310_v45 = vadd.f32 %v5309_v51, %v5149_v40  ;;  %v5371_v26 = vmul.f32 %v5149_v40, %v5149_v40  ;;  %v2387_v35 = vld [vmem:[#allocation2 + $0x188] sm:$0xff]  ;;  %v2388_v40 = vld [vmem:[#allocation2 + $0x190] sm:$0xff] }
 0x409   : > { %v4353_v54 = vpop.f32.mrf.mxu2  ;;  %v4529_v59 = vpop.f32.mrf.mxu3 }
 0x40a   : > { %6030 = vst [vmem:[%s7846_s22 + $0x50] sm:$0xff] %v5909_v60   ;;  %v5424_v22 = vadd.f32 %v5423_v3, %v5371_v26  ;;  %v4530_v25 = vadd.f32 %v4529_v59, %v4351_v34  ;;  %v4711_v32 = vpop.f32.mrf.mxu0  ;;  %v4174_v37 = vpop.f32.mrf.mxu1 }
 0x40b   : > { %v4175_v33 = vadd.f32 %v4174_v37, %v3996_v31  ;;  %v4005_v31 = vadd.f32 %v8234_v55, %v7672_v62  ;;  %v7995_v37 = vld [vmem:[#allocation2 + $0x199] sm:$0xff] }
 0x40c   : > { %v4709_v52 = vadd.f32 %v4708_v20, %v4530_v25  ;;  %v4002_v20 = vadd.f32 %v8233_v12, %v8232_v10 }
 0x40d   : > { %4221 = vmatmul.f32.gmra.mxu1 %v7956_v58  ;;  %4758 = vmatmul.f32.gmra.mxu0 %v7976_v48  ;;  %v4354_v47 = vadd.f32 %v4353_v54, %v4175_v33 }
 0x40e   : > { %v5150_v0 = vmul.f32 %v4971_v2, %v4709_v52  ;;  %4403 = vmatmul.f32.gmra.mxu2 %v2279_v14  ;;  %4579 = vmatmul.f32.gmra.mxu3 %v2386_v9  ;;  %v4986_v2 = vpop.permute.xlu1 %4985  ;;  %v2282_v14 = vld [vmem:[#allocation2 + $0x19f] sm:$0xff] }
 0x40f   : > { %v2389_v9 = vld [vmem:[#allocation2 + $0x198] sm:$0xff] }
 0x410   : > { %v5311_v6 = vadd.f32 %v5310_v45, %v5150_v0  ;;  %v5372_v30 = vmul.f32 %v5150_v0, %v5150_v0 }
 0x411   : > { %v4356_v16 = vpop.f32.mrf.mxu2  ;;  %v4532_v1 = vpop.f32.mrf.mxu3 }
 0x412   : > { %v5425_v11 = vadd.f32 %v5424_v22, %v5372_v30  ;;  %v4533_v56 = vadd.f32 %v4532_v1, %v4354_v47  ;;  %v4714_v63 = vpop.f32.mrf.mxu0  ;;  %v4177_v58 = vpop.f32.mrf.mxu1 }
 0x413   : > { %v4178_v24 = vadd.f32 %v4177_v58, %v3999_v13  ;;  %v4008_v13 = vadd.f32 %v7674_v42, %v7683_v15  ;;  %v8002_v58 = vld [vmem:[#allocation2 + $0x1a1] sm:$0xff] }
 0x414   : > { %v4712_v19 = vadd.f32 %v4711_v32, %v4533_v56 }
 0x415   : > { %4224 = vmatmul.f32.gmra.mxu1 %v7963_v36  ;;  %4761 = vmatmul.f32.gmra.mxu0 %v7982_v29  ;;  %v4357_v17 = vadd.f32 %v4356_v16, %v4178_v24 }
 0x416   : > { %v5151_v51 = vmul.f32 %v4976_v7, %v4712_v19  ;;  %4406 = vmatmul.f32.gmra.mxu2 %v2280_v44  ;;  %4582 = vmatmul.f32.gmra.mxu3 %v2387_v35  ;;  %v4991_v7 = vpop.permute.xlu2 %4990  ;;  %v2283_v44 = vld [vmem:[#allocation2 + $0x1a7] sm:$0xff] }
 0x417   : > { %v2390_v35 = vld [vmem:[#allocation2 + $0x1a0] sm:$0xff] }
 0x418   : > { %v5914_v27 = vpack.c.bf16 %v5151_v51, %v5150_v0  ;;  %v5312_v4 = vadd.f32 %v5311_v6, %v5151_v51  ;;  %v5373_v23 = vmul.f32 %v5151_v51, %v5151_v51 }
 0x419   : > { %v4359_v46 = vpop.f32.mrf.mxu2  ;;  %v4535_v57 = vpop.f32.mrf.mxu3 }
 0x41a   : > { %6031 = vst [vmem:[%s7846_s22 + $0x58] sm:$0xff] %v5914_v27   ;;  %v5426_v3 = vadd.f32 %v5425_v11, %v5373_v23  ;;  %v4536_v18 = vadd.f32 %v4535_v57, %v4357_v17  ;;  %v4717_v36 = vpop.f32.mrf.mxu0  ;;  %v4180_v28 = vpop.f32.mrf.mxu1  ;;  %v8235_v57 = vld [vmem:[#allocation33_spill] sm:$0xff] }
 0x41b   : > { %v4181_v50 = vadd.f32 %v4180_v28, %v4002_v20  ;;  %v8008_v20 = vld [vmem:[#allocation2 + $0x1a9] sm:$0xff] }
 0x41c   : > { %v4715_v43 = vadd.f32 %v4714_v63, %v4536_v18  ;;  %v2284_v28 = vld [vmem:[#allocation2 + $0x1af] sm:$0xff] }
 0x41d   : > { %4227 = vmatmul.f32.gmra.mxu1 %v7969_v5  ;;  %4764 = vmatmul.f32.gmra.mxu0 %v7989_v53  ;;  %v4360_v34 = vadd.f32 %v4359_v46, %v4181_v50 }
 0x41e   : > { %v5152_v60 = vmul.f32 %v4981_v38, %v4715_v43  ;;  %4409 = vmatmul.f32.gmra.mxu2 %v2281_v41  ;;  %4585 = vmatmul.f32.gmra.mxu3 %v2388_v40  ;;  %v2391_v38 = vld [vmem:[#allocation2 + $0x1a8] sm:$0xff] }
 0x420   : > { %v5313_v45 = vadd.f32 %v5312_v4, %v5152_v60  ;;  %v5374_v26 = vmul.f32 %v5152_v60, %v5152_v60 }
 0x421   : > { %v4362_v54 = vpop.f32.mrf.mxu2  ;;  %v4538_v59 = vpop.f32.mrf.mxu3 }
 0x422   : > { %v5427_v22 = vadd.f32 %v5426_v3, %v5374_v26  ;;  %v4539_v25 = vadd.f32 %v4538_v59, %v4360_v34  ;;  %v4720_v32 = vpop.f32.mrf.mxu0  ;;  %v4183_v5 = vpop.f32.mrf.mxu1  ;;  %v8236_v3 = vld [vmem:[#allocation32_spill] sm:$0xff] }
 0x423   : > { %v4184_v33 = vadd.f32 %v4183_v5, %v4005_v31  ;;  %v4011_v18 = vadd.f32 %v8236_v3, %v8235_v57  ;;  %v8028_v3 = vld [vmem:[#allocation2 + $0x1c1] sm:$0xff] }
 0x424   : > { %v4718_v52 = vadd.f32 %v4717_v36, %v4539_v25  ;;  %v4996_v36 = vpop.permute.xlu0 %4995 }
 0x425   : > { %4230 = vmatmul.f32.gmra.mxu1 %v7976_v48  ;;  %4767 = vmatmul.f32.gmra.mxu0 %v7995_v37  ;;  %v4363_v47 = vadd.f32 %v4362_v54, %v4184_v33  ;;  %v2392_v33 = vld [vmem:[#allocation2 + $0x1b0] sm:$0xff] }
 0x426   : > { %v5153_v0 = vmul.f32 %v4986_v2, %v4718_v52  ;;  %4412 = vmatmul.f32.gmra.mxu2 %v2282_v14  ;;  %4588 = vmatmul.f32.gmra.mxu3 %v2389_v9  ;;  %v5001_v52 = vpop.permute.xlu1 %5000  ;;  %v2285_v2 = vld [vmem:[#allocation2 + $0x1b7] sm:$0xff] }
 0x428   : > { %v5919_v6 = vpack.c.bf16 %v5153_v0, %v5152_v60  ;;  %v5314_v30 = vadd.f32 %v5313_v45, %v5153_v0  ;;  %v5375_v62 = vmul.f32 %v5153_v0, %v5153_v0 }
 0x429   : > { %v4365_v16 = vpop.f32.mrf.mxu2  ;;  %v4541_v1 = vpop.f32.mrf.mxu3 }
 0x42a   : > { %6032 = vst [vmem:[%s7846_s22 + $0x60] sm:$0xff] %v5919_v6   ;;  %v5428_v11 = vadd.f32 %v5427_v22, %v5375_v62  ;;  %v4542_v56 = vadd.f32 %v4541_v1, %v4363_v47  ;;  %v4723_v48 = vpop.f32.mrf.mxu0  ;;  %v4186_v19 = vpop.f32.mrf.mxu1  ;;  %v8237_v22 = vld [vmem:[#allocation34_spill] sm:$0xff] }
 0x42b   : > { %v4187_v24 = vadd.f32 %v4186_v19, %v4008_v13  ;;  %v4014_v25 = vadd.f32 %v8237_v22, %v7699_v61  ;;  %v8021_v13 = vld [vmem:[#allocation2 + $0x1b9] sm:$0xff] }
 0x42c   : > { %v4721_v63 = vadd.f32 %v4720_v32, %v4542_v56  ;;  %v8015_v32 = vld [vmem:[#allocation2 + $0x1b1] sm:$0xff]  ;;  %v2286_v19 = vld [vmem:[#allocation2 + $0x1bf] sm:$0xff] }
 0x42d   : > { %4233 = vmatmul.f32.gmra.mxu1 %v7982_v29  ;;  %4770 = vmatmul.f32.gmra.mxu0 %v8002_v58  ;;  %v4366_v23 = vadd.f32 %v4365_v16, %v4187_v24  ;;  %v8238_v16 = vld [vmem:[#allocation35_spill] sm:$0xff] }
 0x42e   : > { %v5154_v51 = vmul.f32 %v4991_v7, %v4721_v63  ;;  %4415 = vmatmul.f32.gmra.mxu2 %v2283_v44  ;;  %4591 = vmatmul.f32.gmra.mxu3 %v2390_v35  ;;  %v4017_v1 = vadd.f32 %v8238_v16, %v7704_v39  ;;  %v2393_v7 = vld [vmem:[#allocation2 + $0x1b8] sm:$0xff] }
 0x430   : > { %v5315_v27 = vadd.f32 %v5314_v30, %v5154_v51  ;;  %v5376_v4 = vmul.f32 %v5154_v51, %v5154_v51 }
 0x431   : > { %v4368_v42 = vpop.f32.mrf.mxu2  ;;  %v4544_v15 = vpop.f32.mrf.mxu3 }
 0x432   : > { %v5429_v17 = vadd.f32 %v5428_v11, %v5376_v4  ;;  %v4545_v46 = vadd.f32 %v4544_v15, %v4366_v23  ;;  %v4726_v10 = vpop.f32.mrf.mxu0  ;;  %v4189_v29 = vpop.f32.mrf.mxu1  ;;  %v8239_v15 = vld [vmem:[#allocation36_spill] sm:$0xff] }
 0x433   : > { %v4190_v43 = vadd.f32 %v4189_v29, %v4011_v18  ;;  %v5011_v18 = vpop.permute.xlu0 %5010  ;;  %v2394_v29 = vld [vmem:[#allocation2 + $0x1c0] sm:$0xff] }
 0x434   : > { %v4724_v12 = vadd.f32 %v4723_v48, %v4545_v46  ;;  %v5006_v48 = vpop.permute.xlu2 %5005 }
 0x435   : > { %4236 = vmatmul.f32.gmra.mxu1 %v7989_v53  ;;  %4773 = vmatmul.f32.gmra.mxu0 %v8008_v20  ;;  %v4369_v45 = vadd.f32 %v4368_v42, %v4190_v43 }
 0x436   : > { %v5155_v50 = vmul.f32 %v4996_v36, %v4724_v12  ;;  %4418 = vmatmul.f32.gmra.mxu2 %v2284_v28  ;;  %4594 = vmatmul.f32.gmra.mxu3 %v2391_v38  ;;  %v2287_v12 = vld [vmem:[#allocation2 + $0x1c7] sm:$0xff] }
 0x438   : > { %v5924_v41 = vpack.c.bf16 %v5155_v50, %v5154_v51  ;;  %v5316_v40 = vadd.f32 %v5315_v27, %v5155_v50  ;;  %v5377_v60 = vmul.f32 %v5155_v50, %v5155_v50 }
 0x439   : > { %v4371_v26 = vpop.f32.mrf.mxu2  ;;  %v4547_v34 = vpop.f32.mrf.mxu3 }
 0x43a   : > { %6033 = vst [vmem:[%s7846_s22 + $0x68] sm:$0xff] %v5924_v41   ;;  %v5430_v54 = vadd.f32 %v5429_v17, %v5377_v60  ;;  %v4548_v59 = vadd.f32 %v4547_v34, %v4369_v45  ;;  %v4729_v53 = vpop.f32.mrf.mxu0  ;;  %v4192_v31 = vpop.f32.mrf.mxu1  ;;  %v4020_v17 = vadd.f32 %v8239_v15, %v7718_v49  ;;  %v8240_v60 = vld [vmem:[#allocation37_spill] sm:$0xff] }
 0x43b   : > { %v4193_v5 = vadd.f32 %v4192_v31, %v4014_v25  ;;  %v4023_v45 = vadd.f32 %v8240_v60, %v7726_v21  ;;  %v2288_v25 = vld [vmem:[#allocation2 + $0x1cf] sm:$0xff]  ;;  %v2290_v15 = vld [vmem:[#allocation2 + $0x1df] sm:$0xff] }
 0x43c   : > { %v4727_v55 = vadd.f32 %v4726_v10, %v4548_v59  ;;  %v5016_v59 = vpop.permute.xlu1 %5015 }
 0x43d   : > { %4239 = vmatmul.f32.gmra.mxu1 %v7995_v37  ;;  %4776 = vmatmul.f32.gmra.mxu0 %v8015_v32  ;;  %v4372_v6 = vadd.f32 %v4371_v26, %v4193_v5 }
 0x43e   : > { %v5156_v14 = vmul.f32 %v5001_v52, %v4727_v55  ;;  %4421 = vmatmul.f32.gmra.mxu2 %v2285_v2  ;;  %4597 = vmatmul.f32.gmra.mxu3 %v2392_v33 }
 0x440   : > { %v5317_v9 = vadd.f32 %v5316_v40, %v5156_v14  ;;  %v5378_v0 = vmul.f32 %v5156_v14, %v5156_v14 }
 0x441   : > { %v4374_v61 = vpop.f32.mrf.mxu2  ;;  %v4550_v30 = vpop.f32.mrf.mxu3 }
 0x442   : > { %v5431_v62 = vadd.f32 %v5430_v54, %v5378_v0  ;;  %v4551_v47 = vadd.f32 %v4550_v30, %v4372_v6  ;;  %v4732_v11 = vpop.f32.mrf.mxu0  ;;  %v4195_v37 = vpop.f32.mrf.mxu1  ;;  %v8034_v54 = vld [vmem:[#allocation2 + $0x1c9] sm:$0xff]  ;;  %v8241_v0 = vld [vmem:[#allocation38_spill] sm:$0xff] }
 0x443   : > { %v4196_v63 = vadd.f32 %v4195_v37, %v4017_v1  ;;  %v4026_v6 = vadd.f32 %v8241_v0, %v7731_v8  ;;  %v2289_v1 = vld [vmem:[#allocation2 + $0x1d7] sm:$0xff] }
 0x444   : > { %v4730_v56 = vadd.f32 %v4729_v53, %v4551_v47  ;;  %v2395_v53 = vld [vmem:[#allocation2 + $0x1c8] sm:$0xff]  ;;  %v5021_v47 = vpop.permute.xlu2 %5020  ;;  %v5031_v60 = vpop.permute.xlu1 %5030 }
 0x445   : > { %4242 = vmatmul.f32.gmra.mxu1 %v8002_v58  ;;  %4779 = vmatmul.f32.gmra.mxu0 %v8021_v13  ;;  %v4375_v51 = vadd.f32 %v4374_v61, %v4196_v63 }
 0x446   : > { %v5157_v24 = vmul.f32 %v5006_v48, %v4730_v56  ;;  %4424 = vmatmul.f32.gmra.mxu2 %v2286_v19  ;;  %4600 = vmatmul.f32.gmra.mxu3 %v2393_v7 }
 0x448   : > { %v5929_v44 = vpack.c.bf16 %v5157_v24, %v5156_v14  ;;  %v5318_v35 = vadd.f32 %v5317_v9, %v5157_v24  ;;  %v5379_v39 = vmul.f32 %v5157_v24, %v5157_v24 }
 0x449   : > { %v4377_v27 = vpop.f32.mrf.mxu2  ;;  %v4553_v4 = vpop.f32.mrf.mxu3 }
 0x44a   : > { %6034 = vst [vmem:[%s7846_s22 + $0x70] sm:$0xff] %v5929_v44   ;;  %v5432_v23 = vadd.f32 %v5431_v62, %v5379_v39  ;;  %v4554_v42 = vadd.f32 %v4553_v4, %v4375_v51  ;;  %v4735_v58 = vpop.f32.mrf.mxu0  ;;  %v4198_v57 = vpop.f32.mrf.mxu1  ;;  %v8041_v62 = vld [vmem:[#allocation2 + $0x1d1] sm:$0xff]  ;;  %v8047_v4 = vld [vmem:[#allocation2 + $0x1d9] sm:$0xff] }
 0x44b   : > { %v4199_v10 = vadd.f32 %v4198_v57, %v4020_v17  ;;  %v8242_v44 = vld [vmem:[#allocation40_spill] sm:$0xff]  ;;  %v2397_v17 = vld [vmem:[#allocation2 + $0x1d8] sm:$0xff] }
 0x44c   : > { %v4733_v46 = vadd.f32 %v4732_v11, %v4554_v42  ;;  %v2396_v11 = vld [vmem:[#allocation2 + $0x1d0] sm:$0xff]  ;;  %v5036_v0 = vpop.permute.xlu2 %5035 }
 0x44d   : > { %4245 = vmatmul.f32.gmra.mxu1 %v8008_v20  ;;  %4782 = vmatmul.f32.gmra.mxu0 %v8028_v3  ;;  %v4378_v38 = vadd.f32 %v4377_v27, %v4199_v10 }
 0x44e   : > { %v5158_v36 = vmul.f32 %v5011_v18, %v4733_v46  ;;  %4427 = vmatmul.f32.gmra.mxu2 %v2287_v12  ;;  %4603 = vmatmul.f32.gmra.mxu3 %v2394_v29 }
 0x450   : > { %v5319_v43 = vadd.f32 %v5318_v35, %v5158_v36  ;;  %v5380_v28 = vmul.f32 %v5158_v36, %v5158_v36  ;;  %v8243_v35 = vld [vmem:[#allocation39_spill] sm:$0xff] }
 0x451   : > { %v4380_v49 = vpop.f32.mrf.mxu2  ;;  %v4556_v50 = vpop.f32.mrf.mxu3  ;;  %v4029_v39 = vadd.f32 %v8243_v35, %v8242_v44  ;;  %v2508_v35 = vld [vmem:[#allocation2 + $0x1f1] sm:$0xff] }
 0x452   : > { %v5433_v41 = vadd.f32 %v5432_v23, %v5380_v28  ;;  %v4557_v40 = vadd.f32 %v4556_v50, %v4378_v38  ;;  %v4738_v26 = vpop.f32.mrf.mxu0  ;;  %v4201_v20 = vpop.f32.mrf.mxu1  ;;  %v8244_v28 = vld [vmem:[#allocation42_spill] sm:$0xff]  ;;  %v8245_v38 = vld [vmem:[#allocation41_spill] sm:$0xff] }
 0x453   : > { %v4202_v22 = vadd.f32 %v4201_v20, %v4023_v45  ;;  %v5026_v23 = vpop.permute.xlu0 %5025 }
 0x454   : > { %v4736_v34 = vadd.f32 %v4735_v58, %v4557_v40  ;;  %v2506_v40 = vld [vmem:[#allocation2 + $0x1e1] sm:$0xff] }
 0x455   : > { %4248 = vmatmul.f32.gmra.mxu1 %v8015_v32  ;;  %4785 = vmatmul.f32.gmra.mxu0 %v8034_v54  ;;  %v4381_v5 = vadd.f32 %v4380_v49, %v4202_v22  ;;  %v4032_v49 = vadd.f32 %v8245_v38, %v8244_v28  ;;  %v5046_v28 = vpop.permute.xlu1 %5045 }
 0x456   : > { %v5159_v55 = vmul.f32 %v5016_v59, %v4736_v34  ;;  %4430 = vmatmul.f32.gmra.mxu2 %v2288_v25  ;;  %4606 = vmatmul.f32.gmra.mxu3 %v2395_v53  ;;  %v2398_v34 = vld [vmem:[#allocation2 + $0x1e0] sm:$0xff] }
 0x458   : > { %v5934_v31 = vpack.c.bf16 %v5159_v55, %v5158_v36  ;;  %v5320_v52 = vadd.f32 %v5319_v43, %v5159_v55  ;;  %v5381_v21 = vmul.f32 %v5159_v55, %v5159_v55 }
 0x459   : > { %v4383_v2 = vpop.f32.mrf.mxu2  ;;  %v4559_v33 = vpop.f32.mrf.mxu3 }
 0x45a   : > { %6035 = vst [vmem:[%s7846_s22 + $0x78] sm:$0xff] %v5934_v31   ;;  %v5434_v14 = vadd.f32 %v5433_v41, %v5381_v21  ;;  %v4560_v9 = vadd.f32 %v4559_v33, %v4381_v5  ;;  %v4741_v32 = vpop.f32.mrf.mxu0  ;;  %v4204_v30 = vpop.f32.mrf.mxu1  ;;  %v8246_v21 = vld [vmem:[#allocation44_spill] sm:$0xff]  ;;  %v8247_v5 = vld [vmem:[#allocation43_spill] sm:$0xff] }
 0x45b   : > { %v4205_v16 = vadd.f32 %v4204_v30, %v4026_v6 }
 0x45c   : > { %v4739_v61 = vadd.f32 %v4738_v26, %v4560_v9  ;;  %v2291_v26 = vld [vmem:[#allocation2 + $0x1e7] sm:$0xff] }
 0x45d   : > { %4251 = vmatmul.f32.gmra.mxu1 %v8021_v13  ;;  %4788 = vmatmul.f32.gmra.mxu0 %v8041_v62  ;;  %v4384_v63 = vadd.f32 %v4383_v2, %v4205_v16  ;;  %v4035_v2 = vadd.f32 %v8247_v5, %v8246_v21 }
 0x45e   : > { %v5160_v56 = vmul.f32 %v5021_v47, %v4739_v61  ;;  %4433 = vmatmul.f32.gmra.mxu2 %v2289_v1  ;;  %4609 = vmatmul.f32.gmra.mxu3 %v2396_v11  ;;  %v2399_v61 = vld [vmem:[#allocation2 + $0x1e8] sm:$0xff] }
 0x460   : > { %v5321_v37 = vadd.f32 %v5320_v52, %v5160_v56  ;;  %v5382_v48 = vmul.f32 %v5160_v56, %v5160_v56 }
 0x461   : > { %v4386_v8 = vpop.f32.mrf.mxu2  ;;  %v4562_v19 = vpop.f32.mrf.mxu3 }
 0x462   : > { %v5435_v7 = vadd.f32 %v5434_v14, %v5382_v48  ;;  %v4563_v24 = vadd.f32 %v4562_v19, %v4384_v63  ;;  %v4744_v51 = vpop.f32.mrf.mxu0  ;;  %v4207_v13 = vpop.f32.mrf.mxu1  ;;  %v8249_v19 = vld [vmem:[#allocation45_spill] sm:$0xff] }
 0x463   : > { %v4208_v42 = vadd.f32 %v4207_v13, %v4029_v39  ;;  %v5041_v39 = vpop.permute.xlu0 %5040 }
 0x464   : > { %v4742_v27 = vadd.f32 %v4741_v32, %v4563_v24  ;;  %v2292_v32 = vld [vmem:[#allocation2 + $0x1ef] sm:$0xff] }
 0x465   : > { %4254 = vmatmul.f32.gmra.mxu1 %v8028_v3  ;;  %4791 = vmatmul.f32.gmra.mxu0 %v8047_v4  ;;  %v4387_v10 = vadd.f32 %v4386_v8, %v4208_v42  ;;  %v8248_v8 = vld [vmem:[#allocation46_spill] sm:$0xff] }
 0x466   : > { %v5161_v58 = vmul.f32 %v5026_v23, %v4742_v27  ;;  %4436 = vmatmul.f32.gmra.mxu2 %v2290_v15  ;;  %4612 = vmatmul.f32.gmra.mxu3 %v2397_v17  ;;  %v2400_v27 = vld [vmem:[#allocation2 + $0x1f0] sm:$0xff] }
 0x468   : > { %v5939_v46 = vpack.c.bf16 %v5161_v58, %v5160_v56  ;;  %v5322_v57 = vadd.f32 %v5321_v37, %v5161_v58  ;;  %v5383_v18 = vmul.f32 %v5161_v58, %v5161_v58 }
 0x469   : > { %v4389_v12 = vpop.f32.mrf.mxu2  ;;  %v4565_v29 = vpop.f32.mrf.mxu3 }
 0x46a   : > { %6036 = vst [vmem:[%s7846_s22 + $0x80] sm:$0xff] %v5939_v46   ;;  %v5436_v36 = vadd.f32 %v5435_v7, %v5383_v18  ;;  %v4566_v43 = vadd.f32 %v4565_v29, %v4387_v10  ;;  %v4747_v3 = vpop.f32.mrf.mxu0  ;;  %v4210_v41 = vpop.f32.mrf.mxu1  ;;  %v4038_v7 = vadd.f32 %v8249_v19, %v8248_v8  ;;  %v8250_v18 = vld [vmem:[#allocation48_spill] sm:$0xff]  ;;  %v8251_v10 = vld [vmem:[#allocation47_spill] sm:$0xff] }
 0x46b   : > { %v4211_v45 = vadd.f32 %v4210_v41, %v4032_v49 }
 0x46c   : > { %v4745_v50 = vadd.f32 %v4744_v51, %v4566_v43 }
 0x46d   : > { %4257 = vmatmul.f32.gmra.mxu1 %v8034_v54  ;;  %4794 = vmatmul.f32.gmra.mxu0 %v2506_v40  ;;  %v4390_v25 = vadd.f32 %v4389_v12, %v4211_v45  ;;  %v2507_v54 = vld [vmem:[#allocation2 + $0x1e9] sm:$0xff]  ;;  %v4041_v12 = vadd.f32 %v8251_v10, %v8250_v18 }
 0x46e   : > { %v5162_v20 = vmul.f32 %v5031_v60, %v4745_v50  ;;  %4439 = vmatmul.f32.gmra.mxu2 %v2291_v26  ;;  %4615 = vmatmul.f32.gmra.mxu3 %v2398_v34  ;;  %v8252_v34 = vld [vmem:[#allocation13_spill] sm:$0xff] }
 0x470   : > { %v5323_v59 = vadd.f32 %v5322_v57, %v5162_v20  ;;  %v5384_v22 = vmul.f32 %v5162_v20, %v5162_v20 }
 0x471   : > { %v4392_v53 = vpop.f32.mrf.mxu2  ;;  %v4568_v55 = vpop.f32.mrf.mxu3 }
 0x472   : > { %v5437_v31 = vadd.f32 %v5436_v36, %v5384_v22  ;;  %v4569_v52 = vadd.f32 %v4568_v55, %v4390_v25  ;;  %v4750_v33 = vpop.f32.mrf.mxu0  ;;  %v4213_v9 = vpop.f32.mrf.mxu1 }
 0x473   : > { %v4214_v6 = vadd.f32 %v4213_v9, %v4035_v2  ;;  %v5051_v55 = vpop.permute.xlu2 %5050 }
 0x474   : > { %v4748_v14 = vadd.f32 %v4747_v3, %v4569_v52 }
 0x475   : > { %4260 = vmatmul.f32.gmra.mxu1 %v8041_v62  ;;  %4797 = vmatmul.f32.gmra.mxu0 %v2507_v54  ;;  %v4393_v11 = vadd.f32 %v4392_v53, %v4214_v6  ;;  %v8255_v6 = vld [vmem:[#allocation50_spill] sm:$0xff] }
 0x476   : > { %v5163_v30 = vmul.f32 %v5036_v0, %v4748_v14  ;;  %4442 = vmatmul.f32.gmra.mxu2 %v2292_v32  ;;  %4618 = vmatmul.f32.gmra.mxu3 %v2399_v61  ;;  %v8254_v0 = vld [vmem:[#allocation15_spill] sm:$0xff] }
 0x477   : > { %v4047_v32 = vadd.f32 %v8255_v6, %v8254_v0 }
 0x478   : > { %v5944_v47 = vpack.c.bf16 %v5163_v30, %v5162_v20  ;;  %v5324_v16 = vadd.f32 %v5323_v59, %v5163_v30  ;;  %v5385_v1 = vmul.f32 %v5163_v30, %v5163_v30  ;;  %v8253_v20 = vld [vmem:[#allocation49_spill] sm:$0xff] }
 0x479   : > { %v4395_v56 = vpop.f32.mrf.mxu2  ;;  %v4571_v37 = vpop.f32.mrf.mxu3  ;;  %v4044_v59 = vadd.f32 %v8253_v20, %v8252_v34 }
 0x47a   : > { %6037 = vst [vmem:[%s7846_s22 + $0x88] sm:$0xff] %v5944_v47   ;;  %v5438_v48 = vadd.f32 %v5437_v31, %v5385_v1  ;;  %v4572_v63 = vadd.f32 %v4571_v37, %v4393_v11  ;;  %v4753_v24 = vpop.f32.mrf.mxu0  ;;  %v4216_v44 = vpop.f32.mrf.mxu1 }
 0x47b   : > { %v4217_v51 = vadd.f32 %v4216_v44, %v4038_v7  ;;  %v8257_v44 = vld [vmem:[#allocation51_spill] sm:$0xff] }
 0x47c   : > { %v4751_v62 = vadd.f32 %v4750_v33, %v4572_v63 }
 0x47d   : > { %4263 = vmatmul.f32.gmra.mxu1 %v8047_v4  ;;  %4800 = vmatmul.f32.gmra.mxu0 %v2508_v35  ;;  %v4396_v15 = vadd.f32 %v4395_v56, %v4217_v51 }
 0x47e   : > { %v5164_v13 = vmul.f32 %v5041_v39, %v4751_v62  ;;  %4621 = vmatmul.f32.gmra.mxu3 %v2400_v27  ;;  %v8256_v62 = vld [vmem:[#allocation16_spill] sm:$0xff] }
 0x47f   : > { %v4050_v35 = vadd.f32 %v8257_v44, %v8256_v62 }
 0x480   : > { %v5325_v23 = vadd.f32 %v5324_v16, %v5164_v13  ;;  %v5386_v42 = vmul.f32 %v5164_v13, %v5164_v13  ;;  %v5056_v16 = vpop.permute.xlu0 %5055 }
 0x481   : > { %v4398_v17 = vpop.f32.mrf.mxu2  ;;  %v4574_v58 = vpop.f32.mrf.mxu3 }
 0x482   : > { %v5439_v46 = vadd.f32 %v5438_v48, %v5386_v42  ;;  %v4575_v57 = vadd.f32 %v4574_v58, %v4396_v15  ;;  %v4756_v29 = vpop.f32.mrf.mxu0  ;;  %v4219_v43 = vpop.f32.mrf.mxu1 }
 0x483   : > { %v4220_v4 = vadd.f32 %v4219_v43, %v4041_v12  ;;  %v8258_v12 = vld [vmem:[#allocation4_spill] sm:$0xff] }
 0x484   : > { %v4754_v36 = vadd.f32 %v4753_v24, %v4575_v57 }
 0x485   : > { %v4399_v41 = vadd.f32 %v4398_v17, %v4220_v4 }
 0x486   : > { %v5165_v38 = vmul.f32 %v5046_v28, %v4754_v36 }
 0x488   : > { %v5949_v49 = vpack.c.bf16 %v5165_v38, %v5164_v13  ;;  %v5326_v3 = vadd.f32 %v5325_v23, %v5165_v38  ;;  %v5387_v50 = vmul.f32 %v5165_v38, %v5165_v38  ;;  %v5061_v13 = vpop.permute.xlu1 %5060  ;;  %v5066_v38 = vpop.permute.xlu2 %5065 }
 0x489   : > { %v4401_v40 = vpop.f32.mrf.mxu2  ;;  %v4577_v60 = vpop.f32.mrf.mxu3 }
 0x48a   : > { %6038 = vst [vmem:[%s7846_s22 + $0x90] sm:$0xff] %v5949_v49   ;;  %v5440_v45 = vadd.f32 %v5439_v46, %v5387_v50  ;;  %v4578_v26 = vadd.f32 %v4577_v60, %v4399_v41  ;;  %v4759_v22 = vpop.f32.mrf.mxu0  ;;  %v4222_v53 = vpop.f32.mrf.mxu1 }
 0x48b   : > { %v4223_v31 = vadd.f32 %v4222_v53, %v4044_v59  ;;  %v8260_v59 = vld [vmem:[#allocation5_spill] sm:$0xff] }
 0x48c   : > { %v4757_v25 = vadd.f32 %v4756_v29, %v4578_v26  ;;  %v8259_v29 = vld [vmem:[#allocation52_spill] sm:$0xff] }
 0x48d   : > { %v4402_v2 = vadd.f32 %v4401_v40, %v4223_v31  ;;  %v4053_v36 = vadd.f32 %v8259_v29, %v8258_v12 }
 0x48e   : > { %v5166_v52 = vmul.f32 %v5051_v55, %v4757_v25 }
 0x490   : > { %v5327_v21 = vadd.f32 %v5326_v3, %v5166_v52  ;;  %v5388_v5 = vmul.f32 %v5166_v52, %v5166_v52 }
 0x491   : > { %v4404_v33 = vpop.f32.mrf.mxu2  ;;  %v4580_v14 = vpop.f32.mrf.mxu3 }
 0x492   : > { %v5441_v9 = vadd.f32 %v5440_v45, %v5388_v5  ;;  %v4581_v54 = vadd.f32 %v4580_v14, %v4402_v2  ;;  %v4762_v61 = vpop.f32.mrf.mxu0  ;;  %v4225_v47 = vpop.f32.mrf.mxu1 }
 0x493   : > { %v4226_v1 = vadd.f32 %v4225_v47, %v4047_v32  ;;  %v8262_v32 = vld [vmem:[#allocation6_spill] sm:$0xff] }
 0x494   : > { %v4760_v30 = vadd.f32 %v4759_v22, %v4581_v54  ;;  %v8261_v22 = vld [vmem:[#allocation53_spill] sm:$0xff] }
 0x495   : > { %v4405_v63 = vadd.f32 %v4404_v33, %v4226_v1  ;;  %v4056_v25 = vadd.f32 %v8261_v22, %v8260_v59 }
 0x496   : > { %v5167_v11 = vmul.f32 %v5056_v16, %v4760_v30 }
 0x498   : > { %v5954_v56 = vpack.c.bf16 %v5167_v11, %v5166_v52  ;;  %v5328_v37 = vadd.f32 %v5327_v21, %v5167_v11  ;;  %v5389_v48 = vmul.f32 %v5167_v11, %v5167_v11  ;;  %v5071_v52 = vpop.permute.xlu0 %5070  ;;  %v5076_v11 = vpop.permute.xlu1 %5075 }
 0x499   : > { %v4407_v8 = vpop.f32.mrf.mxu2  ;;  %v4583_v19 = vpop.f32.mrf.mxu3 }
 0x49a   : > { %6039 = vst [vmem:[%s7846_s22 + $0x98] sm:$0xff] %v5954_v56   ;;  %v5442_v7 = vadd.f32 %v5441_v9, %v5389_v48  ;;  %v4584_v24 = vadd.f32 %v4583_v19, %v4405_v63  ;;  %v4765_v39 = vpop.f32.mrf.mxu0  ;;  %v4228_v27 = vpop.f32.mrf.mxu1 }
 0x49b   : > { %v4229_v23 = vadd.f32 %v4228_v27, %v4050_v35  ;;  %v8264_v35 = vld [vmem:[#allocation7_spill] sm:$0xff] }
 0x49c   : > { %v4763_v51 = vadd.f32 %v4762_v61, %v4584_v24  ;;  %v8263_v61 = vld [vmem:[#allocation54_spill] sm:$0xff] }
 0x49d   : > { %v4408_v58 = vadd.f32 %v4407_v8, %v4229_v23  ;;  %v4059_v30 = vadd.f32 %v8263_v61, %v8262_v32 }
 0x49e   : > { %v5168_v42 = vmul.f32 %v5061_v13, %v4763_v51 }
 0x4a0   : > { %v5329_v15 = vadd.f32 %v5328_v37, %v5168_v42  ;;  %v5390_v17 = vmul.f32 %v5168_v42, %v5168_v42 }
 0x4a1   : > { %v4410_v46 = vpop.f32.mrf.mxu2  ;;  %v4586_v57 = vpop.f32.mrf.mxu3 }
 0x4a2   : > { %v5443_v18 = vadd.f32 %v5442_v7, %v5390_v17  ;;  %v4587_v10 = vadd.f32 %v4586_v57, %v4408_v58  ;;  %v4768_v43 = vpop.f32.mrf.mxu0  ;;  %v4231_v4 = vpop.f32.mrf.mxu1 }
 0x4a3   : > { %v4232_v49 = vadd.f32 %v4231_v4, %v4053_v36  ;;  %v8266_v36 = vld [vmem:[#allocation8_spill] sm:$0xff] }
 0x4a4   : > { %v4766_v28 = vadd.f32 %v4765_v39, %v4587_v10  ;;  %v8265_v39 = vld [vmem:[#allocation55_spill] sm:$0xff] }
 0x4a5   : > { %v4411_v60 = vadd.f32 %v4410_v46, %v4232_v49  ;;  %v4062_v51 = vadd.f32 %v8265_v39, %v8264_v35 }
 0x4a6   : > { %v5169_v3 = vmul.f32 %v5066_v38, %v4766_v28 }
 0x4a8   : > { %v5959_v50 = vpack.c.bf16 %v5169_v3, %v5168_v42  ;;  %v5330_v41 = vadd.f32 %v5329_v15, %v5169_v3  ;;  %v5391_v40 = vmul.f32 %v5169_v3, %v5169_v3  ;;  %v5081_v42 = vpop.permute.xlu2 %5080  ;;  %v5086_v3 = vpop.permute.xlu0 %5085 }
 0x4a9   : > { %v4413_v45 = vpop.f32.mrf.mxu2  ;;  %v4589_v26 = vpop.f32.mrf.mxu3 }
 0x4aa   : > { %6040 = vst [vmem:[%s7846_s22 + $0xa0] sm:$0xff] %v5959_v50   ;;  %v5444_v34 = vadd.f32 %v5443_v18, %v5391_v40  ;;  %v4590_v20 = vadd.f32 %v4589_v26, %v4411_v60  ;;  %v4771_v53 = vpop.f32.mrf.mxu0  ;;  %v4234_v31 = vpop.f32.mrf.mxu1 }
 0x4ab   : > { %v4235_v21 = vadd.f32 %v4234_v31, %v4056_v25  ;;  %v8268_v25 = vld [vmem:[#allocation9_spill] sm:$0xff] }
 0x4ac   : > { %v4769_v55 = vadd.f32 %v4768_v43, %v4590_v20  ;;  %v8267_v43 = vld [vmem:[#allocation56_spill] sm:$0xff] }
 0x4ad   : > { %v4414_v14 = vadd.f32 %v4413_v45, %v4235_v21  ;;  %v4065_v28 = vadd.f32 %v8267_v43, %v8266_v36 }
 0x4ae   : > { %v5170_v5 = vmul.f32 %v5071_v52, %v4769_v55 }
 0x4b0   : > { %v5331_v2 = vadd.f32 %v5330_v41, %v5170_v5  ;;  %v5392_v33 = vmul.f32 %v5170_v5, %v5170_v5 }
 0x4b1   : > { %v4416_v9 = vpop.f32.mrf.mxu2  ;;  %v4592_v54 = vpop.f32.mrf.mxu3 }
 0x4b2   : > { %v5445_v0 = vadd.f32 %v5444_v34, %v5392_v33  ;;  %v4593_v6 = vadd.f32 %v4592_v54, %v4414_v14  ;;  %v4774_v47 = vpop.f32.mrf.mxu0  ;;  %v4237_v1 = vpop.f32.mrf.mxu1 }
 0x4b3   : > { %v4238_v56 = vadd.f32 %v4237_v1, %v4059_v30  ;;  %v8270_v30 = vld [vmem:[#allocation10_spill] sm:$0xff] }
 0x4b4   : > { %v4772_v16 = vadd.f32 %v4771_v53, %v4593_v6  ;;  %v8269_v53 = vld [vmem:[#allocation57_spill] sm:$0xff] }
 0x4b5   : > { %v4417_v19 = vadd.f32 %v4416_v9, %v4238_v56  ;;  %v4068_v55 = vadd.f32 %v8269_v53, %v8268_v25 }
 0x4b6   : > { %v5171_v37 = vmul.f32 %v5076_v11, %v4772_v16 }
 0x4b8   : > { %v5964_v48 = vpack.c.bf16 %v5171_v37, %v5170_v5  ;;  %v5332_v63 = vadd.f32 %v5331_v2, %v5171_v37  ;;  %v5393_v8 = vmul.f32 %v5171_v37, %v5171_v37  ;;  %v5091_v5 = vpop.permute.xlu1 %5090  ;;  %v5096_v37 = vpop.permute.xlu2 %5095 }
 0x4b9   : > { %v4419_v7 = vpop.f32.mrf.mxu2  ;;  %v4595_v24 = vpop.f32.mrf.mxu3 }
 0x4ba   : > { %6041 = vst [vmem:[%s7846_s22 + $0xa8] sm:$0xff] %v5964_v48   ;;  %v5446_v62 = vadd.f32 %v5445_v0, %v5393_v8  ;;  %v4596_v44 = vadd.f32 %v4595_v24, %v4417_v19  ;;  %v4777_v27 = vpop.f32.mrf.mxu0  ;;  %v4240_v23 = vpop.f32.mrf.mxu1 }
 0x4bb   : > { %v4241_v15 = vadd.f32 %v4240_v23, %v4062_v51  ;;  %v8272_v51 = vld [vmem:[#allocation11_spill] sm:$0xff] }
 0x4bc   : > { %v4775_v13 = vadd.f32 %v4774_v47, %v4596_v44  ;;  %v8271_v47 = vld [vmem:[#allocation58_spill] sm:$0xff] }
 0x4bd   : > { %v4420_v57 = vadd.f32 %v4419_v7, %v4241_v15  ;;  %v4071_v16 = vadd.f32 %v8271_v47, %v8270_v30  ;;  %v8278_v47 = vld [vmem:[#allocation17_spill] sm:$0xff] }
 0x4be   : > { %v5172_v17 = vmul.f32 %v5081_v42, %v4775_v13 }
 0x4c0   : > { %v5333_v58 = vadd.f32 %v5332_v63, %v5172_v17  ;;  %v5394_v46 = vmul.f32 %v5172_v17, %v5172_v17 }
 0x4c1   : > { %v4422_v18 = vpop.f32.mrf.mxu2  ;;  %v4598_v10 = vpop.f32.mrf.mxu3 }
 0x4c2   : > { %v5447_v12 = vadd.f32 %v5446_v62, %v5394_v46  ;;  %v4599_v29 = vadd.f32 %v4598_v10, %v4420_v57  ;;  %v4780_v4 = vpop.f32.mrf.mxu0  ;;  %v4243_v49 = vpop.f32.mrf.mxu1 }
 0x4c3   : > { %v4244_v50 = vadd.f32 %v4243_v49, %v4065_v28  ;;  %v8274_v28 = vld [vmem:[#allocation12_spill] sm:$0xff] }
 0x4c4   : > { %v4778_v38 = vadd.f32 %v4777_v27, %v4599_v29  ;;  %v8273_v27 = vld [vmem:[#allocation59_spill] sm:$0xff] }
 0x4c5   : > { %v4423_v26 = vadd.f32 %v4422_v18, %v4244_v50  ;;  %v4074_v13 = vadd.f32 %v8273_v27, %v8272_v51  ;;  %v5106_v50 = vpop.permute.xlu1 %5105  ;;  %v8280_v27 = vld [vmem:[#allocation18_spill] sm:$0xff] }
 0x4c6   : > { %v5173_v41 = vmul.f32 %v5086_v3, %v4778_v38 }
 0x4c8   : > { %v5969_v40 = vpack.c.bf16 %v5173_v41, %v5172_v17  ;;  %v5334_v60 = vadd.f32 %v5333_v58, %v5173_v41  ;;  %v5395_v45 = vmul.f32 %v5173_v41, %v5173_v41  ;;  %v5101_v17 = vpop.permute.xlu0 %5100 }
 0x4c9   : > { %v4425_v34 = vpop.f32.mrf.mxu2  ;;  %v4601_v20 = vpop.f32.mrf.mxu3 }
 0x4ca   : > { %6042 = vst [vmem:[%s7846_s22 + $0xb0] sm:$0xff] %v5969_v40   ;;  %v5448_v59 = vadd.f32 %v5447_v12, %v5395_v45  ;;  %v4602_v22 = vadd.f32 %v4601_v20, %v4423_v26  ;;  %v4783_v31 = vpop.f32.mrf.mxu0  ;;  %v4246_v21 = vpop.f32.mrf.mxu1 }
 0x4cb   : > { %v4247_v2 = vadd.f32 %v4246_v21, %v4068_v55  ;;  %v8276_v55 = vld [vmem:[#allocation14_spill] sm:$0xff] }
 0x4cc   : > { %v4781_v52 = vadd.f32 %v4780_v4, %v4602_v22  ;;  %v8275_v4 = vld [vmem:[#allocation60_spill] sm:$0xff] }
 0x4cd   : > { %v4426_v54 = vadd.f32 %v4425_v34, %v4247_v2  ;;  %v4077_v38 = vadd.f32 %v8275_v4, %v8274_v28  ;;  %v5111_v2 = vpop.permute.xlu2 %5110 }
 0x4ce   : > { %v5174_v33 = vmul.f32 %v5091_v5, %v4781_v52 }
 0x4d0   : > { %v5335_v14 = vadd.f32 %v5334_v60, %v5174_v33  ;;  %v5396_v9 = vmul.f32 %v5174_v33, %v5174_v33 }
 0x4d1   : > { %v4428_v0 = vpop.f32.mrf.mxu2  ;;  %v4604_v6 = vpop.f32.mrf.mxu3 }
 0x4d2   : > { %v5449_v32 = vadd.f32 %v5448_v59, %v5396_v9  ;;  %v4605_v61 = vadd.f32 %v4604_v6, %v4426_v54  ;;  %v4786_v1 = vpop.f32.mrf.mxu0  ;;  %v4249_v56 = vpop.f32.mrf.mxu1 }
 0x4d3   : > { %v4250_v48 = vadd.f32 %v4249_v56, %v4071_v16  ;;  %v8279_v16 = vld [vmem:[#allocation62_spill] sm:$0xff] }
 0x4d4   : > { %v4784_v11 = vadd.f32 %v4783_v31, %v4605_v61  ;;  %v8277_v31 = vld [vmem:[#allocation61_spill] sm:$0xff] }
 0x4d5   : > { %v4429_v24 = vadd.f32 %v4428_v0, %v4250_v48  ;;  %v4080_v52 = vadd.f32 %v8277_v31, %v8276_v55 }
 0x4d6   : > { %v5175_v63 = vmul.f32 %v5096_v37, %v4784_v11  ;;  %v5116_v37 = vpop.permute.xlu0 %5115 }
 0x4d8   : > { %v5974_v8 = vpack.c.bf16 %v5175_v63, %v5174_v33  ;;  %v5336_v19 = vadd.f32 %v5335_v14, %v5175_v63  ;;  %v5397_v7 = vmul.f32 %v5175_v63, %v5175_v63 }
 0x4d9   : > { %v4431_v62 = vpop.f32.mrf.mxu2  ;;  %v4607_v44 = vpop.f32.mrf.mxu3 }
 0x4da   : > { %6043 = vst [vmem:[%s7846_s22 + $0xb8] sm:$0xff] %v5974_v8   ;;  %v5450_v35 = vadd.f32 %v5449_v32, %v5397_v7  ;;  %v4608_v39 = vadd.f32 %v4607_v44, %v4429_v24  ;;  %v4789_v23 = vpop.f32.mrf.mxu0  ;;  %v4252_v15 = vpop.f32.mrf.mxu1 }
 0x4db   : > { %v4253_v58 = vadd.f32 %v4252_v15, %v4074_v13  ;;  %v8281_v13 = vld [vmem:[#allocation63_spill] sm:$0xff] }
 0x4dc   : > { %v4787_v42 = vadd.f32 %v4786_v1, %v4608_v39  ;;  %v4083_v1 = vadd.f32 %v8279_v16, %v8278_v47 }
 0x4dd   : > { %v4432_v10 = vadd.f32 %v4431_v62, %v4253_v58 }
 0x4de   : > { %v5176_v46 = vmul.f32 %v5101_v17, %v4787_v42  ;;  %v5121_v17 = vpop.permute.xlu1 %5120 }
 0x4e0   : > { %v5337_v57 = vadd.f32 %v5336_v19, %v5176_v46  ;;  %v5398_v18 = vmul.f32 %v5176_v46, %v5176_v46 }
 0x4e1   : > { %v4434_v12 = vpop.f32.mrf.mxu2  ;;  %v4610_v29 = vpop.f32.mrf.mxu3 }
 0x4e2   : > { %v5451_v36 = vadd.f32 %v5450_v35, %v5398_v18  ;;  %v4611_v43 = vadd.f32 %v4610_v29, %v4432_v10  ;;  %v4255_v3 = vpop.f32.mrf.mxu1  ;;  %v4792_v40 = vpop.f32.mrf.mxu0 }
 0x4e3   : > { %v4256_v41 = vadd.f32 %v4255_v3, %v4077_v38  ;;  %v5126_v38 = vpop.permute.xlu2 %5125 }
 0x4e4   : > { %v4790_v49 = vadd.f32 %v4789_v23, %v4611_v43  ;;  %v4086_v23 = vadd.f32 %v8281_v13, %v8280_v27 }
 0x4e5   : > { %v4435_v20 = vadd.f32 %v4434_v12, %v4256_v41 }
 0x4e6   : > { %v5177_v60 = vmul.f32 %v5106_v50, %v4790_v49 }
 0x4e8   : > { %v5979_v45 = vpack.c.bf16 %v5177_v60, %v5176_v46  ;;  %v5338_v26 = vadd.f32 %v5337_v57, %v5177_v60  ;;  %v5399_v34 = vmul.f32 %v5177_v60, %v5177_v60 }
 0x4e9   : > { %v4613_v59 = vpop.f32.mrf.mxu3  ;;  %v4437_v53 = vpop.f32.mrf.mxu2 }
 0x4ea   : > { %6044 = vst [vmem:[%s7846_s22 + $0xc0] sm:$0xff] %v5979_v45   ;;  %v5452_v22 = vadd.f32 %v5451_v36, %v5399_v34  ;;  %v4614_v25 = vadd.f32 %v4613_v59, %v4435_v20  ;;  %v4258_v5 = vpop.f32.mrf.mxu1  ;;  %v4795_v9 = vpop.f32.mrf.mxu0 }
 0x4eb   : > { %v4259_v33 = vadd.f32 %v4258_v5, %v4080_v52 }
 0x4ec   : > { %v4793_v21 = vadd.f32 %v4792_v40, %v4614_v25 }
 0x4ed   : > { %v4438_v6 = vadd.f32 %v4437_v53, %v4259_v33 }
 0x4ee   : > { %v5178_v14 = vmul.f32 %v5111_v2, %v4793_v21 }
 0x4f0   : > { %v5339_v54 = vadd.f32 %v5338_v26, %v5178_v14  ;;  %v5400_v0 = vmul.f32 %v5178_v14, %v5178_v14 }
 0x4f1   : > { %v4616_v32 = vpop.f32.mrf.mxu3  ;;  %v4440_v48 = vpop.f32.mrf.mxu2 }
 0x4f2   : > { %v5453_v61 = vadd.f32 %v5452_v22, %v5400_v0  ;;  %v4617_v30 = vadd.f32 %v4616_v32, %v4438_v6  ;;  %v4261_v56 = vpop.f32.mrf.mxu1  ;;  %v4798_v44 = vpop.f32.mrf.mxu0 }
 0x4f3   : > { %v4262_v63 = vadd.f32 %v4261_v56, %v4083_v1 }
 0x4f4   : > { %v4796_v11 = vadd.f32 %v4795_v9, %v4617_v30 }
 0x4f5   : > { %v4441_v62 = vadd.f32 %v4440_v48, %v4262_v63 }
 0x4f6   : > { %v5179_v8 = vmul.f32 %v5116_v37, %v4796_v11 }
 0x4f8   : > { %v5984_v19 = vpack.c.bf16 %v5179_v8, %v5178_v14  ;;  %v5340_v7 = vadd.f32 %v5339_v54, %v5179_v8  ;;  %v5401_v24 = vmul.f32 %v5179_v8, %v5179_v8 }
 0x4f9   : > { %v4619_v35 = vpop.f32.mrf.mxu3  ;;  %v4443_v57 = vpop.f32.mrf.mxu2 }
 0x4fa   : > { %6045 = vst [vmem:[%s7846_s22 + $0xc8] sm:$0xff] %v5984_v19   ;;  %v5454_v39 = vadd.f32 %v5453_v61, %v5401_v24  ;;  %v4620_v51 = vadd.f32 %v4619_v35, %v4441_v62  ;;  %v4264_v15 = vpop.f32.mrf.mxu1  ;;  %v4801_v28 = vpop.f32.mrf.mxu0 }
 0x4fb   : > { %v4265_v58 = vadd.f32 %v4264_v15, %v4086_v23 }
 0x4fc   : > { %v4799_v42 = vadd.f32 %v4798_v44, %v4620_v51 }
 0x4fd   : > { %v4444_v12 = vadd.f32 %v4443_v57, %v4265_v58 }
 0x4fe   : > { %v5180_v46 = vmul.f32 %v5121_v17, %v4799_v42 }
 0x500   : > { %v5341_v18 = vadd.f32 %v5340_v7, %v5180_v46  ;;  %v5402_v10 = vmul.f32 %v5180_v46, %v5180_v46 }
 0x501   : > { %v4622_v29 = vpop.f32.mrf.mxu3 }
 0x502   : > { %v5455_v36 = vadd.f32 %v5454_v39, %v5402_v10  ;;  %v4623_v43 = vadd.f32 %v4622_v29, %v4444_v12 }
 0x504   : > { %v4802_v4 = vadd.f32 %v4801_v28, %v4623_v43 }
 0x506   : > { %v5181_v49 = vmul.f32 %v5126_v38, %v4802_v4 }
 0x508   : > { %v5989_v3 = vpack.c.bf16 %v5181_v49, %v5180_v46  ;;  %v5342_v50 = vadd.f32 %v5341_v18, %v5181_v49  ;;  %v5403_v41 = vmul.f32 %v5181_v49, %v5181_v49 }
 0x50a   : > { %6046 = vst [vmem:[%s7846_s22 + $0xd0] sm:$0xff] %v5989_v3   ;;  %v5343_v40 = vrot.slane %v5342_v50, 4  ;;  %v5456_v60 = vadd.f32 %v5455_v36, %v5403_v41 }
 0x50c   : > { %v5344_v45 = vadd.f32 %v5343_v40, %v5342_v50  ;;  %v5457_v26 = vrot.slane %v5456_v60, 4 }
 0x50e   : > { %v5345_v34 = vrot.slane %v5344_v45, 2  ;;  %v5458_v20 = vadd.f32 %v5457_v26, %v5456_v60 }
 0x510   : > { %v5346_v59 = vadd.f32 %v5345_v34, %v5344_v45  ;;  %v5459_v22 = vrot.slane %v5458_v20, 2 }
 0x512   : > { %v5347_v25 = vrot.slane %v5346_v59, 1  ;;  %v5460_v53 = vadd.f32 %v5459_v22, %v5458_v20 }
 0x514   : > { %v5348_v55 = vadd.f32 %v5347_v25, %v5346_v59  ;;  %v5461_v31 = vrot.slane %v5460_v53, 1 }
 0x516   : > { %5349 = vst [vmem:[%s702_s24] sm:$0x1] %v5348_v55  ;;  %v5462_v52 = vadd.f32 %v5461_v31, %v5460_v53 }
 0x518   : > { %5463 = vst [vmem:[%s708_s29] sm:$0x1] %v5462_v52 }
 0x519 PF: > { %s22_s19 = sadd.s32 1, %s6159_s19   ;;  %s8282_s17 = smov %s6155_s18 }
 0x51a   : > { %p19_p5 = scmp.ge.s32.totalorder %s22_s19, 4   ;;  %s8283_s18 = smov %s8285_s20 }
 0x51c   :  { %21 = sbr.rel (!%p19_p5) target bundleno = 2 (0x2), region = 125 }

</bundles_post_ra>
